<compile_context>
chip_gen: v5e
topology: v5e:2x2
jax: 0.10.0
libtpu: 0.0.40
codegen_flags: <defaults>
</compile_context>

<pallas_src>
import functools

import numpy as np

import jax
import jax.numpy as jnp
from jax.experimental import pallas as pl
from jax.experimental.pallas import tpu as pltpu

EPS = 1e-5
CONV_TM = 512                     # row tile for conv / matmul kernels
ROW_TM = 512                      # row tile for elementwise finalize kernels
VMEM_LIMIT = 32 * 1024 * 1024


def _round_up(x, m):
    return ((x + m - 1) // m) * m


def _compiler_params(sem):
    return pltpu.CompilerParams(dimension_semantics=sem,
                                vmem_limit_bytes=VMEM_LIMIT)


# ------------------------------------------------------------------ kernels

def _conv3x3_stats_kernel(x_ref, w_ref, mask_ref, out_ref, stats_ref, *, wp):
    """Fused 3x3/stride-1 conv over a VMEM-resident padded flat feature map.

    x_ref    : (rows, Cin)  full padded-flat input, resident across the grid
    w_ref    : (9, Cin, Cout) weights (bf16), resident
    mask_ref : (tm, 1) 1.0 for rows that are real (non-padding) outputs
    out_ref  : (tm, Cout) raw (pre-BN) conv output tile, f32
    stats_ref: (2, Cout) accumulated [sum, sum_sq] over valid rows
    """
    tm = out_ref.shape[0]
    base = pl.program_id(0) * tm

    @pl.when(pl.program_id(0) == 0)
    def _init():
        stats_ref[...] = jnp.zeros_like(stats_ref)

    acc = jnp.zeros(out_ref.shape, jnp.float32)
    for dy in range(3):
        for dx in range(3):
            # tap (dy,dx) of the 3x3 stencil == a constant row shift in the
            # padded-flat space -> contiguous pl.ds slice, no HBM im2col.
            xs = x_ref[pl.ds(base + dy * wp + dx, tm), :].astype(jnp.bfloat16)
            acc += jnp.dot(xs, w_ref[dy * 3 + dx],
                           preferred_element_type=jnp.float32)
    out_ref[...] = acc

    # single-pass BN stats (sum and sum of squares) over valid rows only
    ym = acc * mask_ref[...]
    stats_ref[...] += jnp.concatenate(
        [jnp.sum(ym, axis=0, keepdims=True),
         jnp.sum(ym * acc, axis=0, keepdims=True)], axis=0)


def _matmul_stats_kernel(x_ref, w_ref, out_ref, stats_ref):
    @pl.when(pl.program_id(0) == 0)
    def _init():
        stats_ref[...] = jnp.zeros_like(stats_ref)
    y = jnp.dot(x_ref[...], w_ref[...], preferred_element_type=jnp.float32)
    out_ref[...] = y
    stats_ref[...] += jnp.concatenate(
        [jnp.sum(y, axis=0, keepdims=True),
         jnp.sum(y * y, axis=0, keepdims=True)], axis=0)


def _matmul_kernel(x_ref, w_ref, out_ref):
    out_ref[...] = jnp.dot(x_ref[...], w_ref[...],
                           preferred_element_type=jnp.float32)


def _stats_kernel(y_ref, stats_ref):
    @pl.when(pl.program_id(0) == 0)
    def _init():
        stats_ref[...] = jnp.zeros_like(stats_ref)
    y = y_ref[...]
    stats_ref[...] += jnp.concatenate(
        [jnp.sum(y, axis=0, keepdims=True),
         jnp.sum(y * y, axis=0, keepdims=True)], axis=0)


def _bn_relu_kernel(y_ref, a_ref, b_ref, o_ref):
    o_ref[...] = jnp.maximum(y_ref[...] * a_ref[...] + b_ref[...], 0.0)


def _bn_relu_add_relu_kernel(y_ref, sc_ref, a_ref, b_ref, o_ref):
    h = jnp.maximum(y_ref[...] * a_ref[...] + b_ref[...], 0.0)
    o_ref[...] = jnp.maximum(h + sc_ref[...], 0.0)


def _bn_relu_add_bnsc_relu_kernel(y_ref, ysc_ref, a_ref, b_ref,
                                  asc_ref, bsc_ref, o_ref):
    h = jnp.maximum(y_ref[...] * a_ref[...] + b_ref[...], 0.0)
    sc = ysc_ref[...] * asc_ref[...] + bsc_ref[...]
    o_ref[...] = jnp.maximum(h + sc, 0.0)


def _gap_fc_kernel(x_ref, w_ref, b_ref, o_ref):
    gap = jnp.mean(x_ref[...], axis=1)
    o_ref[...] = jnp.dot(gap, w_ref[...],
                         preferred_element_type=jnp.float32) + b_ref[...]


# ------------------------------------------------------------ conv wrappers

def _valid_row_mask(b, h, w, m_pad):
    """1.0 for computed padded-flat rows that are real output positions."""
    hp, wp = h + 2, w + 2
    g = wp + 1
    o = np.arange(m_pad)
    p = o + g
    i = (p % (hp * wp)) // wp
    j = p % wp
    valid = ((o < b * hp * wp - 2 * g) &
             (i >= 1) & (i <= h) & (j >= 1) & (j <= w))
    return jnp.asarray(valid.astype(np.float32)[:, None])


def conv3x3_stats(x, w):
    """3x3 / stride-1 / pad-1 conv, no bias.  x: (B,H,W,Cin), w: (3,3,Cin,Cout).

    Returns (raw, sums): pre-BN output rows (B*H*W, Cout) f32 and in-kernel
    per-channel [sum, sum_sq] over exactly those rows.
    """
    b, h, w_sp, cin = x.shape
    cout = w.shape[-1]
    hp, wp = h + 2, w_sp + 2
    g = wp + 1
    mp = b * hp * wp
    m_out = mp - 2 * g                        # rows computed in padded space
    tm = min(CONV_TM, _round_up(m_out, 8))
    m_pad = _round_up(m_out, tm)
    nt = m_pad // tm

    xf = jnp.pad(x, ((0, 0), (1, 1), (1, 1), (0, 0))).reshape(mp, cin)
    xf = jnp.pad(xf, ((0, m_pad + 2 * g - mp), (0, 0)))     # tail zeros
    wt = w.reshape(9, cin, cout).astype(jnp.bfloat16)
    mask = _valid_row_mask(b, h, w_sp, m_pad)

    kern = functools.partial(_conv3x3_stats_kernel, wp=wp)
    raw, sums = pl.pallas_call(
        kern,
        grid=(nt,),
        in_specs=[
            pl.BlockSpec(xf.shape, lambda i: (0, 0)),        # resident input
            pl.BlockSpec(wt.shape, lambda i: (0, 0, 0)),     # resident weights
            pl.BlockSpec((tm, 1), lambda i: (i, 0)),
        ],
        out_specs=[
            pl.BlockSpec((tm, cout), lambda i: (i, 0)),
            pl.BlockSpec((2, cout), lambda i: (0, 0)),       # stats accumulator
        ],
        out_shape=[
            jax.ShapeDtypeStruct((m_pad, cout), jnp.float32),
            jax.ShapeDtypeStruct((2, cout), jnp.float32),
        ],
        # Stats accumulate across the row grid -> 'arbitrary'.  For v7x
        # megacore one would emit per-tile partial stats and mark 'parallel'.
        compiler_params=_compiler_params(("arbitrary",)),
    )(xf, wt, mask)

    # Put the computed rows back into padded-flat space, strip the pad ring.
    valid = jnp.pad(raw[:m_out], ((g, g), (0, 0))).reshape(b, hp, wp, cout)
    valid = valid[:, 1:h + 1, 1:w_sp + 1, :].reshape(b * h * w_sp, cout)
    return valid, sums


def matmul_conv(x2d, w2d, *, with_stats):
    """Conv-as-matmul (im2col path), row-tiled, optional fused BN stats."""
    m, k = x2d.shape
    cout = w2d.shape[-1]
    tm = min(CONV_TM, _round_up(m, 8))
    m_pad = _round_up(m, tm)
    nt = m_pad // tm
    xp = jnp.pad(x2d, ((0, m_pad - m), (0, 0))).astype(jnp.bfloat16)
    wb = w2d.astype(jnp.bfloat16)

    x_spec = pl.BlockSpec((tm, k), lambda i: (i, 0))
    w_spec = pl.BlockSpec((k, cout), lambda i: (0, 0))
    o_spec = pl.BlockSpec((tm, cout), lambda i: (i, 0))

    if with_stats:
        raw, sums = pl.pallas_call(
            _matmul_stats_kernel,
            grid=(nt,),
            in_specs=[x_spec, w_spec],
            out_specs=[o_spec, pl.BlockSpec((2, cout), lambda i: (0, 0))],
            out_shape=[jax.ShapeDtypeStruct((m_pad, cout), jnp.float32),
                       jax.ShapeDtypeStruct((2, cout), jnp.float32)],
            compiler_params=_compiler_params(("arbitrary",)),
        )(xp, wb)
        return raw[:m], sums

    raw = pl.pallas_call(
        _matmul_kernel,
        grid=(nt,),
        in_specs=[x_spec, w_spec],
        out_specs=o_spec,
        out_shape=jax.ShapeDtypeStruct((m_pad, cout), jnp.float32),
        compiler_params=_compiler_params(("parallel",)),
    )(xp, wb)
    return raw[:m]


def channel_stats(y2d):
    """Per-channel [sum, sum_sq] of a (M, C) activation matrix."""
    m, c = y2d.shape
    tm = min(CONV_TM, _round_up(m, 8))
    m_pad = _round_up(m, tm)
    yp = jnp.pad(y2d, ((0, m_pad - m), (0, 0)))
    nt = m_pad // tm
    return pl.pallas_call(
        _stats_kernel,
        grid=(nt,),
        in_specs=[pl.BlockSpec((tm, c), lambda i: (i, 0))],
        out_specs=pl.BlockSpec((2, c), lambda i: (0, 0)),
        out_shape=jax.ShapeDtypeStruct((2, c), jnp.float32),
        compiler_params=_compiler_params(("arbitrary",)),
    )(yp)


def bn_scale_shift(sums, count, gamma, beta):
    """Fold training-mode BN (biased variance) into per-channel scale/shift."""
    mean = sums[0] / count
    var = jnp.maximum(sums[1] / count - mean * mean, 0.0)
    scale = gamma * jax.lax.rsqrt(var + EPS)
    shift = beta - mean * scale
    return scale.reshape(1, -1), shift.reshape(1, -1)


def rowwise_call(kernel, rows, vecs, m, c):
    """Row-tiled elementwise finalize call.  `rows` are (m, c) f32 arrays
    (tiled over the grid), `vecs` are (1, c) per-channel vectors (resident).
    Rows are folded into the lane dim when c < 128 so stores are lane-dense."""
    fold = 128 // c if (c < 128 and 128 % c == 0) else 1
    m_f = _round_up(m, fold)
    cc = c * fold
    rows = [jnp.pad(r, ((0, m_f - m), (0, 0))).reshape(m_f // fold, cc)
            for r in rows]
    vecs = [jnp.tile(v, (1, fold)) for v in vecs]
    mm = m_f // fold
    tm = min(ROW_TM, _round_up(mm, 8))
    m_pad = _round_up(mm, tm)
    rows = [jnp.pad(r, ((0, m_pad - mm), (0, 0))) for r in rows]
    nt = m_pad // tm
    row_spec = pl.BlockSpec((tm, cc), lambda i: (i, 0))
    vec_spec = pl.BlockSpec((1, cc), lambda i: (0, 0))
    out = pl.pallas_call(
        kernel,
        grid=(nt,),
        in_specs=[row_spec] * len(rows) + [vec_spec] * len(vecs),
        out_specs=row_spec,
        out_shape=jax.ShapeDtypeStruct((m_pad, cc), jnp.float32),
        compiler_params=_compiler_params(("parallel",)),
    )(*rows, *vecs)
    return out[:mm].reshape(m_f, c)[:m]


# ----------------------------------------------------------------- JAX glue

def _im2col(x, kh, kw, stride, pad):
    """x: (B,H,W,C) -> (B*Ho*Wo, kh*kw*C) patches, feature order (kh,kw,C)."""
    b, h, w, c = x.shape
    xp = jnp.pad(x, ((0, 0), (pad, pad), (pad, pad), (0, 0)))
    ho = (h + 2 * pad - kh) // stride + 1
    wo = (w + 2 * pad - kw) // stride + 1
    cols = []
    for dy in range(kh):
        for dx in range(kw):
            cols.append(xp[:, dy:dy + stride * ho:stride,
                           dx:dx + stride * wo:stride, :])
    patches = jnp.concatenate(cols, axis=-1)
    return patches.reshape(b * ho * wo, kh * kw * c), ho, wo


def layer0(x, p):
    """Conv7x7/s2/p3 -> MaxPool3x3/s2/p1 -> BN -> ReLU (torch ordering).
    Conv bias is skipped: a per-channel constant commutes through the max
    and cancels in the BN mean subtraction."""
    b = x.shape[0]
    cout = p["l0_w"].shape[-1]
    patches, ho, wo = _im2col(x, 7, 7, stride=2, pad=3)      # Cin=3: keep im2col
    conv = matmul_conv(patches, p["l0_w"].reshape(-1, cout),
                       with_stats=False).reshape(b, ho, wo, cout)

    # 3x3/s2/p1 max pool as a pairwise-max tree (no 9x window stack in HBM).
    hp_, wp_ = ho // 2, wo // 2
    xp = jnp.pad(conv, ((0, 0), (1, 1), (1, 1), (0, 0)),
                 constant_values=-jnp.inf)
    pooled = None
    for dy in range(3):
        for dx in range(3):
            s = xp[:, dy:dy + 2 * hp_:2, dx:dx + 2 * wp_:2, :]
            pooled = s if pooled is None else jnp.maximum(pooled, s)

    m = b * hp_ * wp_
    pooled2 = pooled.reshape(m, cout)
    sums = channel_stats(pooled2)
    a, bb = bn_scale_shift(sums, m, p["l0_g"], p["l0_bt"])
    out = rowwise_call(_bn_relu_kernel, [pooled2], [a, bb], m, cout)
    return out.reshape(b, hp_, wp_, cout)


def resblock(x, p, *, downsample):
    b, h, w, cin = x.shape
    cout = p["w1"].shape[-1]

    if downsample:
        # conv1: 3x3/stride-2 -- stride breaks the flat row-shift trick, so
        # it goes through im2col (a single small conv); stats fused in-kernel.
        patches, ho, wo = _im2col(x, 3, 3, stride=2, pad=1)
        m = b * ho * wo
        raw1, s1 = matmul_conv(patches, p["w1"].reshape(9 * cin, cout),
                               with_stats=True)
        a1, b1 = bn_scale_shift(s1, m, p["g1"], p["bt1"])
        hact = rowwise_call(_bn_relu_kernel, [raw1], [a1, b1], m, cout)

        # 1x1/stride-2 shortcut conv; its BN is fused into the final kernel.
        xs = x[:, ::2, ::2, :].reshape(m, cin)
        raw_sc, s_sc = matmul_conv(xs, p["sc_w"].reshape(cin, cout),
                                   with_stats=True)
        asc, bsc = bn_scale_shift(s_sc, m, p["sc_g"], p["sc_bt"])

        # conv2: 3x3/stride-1 with in-kernel taps + stats; finalize fuses
        # bn2 + relu + (shortcut BN) + add + relu in one pass.
        raw2, s2 = conv3x3_stats(hact.reshape(b, ho, wo, cout), p["w2"])
        a2, b2 = bn_scale_shift(s2, m, p["g2"], p["bt2"])
        out = rowwise_call(_bn_relu_add_bnsc_relu_kernel,
                           [raw2, raw_sc], [a2, b2, asc, bsc], m, cout)
        return out.reshape(b, ho, wo, cout)

    m = b * h * w
    raw1, s1 = conv3x3_stats(x, p["w1"])
    a1, b1 = bn_scale_shift(s1, m, p["g1"], p["bt1"])
    hact = rowwise_call(_bn_relu_kernel, [raw1], [a1, b1], m, cout)

    raw2, s2 = conv3x3_stats(hact.reshape(b, h, w, cout), p["w2"])
    a2, b2 = bn_scale_shift(s2, m, p["g2"], p["bt2"])
    out = rowwise_call(_bn_relu_add_relu_kernel,
                       [raw2, x.reshape(m, cin)], [a2, b2], m, cout)
    return out.reshape(b, h, w, cout)


def resnet_small_forward(x_nchw, params):
    x = jnp.transpose(x_nchw, (0, 2, 3, 1)).astype(jnp.float32)  # NCHW -> NHWC
    x = layer0(x, params)
    x = resblock(x, params["l1b0"], downsample=False)
    x = resblock(x, params["l1b1"], downsample=False)
    x = resblock(x, params["l2b0"], downsample=True)
    x = resblock(x, params["l2b1"], downsample=False)

    b, h, w, c = x.shape
    ncls = params["fc_w"].shape[1]
    # GAP + FC fused in one tiny whole-block kernel (operands are a few
    # hundred KB total; tiling this one would be pure overhead).
    out = pl.pallas_call(
        _gap_fc_kernel,
        grid=(1,),
        in_specs=[pl.BlockSpec((b, h * w, c), lambda i: (0, 0, 0)),
                  pl.BlockSpec((c, ncls), lambda i: (0, 0)),
                  pl.BlockSpec((1, ncls), lambda i: (0, 0))],
        out_specs=pl.BlockSpec((b, ncls), lambda i: (0, 0)),
        out_shape=jax.ShapeDtypeStruct((b, ncls), jnp.float32),
        compiler_params=_compiler_params(("arbitrary",)),
    )(x.reshape(b, h * w, c), params["fc_w"], params["fc_b"].reshape(1, ncls))
    return out


# -------------------------------------------------------------- param init

def _conv_init(key, kh, kw, cin, cout):
    k1, k2 = jax.random.split(key)
    fan_in = kh * kw * cin
    w = jax.random.normal(k1, (kh, kw, cin, cout), jnp.float32) / jnp.sqrt(fan_in)
    # Conv biases are kept for parity with the torch module but are not
    # applied in the forward: they cancel exactly through training-mode BN
    # (and through the max-pool for layer0).
    b = jax.random.normal(k2, (cout,), jnp.float32) * 0.01
    return w, b


def _bn_init(cout):
    return jnp.ones((cout,), jnp.float32), jnp.zeros((cout,), jnp.float32)


def _block_init(key, cin, cout, downsample):
    ks = jax.random.split(key, 3)
    p = {}
    p["w1"], p["b1"] = _conv_init(ks[0], 3, 3, cin, cout)
    p["g1"], p["bt1"] = _bn_init(cout)
    p["w2"], p["b2"] = _conv_init(ks[1], 3, 3, cout, cout)
    p["g2"], p["bt2"] = _bn_init(cout)
    if downsample:
        p["sc_w"], p["sc_b"] = _conv_init(ks[2], 1, 1, cin, cout)
        p["sc_g"], p["sc_bt"] = _bn_init(cout)
    return p


def init_params(key, in_channels, num_classes):
    ks = jax.random.split(key, 7)
    p = {}
    p["l0_w"], p["l0_b"] = _conv_init(ks[0], 7, 7, in_channels, 64)
    p["l0_g"], p["l0_bt"] = _bn_init(64)
    p["l1b0"] = _block_init(ks[1], 64, 64, False)
    p["l1b1"] = _block_init(ks[2], 64, 64, False)
    p["l2b0"] = _block_init(ks[3], 64, 128, True)
    p["l2b1"] = _block_init(ks[4], 128, 128, False)
    p["fc_w"] = jax.random.normal(ks[5], (128, num_classes), jnp.float32) / jnp.sqrt(128.0)
    p["fc_b"] = jax.random.normal(ks[6], (num_classes,), jnp.float32) * 0.01
    return p


# -------------------------------------------------------------------- main

if __name__ == "__main__":
    key = jax.random.PRNGKey(0)
    pk, xk = jax.random.split(key)
    params = init_params(pk, in_channels=3, num_classes=1000)
    x = jax.random.normal(xk, (2, 3, 32, 32), jnp.float32)   # NCHW, like PyTorch
    fwd = jax.jit(resnet_small_forward)
    out = fwd(x, params)
    jax.block_until_ready(out)
    assert out.shape == (2, 1000) and out.dtype == jnp.float32
    assert bool(jnp.all(jnp.isfinite(out)))
    print("KERNEL_OK")
</pallas_src>

<mosaic_0001>
module attributes {stable_mosaic.version = 11 : i64} {
  func.func @_matmul_kernel(%arg0: i32, %arg1: memref<512x147xbf16, #tpu.memory_space<vmem>>, %arg2: memref<147x64xbf16, #tpu.memory_space<vmem>>, %arg3: memref<512x64xf32, #tpu.memory_space<vmem>>) attributes {dimension_semantics = [#tpu.dimension_semantics<parallel>], iteration_bounds = array<i64: 1>, scalar_prefetch = 0 : i64, scratch_operands = 0 : i64, tpu.core_type = #tpu.core_type<tc>, window_params = [{transform_indices = @transform_0, window_bounds = array<i64: 512, 147>}, {pipeline_mode = #tpu.pipeline_mode<synchronous>, transform_indices = @transform_1, window_bounds = array<i64: 147, 64>}, {transform_indices = @transform_2, window_bounds = array<i64: 512, 64>}]} {
    %c0 = arith.constant 0 : index
    %c0_0 = arith.constant 0 : index
    %0 = vector.load %arg1[%c0, %c0_0] : memref<512x147xbf16, #tpu.memory_space<vmem>>, vector<512x147xbf16>
    %c0_1 = arith.constant 0 : index
    %c0_2 = arith.constant 0 : index
    %1 = vector.load %arg2[%c0_1, %c0_2] : memref<147x64xbf16, #tpu.memory_space<vmem>>, vector<147x64xbf16>
    %cst = arith.constant dense<0.000000e+00> : vector<512x64xf32>
    %2 = tpu.matmul %0, %1, %cst {dimension_numbers = #tpu.dot_dimension_numbers<[1], [0], [0], [1], [0, 0, 1, 1], [], []>} : vector<512x147xbf16>, vector<147x64xbf16>, vector<512x64xf32> -> vector<512x64xf32>
    %c0_3 = arith.constant 0 : index
    %c0_4 = arith.constant 0 : index
    %3 = vector.load %arg3[%c0_3, %c0_4] : memref<512x64xf32, #tpu.memory_space<vmem>>, vector<512x64xf32>
    tpu.vector_store %arg3[%c0_3, %c0_4], %2 {strides = array<i32>} : memref<512x64xf32, #tpu.memory_space<vmem>>, vector<512x64xf32>,
    return
  }
  func.func @transform_0(%arg0: i32) -> (i32, i32) {
    %c0_i32 = arith.constant 0 : i32
    %c0_i32_0 = arith.constant 0 : i32
    return %arg0, %c0_i32 : i32, i32
  }
  func.func @transform_1(%arg0: i32) -> (i32, i32) {
    %c0_i32 = arith.constant 0 : i32
    %c0_i32_0 = arith.constant 0 : i32
    %c0_i32_1 = arith.constant 0 : i32
    return %c0_i32, %c0_i32_0 : i32, i32
  }
  func.func @transform_2(%arg0: i32) -> (i32, i32) {
    %c0_i32 = arith.constant 0 : i32
    %c0_i32_0 = arith.constant 0 : i32
    return %arg0, %c0_i32 : i32, i32
  }
}

module attributes {stable_mosaic.version = 11 : i64} {
  func.func @_stats_kernel(%arg0: i32, %arg1: memref<128x64xf32, #tpu.memory_space<vmem>>, %arg2: memref<2x64xf32, #tpu.memory_space<vmem>>) attributes {dimension_semantics = [#tpu.dimension_semantics<arbitrary>], iteration_bounds = array<i64: 1>, scalar_prefetch = 0 : i64, scratch_operands = 0 : i64, tpu.core_type = #tpu.core_type<tc>, window_params = [{transform_indices = @transform_0, window_bounds = array<i64: 128, 64>}, {pipeline_mode = #tpu.pipeline_mode<synchronous>, transform_indices = @transform_1, window_bounds = array<i64: 2, 64>}]} {
    %c0_i32 = arith.constant 0 : i32
    %0 = arith.cmpi eq, %arg0, %c0_i32 : i32
    %1 = arith.extui %0 : i1 to i32
    %c0_i32_0 = arith.constant 0 : i32
    %2 = arith.cmpi ne, %1, %c0_i32_0 : i32
    scf.if %2 {
      %cst_7 = arith.constant 0.000000e+00 : f32
      %13 = vector.broadcast %cst_7 : f32 to vector<2x64xf32>
      %c0_8 = arith.constant 0 : index
      %c0_9 = arith.constant 0 : index
      %14 = vector.load %arg2[%c0_8, %c0_9] : memref<2x64xf32, #tpu.memory_space<vmem>>, vector<2x64xf32>
      tpu.vector_store %arg2[%c0_8, %c0_9], %13 {strides = array<i32>} : memref<2x64xf32, #tpu.memory_space<vmem>>, vector<2x64xf32>,
    } else {
    }
    %c0 = arith.constant 0 : index
    %c0_1 = arith.constant 0 : index
    %3 = vector.load %arg1[%c0, %c0_1] : memref<128x64xf32, #tpu.memory_space<vmem>>, vector<128x64xf32>
    %c0_2 = arith.constant 0 : index
    %c0_3 = arith.constant 0 : index
    %4 = vector.load %arg2[%c0_2, %c0_3] : memref<2x64xf32, #tpu.memory_space<vmem>>, vector<2x64xf32>
    %cst = arith.constant dense<0.000000e+00> : vector<64xf32>
    %5 = vector.multi_reduction <add>, %3, %cst [0] : vector<128x64xf32> to vector<64xf32>
    %6 = vector.shape_cast %5 : vector<64xf32> to vector<1x64xf32>
    %7 = arith.mulf %3, %3 : vector<128x64xf32>
    %cst_4 = arith.constant dense<0.000000e+00> : vector<64xf32>
    %8 = vector.multi_reduction <add>, %7, %cst_4 [0] : vector<128x64xf32> to vector<64xf32>
    %9 = vector.shape_cast %8 : vector<64xf32> to vector<1x64xf32>
    %10 = tpu.concatenate %6, %9 in 0 : vector<1x64xf32>, vector<1x64xf32> -> vector<2x64xf32>
    %11 = arith.addf %4, %10 : vector<2x64xf32>
    %c0_5 = arith.constant 0 : index
    %c0_6 = arith.constant 0 : index
    %12 = vector.load %arg2[%c0_5, %c0_6] : memref<2x64xf32, #tpu.memory_space<vmem>>, vector<2x64xf32>
    tpu.vector_store %arg2[%c0_5, %c0_6], %11 {strides = array<i32>} : memref<2x64xf32, #tpu.memory_space<vmem>>, vector<2x64xf32>,
    return
  }
  func.func @transform_0(%arg0: i32) -> (i32, i32) {
    %c0_i32 = arith.constant 0 : i32
    %c0_i32_0 = arith.constant 0 : i32
    return %arg0, %c0_i32 : i32, i32
  }
  func.func @transform_1(%arg0: i32) -> (i32, i32) {
    %c0_i32 = arith.constant 0 : i32
    %c0_i32_0 = arith.constant 0 : i32
    %c0_i32_1 = arith.constant 0 : i32
    return %c0_i32, %c0_i32_0 : i32, i32
  }
}

module attributes {stable_mosaic.version = 11 : i64} {
  func.func @_bn_relu_kernel(%arg0: i32, %arg1: memref<64x128xf32, #tpu.memory_space<vmem>>, %arg2: memref<1x128xf32, #tpu.memory_space<vmem>>, %arg3: memref<1x128xf32, #tpu.memory_space<vmem>>, %arg4: memref<64x128xf32, #tpu.memory_space<vmem>>) attributes {dimension_semantics = [#tpu.dimension_semantics<parallel>], iteration_bounds = array<i64: 1>, scalar_prefetch = 0 : i64, scratch_operands = 0 : i64, tpu.core_type = #tpu.core_type<tc>, window_params = [{transform_indices = @transform_0, window_bounds = array<i64: 64, 128>}, {pipeline_mode = #tpu.pipeline_mode<synchronous>, transform_indices = @transform_1, window_bounds = array<i64: 1, 128>}, {pipeline_mode = #tpu.pipeline_mode<synchronous>, transform_indices = @transform_2, window_bounds = array<i64: 1, 128>}, {transform_indices = @transform_3, window_bounds = array<i64: 64, 128>}]} {
    %c0 = arith.constant 0 : index
    %c0_0 = arith.constant 0 : index
    %0 = vector.load %arg1[%c0, %c0_0] : memref<64x128xf32, #tpu.memory_space<vmem>>, vector<64x128xf32>
    %c0_1 = arith.constant 0 : index
    %c0_2 = arith.constant 0 : index
    %1 = vector.load %arg2[%c0_1, %c0_2] : memref<1x128xf32, #tpu.memory_space<vmem>>, vector<1x128xf32>
    %2 = vector.broadcast %1 : vector<1x128xf32> to vector<64x128xf32>
    %3 = arith.mulf %0, %2 : vector<64x128xf32>
    %c0_3 = arith.constant 0 : index
    %c0_4 = arith.constant 0 : index
    %4 = vector.load %arg3[%c0_3, %c0_4] : memref<1x128xf32, #tpu.memory_space<vmem>>, vector<1x128xf32>
    %5 = vector.broadcast %4 : vector<1x128xf32> to vector<64x128xf32>
    %6 = arith.addf %3, %5 : vector<64x128xf32>
    %cst = arith.constant 0.000000e+00 : f32
    %7 = vector.broadcast %cst : f32 to vector<64x128xf32>
    %8 = arith.maximumf %6, %7 : vector<64x128xf32>
    %c0_5 = arith.constant 0 : index
    %c0_6 = arith.constant 0 : index
    %9 = vector.load %arg4[%c0_5, %c0_6] : memref<64x128xf32, #tpu.memory_space<vmem>>, vector<64x128xf32>
    tpu.vector_store %arg4[%c0_5, %c0_6], %8 {strides = array<i32>} : memref<64x128xf32, #tpu.memory_space<vmem>>, vector<64x128xf32>,
    return
  }
  func.func @transform_0(%arg0: i32) -> (i32, i32) {
    %c0_i32 = arith.constant 0 : i32
    %c0_i32_0 = arith.constant 0 : i32
    return %arg0, %c0_i32 : i32, i32
  }
  func.func @transform_1(%arg0: i32) -> (i32, i32) {
    %c0_i32 = arith.constant 0 : i32
    %c0_i32_0 = arith.constant 0 : i32
    %c0_i32_1 = arith.constant 0 : i32
    return %c0_i32, %c0_i32_0 : i32, i32
  }
  func.func @transform_2(%arg0: i32) -> (i32, i32) {
    %c0_i32 = arith.constant 0 : i32
    %c0_i32_0 = arith.constant 0 : i32
    %c0_i32_1 = arith.constant 0 : i32
    return %c0_i32, %c0_i32_0 : i32, i32
  }
  func.func @transform_3(%arg0: i32) -> (i32, i32) {
    %c0_i32 = arith.constant 0 : i32
    %c0_i32_0 = arith.constant 0 : i32
    return %arg0, %c0_i32 : i32, i32
  }
}

module attributes {stable_mosaic.version = 11 : i64} {
  func.func @_bn_relu_add_relu_kernel(%arg0: i32, %arg1: memref<64x128xf32, #tpu.memory_space<vmem>>, %arg2: memref<64x128xf32, #tpu.memory_space<vmem>>, %arg3: memref<1x128xf32, #tpu.memory_space<vmem>>, %arg4: memref<1x128xf32, #tpu.memory_space<vmem>>, %arg5: memref<64x128xf32, #tpu.memory_space<vmem>>) attributes {dimension_semantics = [#tpu.dimension_semantics<parallel>], iteration_bounds = array<i64: 1>, scalar_prefetch = 0 : i64, scratch_operands = 0 : i64, tpu.core_type = #tpu.core_type<tc>, window_params = [{transform_indices = @transform_0, window_bounds = array<i64: 64, 128>}, {transform_indices = @transform_1, window_bounds = array<i64: 64, 128>}, {pipeline_mode = #tpu.pipeline_mode<synchronous>, transform_indices = @transform_2, window_bounds = array<i64: 1, 128>}, {pipeline_mode = #tpu.pipeline_mode<synchronous>, transform_indices = @transform_3, window_bounds = array<i64: 1, 128>}, {transform_indices = @transform_4, window_bounds = array<i64: 64, 128>}]} {
    %c0 = arith.constant 0 : index
    %c0_0 = arith.constant 0 : index
    %0 = vector.load %arg1[%c0, %c0_0] : memref<64x128xf32, #tpu.memory_space<vmem>>, vector<64x128xf32>
    %c0_1 = arith.constant 0 : index
    %c0_2 = arith.constant 0 : index
    %1 = vector.load %arg3[%c0_1, %c0_2] : memref<1x128xf32, #tpu.memory_space<vmem>>, vector<1x128xf32>
    %2 = vector.broadcast %1 : vector<1x128xf32> to vector<64x128xf32>
    %3 = arith.mulf %0, %2 : vector<64x128xf32>
    %c0_3 = arith.constant 0 : index
    %c0_4 = arith.constant 0 : index
    %4 = vector.load %arg4[%c0_3, %c0_4] : memref<1x128xf32, #tpu.memory_space<vmem>>, vector<1x128xf32>
    %5 = vector.broadcast %4 : vector<1x128xf32> to vector<64x128xf32>
    %6 = arith.addf %3, %5 : vector<64x128xf32>
    %cst = arith.constant 0.000000e+00 : f32
    %7 = vector.broadcast %cst : f32 to vector<64x128xf32>
    %8 = arith.maximumf %6, %7 : vector<64x128xf32>
    %c0_5 = arith.constant 0 : index
    %c0_6 = arith.constant 0 : index
    %9 = vector.load %arg2[%c0_5, %c0_6] : memref<64x128xf32, #tpu.memory_space<vmem>>, vector<64x128xf32>
    %10 = arith.addf %8, %9 : vector<64x128xf32>
    %cst_7 = arith.constant 0.000000e+00 : f32
    %11 = vector.broadcast %cst_7 : f32 to vector<64x128xf32>
    %12 = arith.maximumf %10, %11 : vector<64x128xf32>
    %c0_8 = arith.constant 0 : index
    %c0_9 = arith.constant 0 : index
    %13 = vector.load %arg5[%c0_8, %c0_9] : memref<64x128xf32, #tpu.memory_space<vmem>>, vector<64x128xf32>
    tpu.vector_store %arg5[%c0_8, %c0_9], %12 {strides = array<i32>} : memref<64x128xf32, #tpu.memory_space<vmem>>, vector<64x128xf32>,
    return
  }
  func.func @transform_0(%arg0: i32) -> (i32, i32) {
    %c0_i32 = arith.constant 0 : i32
    %c0_i32_0 = arith.constant 0 : i32
    return %arg0, %c0_i32 : i32, i32
  }
  func.func @transform_1(%arg0: i32) -> (i32, i32) {
    %c0_i32 = arith.constant 0 : i32
    %c0_i32_0 = arith.constant 0 : i32
    return %arg0, %c0_i32 : i32, i32
  }
  func.func @transform_2(%arg0: i32) -> (i32, i32) {
    %c0_i32 = arith.constant 0 : i32
    %c0_i32_0 = arith.constant 0 : i32
    %c0_i32_1 = arith.constant 0 : i32
    return %c0_i32, %c0_i32_0 : i32, i32
  }
  func.func @transform_3(%arg0: i32) -> (i32, i32) {
    %c0_i32 = arith.constant 0 : i32
    %c0_i32_0 = arith.constant 0 : i32
    %c0_i32_1 = arith.constant 0 : i32
    return %c0_i32, %c0_i32_0 : i32, i32
  }
  func.func @transform_4(%arg0: i32) -> (i32, i32) {
    %c0_i32 = arith.constant 0 : i32
    %c0_i32_0 = arith.constant 0 : i32
    return %arg0, %c0_i32 : i32, i32
  }
}

module attributes {stable_mosaic.version = 11 : i64} {
  func.func @_conv3x3_stats_kernel(%arg0: i32, %arg1: memref<206x64xf32, #tpu.memory_space<vmem>>, %arg2: memref<9x64x64xbf16, #tpu.memory_space<vmem>>, %arg3: memref<184x1xf32, #tpu.memory_space<vmem>>, %arg4: memref<184x64xf32, #tpu.memory_space<vmem>>, %arg5: memref<2x64xf32, #tpu.memory_space<vmem>>) attributes {dimension_semantics = [#tpu.dimension_semantics<arbitrary>], iteration_bounds = array<i64: 1>, scalar_prefetch = 0 : i64, scratch_operands = 0 : i64, tpu.core_type = #tpu.core_type<tc>, window_params = [{pipeline_mode = #tpu.pipeline_mode<synchronous>, transform_indices = @transform_0, window_bounds = array<i64: 206, 64>}, {pipeline_mode = #tpu.pipeline_mode<synchronous>, transform_indices = @transform_1, window_bounds = array<i64: 9, 64, 64>}, {transform_indices = @transform_2, window_bounds = array<i64: 184, 1>}, {transform_indices = @transform_3, window_bounds = array<i64: 184, 64>}, {pipeline_mode = #tpu.pipeline_mode<synchronous>, transform_indices = @transform_4, window_bounds = array<i64: 2, 64>}]} {
    %c184_i32 = arith.constant 184 : i32
    %0 = arith.muli %arg0, %c184_i32 : i32
    %c0_i32 = arith.constant 0 : i32
    %1 = arith.cmpi eq, %arg0, %c0_i32 : i32
    %2 = arith.extui %1 : i1 to i32
    %c0_i32_0 = arith.constant 0 : i32
    %3 = arith.cmpi ne, %2, %c0_i32_0 : i32
    scf.if %3 {
      %cst_61 = arith.constant 0.000000e+00 : f32
      %99 = vector.broadcast %cst_61 : f32 to vector<2x64xf32>
      %c0_62 = arith.constant 0 : index
      %c0_63 = arith.constant 0 : index
      %100 = vector.load %arg5[%c0_62, %c0_63] : memref<2x64xf32, #tpu.memory_space<vmem>>, vector<2x64xf32>
      tpu.vector_store %arg5[%c0_62, %c0_63], %99 {strides = array<i32>} : memref<2x64xf32, #tpu.memory_space<vmem>>, vector<2x64xf32>,
    } else {
    }
    %cst = arith.constant 0.000000e+00 : f32
    %4 = vector.broadcast %cst : f32 to vector<184x64xf32>
    %c0_i32_1 = arith.constant 0 : i32
    %5 = arith.addi %0, %c0_i32_1 : i32
    %c0_i32_2 = arith.constant 0 : i32
    %6 = arith.addi %5, %c0_i32_2 : i32
    %7 = arith.index_cast %6 : i32 to index
    %c0 = arith.constant 0 : index
    %8 = vector.load %arg1[%7, %c0] : memref<206x64xf32, #tpu.memory_space<vmem>>, vector<184x64xf32>
    %9 = arith.truncf %8 : vector<184x64xf32> to vector<184x64xbf16>
    %c0_3 = arith.constant 0 : index
    %c0_4 = arith.constant 0 : index
    %c0_5 = arith.constant 0 : index
    %10 = vector.load %arg2[%c0_3, %c0_4, %c0_5] : memref<9x64x64xbf16, #tpu.memory_space<vmem>>, vector<1x64x64xbf16>
    %11 = vector.shape_cast %10 : vector<1x64x64xbf16> to vector<64x64xbf16>
    %cst_6 = arith.constant dense<0.000000e+00> : vector<184x64xf32>
    %12 = tpu.matmul %9, %11, %cst_6 {dimension_numbers = #tpu.dot_dimension_numbers<[1], [0], [0], [1], [0, 0, 1, 1], [], []>} : vector<184x64xbf16>, vector<64x64xbf16>, vector<184x64xf32> -> vector<184x64xf32>
    %13 = arith.addf %4, %12 : vector<184x64xf32>
    %c0_i32_7 = arith.constant 0 : i32
    %14 = arith.addi %0, %c0_i32_7 : i32
    %c1_i32 = arith.constant 1 : i32
    %15 = arith.addi %14, %c1_i32 : i32
    %16 = arith.index_cast %15 : i32 to index
    %c0_8 = arith.constant 0 : index
    %17 = vector.load %arg1[%16, %c0_8] : memref<206x64xf32, #tpu.memory_space<vmem>>, vector<184x64xf32>
    %18 = arith.truncf %17 : vector<184x64xf32> to vector<184x64xbf16>
    %c1 = arith.constant 1 : index
    %c0_9 = arith.constant 0 : index
    %c0_10 = arith.constant 0 : index
    %19 = vector.load %arg2[%c1, %c0_9, %c0_10] : memref<9x64x64xbf16, #tpu.memory_space<vmem>>, vector<1x64x64xbf16>
    %20 = vector.shape_cast %19 : vector<1x64x64xbf16> to vector<64x64xbf16>
    %cst_11 = arith.constant dense<0.000000e+00> : vector<184x64xf32>
    %21 = tpu.matmul %18, %20, %cst_11 {dimension_numbers = #tpu.dot_dimension_numbers<[1], [0], [0], [1], [0, 0, 1, 1], [], []>} : vector<184x64xbf16>, vector<64x64xbf16>, vector<184x64xf32> -> vector<184x64xf32>
    %22 = arith.addf %13, %21 : vector<184x64xf32>
    %c0_i32_12 = arith.constant 0 : i32
    %23 = arith.addi %0, %c0_i32_12 : i32
    %c2_i32 = arith.constant 2 : i32
    %24 = arith.addi %23, %c2_i32 : i32
    %25 = arith.index_cast %24 : i32 to index
    %c0_13 = arith.constant 0 : index
    %26 = vector.load %arg1[%25, %c0_13] : memref<206x64xf32, #tpu.memory_space<vmem>>, vector<184x64xf32>
    %27 = arith.truncf %26 : vector<184x64xf32> to vector<184x64xbf16>
    %c2 = arith.constant 2 : index
    %c0_14 = arith.constant 0 : index
    %c0_15 = arith.constant 0 : index
    %28 = vector.load %arg2[%c2, %c0_14, %c0_15] : memref<9x64x64xbf16, #tpu.memory_space<vmem>>, vector<1x64x64xbf16>
    %29 = vector.shape_cast %28 : vector<1x64x64xbf16> to vector<64x64xbf16>
    %cst_16 = arith.constant dense<0.000000e+00> : vector<184x64xf32>
    %30 = tpu.matmul %27, %29, %cst_16 {dimension_numbers = #tpu.dot_dimension_numbers<[1], [0], [0], [1], [0, 0, 1, 1], [], []>} : vector<184x64xbf16>, vector<64x64xbf16>, vector<184x64xf32> -> vector<184x64xf32>
    %31 = arith.addf %22, %30 : vector<184x64xf32>
    %c10_i32 = arith.constant 10 : i32
    %32 = arith.addi %0, %c10_i32 : i32
    %c0_i32_17 = arith.constant 0 : i32
    %33 = arith.addi %32, %c0_i32_17 : i32
    %34 = arith.index_cast %33 : i32 to index
    %c0_18 = arith.constant 0 : index
    %35 = vector.load %arg1[%34, %c0_18] : memref<206x64xf32, #tpu.memory_space<vmem>>, vector<184x64xf32>
    %36 = arith.truncf %35 : vector<184x64xf32> to vector<184x64xbf16>
    %c3 = arith.constant 3 : index
    %c0_19 = arith.constant 0 : index
    %c0_20 = arith.constant 0 : index
    %37 = vector.load %arg2[%c3, %c0_19, %c0_20] : memref<9x64x64xbf16, #tpu.memory_space<vmem>>, vector<1x64x64xbf16>
    %38 = vector.shape_cast %37 : vector<1x64x64xbf16> to vector<64x64xbf16>
    %cst_21 = arith.constant dense<0.000000e+00> : vector<184x64xf32>
    %39 = tpu.matmul %36, %38, %cst_21 {dimension_numbers = #tpu.dot_dimension_numbers<[1], [0], [0], [1], [0, 0, 1, 1], [], []>} : vector<184x64xbf16>, vector<64x64xbf16>, vector<184x64xf32> -> vector<184x64xf32>
    %40 = arith.addf %31, %39 : vector<184x64xf32>
    %c10_i32_22 = arith.constant 10 : i32
    %41 = arith.addi %0, %c10_i32_22 : i32
    %c1_i32_23 = arith.constant 1 : i32
    %42 = arith.addi %41, %c1_i32_23 : i32
    %43 = arith.index_cast %42 : i32 to index
    %c0_24 = arith.constant 0 : index
    %44 = vector.load %arg1[%43, %c0_24] : memref<206x64xf32, #tpu.memory_space<vmem>>, vector<184x64xf32>
    %45 = arith.truncf %44 : vector<184x64xf32> to vector<184x64xbf16>
    %c4 = arith.constant 4 : index
    %c0_25 = arith.constant 0 : index
    %c0_26 = arith.constant 0 : index
    %46 = vector.load %arg2[%c4, %c0_25, %c0_26] : memref<9x64x64xbf16, #tpu.memory_space<vmem>>, vector<1x64x64xbf16>
    %47 = vector.shape_cast %46 : vector<1x64x64xbf16> to vector<64x64xbf16>
    %cst_27 = arith.constant dense<0.000000e+00> : vector<184x64xf32>
    %48 = tpu.matmul %45, %47, %cst_27 {dimension_numbers = #tpu.dot_dimension_numbers<[1], [0], [0], [1], [0, 0, 1, 1], [], []>} : vector<184x64xbf16>, vector<64x64xbf16>, vector<184x64xf32> -> vector<184x64xf32>
    %49 = arith.addf %40, %48 : vector<184x64xf32>
    %c10_i32_28 = arith.constant 10 : i32
    %50 = arith.addi %0, %c10_i32_28 : i32
    %c2_i32_29 = arith.constant 2 : i32
    %51 = arith.addi %50, %c2_i32_29 : i32
    %52 = arith.index_cast %51 : i32 to index
    %c0_30 = arith.constant 0 : index
    %53 = vector.load %arg1[%52, %c0_30] : memref<206x64xf32, #tpu.memory_space<vmem>>, vector<184x64xf32>
    %54 = arith.truncf %53 : vector<184x64xf32> to vector<184x64xbf16>
    %c5 = arith.constant 5 : index
    %c0_31 = arith.constant 0 : index
    %c0_32 = arith.constant 0 : index
    %55 = vector.load %arg2[%c5, %c0_31, %c0_32] : memref<9x64x64xbf16, #tpu.memory_space<vmem>>, vector<1x64x64xbf16>
    %56 = vector.shape_cast %55 : vector<1x64x64xbf16> to vector<64x64xbf16>
    %cst_33 = arith.constant dense<0.000000e+00> : vector<184x64xf32>
    %57 = tpu.matmul %54, %56, %cst_33 {dimension_numbers = #tpu.dot_dimension_numbers<[1], [0], [0], [1], [0, 0, 1, 1], [], []>} : vector<184x64xbf16>, vector<64x64xbf16>, vector<184x64xf32> -> vector<184x64xf32>
    %58 = arith.addf %49, %57 : vector<184x64xf32>
    %c20_i32 = arith.constant 20 : i32
    %59 = arith.addi %0, %c20_i32 : i32
    %c0_i32_34 = arith.constant 0 : i32
    %60 = arith.addi %59, %c0_i32_34 : i32
    %61 = arith.index_cast %60 : i32 to index
    %c0_35 = arith.constant 0 : index
    %62 = vector.load %arg1[%61, %c0_35] : memref<206x64xf32, #tpu.memory_space<vmem>>, vector<184x64xf32>
    %63 = arith.truncf %62 : vector<184x64xf32> to vector<184x64xbf16>
    %c6 = arith.constant 6 : index
    %c0_36 = arith.constant 0 : index
    %c0_37 = arith.constant 0 : index
    %64 = vector.load %arg2[%c6, %c0_36, %c0_37] : memref<9x64x64xbf16, #tpu.memory_space<vmem>>, vector<1x64x64xbf16>
    %65 = vector.shape_cast %64 : vector<1x64x64xbf16> to vector<64x64xbf16>
    %cst_38 = arith.constant dense<0.000000e+00> : vector<184x64xf32>
    %66 = tpu.matmul %63, %65, %cst_38 {dimension_numbers = #tpu.dot_dimension_numbers<[1], [0], [0], [1], [0, 0, 1, 1], [], []>} : vector<184x64xbf16>, vector<64x64xbf16>, vector<184x64xf32> -> vector<184x64xf32>
    %67 = arith.addf %58, %66 : vector<184x64xf32>
    %c20_i32_39 = arith.constant 20 : i32
    %68 = arith.addi %0, %c20_i32_39 : i32
    %c1_i32_40 = arith.constant 1 : i32
    %69 = arith.addi %68, %c1_i32_40 : i32
    %70 = arith.index_cast %69 : i32 to index
    %c0_41 = arith.constant 0 : index
    %71 = vector.load %arg1[%70, %c0_41] : memref<206x64xf32, #tpu.memory_space<vmem>>, vector<184x64xf32>
    %72 = arith.truncf %71 : vector<184x64xf32> to vector<184x64xbf16>
    %c7 = arith.constant 7 : index
    %c0_42 = arith.constant 0 : index
    %c0_43 = arith.constant 0 : index
    %73 = vector.load %arg2[%c7, %c0_42, %c0_43] : memref<9x64x64xbf16, #tpu.memory_space<vmem>>, vector<1x64x64xbf16>
    %74 = vector.shape_cast %73 : vector<1x64x64xbf16> to vector<64x64xbf16>
    %cst_44 = arith.constant dense<0.000000e+00> : vector<184x64xf32>
    %75 = tpu.matmul %72, %74, %cst_44 {dimension_numbers = #tpu.dot_dimension_numbers<[1], [0], [0], [1], [0, 0, 1, 1], [], []>} : vector<184x64xbf16>, vector<64x64xbf16>, vector<184x64xf32> -> vector<184x64xf32>
    %76 = arith.addf %67, %75 : vector<184x64xf32>
    %c20_i32_45 = arith.constant 20 : i32
    %77 = arith.addi %0, %c20_i32_45 : i32
    %c2_i32_46 = arith.constant 2 : i32
    %78 = arith.addi %77, %c2_i32_46 : i32
    %79 = arith.index_cast %78 : i32 to index
    %c0_47 = arith.constant 0 : index
    %80 = vector.load %arg1[%79, %c0_47] : memref<206x64xf32, #tpu.memory_space<vmem>>, vector<184x64xf32>
    %81 = arith.truncf %80 : vector<184x64xf32> to vector<184x64xbf16>
    %c8 = arith.constant 8 : index
    %c0_48 = arith.constant 0 : index
    %c0_49 = arith.constant 0 : index
    %82 = vector.load %arg2[%c8, %c0_48, %c0_49] : memref<9x64x64xbf16, #tpu.memory_space<vmem>>, vector<1x64x64xbf16>
    %83 = vector.shape_cast %82 : vector<1x64x64xbf16> to vector<64x64xbf16>
    %cst_50 = arith.constant dense<0.000000e+00> : vector<184x64xf32>
    %84 = tpu.matmul %81, %83, %cst_50 {dimension_numbers = #tpu.dot_dimension_numbers<[1], [0], [0], [1], [0, 0, 1, 1], [], []>} : vector<184x64xbf16>, vector<64x64xbf16>, vector<184x64xf32> -> vector<184x64xf32>
    %85 = arith.addf %76, %84 : vector<184x64xf32>
    %c0_51 = arith.constant 0 : index
    %c0_52 = arith.constant 0 : index
    %86 = vector.load %arg4[%c0_51, %c0_52] : memref<184x64xf32, #tpu.memory_space<vmem>>, vector<184x64xf32>
    tpu.vector_store %arg4[%c0_51, %c0_52], %85 {strides = array<i32>} : memref<184x64xf32, #tpu.memory_space<vmem>>, vector<184x64xf32>,
    %c0_53 = arith.constant 0 : index
    %c0_54 = arith.constant 0 : index
    %87 = vector.load %arg3[%c0_53, %c0_54] : memref<184x1xf32, #tpu.memory_space<vmem>>, vector<184x1xf32>
    %88 = vector.broadcast %87 : vector<184x1xf32> to vector<184x64xf32>
    %89 = arith.mulf %85, %88 : vector<184x64xf32>
    %c0_55 = arith.constant 0 : index
    %c0_56 = arith.constant 0 : index
    %90 = vector.load %arg5[%c0_55, %c0_56] : memref<2x64xf32, #tpu.memory_space<vmem>>, vector<2x64xf32>
    %cst_57 = arith.constant dense<0.000000e+00> : vector<64xf32>
    %91 = vector.multi_reduction <add>, %89, %cst_57 [0] : vector<184x64xf32> to vector<64xf32>
    %92 = vector.shape_cast %91 : vector<64xf32> to vector<1x64xf32>
    %93 = arith.mulf %89, %85 : vector<184x64xf32>
    %cst_58 = arith.constant dense<0.000000e+00> : vector<64xf32>
    %94 = vector.multi_reduction <add>, %93, %cst_58 [0] : vector<184x64xf32> to vector<64xf32>
    %95 = vector.shape_cast %94 : vector<64xf32> to vector<1x64xf32>
    %96 = tpu.concatenate %92, %95 in 0 : vector<1x64xf32>, vector<1x64xf32> -> vector<2x64xf32>
    %97 = arith.addf %90, %96 : vector<2x64xf32>
    %c0_59 = arith.constant 0 : index
    %c0_60 = arith.constant 0 : index
    %98 = vector.load %arg5[%c0_59, %c0_60] : memref<2x64xf32, #tpu.memory_space<vmem>>, vector<2x64xf32>
    tpu.vector_store %arg5[%c0_59, %c0_60], %97 {strides = array<i32>} : memref<2x64xf32, #tpu.memory_space<vmem>>, vector<2x64xf32>,
    return
  }
  func.func @transform_0(%arg0: i32) -> (i32, i32) {
    %c0_i32 = arith.constant 0 : i32
    %c0_i32_0 = arith.constant 0 : i32
    %c0_i32_1 = arith.constant 0 : i32
    return %c0_i32, %c0_i32_0 : i32, i32
  }
  func.func @transform_1(%arg0: i32) -> (i32, i32, i32) {
    %c0_i32 = arith.constant 0 : i32
    %c0_i32_0 = arith.constant 0 : i32
    %c0_i32_1 = arith.constant 0 : i32
    %c0_i32_2 = arith.constant 0 : i32
    return %c0_i32, %c0_i32_0, %c0_i32_1 : i32, i32, i32
  }
  func.func @transform_2(%arg0: i32) -> (i32, i32) {
    %c0_i32 = arith.constant 0 : i32
    %c0_i32_0 = arith.constant 0 : i32
    return %arg0, %c0_i32 : i32, i32
  }
  func.func @transform_3(%arg0: i32) -> (i32, i32) {
    %c0_i32 = arith.constant 0 : i32
    %c0_i32_0 = arith.constant 0 : i32
    return %arg0, %c0_i32 : i32, i32
  }
  func.func @transform_4(%arg0: i32) -> (i32, i32) {
    %c0_i32 = arith.constant 0 : i32
    %c0_i32_0 = arith.constant 0 : i32
    %c0_i32_1 = arith.constant 0 : i32
    return %c0_i32, %c0_i32_0 : i32, i32
  }
}

module attributes {stable_mosaic.version = 11 : i64} {
  func.func @_matmul_stats_kernel(%arg0: i32, %arg1: memref<32x576xbf16, #tpu.memory_space<vmem>>, %arg2: memref<576x128xbf16, #tpu.memory_space<vmem>>, %arg3: memref<32x128xf32, #tpu.memory_space<vmem>>, %arg4: memref<2x128xf32, #tpu.memory_space<vmem>>) attributes {dimension_semantics = [#tpu.dimension_semantics<arbitrary>], iteration_bounds = array<i64: 1>, scalar_prefetch = 0 : i64, scratch_operands = 0 : i64, tpu.core_type = #tpu.core_type<tc>, window_params = [{transform_indices = @transform_0, window_bounds = array<i64: 32, 576>}, {pipeline_mode = #tpu.pipeline_mode<synchronous>, transform_indices = @transform_1, window_bounds = array<i64: 576, 128>}, {transform_indices = @transform_2, window_bounds = array<i64: 32, 128>}, {pipeline_mode = #tpu.pipeline_mode<synchronous>, transform_indices = @transform_3, window_bounds = array<i64: 2, 128>}]} {
    %c0_i32 = arith.constant 0 : i32
    %0 = arith.cmpi eq, %arg0, %c0_i32 : i32
    %1 = arith.extui %0 : i1 to i32
    %c0_i32_0 = arith.constant 0 : i32
    %2 = arith.cmpi ne, %1, %c0_i32_0 : i32
    scf.if %2 {
      %cst_12 = arith.constant 0.000000e+00 : f32
      %16 = vector.broadcast %cst_12 : f32 to vector<2x128xf32>
      %c0_13 = arith.constant 0 : index
      %c0_14 = arith.constant 0 : index
      %17 = vector.load %arg4[%c0_13, %c0_14] : memref<2x128xf32, #tpu.memory_space<vmem>>, vector<2x128xf32>
      tpu.vector_store %arg4[%c0_13, %c0_14], %16 {strides = array<i32>} : memref<2x128xf32, #tpu.memory_space<vmem>>, vector<2x128xf32>,
    } else {
    }
    %c0 = arith.constant 0 : index
    %c0_1 = arith.constant 0 : index
    %3 = vector.load %arg1[%c0, %c0_1] : memref<32x576xbf16, #tpu.memory_space<vmem>>, vector<32x576xbf16>
    %c0_2 = arith.constant 0 : index
    %c0_3 = arith.constant 0 : index
    %4 = vector.load %arg2[%c0_2, %c0_3] : memref<576x128xbf16, #tpu.memory_space<vmem>>, vector<576x128xbf16>
    %cst = arith.constant dense<0.000000e+00> : vector<32x128xf32>
    %5 = tpu.matmul %3, %4, %cst {dimension_numbers = #tpu.dot_dimension_numbers<[1], [0], [0], [1], [0, 0, 1, 1], [], []>} : vector<32x576xbf16>, vector<576x128xbf16>, vector<32x128xf32> -> vector<32x128xf32>
    %c0_4 = arith.constant 0 : index
    %c0_5 = arith.constant 0 : index
    %6 = vector.load %arg3[%c0_4, %c0_5] : memref<32x128xf32, #tpu.memory_space<vmem>>, vector<32x128xf32>
    tpu.vector_store %arg3[%c0_4, %c0_5], %5 {strides = array<i32>} : memref<32x128xf32, #tpu.memory_space<vmem>>, vector<32x128xf32>,
    %c0_6 = arith.constant 0 : index
    %c0_7 = arith.constant 0 : index
    %7 = vector.load %arg4[%c0_6, %c0_7] : memref<2x128xf32, #tpu.memory_space<vmem>>, vector<2x128xf32>
    %cst_8 = arith.constant dense<0.000000e+00> : vector<128xf32>
    %8 = vector.multi_reduction <add>, %5, %cst_8 [0] : vector<32x128xf32> to vector<128xf32>
    %9 = vector.shape_cast %8 : vector<128xf32> to vector<1x128xf32>
    %10 = arith.mulf %5, %5 : vector<32x128xf32>
    %cst_9 = arith.constant dense<0.000000e+00> : vector<128xf32>
    %11 = vector.multi_reduction <add>, %10, %cst_9 [0] : vector<32x128xf32> to vector<128xf32>
    %12 = vector.shape_cast %11 : vector<128xf32> to vector<1x128xf32>
    %13 = tpu.concatenate %9, %12 in 0 : vector<1x128xf32>, vector<1x128xf32> -> vector<2x128xf32>
    %14 = arith.addf %7, %13 : vector<2x128xf32>
    %c0_10 = arith.constant 0 : index
    %c0_11 = arith.constant 0 : index
    %15 = vector.load %arg4[%c0_10, %c0_11] : memref<2x128xf32, #tpu.memory_space<vmem>>, vector<2x128xf32>
    tpu.vector_store %arg4[%c0_10, %c0_11], %14 {strides = array<i32>} : memref<2x128xf32, #tpu.memory_space<vmem>>, vector<2x128xf32>,
    return
  }
  func.func @transform_0(%arg0: i32) -> (i32, i32) {
    %c0_i32 = arith.constant 0 : i32
    %c0_i32_0 = arith.constant 0 : i32
    return %arg0, %c0_i32 : i32, i32
  }
  func.func @transform_1(%arg0: i32) -> (i32, i32) {
    %c0_i32 = arith.constant 0 : i32
    %c0_i32_0 = arith.constant 0 : i32
    %c0_i32_1 = arith.constant 0 : i32
    return %c0_i32, %c0_i32_0 : i32, i32
  }
  func.func @transform_2(%arg0: i32) -> (i32, i32) {
    %c0_i32 = arith.constant 0 : i32
    %c0_i32_0 = arith.constant 0 : i32
    return %arg0, %c0_i32 : i32, i32
  }
  func.func @transform_3(%arg0: i32) -> (i32, i32) {
    %c0_i32 = arith.constant 0 : i32
    %c0_i32_0 = arith.constant 0 : i32
    %c0_i32_1 = arith.constant 0 : i32
    return %c0_i32, %c0_i32_0 : i32, i32
  }
}

module attributes {stable_mosaic.version = 11 : i64} {
  func.func @_bn_relu_kernel(%arg0: i32, %arg1: memref<32x128xf32, #tpu.memory_space<vmem>>, %arg2: memref<1x128xf32, #tpu.memory_space<vmem>>, %arg3: memref<1x128xf32, #tpu.memory_space<vmem>>, %arg4: memref<32x128xf32, #tpu.memory_space<vmem>>) attributes {dimension_semantics = [#tpu.dimension_semantics<parallel>], iteration_bounds = array<i64: 1>, scalar_prefetch = 0 : i64, scratch_operands = 0 : i64, tpu.core_type = #tpu.core_type<tc>, window_params = [{transform_indices = @transform_0, window_bounds = array<i64: 32, 128>}, {pipeline_mode = #tpu.pipeline_mode<synchronous>, transform_indices = @transform_1, window_bounds = array<i64: 1, 128>}, {pipeline_mode = #tpu.pipeline_mode<synchronous>, transform_indices = @transform_2, window_bounds = array<i64: 1, 128>}, {transform_indices = @transform_3, window_bounds = array<i64: 32, 128>}]} {
    %c0 = arith.constant 0 : index
    %c0_0 = arith.constant 0 : index
    %0 = vector.load %arg1[%c0, %c0_0] : memref<32x128xf32, #tpu.memory_space<vmem>>, vector<32x128xf32>
    %c0_1 = arith.constant 0 : index
    %c0_2 = arith.constant 0 : index
    %1 = vector.load %arg2[%c0_1, %c0_2] : memref<1x128xf32, #tpu.memory_space<vmem>>, vector<1x128xf32>
    %2 = vector.broadcast %1 : vector<1x128xf32> to vector<32x128xf32>
    %3 = arith.mulf %0, %2 : vector<32x128xf32>
    %c0_3 = arith.constant 0 : index
    %c0_4 = arith.constant 0 : index
    %4 = vector.load %arg3[%c0_3, %c0_4] : memref<1x128xf32, #tpu.memory_space<vmem>>, vector<1x128xf32>
    %5 = vector.broadcast %4 : vector<1x128xf32> to vector<32x128xf32>
    %6 = arith.addf %3, %5 : vector<32x128xf32>
    %cst = arith.constant 0.000000e+00 : f32
    %7 = vector.broadcast %cst : f32 to vector<32x128xf32>
    %8 = arith.maximumf %6, %7 : vector<32x128xf32>
    %c0_5 = arith.constant 0 : index
    %c0_6 = arith.constant 0 : index
    %9 = vector.load %arg4[%c0_5, %c0_6] : memref<32x128xf32, #tpu.memory_space<vmem>>, vector<32x128xf32>
    tpu.vector_store %arg4[%c0_5, %c0_6], %8 {strides = array<i32>} : memref<32x128xf32, #tpu.memory_space<vmem>>, vector<32x128xf32>,
    return
  }
  func.func @transform_0(%arg0: i32) -> (i32, i32) {
    %c0_i32 = arith.constant 0 : i32
    %c0_i32_0 = arith.constant 0 : i32
    return %arg0, %c0_i32 : i32, i32
  }
  func.func @transform_1(%arg0: i32) -> (i32, i32) {
    %c0_i32 = arith.constant 0 : i32
    %c0_i32_0 = arith.constant 0 : i32
    %c0_i32_1 = arith.constant 0 : i32
    return %c0_i32, %c0_i32_0 : i32, i32
  }
  func.func @transform_2(%arg0: i32) -> (i32, i32) {
    %c0_i32 = arith.constant 0 : i32
    %c0_i32_0 = arith.constant 0 : i32
    %c0_i32_1 = arith.constant 0 : i32
    return %c0_i32, %c0_i32_0 : i32, i32
  }
  func.func @transform_3(%arg0: i32) -> (i32, i32) {
    %c0_i32 = arith.constant 0 : i32
    %c0_i32_0 = arith.constant 0 : i32
    return %arg0, %c0_i32 : i32, i32
  }
}

module attributes {stable_mosaic.version = 11 : i64} {
  func.func @_conv3x3_stats_kernel(%arg0: i32, %arg1: memref<78x128xf32, #tpu.memory_space<vmem>>, %arg2: memref<9x128x128xbf16, #tpu.memory_space<vmem>>, %arg3: memref<64x1xf32, #tpu.memory_space<vmem>>, %arg4: memref<64x128xf32, #tpu.memory_space<vmem>>, %arg5: memref<2x128xf32, #tpu.memory_space<vmem>>) attributes {dimension_semantics = [#tpu.dimension_semantics<arbitrary>], iteration_bounds = array<i64: 1>, scalar_prefetch = 0 : i64, scratch_operands = 0 : i64, tpu.core_type = #tpu.core_type<tc>, window_params = [{pipeline_mode = #tpu.pipeline_mode<synchronous>, transform_indices = @transform_0, window_bounds = array<i64: 78, 128>}, {pipeline_mode = #tpu.pipeline_mode<synchronous>, transform_indices = @transform_1, window_bounds = array<i64: 9, 128, 128>}, {transform_indices = @transform_2, window_bounds = array<i64: 64, 1>}, {transform_indices = @transform_3, window_bounds = array<i64: 64, 128>}, {pipeline_mode = #tpu.pipeline_mode<synchronous>, transform_indices = @transform_4, window_bounds = array<i64: 2, 128>}]} {
    %c64_i32 = arith.constant 64 : i32
    %0 = arith.muli %arg0, %c64_i32 : i32
    %c0_i32 = arith.constant 0 : i32
    %1 = arith.cmpi eq, %arg0, %c0_i32 : i32
    %2 = arith.extui %1 : i1 to i32
    %c0_i32_0 = arith.constant 0 : i32
    %3 = arith.cmpi ne, %2, %c0_i32_0 : i32
    scf.if %3 {
      %cst_61 = arith.constant 0.000000e+00 : f32
      %99 = vector.broadcast %cst_61 : f32 to vector<2x128xf32>
      %c0_62 = arith.constant 0 : index
      %c0_63 = arith.constant 0 : index
      %100 = vector.load %arg5[%c0_62, %c0_63] : memref<2x128xf32, #tpu.memory_space<vmem>>, vector<2x128xf32>
      tpu.vector_store %arg5[%c0_62, %c0_63], %99 {strides = array<i32>} : memref<2x128xf32, #tpu.memory_space<vmem>>, vector<2x128xf32>,
    } else {
    }
    %cst = arith.constant 0.000000e+00 : f32
    %4 = vector.broadcast %cst : f32 to vector<64x128xf32>
    %c0_i32_1 = arith.constant 0 : i32
    %5 = arith.addi %0, %c0_i32_1 : i32
    %c0_i32_2 = arith.constant 0 : i32
    %6 = arith.addi %5, %c0_i32_2 : i32
    %7 = arith.index_cast %6 : i32 to index
    %c0 = arith.constant 0 : index
    %8 = vector.load %arg1[%7, %c0] : memref<78x128xf32, #tpu.memory_space<vmem>>, vector<64x128xf32>
    %9 = arith.truncf %8 : vector<64x128xf32> to vector<64x128xbf16>
    %c0_3 = arith.constant 0 : index
    %c0_4 = arith.constant 0 : index
    %c0_5 = arith.constant 0 : index
    %10 = vector.load %arg2[%c0_3, %c0_4, %c0_5] : memref<9x128x128xbf16, #tpu.memory_space<vmem>>, vector<1x128x128xbf16>
    %11 = vector.shape_cast %10 : vector<1x128x128xbf16> to vector<128x128xbf16>
    %cst_6 = arith.constant dense<0.000000e+00> : vector<64x128xf32>
    %12 = tpu.matmul %9, %11, %cst_6 {dimension_numbers = #tpu.dot_dimension_numbers<[1], [0], [0], [1], [0, 0, 1, 1], [], []>} : vector<64x128xbf16>, vector<128x128xbf16>, vector<64x128xf32> -> vector<64x128xf32>
    %13 = arith.addf %4, %12 : vector<64x128xf32>
    %c0_i32_7 = arith.constant 0 : i32
    %14 = arith.addi %0, %c0_i32_7 : i32
    %c1_i32 = arith.constant 1 : i32
    %15 = arith.addi %14, %c1_i32 : i32
    %16 = arith.index_cast %15 : i32 to index
    %c0_8 = arith.constant 0 : index
    %17 = vector.load %arg1[%16, %c0_8] : memref<78x128xf32, #tpu.memory_space<vmem>>, vector<64x128xf32>
    %18 = arith.truncf %17 : vector<64x128xf32> to vector<64x128xbf16>
    %c1 = arith.constant 1 : index
    %c0_9 = arith.constant 0 : index
    %c0_10 = arith.constant 0 : index
    %19 = vector.load %arg2[%c1, %c0_9, %c0_10] : memref<9x128x128xbf16, #tpu.memory_space<vmem>>, vector<1x128x128xbf16>
    %20 = vector.shape_cast %19 : vector<1x128x128xbf16> to vector<128x128xbf16>
    %cst_11 = arith.constant dense<0.000000e+00> : vector<64x128xf32>
    %21 = tpu.matmul %18, %20, %cst_11 {dimension_numbers = #tpu.dot_dimension_numbers<[1], [0], [0], [1], [0, 0, 1, 1], [], []>} : vector<64x128xbf16>, vector<128x128xbf16>, vector<64x128xf32> -> vector<64x128xf32>
    %22 = arith.addf %13, %21 : vector<64x128xf32>
    %c0_i32_12 = arith.constant 0 : i32
    %23 = arith.addi %0, %c0_i32_12 : i32
    %c2_i32 = arith.constant 2 : i32
    %24 = arith.addi %23, %c2_i32 : i32
    %25 = arith.index_cast %24 : i32 to index
    %c0_13 = arith.constant 0 : index
    %26 = vector.load %arg1[%25, %c0_13] : memref<78x128xf32, #tpu.memory_space<vmem>>, vector<64x128xf32>
    %27 = arith.truncf %26 : vector<64x128xf32> to vector<64x128xbf16>
    %c2 = arith.constant 2 : index
    %c0_14 = arith.constant 0 : index
    %c0_15 = arith.constant 0 : index
    %28 = vector.load %arg2[%c2, %c0_14, %c0_15] : memref<9x128x128xbf16, #tpu.memory_space<vmem>>, vector<1x128x128xbf16>
    %29 = vector.shape_cast %28 : vector<1x128x128xbf16> to vector<128x128xbf16>
    %cst_16 = arith.constant dense<0.000000e+00> : vector<64x128xf32>
    %30 = tpu.matmul %27, %29, %cst_16 {dimension_numbers = #tpu.dot_dimension_numbers<[1], [0], [0], [1], [0, 0, 1, 1], [], []>} : vector<64x128xbf16>, vector<128x128xbf16>, vector<64x128xf32> -> vector<64x128xf32>
    %31 = arith.addf %22, %30 : vector<64x128xf32>
    %c6_i32 = arith.constant 6 : i32
    %32 = arith.addi %0, %c6_i32 : i32
    %c0_i32_17 = arith.constant 0 : i32
    %33 = arith.addi %32, %c0_i32_17 : i32
    %34 = arith.index_cast %33 : i32 to index
    %c0_18 = arith.constant 0 : index
    %35 = vector.load %arg1[%34, %c0_18] : memref<78x128xf32, #tpu.memory_space<vmem>>, vector<64x128xf32>
    %36 = arith.truncf %35 : vector<64x128xf32> to vector<64x128xbf16>
    %c3 = arith.constant 3 : index
    %c0_19 = arith.constant 0 : index
    %c0_20 = arith.constant 0 : index
    %37 = vector.load %arg2[%c3, %c0_19, %c0_20] : memref<9x128x128xbf16, #tpu.memory_space<vmem>>, vector<1x128x128xbf16>
    %38 = vector.shape_cast %37 : vector<1x128x128xbf16> to vector<128x128xbf16>
    %cst_21 = arith.constant dense<0.000000e+00> : vector<64x128xf32>
    %39 = tpu.matmul %36, %38, %cst_21 {dimension_numbers = #tpu.dot_dimension_numbers<[1], [0], [0], [1], [0, 0, 1, 1], [], []>} : vector<64x128xbf16>, vector<128x128xbf16>, vector<64x128xf32> -> vector<64x128xf32>
    %40 = arith.addf %31, %39 : vector<64x128xf32>
    %c6_i32_22 = arith.constant 6 : i32
    %41 = arith.addi %0, %c6_i32_22 : i32
    %c1_i32_23 = arith.constant 1 : i32
    %42 = arith.addi %41, %c1_i32_23 : i32
    %43 = arith.index_cast %42 : i32 to index
    %c0_24 = arith.constant 0 : index
    %44 = vector.load %arg1[%43, %c0_24] : memref<78x128xf32, #tpu.memory_space<vmem>>, vector<64x128xf32>
    %45 = arith.truncf %44 : vector<64x128xf32> to vector<64x128xbf16>
    %c4 = arith.constant 4 : index
    %c0_25 = arith.constant 0 : index
    %c0_26 = arith.constant 0 : index
    %46 = vector.load %arg2[%c4, %c0_25, %c0_26] : memref<9x128x128xbf16, #tpu.memory_space<vmem>>, vector<1x128x128xbf16>
    %47 = vector.shape_cast %46 : vector<1x128x128xbf16> to vector<128x128xbf16>
    %cst_27 = arith.constant dense<0.000000e+00> : vector<64x128xf32>
    %48 = tpu.matmul %45, %47, %cst_27 {dimension_numbers = #tpu.dot_dimension_numbers<[1], [0], [0], [1], [0, 0, 1, 1], [], []>} : vector<64x128xbf16>, vector<128x128xbf16>, vector<64x128xf32> -> vector<64x128xf32>
    %49 = arith.addf %40, %48 : vector<64x128xf32>
    %c6_i32_28 = arith.constant 6 : i32
    %50 = arith.addi %0, %c6_i32_28 : i32
    %c2_i32_29 = arith.constant 2 : i32
    %51 = arith.addi %50, %c2_i32_29 : i32
    %52 = arith.index_cast %51 : i32 to index
    %c0_30 = arith.constant 0 : index
    %53 = vector.load %arg1[%52, %c0_30] : memref<78x128xf32, #tpu.memory_space<vmem>>, vector<64x128xf32>
    %54 = arith.truncf %53 : vector<64x128xf32> to vector<64x128xbf16>
    %c5 = arith.constant 5 : index
    %c0_31 = arith.constant 0 : index
    %c0_32 = arith.constant 0 : index
    %55 = vector.load %arg2[%c5, %c0_31, %c0_32] : memref<9x128x128xbf16, #tpu.memory_space<vmem>>, vector<1x128x128xbf16>
    %56 = vector.shape_cast %55 : vector<1x128x128xbf16> to vector<128x128xbf16>
    %cst_33 = arith.constant dense<0.000000e+00> : vector<64x128xf32>
    %57 = tpu.matmul %54, %56, %cst_33 {dimension_numbers = #tpu.dot_dimension_numbers<[1], [0], [0], [1], [0, 0, 1, 1], [], []>} : vector<64x128xbf16>, vector<128x128xbf16>, vector<64x128xf32> -> vector<64x128xf32>
    %58 = arith.addf %49, %57 : vector<64x128xf32>
    %c12_i32 = arith.constant 12 : i32
    %59 = arith.addi %0, %c12_i32 : i32
    %c0_i32_34 = arith.constant 0 : i32
    %60 = arith.addi %59, %c0_i32_34 : i32
    %61 = arith.index_cast %60 : i32 to index
    %c0_35 = arith.constant 0 : index
    %62 = vector.load %arg1[%61, %c0_35] : memref<78x128xf32, #tpu.memory_space<vmem>>, vector<64x128xf32>
    %63 = arith.truncf %62 : vector<64x128xf32> to vector<64x128xbf16>
    %c6 = arith.constant 6 : index
    %c0_36 = arith.constant 0 : index
    %c0_37 = arith.constant 0 : index
    %64 = vector.load %arg2[%c6, %c0_36, %c0_37] : memref<9x128x128xbf16, #tpu.memory_space<vmem>>, vector<1x128x128xbf16>
    %65 = vector.shape_cast %64 : vector<1x128x128xbf16> to vector<128x128xbf16>
    %cst_38 = arith.constant dense<0.000000e+00> : vector<64x128xf32>
    %66 = tpu.matmul %63, %65, %cst_38 {dimension_numbers = #tpu.dot_dimension_numbers<[1], [0], [0], [1], [0, 0, 1, 1], [], []>} : vector<64x128xbf16>, vector<128x128xbf16>, vector<64x128xf32> -> vector<64x128xf32>
    %67 = arith.addf %58, %66 : vector<64x128xf32>
    %c12_i32_39 = arith.constant 12 : i32
    %68 = arith.addi %0, %c12_i32_39 : i32
    %c1_i32_40 = arith.constant 1 : i32
    %69 = arith.addi %68, %c1_i32_40 : i32
    %70 = arith.index_cast %69 : i32 to index
    %c0_41 = arith.constant 0 : index
    %71 = vector.load %arg1[%70, %c0_41] : memref<78x128xf32, #tpu.memory_space<vmem>>, vector<64x128xf32>
    %72 = arith.truncf %71 : vector<64x128xf32> to vector<64x128xbf16>
    %c7 = arith.constant 7 : index
    %c0_42 = arith.constant 0 : index
    %c0_43 = arith.constant 0 : index
    %73 = vector.load %arg2[%c7, %c0_42, %c0_43] : memref<9x128x128xbf16, #tpu.memory_space<vmem>>, vector<1x128x128xbf16>
    %74 = vector.shape_cast %73 : vector<1x128x128xbf16> to vector<128x128xbf16>
    %cst_44 = arith.constant dense<0.000000e+00> : vector<64x128xf32>
    %75 = tpu.matmul %72, %74, %cst_44 {dimension_numbers = #tpu.dot_dimension_numbers<[1], [0], [0], [1], [0, 0, 1, 1], [], []>} : vector<64x128xbf16>, vector<128x128xbf16>, vector<64x128xf32> -> vector<64x128xf32>
    %76 = arith.addf %67, %75 : vector<64x128xf32>
    %c12_i32_45 = arith.constant 12 : i32
    %77 = arith.addi %0, %c12_i32_45 : i32
    %c2_i32_46 = arith.constant 2 : i32
    %78 = arith.addi %77, %c2_i32_46 : i32
    %79 = arith.index_cast %78 : i32 to index
    %c0_47 = arith.constant 0 : index
    %80 = vector.load %arg1[%79, %c0_47] : memref<78x128xf32, #tpu.memory_space<vmem>>, vector<64x128xf32>
    %81 = arith.truncf %80 : vector<64x128xf32> to vector<64x128xbf16>
    %c8 = arith.constant 8 : index
    %c0_48 = arith.constant 0 : index
    %c0_49 = arith.constant 0 : index
    %82 = vector.load %arg2[%c8, %c0_48, %c0_49] : memref<9x128x128xbf16, #tpu.memory_space<vmem>>, vector<1x128x128xbf16>
    %83 = vector.shape_cast %82 : vector<1x128x128xbf16> to vector<128x128xbf16>
    %cst_50 = arith.constant dense<0.000000e+00> : vector<64x128xf32>
    %84 = tpu.matmul %81, %83, %cst_50 {dimension_numbers = #tpu.dot_dimension_numbers<[1], [0], [0], [1], [0, 0, 1, 1], [], []>} : vector<64x128xbf16>, vector<128x128xbf16>, vector<64x128xf32> -> vector<64x128xf32>
    %85 = arith.addf %76, %84 : vector<64x128xf32>
    %c0_51 = arith.constant 0 : index
    %c0_52 = arith.constant 0 : index
    %86 = vector.load %arg4[%c0_51, %c0_52] : memref<64x128xf32, #tpu.memory_space<vmem>>, vector<64x128xf32>
    tpu.vector_store %arg4[%c0_51, %c0_52], %85 {strides = array<i32>} : memref<64x128xf32, #tpu.memory_space<vmem>>, vector<64x128xf32>,
    %c0_53 = arith.constant 0 : index
    %c0_54 = arith.constant 0 : index
    %87 = vector.load %arg3[%c0_53, %c0_54] : memref<64x1xf32, #tpu.memory_space<vmem>>, vector<64x1xf32>
    %88 = vector.broadcast %87 : vector<64x1xf32> to vector<64x128xf32>
    %89 = arith.mulf %85, %88 : vector<64x128xf32>
    %c0_55 = arith.constant 0 : index
    %c0_56 = arith.constant 0 : index
    %90 = vector.load %arg5[%c0_55, %c0_56] : memref<2x128xf32, #tpu.memory_space<vmem>>, vector<2x128xf32>
    %cst_57 = arith.constant dense<0.000000e+00> : vector<128xf32>
    %91 = vector.multi_reduction <add>, %89, %cst_57 [0] : vector<64x128xf32> to vector<128xf32>
    %92 = vector.shape_cast %91 : vector<128xf32> to vector<1x128xf32>
    %93 = arith.mulf %89, %85 : vector<64x128xf32>
    %cst_58 = arith.constant dense<0.000000e+00> : vector<128xf32>
    %94 = vector.multi_reduction <add>, %93, %cst_58 [0] : vector<64x128xf32> to vector<128xf32>
    %95 = vector.shape_cast %94 : vector<128xf32> to vector<1x128xf32>
    %96 = tpu.concatenate %92, %95 in 0 : vector<1x128xf32>, vector<1x128xf32> -> vector<2x128xf32>
    %97 = arith.addf %90, %96 : vector<2x128xf32>
    %c0_59 = arith.constant 0 : index
    %c0_60 = arith.constant 0 : index
    %98 = vector.load %arg5[%c0_59, %c0_60] : memref<2x128xf32, #tpu.memory_space<vmem>>, vector<2x128xf32>
    tpu.vector_store %arg5[%c0_59, %c0_60], %97 {strides = array<i32>} : memref<2x128xf32, #tpu.memory_space<vmem>>, vector<2x128xf32>,
    return
  }
  func.func @transform_0(%arg0: i32) -> (i32, i32) {
    %c0_i32 = arith.constant 0 : i32
    %c0_i32_0 = arith.constant 0 : i32
    %c0_i32_1 = arith.constant 0 : i32
    return %c0_i32, %c0_i32_0 : i32, i32
  }
  func.func @transform_1(%arg0: i32) -> (i32, i32, i32) {
    %c0_i32 = arith.constant 0 : i32
    %c0_i32_0 = arith.constant 0 : i32
    %c0_i32_1 = arith.constant 0 : i32
    %c0_i32_2 = arith.constant 0 : i32
    return %c0_i32, %c0_i32_0, %c0_i32_1 : i32, i32, i32
  }
  func.func @transform_2(%arg0: i32) -> (i32, i32) {
    %c0_i32 = arith.constant 0 : i32
    %c0_i32_0 = arith.constant 0 : i32
    return %arg0, %c0_i32 : i32, i32
  }
  func.func @transform_3(%arg0: i32) -> (i32, i32) {
    %c0_i32 = arith.constant 0 : i32
    %c0_i32_0 = arith.constant 0 : i32
    return %arg0, %c0_i32 : i32, i32
  }
  func.func @transform_4(%arg0: i32) -> (i32, i32) {
    %c0_i32 = arith.constant 0 : i32
    %c0_i32_0 = arith.constant 0 : i32
    %c0_i32_1 = arith.constant 0 : i32
    return %c0_i32, %c0_i32_0 : i32, i32
  }
}

module attributes {stable_mosaic.version = 11 : i64} {
  func.func @_matmul_stats_kernel(%arg0: i32, %arg1: memref<32x64xbf16, #tpu.memory_space<vmem>>, %arg2: memref<64x128xbf16, #tpu.memory_space<vmem>>, %arg3: memref<32x128xf32, #tpu.memory_space<vmem>>, %arg4: memref<2x128xf32, #tpu.memory_space<vmem>>) attributes {dimension_semantics = [#tpu.dimension_semantics<arbitrary>], iteration_bounds = array<i64: 1>, scalar_prefetch = 0 : i64, scratch_operands = 0 : i64, tpu.core_type = #tpu.core_type<tc>, window_params = [{transform_indices = @transform_0, window_bounds = array<i64: 32, 64>}, {pipeline_mode = #tpu.pipeline_mode<synchronous>, transform_indices = @transform_1, window_bounds = array<i64: 64, 128>}, {transform_indices = @transform_2, window_bounds = array<i64: 32, 128>}, {pipeline_mode = #tpu.pipeline_mode<synchronous>, transform_indices = @transform_3, window_bounds = array<i64: 2, 128>}]} {
    %c0_i32 = arith.constant 0 : i32
    %0 = arith.cmpi eq, %arg0, %c0_i32 : i32
    %1 = arith.extui %0 : i1 to i32
    %c0_i32_0 = arith.constant 0 : i32
    %2 = arith.cmpi ne, %1, %c0_i32_0 : i32
    scf.if %2 {
      %cst_12 = arith.constant 0.000000e+00 : f32
      %16 = vector.broadcast %cst_12 : f32 to vector<2x128xf32>
      %c0_13 = arith.constant 0 : index
      %c0_14 = arith.constant 0 : index
      %17 = vector.load %arg4[%c0_13, %c0_14] : memref<2x128xf32, #tpu.memory_space<vmem>>, vector<2x128xf32>
      tpu.vector_store %arg4[%c0_13, %c0_14], %16 {strides = array<i32>} : memref<2x128xf32, #tpu.memory_space<vmem>>, vector<2x128xf32>,
    } else {
    }
    %c0 = arith.constant 0 : index
    %c0_1 = arith.constant 0 : index
    %3 = vector.load %arg1[%c0, %c0_1] : memref<32x64xbf16, #tpu.memory_space<vmem>>, vector<32x64xbf16>
    %c0_2 = arith.constant 0 : index
    %c0_3 = arith.constant 0 : index
    %4 = vector.load %arg2[%c0_2, %c0_3] : memref<64x128xbf16, #tpu.memory_space<vmem>>, vector<64x128xbf16>
    %cst = arith.constant dense<0.000000e+00> : vector<32x128xf32>
    %5 = tpu.matmul %3, %4, %cst {dimension_numbers = #tpu.dot_dimension_numbers<[1], [0], [0], [1], [0, 0, 1, 1], [], []>} : vector<32x64xbf16>, vector<64x128xbf16>, vector<32x128xf32> -> vector<32x128xf32>
    %c0_4 = arith.constant 0 : index
    %c0_5 = arith.constant 0 : index
    %6 = vector.load %arg3[%c0_4, %c0_5] : memref<32x128xf32, #tpu.memory_space<vmem>>, vector<32x128xf32>
    tpu.vector_store %arg3[%c0_4, %c0_5], %5 {strides = array<i32>} : memref<32x128xf32, #tpu.memory_space<vmem>>, vector<32x128xf32>,
    %c0_6 = arith.constant 0 : index
    %c0_7 = arith.constant 0 : index
    %7 = vector.load %arg4[%c0_6, %c0_7] : memref<2x128xf32, #tpu.memory_space<vmem>>, vector<2x128xf32>
    %cst_8 = arith.constant dense<0.000000e+00> : vector<128xf32>
    %8 = vector.multi_reduction <add>, %5, %cst_8 [0] : vector<32x128xf32> to vector<128xf32>
    %9 = vector.shape_cast %8 : vector<128xf32> to vector<1x128xf32>
    %10 = arith.mulf %5, %5 : vector<32x128xf32>
    %cst_9 = arith.constant dense<0.000000e+00> : vector<128xf32>
    %11 = vector.multi_reduction <add>, %10, %cst_9 [0] : vector<32x128xf32> to vector<128xf32>
    %12 = vector.shape_cast %11 : vector<128xf32> to vector<1x128xf32>
    %13 = tpu.concatenate %9, %12 in 0 : vector<1x128xf32>, vector<1x128xf32> -> vector<2x128xf32>
    %14 = arith.addf %7, %13 : vector<2x128xf32>
    %c0_10 = arith.constant 0 : index
    %c0_11 = arith.constant 0 : index
    %15 = vector.load %arg4[%c0_10, %c0_11] : memref<2x128xf32, #tpu.memory_space<vmem>>, vector<2x128xf32>
    tpu.vector_store %arg4[%c0_10, %c0_11], %14 {strides = array<i32>} : memref<2x128xf32, #tpu.memory_space<vmem>>, vector<2x128xf32>,
    return
  }
  func.func @transform_0(%arg0: i32) -> (i32, i32) {
    %c0_i32 = arith.constant 0 : i32
    %c0_i32_0 = arith.constant 0 : i32
    return %arg0, %c0_i32 : i32, i32
  }
  func.func @transform_1(%arg0: i32) -> (i32, i32) {
    %c0_i32 = arith.constant 0 : i32
    %c0_i32_0 = arith.constant 0 : i32
    %c0_i32_1 = arith.constant 0 : i32
    return %c0_i32, %c0_i32_0 : i32, i32
  }
  func.func @transform_2(%arg0: i32) -> (i32, i32) {
    %c0_i32 = arith.constant 0 : i32
    %c0_i32_0 = arith.constant 0 : i32
    return %arg0, %c0_i32 : i32, i32
  }
  func.func @transform_3(%arg0: i32) -> (i32, i32) {
    %c0_i32 = arith.constant 0 : i32
    %c0_i32_0 = arith.constant 0 : i32
    %c0_i32_1 = arith.constant 0 : i32
    return %c0_i32, %c0_i32_0 : i32, i32
  }
}

module attributes {stable_mosaic.version = 11 : i64} {
  func.func @_bn_relu_add_bnsc_relu_kernel(%arg0: i32, %arg1: memref<32x128xf32, #tpu.memory_space<vmem>>, %arg2: memref<32x128xf32, #tpu.memory_space<vmem>>, %arg3: memref<1x128xf32, #tpu.memory_space<vmem>>, %arg4: memref<1x128xf32, #tpu.memory_space<vmem>>, %arg5: memref<1x128xf32, #tpu.memory_space<vmem>>, %arg6: memref<1x128xf32, #tpu.memory_space<vmem>>, %arg7: memref<32x128xf32, #tpu.memory_space<vmem>>) attributes {dimension_semantics = [#tpu.dimension_semantics<parallel>], iteration_bounds = array<i64: 1>, scalar_prefetch = 0 : i64, scratch_operands = 0 : i64, tpu.core_type = #tpu.core_type<tc>, window_params = [{transform_indices = @transform_0, window_bounds = array<i64: 32, 128>}, {transform_indices = @transform_1, window_bounds = array<i64: 32, 128>}, {pipeline_mode = #tpu.pipeline_mode<synchronous>, transform_indices = @transform_2, window_bounds = array<i64: 1, 128>}, {pipeline_mode = #tpu.pipeline_mode<synchronous>, transform_indices = @transform_3, window_bounds = array<i64: 1, 128>}, {pipeline_mode = #tpu.pipeline_mode<synchronous>, transform_indices = @transform_4, window_bounds = array<i64: 1, 128>}, {pipeline_mode = #tpu.pipeline_mode<synchronous>, transform_indices = @transform_5, window_bounds = array<i64: 1, 128>}, {transform_indices = @transform_6, window_bounds = array<i64: 32, 128>}]} {
    %c0 = arith.constant 0 : index
    %c0_0 = arith.constant 0 : index
    %0 = vector.load %arg1[%c0, %c0_0] : memref<32x128xf32, #tpu.memory_space<vmem>>, vector<32x128xf32>
    %c0_1 = arith.constant 0 : index
    %c0_2 = arith.constant 0 : index
    %1 = vector.load %arg3[%c0_1, %c0_2] : memref<1x128xf32, #tpu.memory_space<vmem>>, vector<1x128xf32>
    %2 = vector.broadcast %1 : vector<1x128xf32> to vector<32x128xf32>
    %3 = arith.mulf %0, %2 : vector<32x128xf32>
    %c0_3 = arith.constant 0 : index
    %c0_4 = arith.constant 0 : index
    %4 = vector.load %arg4[%c0_3, %c0_4] : memref<1x128xf32, #tpu.memory_space<vmem>>, vector<1x128xf32>
    %5 = vector.broadcast %4 : vector<1x128xf32> to vector<32x128xf32>
    %6 = arith.addf %3, %5 : vector<32x128xf32>
    %cst = arith.constant 0.000000e+00 : f32
    %7 = vector.broadcast %cst : f32 to vector<32x128xf32>
    %8 = arith.maximumf %6, %7 : vector<32x128xf32>
    %c0_5 = arith.constant 0 : index
    %c0_6 = arith.constant 0 : index
    %9 = vector.load %arg2[%c0_5, %c0_6] : memref<32x128xf32, #tpu.memory_space<vmem>>, vector<32x128xf32>
    %c0_7 = arith.constant 0 : index
    %c0_8 = arith.constant 0 : index
    %10 = vector.load %arg5[%c0_7, %c0_8] : memref<1x128xf32, #tpu.memory_space<vmem>>, vector<1x128xf32>
    %11 = vector.broadcast %10 : vector<1x128xf32> to vector<32x128xf32>
    %12 = arith.mulf %9, %11 : vector<32x128xf32>
    %c0_9 = arith.constant 0 : index
    %c0_10 = arith.constant 0 : index
    %13 = vector.load %arg6[%c0_9, %c0_10] : memref<1x128xf32, #tpu.memory_space<vmem>>, vector<1x128xf32>
    %14 = vector.broadcast %13 : vector<1x128xf32> to vector<32x128xf32>
    %15 = arith.addf %12, %14 : vector<32x128xf32>
    %16 = arith.addf %8, %15 : vector<32x128xf32>
    %cst_11 = arith.constant 0.000000e+00 : f32
    %17 = vector.broadcast %cst_11 : f32 to vector<32x128xf32>
    %18 = arith.maximumf %16, %17 : vector<32x128xf32>
    %c0_12 = arith.constant 0 : index
    %c0_13 = arith.constant 0 : index
    %19 = vector.load %arg7[%c0_12, %c0_13] : memref<32x128xf32, #tpu.memory_space<vmem>>, vector<32x128xf32>
    tpu.vector_store %arg7[%c0_12, %c0_13], %18 {strides = array<i32>} : memref<32x128xf32, #tpu.memory_space<vmem>>, vector<32x128xf32>,
    return
  }
  func.func @transform_0(%arg0: i32) -> (i32, i32) {
    %c0_i32 = arith.constant 0 : i32
    %c0_i32_0 = arith.constant 0 : i32
    return %arg0, %c0_i32 : i32, i32
  }
  func.func @transform_1(%arg0: i32) -> (i32, i32) {
    %c0_i32 = arith.constant 0 : i32
    %c0_i32_0 = arith.constant 0 : i32
    return %arg0, %c0_i32 : i32, i32
  }
  func.func @transform_2(%arg0: i32) -> (i32, i32) {
    %c0_i32 = arith.constant 0 : i32
    %c0_i32_0 = arith.constant 0 : i32
    %c0_i32_1 = arith.constant 0 : i32
    return %c0_i32, %c0_i32_0 : i32, i32
  }
  func.func @transform_3(%arg0: i32) -> (i32, i32) {
    %c0_i32 = arith.constant 0 : i32
    %c0_i32_0 = arith.constant 0 : i32
    %c0_i32_1 = arith.constant 0 : i32
    return %c0_i32, %c0_i32_0 : i32, i32
  }
  func.func @transform_4(%arg0: i32) -> (i32, i32) {
    %c0_i32 = arith.constant 0 : i32
    %c0_i32_0 = arith.constant 0 : i32
    %c0_i32_1 = arith.constant 0 : i32
    return %c0_i32, %c0_i32_0 : i32, i32
  }
  func.func @transform_5(%arg0: i32) -> (i32, i32) {
    %c0_i32 = arith.constant 0 : i32
    %c0_i32_0 = arith.constant 0 : i32
    %c0_i32_1 = arith.constant 0 : i32
    return %c0_i32, %c0_i32_0 : i32, i32
  }
  func.func @transform_6(%arg0: i32) -> (i32, i32) {
    %c0_i32 = arith.constant 0 : i32
    %c0_i32_0 = arith.constant 0 : i32
    return %arg0, %c0_i32 : i32, i32
  }
}

module attributes {stable_mosaic.version = 11 : i64} {
  func.func @_bn_relu_add_relu_kernel(%arg0: i32, %arg1: memref<32x128xf32, #tpu.memory_space<vmem>>, %arg2: memref<32x128xf32, #tpu.memory_space<vmem>>, %arg3: memref<1x128xf32, #tpu.memory_space<vmem>>, %arg4: memref<1x128xf32, #tpu.memory_space<vmem>>, %arg5: memref<32x128xf32, #tpu.memory_space<vmem>>) attributes {dimension_semantics = [#tpu.dimension_semantics<parallel>], iteration_bounds = array<i64: 1>, scalar_prefetch = 0 : i64, scratch_operands = 0 : i64, tpu.core_type = #tpu.core_type<tc>, window_params = [{transform_indices = @transform_0, window_bounds = array<i64: 32, 128>}, {transform_indices = @transform_1, window_bounds = array<i64: 32, 128>}, {pipeline_mode = #tpu.pipeline_mode<synchronous>, transform_indices = @transform_2, window_bounds = array<i64: 1, 128>}, {pipeline_mode = #tpu.pipeline_mode<synchronous>, transform_indices = @transform_3, window_bounds = array<i64: 1, 128>}, {transform_indices = @transform_4, window_bounds = array<i64: 32, 128>}]} {
    %c0 = arith.constant 0 : index
    %c0_0 = arith.constant 0 : index
    %0 = vector.load %arg1[%c0, %c0_0] : memref<32x128xf32, #tpu.memory_space<vmem>>, vector<32x128xf32>
    %c0_1 = arith.constant 0 : index
    %c0_2 = arith.constant 0 : index
    %1 = vector.load %arg3[%c0_1, %c0_2] : memref<1x128xf32, #tpu.memory_space<vmem>>, vector<1x128xf32>
    %2 = vector.broadcast %1 : vector<1x128xf32> to vector<32x128xf32>
    %3 = arith.mulf %0, %2 : vector<32x128xf32>
    %c0_3 = arith.constant 0 : index
    %c0_4 = arith.constant 0 : index
    %4 = vector.load %arg4[%c0_3, %c0_4] : memref<1x128xf32, #tpu.memory_space<vmem>>, vector<1x128xf32>
    %5 = vector.broadcast %4 : vector<1x128xf32> to vector<32x128xf32>
    %6 = arith.addf %3, %5 : vector<32x128xf32>
    %cst = arith.constant 0.000000e+00 : f32
    %7 = vector.broadcast %cst : f32 to vector<32x128xf32>
    %8 = arith.maximumf %6, %7 : vector<32x128xf32>
    %c0_5 = arith.constant 0 : index
    %c0_6 = arith.constant 0 : index
    %9 = vector.load %arg2[%c0_5, %c0_6] : memref<32x128xf32, #tpu.memory_space<vmem>>, vector<32x128xf32>
    %10 = arith.addf %8, %9 : vector<32x128xf32>
    %cst_7 = arith.constant 0.000000e+00 : f32
    %11 = vector.broadcast %cst_7 : f32 to vector<32x128xf32>
    %12 = arith.maximumf %10, %11 : vector<32x128xf32>
    %c0_8 = arith.constant 0 : index
    %c0_9 = arith.constant 0 : index
    %13 = vector.load %arg5[%c0_8, %c0_9] : memref<32x128xf32, #tpu.memory_space<vmem>>, vector<32x128xf32>
    tpu.vector_store %arg5[%c0_8, %c0_9], %12 {strides = array<i32>} : memref<32x128xf32, #tpu.memory_space<vmem>>, vector<32x128xf32>,
    return
  }
  func.func @transform_0(%arg0: i32) -> (i32, i32) {
    %c0_i32 = arith.constant 0 : i32
    %c0_i32_0 = arith.constant 0 : i32
    return %arg0, %c0_i32 : i32, i32
  }
  func.func @transform_1(%arg0: i32) -> (i32, i32) {
    %c0_i32 = arith.constant 0 : i32
    %c0_i32_0 = arith.constant 0 : i32
    return %arg0, %c0_i32 : i32, i32
  }
  func.func @transform_2(%arg0: i32) -> (i32, i32) {
    %c0_i32 = arith.constant 0 : i32
    %c0_i32_0 = arith.constant 0 : i32
    %c0_i32_1 = arith.constant 0 : i32
    return %c0_i32, %c0_i32_0 : i32, i32
  }
  func.func @transform_3(%arg0: i32) -> (i32, i32) {
    %c0_i32 = arith.constant 0 : i32
    %c0_i32_0 = arith.constant 0 : i32
    %c0_i32_1 = arith.constant 0 : i32
    return %c0_i32, %c0_i32_0 : i32, i32
  }
  func.func @transform_4(%arg0: i32) -> (i32, i32) {
    %c0_i32 = arith.constant 0 : i32
    %c0_i32_0 = arith.constant 0 : i32
    return %arg0, %c0_i32 : i32, i32
  }
}

module attributes {stable_mosaic.version = 11 : i64} {
  func.func @_gap_fc_kernel(%arg0: i32, %arg1: memref<2x16x128xf32, #tpu.memory_space<vmem>>, %arg2: memref<128x1000xf32, #tpu.memory_space<vmem>>, %arg3: memref<1x1000xf32, #tpu.memory_space<vmem>>, %arg4: memref<2x1000xf32, #tpu.memory_space<vmem>>) attributes {dimension_semantics = [#tpu.dimension_semantics<arbitrary>], iteration_bounds = array<i64: 1>, scalar_prefetch = 0 : i64, scratch_operands = 0 : i64, tpu.core_type = #tpu.core_type<tc>, window_params = [{pipeline_mode = #tpu.pipeline_mode<synchronous>, transform_indices = @transform_0, window_bounds = array<i64: 2, 16, 128>}, {pipeline_mode = #tpu.pipeline_mode<synchronous>, transform_indices = @transform_1, window_bounds = array<i64: 128, 1000>}, {pipeline_mode = #tpu.pipeline_mode<synchronous>, transform_indices = @transform_2, window_bounds = array<i64: 1, 1000>}, {pipeline_mode = #tpu.pipeline_mode<synchronous>, transform_indices = @transform_3, window_bounds = array<i64: 2, 1000>}]} {
    %c0 = arith.constant 0 : index
    %c0_0 = arith.constant 0 : index
    %c0_1 = arith.constant 0 : index
    %0 = vector.load %arg1[%c0, %c0_0, %c0_1] : memref<2x16x128xf32, #tpu.memory_space<vmem>>, vector<2x16x128xf32>
    %cst = arith.constant dense<0.000000e+00> : vector<2x128xf32>
    %1 = vector.multi_reduction <add>, %0, %cst [1] : vector<2x16x128xf32> to vector<2x128xf32>
    %cst_2 = arith.constant 1.600000e+01 : f32
    %2 = vector.broadcast %cst_2 : f32 to vector<2x128xf32>
    %3 = arith.divf %1, %2 : vector<2x128xf32>
    %c0_3 = arith.constant 0 : index
    %c0_4 = arith.constant 0 : index
    %4 = vector.load %arg2[%c0_3, %c0_4] : memref<128x1000xf32, #tpu.memory_space<vmem>>, vector<128x1000xf32>
    %cst_5 = arith.constant dense<0.000000e+00> : vector<2x1000xf32>
    %5 = tpu.matmul %3, %4, %cst_5 {dimension_numbers = #tpu.dot_dimension_numbers<[1], [0], [0], [1], [0, 0, 1, 1], [], []>} : vector<2x128xf32>, vector<128x1000xf32>, vector<2x1000xf32> -> vector<2x1000xf32>
    %c0_6 = arith.constant 0 : index
    %c0_7 = arith.constant 0 : index
    %6 = vector.load %arg3[%c0_6, %c0_7] : memref<1x1000xf32, #tpu.memory_space<vmem>>, vector<1x1000xf32>
    %7 = vector.broadcast %6 : vector<1x1000xf32> to vector<2x1000xf32>
    %8 = arith.addf %5, %7 : vector<2x1000xf32>
    %c0_8 = arith.constant 0 : index
    %c0_9 = arith.constant 0 : index
    %9 = vector.load %arg4[%c0_8, %c0_9] : memref<2x1000xf32, #tpu.memory_space<vmem>>, vector<2x1000xf32>
    tpu.vector_store %arg4[%c0_8, %c0_9], %8 {strides = array<i32>} : memref<2x1000xf32, #tpu.memory_space<vmem>>, vector<2x1000xf32>,
    return
  }
  func.func @transform_0(%arg0: i32) -> (i32, i32, i32) {
    %c0_i32 = arith.constant 0 : i32
    %c0_i32_0 = arith.constant 0 : i32
    %c0_i32_1 = arith.constant 0 : i32
    %c0_i32_2 = arith.constant 0 : i32
    return %c0_i32, %c0_i32_0, %c0_i32_1 : i32, i32, i32
  }
  func.func @transform_1(%arg0: i32) -> (i32, i32) {
    %c0_i32 = arith.constant 0 : i32
    %c0_i32_0 = arith.constant 0 : i32
    %c0_i32_1 = arith.constant 0 : i32
    return %c0_i32, %c0_i32_0 : i32, i32
  }
  func.func @transform_2(%arg0: i32) -> (i32, i32) {
    %c0_i32 = arith.constant 0 : i32
    %c0_i32_0 = arith.constant 0 : i32
    %c0_i32_1 = arith.constant 0 : i32
    return %c0_i32, %c0_i32_0 : i32, i32
  }
  func.func @transform_3(%arg0: i32) -> (i32, i32) {
    %c0_i32 = arith.constant 0 : i32
    %c0_i32_0 = arith.constant 0 : i32
    %c0_i32_1 = arith.constant 0 : i32
    return %c0_i32, %c0_i32_0 : i32, i32
  }
}

</mosaic_0001>

<bundles_post_ra>
// kernel: resnet_small_forward.21
= control target key start
LH: loop header
LB: loop body
LE: loop exit
PB: predicated region body
PF: predicated region fallthrough
CT: control target
= control target key end

     0   :  { %vm537_vm0 = vcmask 1040384   ;;  %vm538_vm1 = vcmask 1041408   ;;  %v1359_v2 = vmov 65535   ;;  %vm440_vm2 = vcmask 154624   ;;  %s2113_s1 = inlined_call_operand.vmem [shape: bf16[147,64], index: 1, kind: input, shape index: {}]   ;;  %s2114_s0 = inlined_call_operand.vmem [shape: bf16[512,147], index: 0, kind: input, shape index: {}]   ;;  %s2115_s2 = inlined_call_operand.vmem [shape: f32[512,64], index: 2, kind: output, shape index: {}]  }
   0x1   :  { %v1346_v0 = vld [vmem:[%s2113_s1 + $0x38] sm:$0xff]  ;;  %v94_v1 = vld [vmem:[%s2113_s1 + $0x48] sm:$0x3]  ;;  %v539_v3 = vsel %vm537_vm0, 4294967295, %v1359_v2  ;;  %v1345_v5 = vld [vmem:[%s2113_s1 + $0x30] sm:$0xff]  ;;  %vm882_vm3 = vcmask 523264  }
   0x2   :  { %v420_v4 = vunpack.c.l.b16 %v94_v1  ;;  %544 = vmatpush.bf16.msra.mxu0 %v1346_v0  ;;  %1348 = vmatpush.bf16.msra.mxu2 %v1346_v0  ;;  %v540_v6 = vsel %vm538_vm1, %v539_v3, 0  ;;  %v1344_v9 = vld [vmem:[%s2113_s1 + $0x28] sm:$0xff]  ;;  %v1347_v10 = vld [vmem:[%s2113_s1 + $0x40] sm:$0xff]  ;;  %v1309_v13 = vld [vmem:[%s2114_s0 + $0x114] sm:$0xf] }
   0x3   :  { %v1275_v11 = vld [vmem:[%s2114_s0 + $0x4] sm:$0xf]  ;;  %v955_v12 = vld [vmem:[%s2114_s0 + $0x8] sm:$0xf0]  ;;  %v1091_v14 = vld [vmem:[%s2114_s0 + $0x118] sm:$0xf0] }
   0x4   :  { %v430_v7 = vpack.c.b16 %v420_v4, %v420_v4  ;;  %v958_v15 = vor.u32 %v1275_v11, %v955_v12  ;;  %v1343_v16 = vld [vmem:[%s2113_s1 + $0x20] sm:$0xff]  ;;  %v1094_v17 = vor.u32 %v1309_v13, %v1091_v14  ;;  %v1342_v18 = vld [vmem:[%s2113_s1 + $0x18] sm:$0xff]  ;;  %v1341_v19 = vld [vmem:[%s2113_s1 + $0x10] sm:$0xff] }
   0x5   :  { %v1340_v20 = vld [vmem:[%s2113_s1 + $0x8] sm:$0xff]  ;;  %v1277_v21 = vld [vmem:[%s2114_s0 + $0x14] sm:$0xf]  ;;  %v963_v22 = vld [vmem:[%s2114_s0 + $0x18] sm:$0xf0] }
   0x6   :  { %v542_v8 = vand.u32 %v540_v6, %v430_v7  ;;  %545 = vmatpush.bf16.msra.mxu0 %v1345_v5  ;;  %1349 = vmatpush.bf16.msra.mxu2 %v1345_v5  ;;  %v1311_v23 = vld [vmem:[%s2114_s0 + $0x124] sm:$0xf]  ;;  %v1099_v24 = vld [vmem:[%s2114_s0 + $0x128] sm:$0xf0]  ;;  %v966_v25 = vor.u32 %v1277_v21, %v963_v22  ;;  %v953_v27 = vld [vmem:[%s2114_s0] sm:$0xf] }
   0x7   :  { %v1339_v26 = vld [vmem:[%s2113_s1] sm:$0xff]  ;;  %v1276_v28 = vld [vmem:[%s2114_s0 + $0x4] sm:$0xf0]  ;;  %v1102_v31 = vor.u32 %v1311_v23, %v1099_v24  ;;  %v971_v35 = vld [vmem:[%s2114_s0 + $0x28] sm:$0xf0] }
   0x8   :  { %719 = vmatpush.bf16.msra.mxu1 %v542_v8  ;;  %1356 = vmatpush.bf16.msra.mxu3 %v542_v8  ;;  %v1081_v29 = vld [vmem:[%s2114_s0 + $0x100] sm:$0xf]  ;;  %v1308_v30 = vld [vmem:[%s2114_s0 + $0x104] sm:$0xf0]  ;;  %v954_v32 = vor.u32 %v1276_v28, %v953_v27  ;;  %v1279_v34 = vld [vmem:[%s2114_s0 + $0x24] sm:$0xf] }
   0x9   :  { %v1082_v33 = vor.u32 %v1308_v30, %v1081_v29  ;;  %v1313_v36 = vld [vmem:[%s2114_s0 + $0x134] sm:$0xf]  ;;  %v1107_v37 = vld [vmem:[%s2114_s0 + $0x138] sm:$0xf0]  ;;  %v974_v38 = vor.u32 %v1279_v34, %v971_v35  ;;  %v961_v39 = vld [vmem:[%s2114_s0 + $0x10] sm:$0xf] }
   0xa   :  { %546 = vmatpush.bf16.msra.mxu0 %v1344_v9  ;;  %1350 = vmatpush.bf16.msra.mxu2 %v1344_v9  ;;  %v1278_v40 = vld [vmem:[%s2114_s0 + $0x14] sm:$0xf0]  ;;  %v1089_v41 = vld [vmem:[%s2114_s0 + $0x110] sm:$0xf]  ;;  %v1110_v43 = vor.u32 %v1313_v36, %v1107_v37  ;;  %v1281_v46 = vld [vmem:[%s2114_s0 + $0x34] sm:$0xf] }
   0xb   :  { %v1310_v42 = vld [vmem:[%s2114_s0 + $0x114] sm:$0xf0]  ;;  %v962_v44 = vor.u32 %v1278_v40, %v961_v39  ;;  %v979_v47 = vld [vmem:[%s2114_s0 + $0x38] sm:$0xf0]  ;;  %v1315_v48 = vld [vmem:[%s2114_s0 + $0x144] sm:$0xf] }
   0xc   :  { %720 = vmatpush.bf16.msra.mxu1 %v1347_v10  ;;  %1357 = vmatpush.bf16.msra.mxu3 %v1347_v10  ;;  %v1090_v45 = vor.u32 %v1310_v42, %v1089_v41  ;;  %v1115_v49 = vld [vmem:[%s2114_s0 + $0x148] sm:$0xf0]  ;;  %v982_v50 = vor.u32 %v1281_v46, %v979_v47  ;;  %v969_v51 = vld [vmem:[%s2114_s0 + $0x20] sm:$0xf]  ;;  %v1280_v52 = vld [vmem:[%s2114_s0 + $0x24] sm:$0xf0] }
   0xd   :  { %v1097_v53 = vld [vmem:[%s2114_s0 + $0x120] sm:$0xf]  ;;  %v1312_v54 = vld [vmem:[%s2114_s0 + $0x124] sm:$0xf0]  ;;  %v1118_v55 = vor.u32 %v1315_v48, %v1115_v49  ;;  %v970_v56 = vor.u32 %v1280_v52, %v969_v51  ;;  %v1283_v58 = vld [vmem:[%s2114_s0 + $0x44] sm:$0xf] }
   0xe   :  { %547 = vmatpush.bf16.msra.mxu0 %v1343_v16  ;;  %1351 = vmatpush.bf16.msra.mxu2 %v1343_v16  ;;  %v1098_v57 = vor.u32 %v1312_v54, %v1097_v53  ;;  %v987_v59 = vld [vmem:[%s2114_s0 + $0x48] sm:$0xf0]  ;;  %v1317_v60 = vld [vmem:[%s2114_s0 + $0x154] sm:$0xf]  ;;  %v1123_v61 = vld [vmem:[%s2114_s0 + $0x158] sm:$0xf0] }
   0xf   :  { %1243 = vmatmul.msk.bf16.vlgmr.msra.gmra.mxu1 %vm440_vm2, %v958_v15  ;;  %1260 = vmatmul.msk.bf16.vlgmr.msra.gmra.mxu3 %vm440_vm2, %v1094_v17  ;;  %v990_v62 = vor.u32 %v1283_v58, %v987_v59  ;;  %v977_v63 = vld [vmem:[%s2114_s0 + $0x30] sm:$0xf]  ;;  %v1282_v0 = vld [vmem:[%s2114_s0 + $0x34] sm:$0xf0]  ;;  %v1126_v3 = vor.u32 %v1317_v60, %v1123_v61  ;;  %v1285_v6 = vld [vmem:[%s2114_s0 + $0x54] sm:$0xf] }
  0x10   :  { %v1105_v1 = vld [vmem:[%s2114_s0 + $0x130] sm:$0xf]  ;;  %v1314_v2 = vld [vmem:[%s2114_s0 + $0x134] sm:$0xf0]  ;;  %v978_v4 = vor.u32 %v1282_v0, %v977_v63  ;;  %v995_v7 = vld [vmem:[%s2114_s0 + $0x58] sm:$0xf0] }
  0x11   :  { %v1106_v5 = vor.u32 %v1314_v2, %v1105_v1  ;;  %v1319_v8 = vld [vmem:[%s2114_s0 + $0x164] sm:$0xf]  ;;  %v1131_v9 = vld [vmem:[%s2114_s0 + $0x168] sm:$0xf0]  ;;  %v998_v10 = vor.u32 %v1285_v6, %v995_v7  ;;  %v985_v11 = vld [vmem:[%s2114_s0 + $0x40] sm:$0xf] }
  0x12   :  { %548 = vmatpush.bf16.msra.mxu0 %v1342_v18  ;;  %1352 = vmatpush.bf16.msra.mxu2 %v1342_v18  ;;  %v1284_v12 = vld [vmem:[%s2114_s0 + $0x44] sm:$0xf0]  ;;  %v1113_v13 = vld [vmem:[%s2114_s0 + $0x140] sm:$0xf]  ;;  %v1134_v15 = vor.u32 %v1319_v8, %v1131_v9  ;;  %v1287_v18 = vld [vmem:[%s2114_s0 + $0x64] sm:$0xf] }
  0x13   :  { %v1316_v14 = vld [vmem:[%s2114_s0 + $0x144] sm:$0xf0]  ;;  %v986_v16 = vor.u32 %v1284_v12, %v985_v11  ;;  %v1139_v21 = vld [vmem:[%s2114_s0 + $0x178] sm:$0xf0]  ;;  %v993_v23 = vld [vmem:[%s2114_s0 + $0x50] sm:$0xf] }
  0x14   :  { %v1114_v17 = vor.u32 %v1316_v14, %v1113_v13  ;;  %v1286_v24 = vld [vmem:[%s2114_s0 + $0x54] sm:$0xf0]  ;;  %v1289_v30 = vld [vmem:[%s2114_s0 + $0x74] sm:$0xf]  ;;  %v1001_v35 = vld [vmem:[%s2114_s0 + $0x60] sm:$0xf] }
  0x15   :  { %v994_v28 = vor.u32 %v1286_v24, %v993_v23  ;;  %v1288_v36 = vld [vmem:[%s2114_s0 + $0x64] sm:$0xf0]  ;;  %v1129_v37 = vld [vmem:[%s2114_s0 + $0x160] sm:$0xf]  ;;  %v1291_v42 = vld [vmem:[%s2114_s0 + $0x84] sm:$0xf] }
  0x16   :  { %549 = vmatpush.bf16.msra.mxu0 %v1341_v19  ;;  %1353 = vmatpush.bf16.msra.mxu2 %v1341_v19  ;;  %v1003_v19 = vld [vmem:[%s2114_s0 + $0x68] sm:$0xf0]  ;;  %v1002_v40 = vor.u32 %v1288_v36, %v1001_v35  ;;  %v1009_v47 = vld [vmem:[%s2114_s0 + $0x70] sm:$0xf]  ;;  %v1290_v48 = vld [vmem:[%s2114_s0 + $0x74] sm:$0xf0] }
  0x17   :  { %v1006_v22 = vor.u32 %v1287_v18, %v1003_v19  ;;  %v1322_v51 = vld [vmem:[%s2114_s0 + $0x174] sm:$0xf0]  ;;  %v1010_v53 = vor.u32 %v1290_v48, %v1009_v47  ;;  %v1027_v58 = vld [vmem:[%s2114_s0 + $0x98] sm:$0xf0]  ;;  %v1327_v59 = vld [vmem:[%s2114_s0 + $0x1a4] sm:$0xf] }
  0x18   :  { %v1163_v60 = vld [vmem:[%s2114_s0 + $0x1a8] sm:$0xf0]  ;;  %v1292_v63 = vld [vmem:[%s2114_s0 + $0x84] sm:$0xf0]  ;;  %v1145_v2 = vld [vmem:[%s2114_s0 + $0x180] sm:$0xf] }
  0x19   :  { %v1295_v14 = vld [vmem:[%s2114_s0 + $0xa4] sm:$0xf]  ;;  %v1025_v19 = vld [vmem:[%s2114_s0 + $0x90] sm:$0xf]  ;;  %v1326_v24 = vld [vmem:[%s2114_s0 + $0x194] sm:$0xf0] }
  0x1a   :  { %550 = vmatpush.bf16.msra.mxu0 %v1340_v20  ;;  %1354 = vmatpush.bf16.msra.mxu2 %v1340_v20  ;;  %v1321_v20 = vld [vmem:[%s2114_s0 + $0x174] sm:$0xf]  ;;  %v1153_v23 = vld [vmem:[%s2114_s0 + $0x190] sm:$0xf]  ;;  %v1328_v47 = vld [vmem:[%s2114_s0 + $0x1a4] sm:$0xf0] }
  0x1b   :  { %v1142_v27 = vor.u32 %v1321_v20, %v1139_v21  ;;  %v1294_v20 = vld [vmem:[%s2114_s0 + $0x94] sm:$0xf0] }
  0x1e   :  { %551 = vmatpush.bf16.msra.mxu0 %v1339_v26  ;;  %1355 = vmatpush.bf16.msra.mxu2 %v1339_v26  ;;  %v1318_v26 = vld [vmem:[%s2114_s0 + $0x154] sm:$0xf0] }
  0x1f   :  { %1244 = vmatmul.msk.bf16.gmra.mxu1 %vm440_vm2, %v966_v25  ;;  %1261 = vmatmul.msk.bf16.gmra.mxu3 %vm440_vm2, %v1102_v31  ;;  %v1121_v25 = vld [vmem:[%s2114_s0 + $0x150] sm:$0xf]  ;;  %v1011_v31 = vld [vmem:[%s2114_s0 + $0x78] sm:$0xf0] }
  0x20   :  { %v1122_v29 = vor.u32 %v1318_v26, %v1121_v25  ;;  %v1014_v34 = vor.u32 %v1289_v30, %v1011_v31 }
  0x21   :  { %552 = vmatmul.bf16.vlgmr.msra.gmra.mxu0 %v954_v32  ;;  %632 = vmatmul.bf16.vlgmr.msra.gmra.mxu2 %v1082_v33  ;;  %v1323_v32 = vld [vmem:[%s2114_s0 + $0x184] sm:$0xf]  ;;  %v1147_v33 = vld [vmem:[%s2114_s0 + $0x188] sm:$0xf0] }
  0x22   :  { %v1150_v39 = vor.u32 %v1323_v32, %v1147_v33 }
  0x2f   :  { %1245 = vmatmul.msk.bf16.gmra.mxu1 %vm440_vm2, %v974_v38  ;;  %1262 = vmatmul.msk.bf16.gmra.mxu3 %vm440_vm2, %v1110_v43  ;;  %v1320_v38 = vld [vmem:[%s2114_s0 + $0x164] sm:$0xf0]  ;;  %v1019_v43 = vld [vmem:[%s2114_s0 + $0x88] sm:$0xf0] }
  0x30   :  { %v1130_v41 = vor.u32 %v1320_v38, %v1129_v37  ;;  %v1022_v46 = vor.u32 %v1291_v42, %v1019_v43  ;;  %v1297_v37 = vld [vmem:[%s2114_s0 + $0xb4] sm:$0xf]  ;;  %v1043_v38 = vld [vmem:[%s2114_s0 + $0xb8] sm:$0xf0]  ;;  %v1033_v42 = vld [vmem:[%s2114_s0 + $0xa0] sm:$0xf] }
  0x31   :  { %557 = vmatmul.bf16.gmra.mxu0 %v962_v44  ;;  %637 = vmatmul.bf16.gmra.mxu2 %v1090_v45  ;;  %v1325_v44 = vld [vmem:[%s2114_s0 + $0x194] sm:$0xf]  ;;  %v1155_v45 = vld [vmem:[%s2114_s0 + $0x198] sm:$0xf0]  ;;  %v1296_v43 = vld [vmem:[%s2114_s0 + $0xa4] sm:$0xf0] }
  0x32   :  { %v1158_v52 = vor.u32 %v1325_v44, %v1155_v45 }
  0x3f   :  { %1246 = vmatmul.msk.bf16.gmra.mxu1 %vm440_vm2, %v982_v50  ;;  %1263 = vmatmul.msk.bf16.gmra.mxu3 %vm440_vm2, %v1118_v55  ;;  %v1137_v50 = vld [vmem:[%s2114_s0 + $0x170] sm:$0xf] }
  0x40   :  { %v1138_v54 = vor.u32 %v1322_v51, %v1137_v50  ;;  %v1034_v50 = vor.u32 %v1296_v43, %v1033_v42 }
  0x41   :  { %562 = vmatmul.bf16.gmra.mxu0 %v970_v56  ;;  %642 = vmatmul.bf16.gmra.mxu2 %v1098_v57  ;;  %v1293_v57 = vld [vmem:[%s2114_s0 + $0x94] sm:$0xf] }
  0x42   :  { %v1030_v61 = vor.u32 %v1293_v57, %v1027_v58 }
  0x4f   :  { %1247 = vmatmul.msk.bf16.gmra.mxu1 %vm440_vm2, %v990_v62  ;;  %1264 = vmatmul.msk.bf16.gmra.mxu3 %vm440_vm2, %v1126_v3  ;;  %v1017_v62 = vld [vmem:[%s2114_s0 + $0x80] sm:$0xf]  ;;  %v1324_v3 = vld [vmem:[%s2114_s0 + $0x184] sm:$0xf0] }
  0x50   :  { %v1146_v7 = vor.u32 %v1324_v3, %v1145_v2  ;;  %v1041_v2 = vld [vmem:[%s2114_s0 + $0xb0] sm:$0xf]  ;;  %v1298_v3 = vld [vmem:[%s2114_s0 + $0xb4] sm:$0xf0] }
  0x51   :  { %567 = vmatmul.bf16.gmra.mxu0 %v978_v4  ;;  %647 = vmatmul.bf16.gmra.mxu2 %v1106_v5  ;;  %v1166_v4 = vor.u32 %v1327_v59, %v1163_v60  ;;  %v1018_v5 = vor.u32 %v1292_v63, %v1017_v62  ;;  %v1051_v62 = vld [vmem:[%s2114_s0 + $0xc8] sm:$0xf0]  ;;  %v1333_v63 = vld [vmem:[%s2114_s0 + $0x1d4] sm:$0xf] }
  0x5f   :  { %1248 = vmatmul.msk.bf16.gmra.mxu1 %vm440_vm2, %v998_v10  ;;  %1265 = vmatmul.msk.bf16.gmra.mxu3 %vm440_vm2, %v1134_v15  ;;  %v1035_v15 = vld [vmem:[%s2114_s0 + $0xa8] sm:$0xf0] }
  0x60   :  { %v1038_v18 = vor.u32 %v1295_v14, %v1035_v15 }
  0x61   :  { %572 = vmatmul.bf16.gmra.mxu0 %v986_v16  ;;  %652 = vmatmul.bf16.gmra.mxu2 %v1114_v17  ;;  %v1329_v16 = vld [vmem:[%s2114_s0 + $0x1b4] sm:$0xf]  ;;  %v1171_v17 = vld [vmem:[%s2114_s0 + $0x1b8] sm:$0xf0] }
  0x62   :  { %v1174_v25 = vor.u32 %v1329_v16, %v1171_v17 }
  0x6f   :  { %1249 = vmatmul.msk.bf16.gmra.mxu1 %vm440_vm2, %v1006_v22  ;;  %1266 = vmatmul.msk.bf16.gmra.mxu3 %vm440_vm2, %v1142_v27  ;;  %v1026_v27 = vor.u32 %v1294_v20, %v1025_v19 }
  0x71   :  { %577 = vmatmul.bf16.gmra.mxu0 %v994_v28  ;;  %657 = vmatmul.bf16.gmra.mxu2 %v1122_v29  ;;  %v1154_v29 = vor.u32 %v1326_v24, %v1153_v23  ;;  %v1059_v23 = vld [vmem:[%s2114_s0 + $0xd8] sm:$0xf0]  ;;  %v1335_v24 = vld [vmem:[%s2114_s0 + $0x1e4] sm:$0xf] }
  0x7f   :  { %1250 = vmatmul.msk.bf16.gmra.mxu1 %vm440_vm2, %v1014_v34  ;;  %1267 = vmatmul.msk.bf16.gmra.mxu3 %vm440_vm2, %v1150_v39  ;;  %v1331_v39 = vld [vmem:[%s2114_s0 + $0x1c4] sm:$0xf] }
  0x81   :  { %582 = vmatmul.bf16.gmra.mxu0 %v1002_v40  ;;  %662 = vmatmul.bf16.gmra.mxu2 %v1130_v41  ;;  %v1179_v40 = vld [vmem:[%s2114_s0 + $0x1c8] sm:$0xf0]  ;;  %v1046_v41 = vor.u32 %v1297_v37, %v1043_v38 }
  0x82   :  { %v1182_v48 = vor.u32 %v1331_v39, %v1179_v40 }
  0x8c   :  { %v722_v49 = vpop.f32.mrf.mxu1 }
  0x8f   :  { %1251 = vmatmul.msk.bf16.gmra.mxu1 %vm440_vm2, %v1022_v46  ;;  %1268 = vmatmul.msk.bf16.gmra.mxu3 %vm440_vm2, %v1158_v52  ;;  %v1161_v46 = vld [vmem:[%s2114_s0 + $0x1a0] sm:$0xf] }
  0x91   :  { %587 = vmatmul.bf16.gmra.mxu0 %v1010_v53  ;;  %667 = vmatmul.bf16.gmra.mxu2 %v1138_v54  ;;  %v1162_v53 = vor.u32 %v1328_v47, %v1161_v46  ;;  %v1303_v47 = vld [vmem:[%s2114_s0 + $0xe4] sm:$0xf] }
  0x92   :  { %v807_v55 = vpop.f32.mrf.mxu3 }
  0x94   :  { %v724_v56 = vpop.f32.mrf.mxu1 }
  0x9a   :  { %v1645_v0 = vpop.f32.mrf.mxu3 }
  0x9c   :  { %v727_v1 = vpop.f32.mrf.mxu1 }
  0x9e   :  { %v553_v6 = vpop.f32.mrf.mxu0 }
  0x9f   :  { %1252 = vmatmul.msk.bf16.gmra.mxu1 %vm440_vm2, %v1030_v61  ;;  %v723_v8 = vadd.f32 %v722_v49, %v553_v6  ;;  %1269 = vmatmul.msk.bf16.gmra.mxu3 %vm440_vm2, %v1166_v4  ;;  %v1299_v61 = vld [vmem:[%s2114_s0 + $0xc4] sm:$0xf]  ;;  %v1169_v6 = vld [vmem:[%s2114_s0 + $0x1b0] sm:$0xf] }
  0xa1   :  { %883 = vst.msk [vmem:[%s2115_s2] sm:$0xff] %vm882_vm3, %v723_v8  ;;  %592 = vmatmul.bf16.gmra.mxu0 %v1018_v5  ;;  %672 = vmatmul.bf16.gmra.mxu2 %v1146_v7  ;;  %v1330_v7 = vld [vmem:[%s2114_s0 + $0x1b4] sm:$0xf0] }
  0xa2   :  { %v1659_v9 = vpop.f32.mrf.mxu3  ;;  %v1170_v14 = vor.u32 %v1330_v7, %v1169_v6  ;;  %v1305_v7 = vld [vmem:[%s2114_s0 + $0xf4] sm:$0xf] }
  0xa4   :  { %v729_v10 = vpop.f32.mrf.mxu1  ;;  %v1661_v11 = vpop.f32.mrf.mxu2 }
  0xa6   :  { %v555_v12 = vpop.f32.mrf.mxu0 }
  0xa7   :  { %v725_v13 = vadd.f32 %v724_v56, %v555_v12 }
  0xa9   :  { %884 = vst.msk [vmem:[%s2115_s2 + $0x8] sm:$0xff] %vm882_vm3, %v725_v13 }
  0xaa   :  { %v1685_v21 = vpop.f32.mrf.mxu3 }
  0xac   :  { %v732_v22 = vpop.f32.mrf.mxu1  ;;  %v1693_v26 = vpop.f32.mrf.mxu2 }
  0xae   :  { %v558_v28 = vpop.f32.mrf.mxu0 }
  0xaf   :  { %1253 = vmatmul.msk.bf16.gmra.mxu1 %vm440_vm2, %v1038_v18  ;;  %v728_v30 = vadd.f32 %v727_v1, %v558_v28  ;;  %1270 = vmatmul.msk.bf16.gmra.mxu3 %vm440_vm2, %v1174_v25  ;;  %v1054_v1 = vor.u32 %v1299_v61, %v1051_v62  ;;  %v1195_v25 = vld [vmem:[%s2114_s0 + $0x1e8] sm:$0xf0]  ;;  %v1049_v28 = vld [vmem:[%s2114_s0 + $0xc0] sm:$0xf] }
  0xb1   :  { %885 = vst.msk [vmem:[%s2115_s2 + $0x10] sm:$0xff] %vm882_vm3, %v728_v30  ;;  %597 = vmatmul.bf16.gmra.mxu0 %v1026_v27  ;;  %677 = vmatmul.bf16.gmra.mxu2 %v1154_v29  ;;  %v1300_v29 = vld [vmem:[%s2114_s0 + $0xc4] sm:$0xf0] }
  0xb2   :  { %v1701_v31 = vpop.f32.mrf.mxu3 }
  0xb4   :  { %v734_v32 = vpop.f32.mrf.mxu1  ;;  %v638_v33 = vpop.f32.mrf.mxu2 }
  0xb5   :  { %v808_v34 = vadd.f32 %v807_v55, %v638_v33  ;;  %v1332_v33 = vld [vmem:[%s2114_s0 + $0x1c4] sm:$0xf0] }
  0xb6   :  { %v560_v35 = vpop.f32.mrf.mxu0 }
  0xb7   :  { %v730_v36 = vadd.f32 %v729_v10, %v560_v35  ;;  %917 = vst.msk [vmem:[%s2115_s2 + $0x110] sm:$0xff] %vm882_vm3, %v808_v34  ;;  %v1042_v10 = vor.u32 %v1298_v3, %v1041_v2  ;;  %v1198_v34 = vor.u32 %v1335_v24, %v1195_v25 }
  0xb9   :  { %886 = vst.msk [vmem:[%s2115_s2 + $0x18] sm:$0xff] %vm882_vm3, %v730_v36  ;;  %v1050_v36 = vor.u32 %v1300_v29, %v1049_v28  ;;  %v1307_v29 = vld [vmem:[%s2114_s0 + $0x104] sm:$0xf] }
  0xba   :  { %v1729_v44 = vpop.f32.mrf.mxu3 }
  0xbc   :  { %v737_v45 = vpop.f32.mrf.mxu1  ;;  %v640_v49 = vpop.f32.mrf.mxu2 }
  0xbd   :  { %v810_v51 = vadd.f32 %v1645_v0, %v640_v49  ;;  %v1187_v0 = vld [vmem:[%s2114_s0 + $0x1d8] sm:$0xf0]  ;;  %v1337_v49 = vld [vmem:[%s2114_s0 + $0x1f4] sm:$0xf] }
  0xbe   :  { %v563_v52 = vpop.f32.mrf.mxu0  ;;  %v1190_v8 = vor.u32 %v1333_v63, %v1187_v0 }
  0xbf   :  { %1254 = vmatmul.msk.bf16.gmra.mxu1 %vm440_vm2, %v1046_v41  ;;  %v733_v54 = vadd.f32 %v732_v22, %v563_v52  ;;  %1271 = vmatmul.msk.bf16.gmra.mxu3 %vm440_vm2, %v1182_v48  ;;  %918 = vst.msk [vmem:[%s2115_s2 + $0x118] sm:$0xff] %vm882_vm3, %v810_v51  ;;  %v1301_v22 = vld [vmem:[%s2114_s0 + $0xd4] sm:$0xf]  ;;  %v1067_v48 = vld [vmem:[%s2114_s0 + $0xe8] sm:$0xf0] }
  0xc0   :  { %v1062_v27 = vor.u32 %v1301_v22, %v1059_v23  ;;  %v1070_v51 = vor.u32 %v1303_v47, %v1067_v48  ;;  %v1057_v52 = vld [vmem:[%s2114_s0 + $0xd0] sm:$0xf] }
  0xc1   :  { %887 = vst.msk [vmem:[%s2115_s2 + $0x20] sm:$0xff] %vm882_vm3, %v733_v54  ;;  %602 = vmatmul.bf16.gmra.mxu0 %v1034_v50  ;;  %682 = vmatmul.bf16.gmra.mxu2 %v1162_v53  ;;  %v1203_v50 = vld [vmem:[%s2114_s0 + $0x1f8] sm:$0xf0]  ;;  %v1302_v53 = vld [vmem:[%s2114_s0 + $0xd4] sm:$0xf0] }
  0xc2   :  { %v1748_v55 = vpop.f32.mrf.mxu3 }
  0xc4   :  { %v739_v56 = vpop.f32.mrf.mxu1  ;;  %v643_v57 = vpop.f32.mrf.mxu2 }
  0xc5   :  { %v813_v58 = vadd.f32 %v1659_v9, %v643_v57  ;;  %v1334_v57 = vld [vmem:[%s2114_s0 + $0x1d4] sm:$0xf0] }
  0xc6   :  { %v565_v59 = vpop.f32.mrf.mxu0 }
  0xc7   :  { %v735_v60 = vadd.f32 %v734_v32, %v565_v59  ;;  %919 = vst.msk [vmem:[%s2115_s2 + $0x120] sm:$0xff] %vm882_vm3, %v813_v58  ;;  %v1177_v32 = vld [vmem:[%s2114_s0 + $0x1c0] sm:$0xf]  ;;  %v1206_v58 = vor.u32 %v1337_v49, %v1203_v50 }
  0xc8   :  { %v1178_v39 = vor.u32 %v1332_v33, %v1177_v32  ;;  %v1073_v33 = vld [vmem:[%s2114_s0 + $0xf0] sm:$0xf] }
  0xc9   :  { %888 = vst.msk [vmem:[%s2115_s2 + $0x28] sm:$0xff] %vm882_vm3, %v735_v60  ;;  %v1058_v60 = vor.u32 %v1302_v53, %v1057_v52 }
  0xca   :  { %v1777_v4 = vpop.f32.mrf.mxu3 }
  0xcc   :  { %v742_v5 = vpop.f32.mrf.mxu1  ;;  %v645_v9 = vpop.f32.mrf.mxu2 }
  0xcd   :  { %v815_v12 = vadd.f32 %v1685_v21, %v645_v9 }
  0xce   :  { %v568_v13 = vpop.f32.mrf.mxu0 }
  0xcf   :  { %1255 = vmatmul.msk.bf16.gmra.mxu1 %vm440_vm2, %v1054_v1  ;;  %v738_v15 = vadd.f32 %v737_v45, %v568_v13  ;;  %1272 = vmatmul.msk.bf16.gmra.mxu3 %vm440_vm2, %v1190_v8  ;;  %920 = vst.msk [vmem:[%s2115_s2 + $0x128] sm:$0xff] %vm882_vm3, %v815_v12  ;;  %v1075_v8 = vld [vmem:[%s2114_s0 + $0xf8] sm:$0xf0]  ;;  %v1304_v12 = vld [vmem:[%s2114_s0 + $0xe4] sm:$0xf0] }
  0xd0   :  { %v1078_v9 = vor.u32 %v1305_v7, %v1075_v8 }
  0xd1   :  { %889 = vst.msk [vmem:[%s2115_s2 + $0x30] sm:$0xff] %vm882_vm3, %v738_v15  ;;  %607 = vmatmul.bf16.gmra.mxu0 %v1042_v10  ;;  %687 = vmatmul.bf16.gmra.mxu2 %v1170_v14  ;;  %v1065_v10 = vld [vmem:[%s2114_s0 + $0xe0] sm:$0xf]  ;;  %v1336_v15 = vld [vmem:[%s2114_s0 + $0x1e4] sm:$0xf0] }
  0xd2   :  { %v1796_v16 = vpop.f32.mrf.mxu3  ;;  %v1193_v14 = vld [vmem:[%s2114_s0 + $0x1e0] sm:$0xf] }
  0xd4   :  { %v744_v17 = vpop.f32.mrf.mxu1  ;;  %v648_v18 = vpop.f32.mrf.mxu2 }
  0xd5   :  { %v818_v19 = vadd.f32 %v1701_v31, %v648_v18 }
  0xd6   :  { %v570_v20 = vpop.f32.mrf.mxu0 }
  0xd7   :  { %v740_v21 = vadd.f32 %v739_v56, %v570_v20  ;;  %921 = vst.msk [vmem:[%s2115_s2 + $0x130] sm:$0xff] %vm882_vm3, %v818_v19  ;;  %v1185_v56 = vld [vmem:[%s2114_s0 + $0x1d0] sm:$0xf] }
  0xd8   :  { %v1186_v63 = vor.u32 %v1334_v57, %v1185_v56 }
  0xd9   :  { %890 = vst.msk [vmem:[%s2115_s2 + $0x38] sm:$0xff] %vm882_vm3, %v740_v21  ;;  %v1194_v21 = vor.u32 %v1336_v15, %v1193_v14 }
  0xda   :  { %v1825_v30 = vpop.f32.mrf.mxu3 }
  0xdc   :  { %v747_v31 = vpop.f32.mrf.mxu1  ;;  %v650_v35 = vpop.f32.mrf.mxu2 }
  0xdd   :  { %v820_v37 = vadd.f32 %v1729_v44, %v650_v35 }
  0xde   :  { %v573_v38 = vpop.f32.mrf.mxu0 }
  0xdf   :  { %1256 = vmatmul.msk.bf16.gmra.mxu1 %vm440_vm2, %v1062_v27  ;;  %v743_v40 = vadd.f32 %v742_v5, %v573_v38  ;;  %1273 = vmatmul.msk.bf16.gmra.mxu3 %vm440_vm2, %v1198_v34  ;;  %922 = vst.msk [vmem:[%s2115_s2 + $0x138] sm:$0xff] %vm882_vm3, %v820_v37  ;;  %v1306_v34 = vld [vmem:[%s2114_s0 + $0xf4] sm:$0xf0] }
  0xe0   :  { %v1338_v37 = vld [vmem:[%s2114_s0 + $0x1f4] sm:$0xf0] }
  0xe1   :  { %891 = vst.msk [vmem:[%s2115_s2 + $0x40] sm:$0xff] %vm882_vm3, %v743_v40  ;;  %612 = vmatmul.bf16.gmra.mxu0 %v1050_v36  ;;  %692 = vmatmul.bf16.gmra.mxu2 %v1178_v39  ;;  %v1201_v36 = vld [vmem:[%s2114_s0 + $0x1f0] sm:$0xf]  ;;  %v1074_v39 = vor.u32 %v1306_v34, %v1073_v33 }
  0xe2   :  { %v832_v41 = vpop.f32.mrf.mxu3 }
  0xe4   :  { %v749_v42 = vpop.f32.mrf.mxu1  ;;  %v653_v43 = vpop.f32.mrf.mxu2 }
  0xe5   :  { %v823_v44 = vadd.f32 %v1748_v55, %v653_v43 }
  0xe6   :  { %v575_v45 = vpop.f32.mrf.mxu0 }
  0xe7   :  { %v745_v46 = vadd.f32 %v744_v17, %v575_v45  ;;  %923 = vst.msk [vmem:[%s2115_s2 + $0x140] sm:$0xff] %vm882_vm3, %v823_v44  ;;  %v1066_v17 = vor.u32 %v1304_v12, %v1065_v10 }
  0xe9   :  { %892 = vst.msk [vmem:[%s2115_s2 + $0x48] sm:$0xff] %vm882_vm3, %v745_v46 }
  0xea   :  { %v1871_v54 = vpop.f32.mrf.mxu3 }
  0xec   :  { %v752_v55 = vpop.f32.mrf.mxu1  ;;  %v655_v59 = vpop.f32.mrf.mxu2 }
  0xed   :  { %v825_v61 = vadd.f32 %v1777_v4, %v655_v59 }
  0xee   :  { %v578_v62 = vpop.f32.mrf.mxu0 }
  0xef   :  { %1257 = vmatmul.msk.bf16.gmra.mxu1 %vm440_vm2, %v1070_v51  ;;  %v748_v0 = vadd.f32 %v747_v31, %v578_v62  ;;  %1274 = vmatmul.msk.bf16.gmra.mxu3 %vm440_vm2, %v1206_v58  ;;  %924 = vst.msk [vmem:[%s2115_s2 + $0x148] sm:$0xff] %vm882_vm3, %v825_v61 }
  0xf1   :  { %893 = vst.msk [vmem:[%s2115_s2 + $0x50] sm:$0xff] %vm882_vm3, %v748_v0  ;;  %617 = vmatmul.bf16.gmra.mxu0 %v1058_v60  ;;  %697 = vmatmul.bf16.gmra.mxu2 %v1186_v63 }
  0xf2   :  { %v837_v2 = vpop.f32.mrf.mxu3 }
  0xf4   :  { %v754_v1 = vpop.f32.mrf.mxu1  ;;  %v658_v3 = vpop.f32.mrf.mxu2 }
  0xf5   :  { %v828_v4 = vadd.f32 %v1796_v16, %v658_v3 }
  0xf6   :  { %v580_v5 = vpop.f32.mrf.mxu0 }
  0xf7   :  { %v750_v6 = vadd.f32 %v749_v42, %v580_v5  ;;  %925 = vst.msk [vmem:[%s2115_s2 + $0x150] sm:$0xff] %vm882_vm3, %v828_v4  ;;  %v1202_v42 = vor.u32 %v1338_v37, %v1201_v36 }
  0xf9   :  { %894 = vst.msk [vmem:[%s2115_s2 + $0x58] sm:$0xff] %vm882_vm3, %v750_v6 }
  0xfa   :  { %v839_v18 = vpop.f32.mrf.mxu3 }
  0xfc   :  { %v757_v13 = vpop.f32.mrf.mxu1  ;;  %v660_v16 = vpop.f32.mrf.mxu2 }
  0xfd   :  { %v830_v19 = vadd.f32 %v1825_v30, %v660_v16  ;;  %v1083_v30 = vld [vmem:[%s2114_s0 + $0x108] sm:$0xf0] }
  0xfe   :  { %v583_v20 = vpop.f32.mrf.mxu0  ;;  %v1086_v32 = vor.u32 %v1307_v29, %v1083_v30 }
  0xff   :  { %1258 = vmatmul.msk.bf16.gmra.mxu1 %vm440_vm2, %v1078_v9  ;;  %v753_v22 = vadd.f32 %v752_v55, %v583_v20  ;;  %926 = vst.msk [vmem:[%s2115_s2 + $0x158] sm:$0xff] %vm882_vm3, %v830_v19 }
 0x101   :  { %895 = vst.msk [vmem:[%s2115_s2 + $0x60] sm:$0xff] %vm882_vm3, %v753_v22  ;;  %622 = vmatmul.bf16.gmra.mxu0 %v1066_v17  ;;  %702 = vmatmul.bf16.gmra.mxu2 %v1194_v21 }
 0x102   :  { %v842_v31 = vpop.f32.mrf.mxu3 }
 0x104   :  { %v759_v23 = vpop.f32.mrf.mxu1  ;;  %v663_v24 = vpop.f32.mrf.mxu2 }
 0x105   :  { %v833_v25 = vadd.f32 %v832_v41, %v663_v24 }
 0x106   :  { %v585_v27 = vpop.f32.mrf.mxu0 }
 0x107   :  { %v755_v28 = vadd.f32 %v754_v1, %v585_v27  ;;  %927 = vst.msk [vmem:[%s2115_s2 + $0x160] sm:$0xff] %vm882_vm3, %v833_v25 }
 0x109   :  { %896 = vst.msk [vmem:[%s2115_s2 + $0x68] sm:$0xff] %vm882_vm3, %v755_v28 }
 0x10a   :  { %v844_v44 = vpop.f32.mrf.mxu3 }
 0x10c   :  { %v762_v35 = vpop.f32.mrf.mxu1  ;;  %v665_v38 = vpop.f32.mrf.mxu2 }
 0x10d   :  { %v835_v40 = vadd.f32 %v1871_v54, %v665_v38 }
 0x10e   :  { %v588_v41 = vpop.f32.mrf.mxu0 }
 0x10f   :  { %1259 = vmatmul.msk.bf16.gmra.mxu1 %vm440_vm2, %v1086_v32  ;;  %v758_v43 = vadd.f32 %v757_v13, %v588_v41  ;;  %928 = vst.msk [vmem:[%s2115_s2 + $0x168] sm:$0xff] %vm882_vm3, %v835_v40 }
 0x111   :  { %897 = vst.msk [vmem:[%s2115_s2 + $0x70] sm:$0xff] %vm882_vm3, %v758_v43  ;;  %627 = vmatmul.bf16.gmra.mxu0 %v1074_v39  ;;  %707 = vmatmul.bf16.gmra.mxu2 %v1202_v42 }
 0x112   :  { %v847_v51 = vpop.f32.mrf.mxu3 }
 0x114   :  { %v764_v45 = vpop.f32.mrf.mxu1  ;;  %v668_v46 = vpop.f32.mrf.mxu2 }
 0x115   :  { %v838_v47 = vadd.f32 %v837_v2, %v668_v46 }
 0x116   :  { %v590_v48 = vpop.f32.mrf.mxu0 }
 0x117   :  { %v760_v49 = vadd.f32 %v759_v23, %v590_v48  ;;  %929 = vst.msk [vmem:[%s2115_s2 + $0x170] sm:$0xff] %vm882_vm3, %v838_v47 }
 0x119   :  { %898 = vst.msk [vmem:[%s2115_s2 + $0x78] sm:$0xff] %vm882_vm3, %v760_v49 }
 0x11a   :  { %v849_v58 = vpop.f32.mrf.mxu3 }
 0x11c   :  { %v767_v50 = vpop.f32.mrf.mxu1  ;;  %v670_v52 = vpop.f32.mrf.mxu2 }
 0x11d   :  { %v840_v53 = vadd.f32 %v839_v18, %v670_v52 }
 0x11e   :  { %v593_v54 = vpop.f32.mrf.mxu0 }
 0x11f   :  { %v763_v55 = vadd.f32 %v762_v35, %v593_v54  ;;  %930 = vst.msk [vmem:[%s2115_s2 + $0x178] sm:$0xff] %vm882_vm3, %v840_v53 }
 0x121   :  { %899 = vst.msk [vmem:[%s2115_s2 + $0x80] sm:$0xff] %vm882_vm3, %v763_v55 }
 0x122   :  { %v852_v3 = vpop.f32.mrf.mxu3 }
 0x124   :  { %v769_v56 = vpop.f32.mrf.mxu1  ;;  %v673_v57 = vpop.f32.mrf.mxu2 }
 0x125   :  { %v843_v59 = vadd.f32 %v842_v31, %v673_v57 }
 0x126   :  { %v595_v60 = vpop.f32.mrf.mxu0 }
 0x127   :  { %v765_v61 = vadd.f32 %v764_v45, %v595_v60  ;;  %931 = vst.msk [vmem:[%s2115_s2 + $0x180] sm:$0xff] %vm882_vm3, %v843_v59 }
 0x129   :  { %900 = vst.msk [vmem:[%s2115_s2 + $0x88] sm:$0xff] %vm882_vm3, %v765_v61 }
 0x12a   :  { %v854_v9 = vpop.f32.mrf.mxu3 }
 0x12c   :  { %v772_v62 = vpop.f32.mrf.mxu1  ;;  %v675_v63 = vpop.f32.mrf.mxu2 }
 0x12d   :  { %v845_v0 = vadd.f32 %v844_v44, %v675_v63 }
 0x12e   :  { %v598_v1 = vpop.f32.mrf.mxu0 }
 0x12f   :  { %v768_v2 = vadd.f32 %v767_v50, %v598_v1  ;;  %932 = vst.msk [vmem:[%s2115_s2 + $0x188] sm:$0xff] %vm882_vm3, %v845_v0 }
 0x131   :  { %901 = vst.msk [vmem:[%s2115_s2 + $0x90] sm:$0xff] %vm882_vm3, %v768_v2 }
 0x132   :  { %v857_v17 = vpop.f32.mrf.mxu3 }
 0x134   :  { %v774_v4 = vpop.f32.mrf.mxu1  ;;  %v678_v5 = vpop.f32.mrf.mxu2 }
 0x135   :  { %v848_v6 = vadd.f32 %v847_v51, %v678_v5 }
 0x136   :  { %v600_v7 = vpop.f32.mrf.mxu0 }
 0x137   :  { %v770_v8 = vadd.f32 %v769_v56, %v600_v7  ;;  %933 = vst.msk [vmem:[%s2115_s2 + $0x190] sm:$0xff] %vm882_vm3, %v848_v6 }
 0x139   :  { %902 = vst.msk [vmem:[%s2115_s2 + $0x98] sm:$0xff] %vm882_vm3, %v770_v8 }
 0x13a   :  { %v859_v24 = vpop.f32.mrf.mxu3 }
 0x13c   :  { %v777_v10 = vpop.f32.mrf.mxu1  ;;  %v680_v12 = vpop.f32.mrf.mxu2 }
 0x13d   :  { %v850_v13 = vadd.f32 %v849_v58, %v680_v12 }
 0x13e   :  { %v603_v14 = vpop.f32.mrf.mxu0 }
 0x13f   :  { %v773_v15 = vadd.f32 %v772_v62, %v603_v14  ;;  %934 = vst.msk [vmem:[%s2115_s2 + $0x198] sm:$0xff] %vm882_vm3, %v850_v13 }
 0x141   :  { %903 = vst.msk [vmem:[%s2115_s2 + $0xa0] sm:$0xff] %vm882_vm3, %v773_v15 }
 0x142   :  { %v862_v34 = vpop.f32.mrf.mxu3 }
 0x144   :  { %v779_v16 = vpop.f32.mrf.mxu1  ;;  %v683_v18 = vpop.f32.mrf.mxu2 }
 0x145   :  { %v853_v19 = vadd.f32 %v852_v3, %v683_v18 }
 0x146   :  { %v605_v20 = vpop.f32.mrf.mxu0 }
 0x147   :  { %v775_v21 = vadd.f32 %v774_v4, %v605_v20  ;;  %935 = vst.msk [vmem:[%s2115_s2 + $0x1a0] sm:$0xff] %vm882_vm3, %v853_v19 }
 0x149   :  { %904 = vst.msk [vmem:[%s2115_s2 + $0xa8] sm:$0xff] %vm882_vm3, %v775_v21 }
 0x14a   :  { %v864_v40 = vpop.f32.mrf.mxu3 }
 0x14c   :  { %v782_v22 = vpop.f32.mrf.mxu1  ;;  %v685_v23 = vpop.f32.mrf.mxu2 }
 0x14d   :  { %v855_v25 = vadd.f32 %v854_v9, %v685_v23 }
 0x14e   :  { %v608_v27 = vpop.f32.mrf.mxu0 }
 0x14f   :  { %v778_v28 = vadd.f32 %v777_v10, %v608_v27  ;;  %936 = vst.msk [vmem:[%s2115_s2 + $0x1a8] sm:$0xff] %vm882_vm3, %v855_v25 }
 0x151   :  { %905 = vst.msk [vmem:[%s2115_s2 + $0xb0] sm:$0xff] %vm882_vm3, %v778_v28 }
 0x152   :  { %v867_v47 = vpop.f32.mrf.mxu3 }
 0x154   :  { %v784_v29 = vpop.f32.mrf.mxu1  ;;  %v688_v30 = vpop.f32.mrf.mxu2 }
 0x155   :  { %v858_v31 = vadd.f32 %v857_v17, %v688_v30 }
 0x156   :  { %v610_v32 = vpop.f32.mrf.mxu0 }
 0x157   :  { %v780_v33 = vadd.f32 %v779_v16, %v610_v32  ;;  %937 = vst.msk [vmem:[%s2115_s2 + $0x1b0] sm:$0xff] %vm882_vm3, %v858_v31 }
 0x159   :  { %906 = vst.msk [vmem:[%s2115_s2 + $0xb8] sm:$0xff] %vm882_vm3, %v780_v33 }
 0x15a   :  { %v869_v54 = vpop.f32.mrf.mxu3 }
 0x15c   :  { %v787_v35 = vpop.f32.mrf.mxu1  ;;  %v690_v36 = vpop.f32.mrf.mxu2 }
 0x15d   :  { %v860_v37 = vadd.f32 %v859_v24, %v690_v36 }
 0x15e   :  { %v613_v38 = vpop.f32.mrf.mxu0 }
 0x15f   :  { %v783_v39 = vadd.f32 %v782_v22, %v613_v38  ;;  %938 = vst.msk [vmem:[%s2115_s2 + $0x1b8] sm:$0xff] %vm882_vm3, %v860_v37 }
 0x161   :  { %907 = vst.msk [vmem:[%s2115_s2 + $0xc0] sm:$0xff] %vm882_vm3, %v783_v39 }
 0x162   :  { %v872_v62 = vpop.f32.mrf.mxu3 }
 0x164   :  { %v789_v41 = vpop.f32.mrf.mxu1  ;;  %v693_v42 = vpop.f32.mrf.mxu2 }
 0x165   :  { %v863_v43 = vadd.f32 %v862_v34, %v693_v42 }
 0x166   :  { %v615_v44 = vpop.f32.mrf.mxu0 }
 0x167   :  { %v785_v45 = vadd.f32 %v784_v29, %v615_v44  ;;  %939 = vst.msk [vmem:[%s2115_s2 + $0x1c0] sm:$0xff] %vm882_vm3, %v863_v43 }
 0x169   :  { %908 = vst.msk [vmem:[%s2115_s2 + $0xc8] sm:$0xff] %vm882_vm3, %v785_v45 }
 0x16a   :  { %v874_v5 = vpop.f32.mrf.mxu3 }
 0x16c   :  { %v792_v46 = vpop.f32.mrf.mxu1  ;;  %v695_v48 = vpop.f32.mrf.mxu2 }
 0x16d   :  { %v865_v49 = vadd.f32 %v864_v40, %v695_v48 }
 0x16e   :  { %v618_v50 = vpop.f32.mrf.mxu0 }
 0x16f   :  { %v788_v51 = vadd.f32 %v787_v35, %v618_v50  ;;  %940 = vst.msk [vmem:[%s2115_s2 + $0x1c8] sm:$0xff] %vm882_vm3, %v865_v49 }
 0x171   :  { %909 = vst.msk [vmem:[%s2115_s2 + $0xd0] sm:$0xff] %vm882_vm3, %v788_v51 }
 0x174   :  { %v794_v52 = vpop.f32.mrf.mxu1  ;;  %v698_v53 = vpop.f32.mrf.mxu2 }
 0x175   :  { %v868_v55 = vadd.f32 %v867_v47, %v698_v53 }
 0x176   :  { %v620_v56 = vpop.f32.mrf.mxu0 }
 0x177   :  { %v790_v57 = vadd.f32 %v789_v41, %v620_v56  ;;  %941 = vst.msk [vmem:[%s2115_s2 + $0x1d0] sm:$0xff] %vm882_vm3, %v868_v55 }
 0x179   :  { %910 = vst.msk [vmem:[%s2115_s2 + $0xd8] sm:$0xff] %vm882_vm3, %v790_v57 }
 0x17c   :  { %v797_v58 = vpop.f32.mrf.mxu1  ;;  %v700_v59 = vpop.f32.mrf.mxu2 }
 0x17d   :  { %v870_v60 = vadd.f32 %v869_v54, %v700_v59 }
 0x17e   :  { %v623_v61 = vpop.f32.mrf.mxu0 }
 0x17f   :  { %v793_v63 = vadd.f32 %v792_v46, %v623_v61  ;;  %942 = vst.msk [vmem:[%s2115_s2 + $0x1d8] sm:$0xff] %vm882_vm3, %v870_v60 }
 0x181   :  { %911 = vst.msk [vmem:[%s2115_s2 + $0xe0] sm:$0xff] %vm882_vm3, %v793_v63 }
 0x184   :  { %v799_v0 = vpop.f32.mrf.mxu1  ;;  %v703_v1 = vpop.f32.mrf.mxu2 }
 0x185   :  { %v873_v2 = vadd.f32 %v872_v62, %v703_v1 }
 0x186   :  { %v625_v3 = vpop.f32.mrf.mxu0 }
 0x187   :  { %v795_v4 = vadd.f32 %v794_v52, %v625_v3  ;;  %943 = vst.msk [vmem:[%s2115_s2 + $0x1e0] sm:$0xff] %vm882_vm3, %v873_v2 }
 0x189   :  { %912 = vst.msk [vmem:[%s2115_s2 + $0xe8] sm:$0xff] %vm882_vm3, %v795_v4 }
 0x18c   :  { %v802_v6 = vpop.f32.mrf.mxu1  ;;  %v705_v8 = vpop.f32.mrf.mxu2 }
 0x18d   :  { %v803_v7 = vadd.f32 %v802_v6, %v1661_v11  ;;  %v875_v9 = vadd.f32 %v874_v5, %v705_v8  ;;  %v877_v11 = vpop.f32.mrf.mxu3 }
 0x18e   :  { %v628_v10 = vpop.f32.mrf.mxu0 }
 0x18f   :  { %915 = vst.msk [vmem:[%s2115_s2 + $0x100] sm:$0xff] %vm882_vm3, %v803_v7  ;;  %v798_v12 = vadd.f32 %v797_v58, %v628_v10 }
 0x190   :  { %944 = vst.msk [vmem:[%s2115_s2 + $0x1e8] sm:$0xff] %vm882_vm3, %v875_v9 }
 0x191   :  { %913 = vst.msk [vmem:[%s2115_s2 + $0xf0] sm:$0xff] %vm882_vm3, %v798_v12 }
 0x194   :  { %v804_v13 = vpop.f32.mrf.mxu1  ;;  %v708_v15 = vpop.f32.mrf.mxu2 }
 0x195   :  { %v805_v14 = vadd.f32 %v804_v13, %v1693_v26  ;;  %v878_v16 = vadd.f32 %v877_v11, %v708_v15  ;;  %v879_v26 = vpop.f32.mrf.mxu3 }
 0x196   :  { %v630_v17 = vpop.f32.mrf.mxu0 }
 0x197   :  { %916 = vst.msk [vmem:[%s2115_s2 + $0x108] sm:$0xff] %vm882_vm3, %v805_v14  ;;  %v800_v18 = vadd.f32 %v799_v0, %v630_v17 }
 0x198   :  { %945 = vst.msk [vmem:[%s2115_s2 + $0x1f0] sm:$0xff] %vm882_vm3, %v878_v16 }
 0x199   :  { %914 = vst.msk [vmem:[%s2115_s2 + $0xf8] sm:$0xff] %vm882_vm3, %v800_v18 }
 0x19c   :  { %v710_v19 = vpop.f32.mrf.mxu2 }
 0x19d   :  { %v880_v20 = vadd.f32 %v879_v26, %v710_v19 }
 0x19f   :  { %946 = vst.msk [vmem:[%s2115_s2 + $0x1f8] sm:$0xff] %vm882_vm3, %v880_v20 }

// kernel: resnet_small_forward.23
= control target key start
LH: loop header
LB: loop body
LE: loop exit
PB: predicated region body
PF: predicated region fallthrough
CT: control target
= control target key end

     0   :  { %s142_s0 = inlined_call_operand.vmem [shape: f32[64,128], index: 0, kind: input, shape index: {}]   ;;  %s143_s1 = inlined_call_operand.vmem [shape: f32[1,128], index: 1, kind: input, shape index: {}]   ;;  %s144_s2 = inlined_call_operand.vmem [shape: f32[1,128], index: 2, kind: input, shape index: {}]   ;;  %s145_s3 = inlined_call_operand.vmem [shape: f32[64,128], index: 3, kind: output, shape index: {}]  }
   0x1   :  { %v14_v0 = vld [vmem:[%s142_s0] sm:$0xff]  ;;  %v15_v3 = vld [vmem:[%s142_s0 + $0x8] sm:$0xff]  ;;  %v16_v6 = vld [vmem:[%s142_s0 + $0x10] sm:$0xff] }
   0x2   :  { %v66_v1 = vld [vmem:[%s143_s1] ss:$0 sm:$0xff]  ;;  %v17_v7 = vld [vmem:[%s142_s0 + $0x18] sm:$0xff]  ;;  %v19_v12 = vld [vmem:[%s142_s0 + $0x28] sm:$0xff] }
   0x3   :  { %v67_v2 = vld [vmem:[%s144_s2] ss:$0 sm:$0xff]  ;;  %v26_v4 = vmul.f32 %v66_v1, %v14_v0  ;;  %v27_v5 = vmul.f32 %v66_v1, %v15_v3  ;;  %v28_v9 = vmul.f32 %v66_v1, %v16_v6  ;;  %v29_v10 = vmul.f32 %v66_v1, %v17_v7  ;;  %v20_v13 = vld [vmem:[%s142_s0 + $0x30] sm:$0xff]  ;;  %v21_v14 = vld [vmem:[%s142_s0 + $0x38] sm:$0xff] }
   0x4   :  { %v18_v8 = vld [vmem:[%s142_s0 + $0x20] sm:$0xff]  ;;  %v31_v17 = vmul.f32 %v66_v1, %v19_v12  ;;  %v32_v18 = vmul.f32 %v66_v1, %v20_v13  ;;  %v33_v22 = vmul.f32 %v66_v1, %v21_v14 }
   0x5   :  { %v30_v11 = vmul.f32 %v66_v1, %v18_v8  ;;  %v38_v15 = vadd.f32 %v67_v2, %v26_v4  ;;  %v39_v16 = vadd.f32 %v67_v2, %v27_v5  ;;  %v40_v19 = vadd.f32 %v67_v2, %v28_v9 }
   0x6   :  { %v41_v20 = vadd.f32 %v67_v2, %v29_v10  ;;  %v43_v25 = vadd.f32 %v67_v2, %v31_v17  ;;  %v44_v26 = vadd.f32 %v67_v2, %v32_v18  ;;  %v45_v29 = vadd.f32 %v67_v2, %v33_v22 }
   0x7   :  { %v42_v21 = vadd.f32 %v67_v2, %v30_v11  ;;  %v46_v23 = vmax.f32 %v38_v15, 0.0  ;;  %v47_v24 = vmax.f32 %v39_v16, 0.0  ;;  %v48_v27 = vmax.f32 %v40_v19, 0.0 }
   0x8   :  { %v49_v28 = vmax.f32 %v41_v20, 0.0  ;;  %v51_v31 = vmax.f32 %v43_v25, 0.0  ;;  %v52_v32 = vmax.f32 %v44_v26, 0.0  ;;  %v53_v33 = vmax.f32 %v45_v29, 0.0 }
   0x9   :  { %54 = vst [vmem:[%s145_s3] sm:$0xff] %v46_v23  ;;  %v50_v30 = vmax.f32 %v42_v21, 0.0 }
   0xa   :  { %55 = vst [vmem:[%s145_s3 + $0x8] sm:$0xff] %v47_v24 }
   0xb   :  { %56 = vst [vmem:[%s145_s3 + $0x10] sm:$0xff] %v48_v27 }
   0xc   :  { %57 = vst [vmem:[%s145_s3 + $0x18] sm:$0xff] %v49_v28 }
   0xd   :  { %58 = vst [vmem:[%s145_s3 + $0x20] sm:$0xff] %v50_v30 }
   0xe   :  { %59 = vst [vmem:[%s145_s3 + $0x28] sm:$0xff] %v51_v31 }
   0xf   :  { %60 = vst [vmem:[%s145_s3 + $0x30] sm:$0xff] %v52_v32 }
  0x10   :  { %61 = vst [vmem:[%s145_s3 + $0x38] sm:$0xff] %v53_v33 }

// kernel: resnet_small_forward.22
= control target key start
LH: loop header
LB: loop body
LE: loop exit
PB: predicated region body
PF: predicated region fallthrough
CT: control target
= control target key end

     0   :  { %vm12_vm0 = vcmask 517120   ;;  %vm31_vm1 = vcmask 523264   ;;  %v132_v0 = vmov 0.0   ;;  %vm122_vm2 = vcmask 1040384   ;;  %s234_s0 = inlined_call_operand.vmem [shape: f32[128,64], index: 0, kind: input, shape index: {}]   ;;  %s235_s1 = inlined_call_operand.vmem [shape: f32[2,64], index: 1, kind: output, shape index: {}]  }
   0x1   :  { %13 = vst.msk [vmem:[%s235_s1] sm:$0x3] %vm12_vm0, %v132_v0  ;;  %v14_v1 = vld [vmem:[%s234_s0] sm:$0xff]  ;;  %v15_v2 = vld [vmem:[%s234_s0 + $0x8] sm:$0xff]  ;;  %v16_v3 = vld [vmem:[%s234_s0 + $0x10] sm:$0xff] }
   0x2   :  { %v32_v4 = vsel %vm31_vm1, %v14_v1, 0.0  ;;  %v33_v5 = vsel %vm31_vm1, %v15_v2, 0.0  ;;  %v35_v6 = vsel %vm31_vm1, %v16_v3, 0.0  ;;  %v17_v7 = vld [vmem:[%s234_s0 + $0x18] sm:$0xff]  ;;  %v18_v10 = vld [vmem:[%s234_s0 + $0x20] sm:$0xff]  ;;  %v19_v13 = vld [vmem:[%s234_s0 + $0x28] sm:$0xff]  ;;  %v69_v15 = vmul.f32 %v14_v1, %v14_v1 }
   0x3   :  { %v34_v8 = vadd.f32 %v33_v5, %v32_v4  ;;  %v37_v9 = vsel %vm31_vm1, %v17_v7, 0.0  ;;  %v39_v12 = vsel %vm31_vm1, %v18_v10, 0.0  ;;  %v70_v16 = vmul.f32 %v15_v2, %v15_v2  ;;  %v20_v19 = vld [vmem:[%s234_s0 + $0x30] sm:$0xff]  ;;  %v21_v24 = vld [vmem:[%s234_s0 + $0x38] sm:$0xff]  ;;  %v22_v31 = vld [vmem:[%s234_s0 + $0x40] sm:$0xff] }
   0x4   :  { %v71_v17 = vmul.f32 %v16_v3, %v16_v3  ;;  %v41_v18 = vsel %vm31_vm1, %v19_v13, 0.0  ;;  %v72_v21 = vmul.f32 %v17_v7, %v17_v7  ;;  %v43_v22 = vsel %vm31_vm1, %v20_v19, 0.0  ;;  %v23_v37 = vld [vmem:[%s234_s0 + $0x48] sm:$0xff]  ;;  %v24_v43 = vld [vmem:[%s234_s0 + $0x50] sm:$0xff]  ;;  %v25_v49 = vld [vmem:[%s234_s0 + $0x58] sm:$0xff] }
   0x5   :  { %v36_v11 = vadd.f32 %v35_v6, %v34_v8  ;;  %v73_v23 = vmul.f32 %v18_v10, %v18_v10  ;;  %v85_v26 = vsel %vm31_vm1, %v69_v15, 0.0  ;;  %v86_v27 = vsel %vm31_vm1, %v70_v16, 0.0  ;;  %v26_v55 = vld [vmem:[%s234_s0 + $0x60] sm:$0xff]  ;;  %v27_v61 = vld [vmem:[%s234_s0 + $0x68] sm:$0xff]  ;;  %v28_v3 = vld [vmem:[%s234_s0 + $0x70] sm:$0xff] }
   0x6   :  { %v88_v28 = vsel %vm31_vm1, %v71_v17, 0.0  ;;  %v45_v29 = vsel %vm31_vm1, %v21_v24, 0.0  ;;  %v87_v30 = vadd.f32 %v86_v27, %v85_v26  ;;  %v74_v33 = vmul.f32 %v19_v13, %v19_v13 }
   0x7   :  { %v38_v14 = vadd.f32 %v37_v9, %v36_v11  ;;  %v90_v34 = vsel %vm31_vm1, %v72_v21, 0.0  ;;  %v47_v35 = vsel %vm31_vm1, %v22_v31, 0.0  ;;  %v75_v39 = vmul.f32 %v20_v19, %v20_v19  ;;  %v29_v9 = vld [vmem:[%s234_s0 + $0x78] sm:$0xff] }
   0x8   :  { %v89_v36 = vadd.f32 %v88_v28, %v87_v30  ;;  %v92_v40 = vsel %vm31_vm1, %v73_v23, 0.0  ;;  %v49_v41 = vsel %vm31_vm1, %v23_v37, 0.0  ;;  %v76_v45 = vmul.f32 %v21_v24, %v21_v24 }
   0x9   :  { %v40_v20 = vadd.f32 %v39_v12, %v38_v14  ;;  %v94_v46 = vsel %vm31_vm1, %v74_v33, 0.0  ;;  %v51_v47 = vsel %vm31_vm1, %v24_v43, 0.0  ;;  %v77_v51 = vmul.f32 %v22_v31, %v22_v31 }
   0xa   :  { %v91_v42 = vadd.f32 %v90_v34, %v89_v36  ;;  %v96_v52 = vsel %vm31_vm1, %v75_v39, 0.0  ;;  %v53_v53 = vsel %vm31_vm1, %v25_v49, 0.0  ;;  %v78_v57 = vmul.f32 %v23_v37, %v23_v37 }
   0xb   :  { %v42_v25 = vadd.f32 %v41_v18, %v40_v20  ;;  %v98_v58 = vsel %vm31_vm1, %v76_v45, 0.0  ;;  %v55_v59 = vsel %vm31_vm1, %v26_v55, 0.0  ;;  %v79_v63 = vmul.f32 %v24_v43, %v24_v43 }
   0xc   :  { %v93_v48 = vadd.f32 %v92_v40, %v91_v42  ;;  %v100_v0 = vsel %vm31_vm1, %v77_v51, 0.0  ;;  %v57_v1 = vsel %vm31_vm1, %v27_v61, 0.0  ;;  %v80_v5 = vmul.f32 %v25_v49, %v25_v49  ;;  %v30_v42 = vld [vmem:[%s235_s1] sm:$0x3] }
   0xd   :  { %v44_v32 = vadd.f32 %v43_v22, %v42_v25  ;;  %v102_v6 = vsel %vm31_vm1, %v78_v57, 0.0  ;;  %v59_v7 = vsel %vm31_vm1, %v28_v3, 0.0  ;;  %v81_v11 = vmul.f32 %v26_v55, %v26_v55 }
   0xe   :  { %v95_v54 = vadd.f32 %v94_v46, %v93_v48  ;;  %v104_v12 = vsel %vm31_vm1, %v79_v63, 0.0  ;;  %v61_v13 = vsel %vm31_vm1, %v29_v9, 0.0  ;;  %v82_v16 = vmul.f32 %v27_v61, %v27_v61 }
   0xf   :  { %v46_v38 = vadd.f32 %v45_v29, %v44_v32  ;;  %v106_v17 = vsel %vm31_vm1, %v80_v5, 0.0  ;;  %v83_v20 = vmul.f32 %v28_v3, %v28_v3  ;;  %v108_v21 = vsel %vm31_vm1, %v81_v11, 0.0 }
  0x10   :  { %v97_v60 = vadd.f32 %v96_v52, %v95_v54  ;;  %v84_v24 = vmul.f32 %v29_v9, %v29_v9  ;;  %v110_v25 = vsel %vm31_vm1, %v82_v16, 0.0 }
  0x11   :  { %v48_v44 = vadd.f32 %v47_v35, %v46_v38  ;;  %v112_v28 = vsel %vm31_vm1, %v83_v20, 0.0 }
  0x12   :  { %v99_v2 = vadd.f32 %v98_v58, %v97_v60  ;;  %v114_v30 = vsel %vm31_vm1, %v84_v24, 0.0 }
  0x13   :  { %v50_v50 = vadd.f32 %v49_v41, %v48_v44 }
  0x14   :  { %v101_v8 = vadd.f32 %v100_v0, %v99_v2 }
  0x15   :  { %v52_v56 = vadd.f32 %v51_v47, %v50_v50 }
  0x16   :  { %v103_v14 = vadd.f32 %v102_v6, %v101_v8 }
  0x17   :  { %v54_v62 = vadd.f32 %v53_v53, %v52_v56 }
  0x18   :  { %v105_v18 = vadd.f32 %v104_v12, %v103_v14 }
  0x19   :  { %v56_v4 = vadd.f32 %v55_v59, %v54_v62 }
  0x1a   :  { %v107_v22 = vadd.f32 %v106_v17, %v105_v18 }
  0x1b   :  { %v58_v10 = vadd.f32 %v57_v1, %v56_v4 }
  0x1c   :  { %v109_v26 = vadd.f32 %v108_v21, %v107_v22 }
  0x1d   :  { %v60_v15 = vadd.f32 %v59_v7, %v58_v10 }
  0x1e   :  { %v111_v29 = vadd.f32 %v110_v25, %v109_v26 }
  0x1f   :  { %v62_v19 = vadd.f32 %v61_v13, %v60_v15 }
  0x20   :  { %v113_v32 = vadd.f32 %v112_v28, %v111_v29 }
  0x21   :  { %v63_v23 = vrot.slane %v62_v19, 4 }
  0x22   :  { %v115_v33 = vadd.f32 %v114_v30, %v113_v32 }
  0x23   :  { %v64_v27 = vadd.f32 %v63_v23, %v62_v19 }
  0x24   :  { %v116_v35 = vrot.slane %v115_v33, 4 }
  0x25   :  { %v65_v31 = vrot.slane %v64_v27, 2 }
  0x26   :  { %v117_v36 = vadd.f32 %v116_v35, %v115_v33 }
  0x27   :  { %v66_v34 = vadd.f32 %v65_v31, %v64_v27 }
  0x28   :  { %v118_v38 = vrot.slane %v117_v36, 2 }
  0x29   :  { %v67_v37 = vrot.slane %v66_v34, 1 }
  0x2a   :  { %v119_v39 = vadd.f32 %v118_v38, %v117_v36 }
  0x2b   :  { %v68_v40 = vadd.f32 %v67_v37, %v66_v34 }
  0x2c   :  { %v120_v41 = vrot.slane %v119_v39, 1 }
  0x2e   :  { %v121_v43 = vadd.f32 %v120_v41, %v119_v39 }
  0x30   :  { %v123_v44 = vsel %vm122_vm2, %v68_v40, %v121_v43 }
  0x31   :  { %v124_v45 = vadd.f32 %v123_v44, %v30_v42 }
  0x33   :  { %126 = vst.msk [vmem:[%s235_s1] sm:$0x3] %vm12_vm0, %v124_v45 }

// kernel: resnet_small_forward.27
= control target key start
LH: loop header
LB: loop body
LE: loop exit
PB: predicated region body
PF: predicated region fallthrough
CT: control target
= control target key end

     0   :  { %s198_s0 = inlined_call_operand.vmem [shape: f32[64,128], index: 0, kind: input, shape index: {}]   ;;  %s199_s2 = inlined_call_operand.vmem [shape: f32[1,128], index: 2, kind: input, shape index: {}]   ;;  %s200_s3 = inlined_call_operand.vmem [shape: f32[1,128], index: 3, kind: input, shape index: {}]   ;;  %s201_s1 = inlined_call_operand.vmem [shape: f32[64,128], index: 1, kind: input, shape index: {}]   ;;  %s202_s4 = inlined_call_operand.vmem [shape: f32[64,128], index: 4, kind: output, shape index: {}]  }
   0x1   :  { %v17_v0 = vld [vmem:[%s198_s0] sm:$0xff]  ;;  %v18_v4 = vld [vmem:[%s198_s0 + $0x8] sm:$0xff]  ;;  %v19_v5 = vld [vmem:[%s198_s0 + $0x10] sm:$0xff] }
   0x2   :  { %v93_v1 = vld [vmem:[%s199_s2] ss:$0 sm:$0xff]  ;;  %v20_v8 = vld [vmem:[%s198_s0 + $0x18] sm:$0xff]  ;;  %v22_v12 = vld [vmem:[%s198_s0 + $0x28] sm:$0xff] }
   0x3   :  { %v94_v2 = vld [vmem:[%s200_s3] ss:$0 sm:$0xff]  ;;  %v29_v3 = vmul.f32 %v93_v1, %v17_v0  ;;  %v30_v6 = vmul.f32 %v93_v1, %v18_v4  ;;  %v31_v7 = vmul.f32 %v93_v1, %v19_v5  ;;  %v32_v10 = vmul.f32 %v93_v1, %v20_v8  ;;  %v23_v18 = vld [vmem:[%s198_s0 + $0x30] sm:$0xff]  ;;  %v58_v20 = vld [vmem:[%s201_s1 + $0x8] sm:$0xff] }
   0x4   :  { %v21_v11 = vld [vmem:[%s198_s0 + $0x20] sm:$0xff]  ;;  %v34_v17 = vmul.f32 %v93_v1, %v22_v12  ;;  %v59_v21 = vld [vmem:[%s201_s1 + $0x10] sm:$0xff]  ;;  %v35_v23 = vmul.f32 %v93_v1, %v23_v18  ;;  %v24_v24 = vld [vmem:[%s198_s0 + $0x38] sm:$0xff] }
   0x5   :  { %v41_v9 = vadd.f32 %v94_v2, %v29_v3  ;;  %v57_v13 = vld [vmem:[%s201_s1] sm:$0xff]  ;;  %v42_v14 = vadd.f32 %v94_v2, %v30_v6  ;;  %v43_v15 = vadd.f32 %v94_v2, %v31_v7  ;;  %v33_v16 = vmul.f32 %v93_v1, %v21_v11  ;;  %v60_v27 = vld [vmem:[%s201_s1 + $0x18] sm:$0xff]  ;;  %v62_v33 = vld [vmem:[%s201_s1 + $0x28] sm:$0xff] }
   0x6   :  { %v44_v22 = vadd.f32 %v94_v2, %v32_v10  ;;  %v46_v29 = vadd.f32 %v94_v2, %v34_v17  ;;  %v61_v32 = vld [vmem:[%s201_s1 + $0x20] sm:$0xff]  ;;  %v47_v34 = vadd.f32 %v94_v2, %v35_v23  ;;  %v36_v35 = vmul.f32 %v93_v1, %v24_v24  ;;  %v63_v40 = vld [vmem:[%s201_s1 + $0x30] sm:$0xff]  ;;  %v64_v49 = vld [vmem:[%s201_s1 + $0x38] sm:$0xff] }
   0x7   :  { %v49_v19 = vmax.f32 %v41_v9, 0.0  ;;  %v50_v25 = vmax.f32 %v42_v14, 0.0  ;;  %v51_v26 = vmax.f32 %v43_v15, 0.0  ;;  %v45_v28 = vadd.f32 %v94_v2, %v33_v16 }
   0x8   :  { %v52_v31 = vmax.f32 %v44_v22, 0.0  ;;  %v54_v39 = vmax.f32 %v46_v29, 0.0  ;;  %v55_v43 = vmax.f32 %v47_v34, 0.0  ;;  %v48_v44 = vadd.f32 %v94_v2, %v36_v35 }
   0x9   :  { %v65_v30 = vadd.f32 %v57_v13, %v49_v19  ;;  %v66_v36 = vadd.f32 %v58_v20, %v50_v25  ;;  %v67_v37 = vadd.f32 %v59_v21, %v51_v26  ;;  %v53_v38 = vmax.f32 %v45_v28, 0.0 }
   0xa   :  { %v68_v42 = vadd.f32 %v60_v27, %v52_v31  ;;  %v70_v48 = vadd.f32 %v62_v33, %v54_v39  ;;  %v71_v51 = vadd.f32 %v63_v40, %v55_v43  ;;  %v56_v52 = vmax.f32 %v48_v44, 0.0 }
   0xb   :  { %v73_v41 = vmax.f32 %v65_v30, 0.0  ;;  %v74_v45 = vmax.f32 %v66_v36, 0.0  ;;  %v75_v46 = vmax.f32 %v67_v37, 0.0  ;;  %v69_v47 = vadd.f32 %v61_v32, %v53_v38 }
   0xc   :  { %v76_v50 = vmax.f32 %v68_v42, 0.0  ;;  %v78_v54 = vmax.f32 %v70_v48, 0.0  ;;  %v79_v55 = vmax.f32 %v71_v51, 0.0  ;;  %v72_v56 = vadd.f32 %v64_v49, %v56_v52 }
   0xd   :  { %81 = vst [vmem:[%s202_s4] sm:$0xff] %v73_v41  ;;  %v77_v53 = vmax.f32 %v69_v47, 0.0 }
   0xe   :  { %82 = vst [vmem:[%s202_s4 + $0x8] sm:$0xff] %v74_v45  ;;  %v80_v57 = vmax.f32 %v72_v56, 0.0 }
   0xf   :  { %83 = vst [vmem:[%s202_s4 + $0x10] sm:$0xff] %v75_v46 }
  0x10   :  { %84 = vst [vmem:[%s202_s4 + $0x18] sm:$0xff] %v76_v50 }
  0x11   :  { %85 = vst [vmem:[%s202_s4 + $0x20] sm:$0xff] %v77_v53 }
  0x12   :  { %86 = vst [vmem:[%s202_s4 + $0x28] sm:$0xff] %v78_v54 }
  0x13   :  { %87 = vst [vmem:[%s202_s4 + $0x30] sm:$0xff] %v79_v55 }
  0x14   :  { %88 = vst [vmem:[%s202_s4 + $0x38] sm:$0xff] %v80_v57 }

// kernel: resnet_small_forward.33
= control target key start
LH: loop header
LB: loop body
LE: loop exit
PB: predicated region body
PF: predicated region fallthrough
CT: control target
= control target key end

     0   :  { %s98_s0 = inlined_call_operand.vmem [shape: f32[32,128], index: 0, kind: input, shape index: {}]   ;;  %s99_s1 = inlined_call_operand.vmem [shape: f32[1,128], index: 1, kind: input, shape index: {}]   ;;  %s100_s2 = inlined_call_operand.vmem [shape: f32[1,128], index: 2, kind: input, shape index: {}]   ;;  %s101_s3 = inlined_call_operand.vmem [shape: f32[32,128], index: 3, kind: output, shape index: {}]  }
   0x1   :  { %v14_v0 = vld [vmem:[%s98_s0] sm:$0xff]  ;;  %v15_v3 = vld [vmem:[%s98_s0 + $0x8] sm:$0xff]  ;;  %v16_v6 = vld [vmem:[%s98_s0 + $0x10] sm:$0xff] }
   0x2   :  { %v46_v1 = vld [vmem:[%s99_s1] ss:$0 sm:$0xff]  ;;  %v17_v7 = vld [vmem:[%s98_s0 + $0x18] sm:$0xff] }
   0x3   :  { %v47_v2 = vld [vmem:[%s100_s2] ss:$0 sm:$0xff]  ;;  %v22_v4 = vmul.f32 %v46_v1, %v14_v0  ;;  %v23_v5 = vmul.f32 %v46_v1, %v15_v3  ;;  %v24_v8 = vmul.f32 %v46_v1, %v16_v6  ;;  %v25_v9 = vmul.f32 %v46_v1, %v17_v7 }
   0x5   :  { %v30_v10 = vadd.f32 %v47_v2, %v22_v4  ;;  %v31_v11 = vadd.f32 %v47_v2, %v23_v5  ;;  %v32_v12 = vadd.f32 %v47_v2, %v24_v8  ;;  %v33_v13 = vadd.f32 %v47_v2, %v25_v9 }
   0x7   :  { %v34_v14 = vmax.f32 %v30_v10, 0.0  ;;  %v35_v15 = vmax.f32 %v31_v11, 0.0  ;;  %v36_v16 = vmax.f32 %v32_v12, 0.0  ;;  %v37_v17 = vmax.f32 %v33_v13, 0.0 }
   0x9   :  { %38 = vst [vmem:[%s101_s3] sm:$0xff] %v34_v14 }
   0xa   :  { %39 = vst [vmem:[%s101_s3 + $0x8] sm:$0xff] %v35_v15 }
   0xb   :  { %40 = vst [vmem:[%s101_s3 + $0x10] sm:$0xff] %v36_v16 }
   0xc   :  { %41 = vst [vmem:[%s101_s3 + $0x18] sm:$0xff] %v37_v17 }

// kernel: resnet_small_forward.32
= control target key start
LH: loop header
LB: loop body
LE: loop exit
PB: predicated region body
PF: predicated region fallthrough
CT: control target
= control target key end

     0   :  { %vm369_vm0 = vcmask 523264   ;;  %vm498_vm1 = vcmask 1040384   ;;  %s957_s1 = inlined_call_operand.vmem [shape: bf16[576,128], index: 1, kind: input, shape index: {}]   ;;  %s958_s0 = inlined_call_operand.vmem [shape: bf16[32,576], index: 0, kind: input, shape index: {}]   ;;  %s959_s3 = inlined_call_operand.vmem [shape: f32[2,128], index: 3, kind: output, shape index: {1}]   ;;  %s960_s2 = inlined_call_operand.vmem [shape: f32[32,128], index: 2, kind: output, shape index: {0}]  }
   0x1   :  { %v713_v0 = vld [vmem:[%s957_s1 + $0x38] sm:$0xff]  ;;  %v712_v4 = vld [vmem:[%s957_s1 + $0x30] sm:$0xff]  ;;  %v711_v8 = vld [vmem:[%s957_s1 + $0x28] sm:$0xff] }
   0x2   :  { %v721_v1 = vld [vmem:[%s957_s1 + $0x78] sm:$0xff]  ;;  %376 = vmatpush.bf16.msra.mxu0 %v713_v0  ;;  %v720_v5 = vld [vmem:[%s957_s1 + $0x70] sm:$0xff]  ;;  %v719_v9 = vld [vmem:[%s957_s1 + $0x68] sm:$0xff] }
   0x3   :  { %v729_v2 = vld [vmem:[%s957_s1 + $0xb8] sm:$0xff]  ;;  %395 = vmatpush.bf16.msra.mxu1 %v721_v1  ;;  %v728_v6 = vld [vmem:[%s957_s1 + $0xb0] sm:$0xff]  ;;  %v727_v10 = vld [vmem:[%s957_s1 + $0xa8] sm:$0xff] }
   0x4   :  { %v737_v3 = vld [vmem:[%s957_s1 + $0xf8] sm:$0xff]  ;;  %414 = vmatpush.bf16.msra.mxu2 %v729_v2  ;;  %v736_v7 = vld [vmem:[%s957_s1 + $0xf0] sm:$0xff]  ;;  %v735_v11 = vld [vmem:[%s957_s1 + $0xe8] sm:$0xff] }
   0x5   :  { %433 = vmatpush.bf16.msra.mxu3 %v737_v3  ;;  %v710_v12 = vld [vmem:[%s957_s1 + $0x20] sm:$0xff]  ;;  %v709_v16 = vld [vmem:[%s957_s1 + $0x18] sm:$0xff]  ;;  %v708_v20 = vld [vmem:[%s957_s1 + $0x10] sm:$0xff] }
   0x6   :  { %377 = vmatpush.bf16.msra.mxu0 %v712_v4  ;;  %v718_v13 = vld [vmem:[%s957_s1 + $0x60] sm:$0xff]  ;;  %v717_v17 = vld [vmem:[%s957_s1 + $0x58] sm:$0xff]  ;;  %v716_v21 = vld [vmem:[%s957_s1 + $0x50] sm:$0xff] }
   0x7   :  { %396 = vmatpush.bf16.msra.mxu1 %v720_v5  ;;  %v726_v14 = vld [vmem:[%s957_s1 + $0xa0] sm:$0xff]  ;;  %v725_v18 = vld [vmem:[%s957_s1 + $0x98] sm:$0xff]  ;;  %v724_v22 = vld [vmem:[%s957_s1 + $0x90] sm:$0xff] }
   0x8   :  { %415 = vmatpush.bf16.msra.mxu2 %v728_v6  ;;  %v734_v15 = vld [vmem:[%s957_s1 + $0xe0] sm:$0xff]  ;;  %v733_v19 = vld [vmem:[%s957_s1 + $0xd8] sm:$0xff]  ;;  %v732_v23 = vld [vmem:[%s957_s1 + $0xd0] sm:$0xff] }
   0x9   :  { %434 = vmatpush.bf16.msra.mxu3 %v736_v7  ;;  %v707_v24 = vld [vmem:[%s957_s1 + $0x8] sm:$0xff]  ;;  %v706_v28 = vld [vmem:[%s957_s1] sm:$0xff]  ;;  %v698_v33 = vld [vmem:[%s958_s0 + $0x10] sm:$0xf0] }
   0xa   :  { %378 = vmatpush.bf16.msra.mxu0 %v711_v8  ;;  %v715_v25 = vld [vmem:[%s957_s1 + $0x48] sm:$0xff]  ;;  %v714_v29 = vld [vmem:[%s957_s1 + $0x40] sm:$0xff]  ;;  %v514_v35 = vld [vmem:[%s958_s0 + $0x14] sm:$0xf0]  ;;  %v747_v8 = vmov 0.0  }
   0xb   :  { %397 = vmatpush.bf16.msra.mxu1 %v719_v9  ;;  %v723_v26 = vld [vmem:[%s957_s1 + $0x88] sm:$0xff]  ;;  %v722_v30 = vld [vmem:[%s957_s1 + $0x80] sm:$0xff]  ;;  %v699_v37 = vld [vmem:[%s958_s0 + $0x18] sm:$0xf0]  ;;  %18 = vst [vmem:[%s959_s3] sm:$0x3] %v747_v8 }
   0xc   :  { %416 = vmatpush.bf16.msra.mxu2 %v727_v10  ;;  %v731_v27 = vld [vmem:[%s957_s1 + $0xc8] sm:$0xff]  ;;  %v730_v31 = vld [vmem:[%s957_s1 + $0xc0] sm:$0xff]  ;;  %v741_v40 = vld [vmem:[%s957_s1 + $0x118] sm:$0xff] }
   0xd   :  { %435 = vmatpush.bf16.msra.mxu3 %v735_v11  ;;  %v512_v32 = vld [vmem:[%s958_s0] sm:$0xf]  ;;  %v696_v34 = vld [vmem:[%s958_s0 + $0x4] sm:$0xf]  ;;  %v520_v36 = vld [vmem:[%s958_s0 + $0x8] sm:$0xf] }
   0xe   :  { %379 = vmatpush.bf16.msra.mxu0 %v710_v12  ;;  %v697_v38 = vld [vmem:[%s958_s0 + $0xc] sm:$0xf]  ;;  %v522_v39 = vld [vmem:[%s958_s0 + $0x1c] sm:$0xf0]  ;;  %v513_v41 = vor.u32 %v698_v33, %v512_v32  ;;  %v517_v42 = vor.u32 %v696_v34, %v514_v35  ;;  %v521_v43 = vor.u32 %v699_v37, %v520_v36  ;;  %v740_v45 = vld [vmem:[%s957_s1 + $0x110] sm:$0xff] }
   0xf   :  { %398 = vmatpush.bf16.msra.mxu1 %v718_v13  ;;  %v525_v44 = vor.u32 %v697_v38, %v522_v39  ;;  %v739_v46 = vld [vmem:[%s957_s1 + $0x108] sm:$0xff]  ;;  %v738_v47 = vld [vmem:[%s957_s1 + $0x100] sm:$0xff]  ;;  %v703_v49 = vld [vmem:[%s958_s0 + $0x38] sm:$0xf0] }
  0x10   :  { %417 = vmatpush.bf16.msra.mxu2 %v726_v14  ;;  %v532_v48 = vld [vmem:[%s958_s0 + $0x28] sm:$0xf]  ;;  %v701_v50 = vld [vmem:[%s958_s0 + $0x2c] sm:$0xf]  ;;  %v534_v51 = vld [vmem:[%s958_s0 + $0x3c] sm:$0xf0] }
  0x11   :  { %436 = vmatpush.bf16.msra.mxu3 %v734_v15  ;;  %v540_v52 = vld [vmem:[%s958_s0 + $0x30] sm:$0xf]  ;;  %v704_v53 = vld [vmem:[%s958_s0 + $0x40] sm:$0xf0]  ;;  %v702_v54 = vld [vmem:[%s958_s0 + $0x34] sm:$0xf]  ;;  %v533_v56 = vor.u32 %v703_v49, %v532_v48  ;;  %v537_v57 = vor.u32 %v701_v50, %v534_v51 }
  0x12   :  { %380 = vmatpush.bf16.msra.mxu0 %v709_v16  ;;  %v542_v55 = vld [vmem:[%s958_s0 + $0x44] sm:$0xf0]  ;;  %v541_v58 = vor.u32 %v704_v53, %v540_v52  ;;  %v528_v60 = vld [vmem:[%s958_s0 + $0x10] sm:$0xf]  ;;  %v700_v61 = vld [vmem:[%s958_s0 + $0x20] sm:$0xf0] }
  0x13   :  { %399 = vmatpush.bf16.msra.mxu1 %v717_v17  ;;  %v545_v59 = vor.u32 %v702_v54, %v542_v55  ;;  %v548_v62 = vld [vmem:[%s958_s0 + $0x38] sm:$0xf]  ;;  %v705_v63 = vld [vmem:[%s958_s0 + $0x48] sm:$0xf0]  ;;  %v529_v0 = vor.u32 %v700_v61, %v528_v60 }
  0x14   :  { %418 = vmatpush.bf16.msra.mxu2 %v725_v18  ;;  %v549_v1 = vor.u32 %v705_v63, %v548_v62 }
  0x15   :  { %437 = vmatpush.bf16.msra.mxu3 %v733_v19 }
  0x16   :  { %381 = vmatpush.bf16.msra.mxu0 %v708_v20 }
  0x17   :  { %400 = vmatpush.bf16.msra.mxu1 %v716_v21 }
  0x18   :  { %419 = vmatpush.bf16.msra.mxu2 %v724_v22 }
  0x19   :  { %438 = vmatpush.bf16.msra.mxu3 %v732_v23 }
  0x1a   :  { %382 = vmatpush.bf16.msra.mxu0 %v707_v24 }
  0x1b   :  { %401 = vmatpush.bf16.msra.mxu1 %v715_v25 }
  0x1c   :  { %420 = vmatpush.bf16.msra.mxu2 %v723_v26 }
  0x1d   :  { %439 = vmatpush.bf16.msra.mxu3 %v731_v27 }
  0x1e   :  { %383 = vmatpush.bf16.msra.mxu0 %v706_v28 }
  0x1f   :  { %402 = vmatpush.bf16.msra.mxu1 %v714_v29 }
  0x20   :  { %421 = vmatpush.bf16.msra.mxu2 %v722_v30 }
  0x21   :  { %440 = vmatpush.bf16.msra.mxu3 %v730_v31  ;;  %384 = vmatmul.bf16.vlgmr.msra.gmra.mxu0 %v513_v41 }
  0x22   :  { %456 = vmatpush.bf16.msrb.mxu0 %v741_v40  ;;  %403 = vmatmul.bf16.vlgmr.msra.gmra.mxu1 %v517_v42 }
  0x23   :  { %742 = vmatpush.bf16.msrb.mxu1 %v741_v40  ;;  %422 = vmatmul.bf16.vlgmr.msra.gmra.mxu2 %v521_v43 }
  0x24   :  { %441 = vmatmul.bf16.vlgmr.msra.gmra.mxu3 %v525_v44 }
  0x26   :  { %457 = vmatpush.bf16.msrb.mxu0 %v740_v45 }
  0x27   :  { %743 = vmatpush.bf16.msrb.mxu1 %v740_v45 }
  0x2a   :  { %458 = vmatpush.bf16.msrb.mxu0 %v739_v46 }
  0x2b   :  { %744 = vmatpush.bf16.msrb.mxu1 %v739_v46 }
  0x2e   :  { %459 = vmatpush.bf16.msrb.mxu0 %v738_v47 }
  0x2f   :  { %745 = vmatpush.bf16.msrb.mxu1 %v738_v47 }
  0x31   :  { %389 = vmatmul.bf16.gmra.mxu0 %v533_v56 }
  0x32   :  { %408 = vmatmul.bf16.gmra.mxu1 %v537_v57 }
  0x33   :  { %427 = vmatmul.bf16.gmra.mxu2 %v541_v58 }
  0x34   :  { %446 = vmatmul.bf16.gmra.mxu3 %v545_v59  ;;  %v475_v59 = vld [vmem:[%s959_s3] sm:$0x3] }
  0x41   :  { %694 = vmatmul.msk.bf16.vlgmr.msrb.gmra.mxu0 %vm369_vm0, %v529_v0 }
  0x42   :  { %695 = vmatmul.msk.bf16.vlgmr.msrb.gmra.mxu1 %vm369_vm0, %v549_v1 }
  0x9e   :  { %v385_v2 = vpop.f32.mrf.mxu0 }
  0x9f   :  { %v404_v3 = vpop.f32.mrf.mxu1 }
  0xa0   :  { %v405_v16 = vadd.f32 %v404_v3, %v385_v2 }
  0xa6   :  { %v423_v4 = vpop.f32.mrf.mxu2  ;;  %v387_v6 = vpop.f32.mrf.mxu0 }
  0xa7   :  { %v442_v5 = vpop.f32.mrf.mxu3  ;;  %v406_v7 = vpop.f32.mrf.mxu1  ;;  %v424_v19 = vadd.f32 %v423_v4, %v405_v16 }
  0xa8   :  { %v407_v26 = vadd.f32 %v406_v7, %v387_v6 }
  0xa9   :  { %v443_v21 = vadd.f32 %v442_v5, %v424_v19 }
  0xae   :  { %v425_v9 = vpop.f32.mrf.mxu2  ;;  %v390_v11 = vpop.f32.mrf.mxu0 }
  0xaf   :  { %v444_v10 = vpop.f32.mrf.mxu3  ;;  %v409_v12 = vpop.f32.mrf.mxu1  ;;  %v426_v30 = vadd.f32 %v425_v9, %v407_v26 }
  0xb0   :  { %v410_v17 = vadd.f32 %v409_v12, %v390_v11 }
  0xb1   :  { %v445_v33 = vadd.f32 %v444_v10, %v426_v30 }
  0xb6   :  { %v428_v13 = vpop.f32.mrf.mxu2  ;;  %v392_v14 = vpop.f32.mrf.mxu0 }
  0xb7   :  { %v411_v15 = vpop.f32.mrf.mxu1  ;;  %v447_v18 = vpop.f32.mrf.mxu3  ;;  %v429_v20 = vadd.f32 %v428_v13, %v410_v17 }
  0xb8   :  { %v412_v27 = vadd.f32 %v411_v15, %v392_v14 }
  0xb9   :  { %v448_v22 = vadd.f32 %v447_v18, %v429_v20 }
  0xbe   :  { %v430_v23 = vpop.f32.mrf.mxu2  ;;  %v461_v24 = vpop.f32.mrf.mxu0 }
  0xbf   :  { %v466_v25 = vpop.f32.mrf.mxu1  ;;  %v462_v28 = vadd.f32 %v461_v24, %v443_v21  ;;  %v431_v31 = vadd.f32 %v430_v23, %v412_v27  ;;  %v449_v32 = vpop.f32.mrf.mxu3 }
  0xc0   :  { %v467_v29 = vadd.f32 %v466_v25, %v448_v22 }
  0xc1   :  { %471 = vst [vmem:[%s960_s2] sm:$0xff] %v462_v28  ;;  %v450_v34 = vadd.f32 %v449_v32, %v431_v31  ;;  %v485_v39 = vmul.f32 %v462_v28, %v462_v28 }
  0xc2   :  { %473 = vst [vmem:[%s960_s2 + $0x10] sm:$0xff] %v467_v29  ;;  %v487_v42 = vmul.f32 %v467_v29, %v467_v29 }
  0xc6   :  { %v463_v35 = vpop.f32.mrf.mxu0 }
  0xc7   :  { %v468_v36 = vpop.f32.mrf.mxu1  ;;  %v464_v37 = vadd.f32 %v463_v35, %v445_v33 }
  0xc8   :  { %v469_v38 = vadd.f32 %v468_v36, %v450_v34 }
  0xc9   :  { %472 = vst [vmem:[%s960_s2 + $0x8] sm:$0xff] %v464_v37  ;;  %v476_v40 = vadd.f32 %v464_v37, %v462_v28  ;;  %v486_v41 = vmul.f32 %v464_v37, %v464_v37 }
  0xca   :  { %474 = vst [vmem:[%s960_s2 + $0x18] sm:$0xff] %v469_v38  ;;  %v488_v46 = vmul.f32 %v469_v38, %v469_v38 }
  0xcb   :  { %v489_v43 = vadd.f32 %v486_v41, %v485_v39  ;;  %v477_v44 = vadd.f32 %v476_v40, %v467_v29 }
  0xcd   :  { %v478_v45 = vadd.f32 %v477_v44, %v469_v38  ;;  %v490_v47 = vadd.f32 %v489_v43, %v487_v42 }
  0xcf   :  { %v479_v48 = vrot.slane %v478_v45, 4  ;;  %v491_v49 = vadd.f32 %v490_v47, %v488_v46 }
  0xd1   :  { %v480_v50 = vadd.f32 %v479_v48, %v478_v45  ;;  %v492_v51 = vrot.slane %v491_v49, 4 }
  0xd3   :  { %v481_v52 = vrot.slane %v480_v50, 2  ;;  %v493_v53 = vadd.f32 %v492_v51, %v491_v49 }
  0xd5   :  { %v482_v54 = vadd.f32 %v481_v52, %v480_v50  ;;  %v494_v55 = vrot.slane %v493_v53, 2 }
  0xd7   :  { %v483_v56 = vrot.slane %v482_v54, 1  ;;  %v495_v57 = vadd.f32 %v494_v55, %v493_v53 }
  0xd9   :  { %v496_v58 = vrot.slane %v495_v57, 1  ;;  %v484_v60 = vadd.f32 %v483_v56, %v482_v54 }
  0xdb   :  { %v497_v61 = vadd.f32 %v496_v58, %v495_v57 }
  0xdd   :  { %v499_v62 = vsel %vm498_vm1, %v484_v60, %v497_v61 }
  0xde   :  { %v500_v63 = vadd.f32 %v499_v62, %v475_v59 }
  0xe0   :  { %501 = vst [vmem:[%s959_s3] sm:$0x3] %v500_v63 }

// kernel: resnet_small_forward.24
= control target key start
LH: loop header
LB: loop body
LE: loop exit
PB: predicated region body
PF: predicated region fallthrough
CT: control target
= control target key end

     0   :  { %vm138_vm0 = vcmask 523264   ;;  %vm22_vm1 = vcmask 517120   ;;  %vm2060_vm2 = vcmask 1040384   ;;  %s3731_s1 = inlined_call_operand.vmem [shape: bf16[9,64,64], index: 1, kind: input, shape index: {}]   ;;  %s3732_s0 = inlined_call_operand.vmem [shape: f32[206,64], index: 0, kind: input, shape index: {}]   ;;  %s3733_s2 = inlined_call_operand.vmem [shape: f32[184,1], index: 2, kind: input, shape index: {}]   ;;  %s3734_s3 = inlined_call_operand.vmem [shape: f32[184,64], index: 3, kind: output, shape index: {0}]   ;;  %s3735_s4 = inlined_call_operand.vmem [shape: f32[2,64], index: 4, kind: output, shape index: {1}]  }
   0x1   :  { %v2588_v0 = vld [vmem:[%s3731_s1 + $0x38] sm:$0xff]  ;;  %v2587_v1 = vld [vmem:[%s3731_s1 + $0x30] sm:$0xff]  ;;  %v2586_v2 = vld [vmem:[%s3731_s1 + $0x28] sm:$0xff] }
   0x2   :  { %2617 = vmatpush.bf16.msra.mxu1 %v2588_v0  ;;  %2618 = vmatpush.bf16.msra.mxu2 %v2588_v0  ;;  %v2585_v3 = vld [vmem:[%s3731_s1 + $0x20] sm:$0xff]  ;;  %v2087_v4 = vld [vmem:[%s3732_s0 + $0x31] sm:$0xff]  ;;  %v2094_v7 = vld [vmem:[%s3732_s0 + $0x69] sm:$0xff] }
   0x3   :  { %2619 = vmatpush.bf16.msra.mxu3 %v2588_v0  ;;  %179 = vmatpush.bf16.msra.mxu0 %v2588_v0  ;;  %v2088_v5 = vld [vmem:[%s3732_s0 + $0x39] sm:$0xff]  ;;  %v2093_v6 = vld [vmem:[%s3732_s0 + $0x61] sm:$0xff]  ;;  %v2099_v8 = vld [vmem:[%s3732_s0 + $0x91] sm:$0xff] }
   0x4   :  { %v2100_v9 = vld [vmem:[%s3732_s0 + $0x99] sm:$0xff]  ;;  %v2081_v10 = vld [vmem:[%s3732_s0 + $0x1] sm:$0xff]  ;;  %v2082_v11 = vld [vmem:[%s3732_s0 + $0x9] sm:$0xff]  ;;  %v96_v14 = vpack.c.bf16 %v2088_v5, %v2087_v4  ;;  %v99_v15 = vpack.c.bf16 %v2094_v7, %v2093_v6 }
   0x5   :  { %v2592_v12 = vld [vmem:[%s3731_s1 + $0x58] sm:$0xff]  ;;  %v102_v16 = vpack.c.bf16 %v2100_v9, %v2099_v8  ;;  %v93_v17 = vpack.c.bf16 %v2082_v11, %v2081_v10  ;;  %v2591_v20 = vld [vmem:[%s3731_s1 + $0x50] sm:$0xff]  ;;  %v2590_v24 = vld [vmem:[%s3731_s1 + $0x48] sm:$0xff] }
   0x6   :  { %2620 = vmatpush.bf16.msra.mxu1 %v2587_v1  ;;  %2621 = vmatpush.bf16.msra.mxu2 %v2587_v1  ;;  %v2596_v13 = vld [vmem:[%s3731_s1 + $0x78] sm:$0xff]  ;;  %v2595_v21 = vld [vmem:[%s3731_s1 + $0x70] sm:$0xff]  ;;  %v2594_v25 = vld [vmem:[%s3731_s1 + $0x68] sm:$0xff] }
   0x7   :  { %2622 = vmatpush.bf16.msra.mxu3 %v2587_v1  ;;  %180 = vmatpush.bf16.msra.mxu0 %v2587_v1  ;;  %v2584_v18 = vld [vmem:[%s3731_s1 + $0x18] sm:$0xff]  ;;  %v2583_v22 = vld [vmem:[%s3731_s1 + $0x10] sm:$0xff]  ;;  %v2582_v26 = vld [vmem:[%s3731_s1 + $0x8] sm:$0xff] }
   0x8   :  { %v2600_v19 = vld [vmem:[%s3731_s1 + $0x98] sm:$0xff]  ;;  %v2599_v23 = vld [vmem:[%s3731_s1 + $0x90] sm:$0xff]  ;;  %v2598_v27 = vld [vmem:[%s3731_s1 + $0x88] sm:$0xff] }
   0x9   :  { %v2089_v28 = vld [vmem:[%s3732_s0 + $0x41] sm:$0xff]  ;;  %v2090_v31 = vld [vmem:[%s3732_s0 + $0x49] sm:$0xff]  ;;  %v2095_v32 = vld [vmem:[%s3732_s0 + $0x71] sm:$0xff] }
   0xa   :  { %2623 = vmatpush.bf16.msra.mxu1 %v2586_v2  ;;  %2624 = vmatpush.bf16.msra.mxu2 %v2586_v2  ;;  %v2589_v29 = vld [vmem:[%s3731_s1 + $0x40] sm:$0xff]  ;;  %v2102_v35 = vld [vmem:[%s3732_s0 + $0xa9] sm:$0xff]  ;;  %v2083_v36 = vld [vmem:[%s3732_s0 + $0x11] sm:$0xff]  ;;  %v97_v40 = vpack.c.bf16 %v2090_v31, %v2089_v28 }
   0xb   :  { %2625 = vmatpush.bf16.msra.mxu3 %v2586_v2  ;;  %181 = vmatpush.bf16.msra.mxu0 %v2586_v2  ;;  %v2593_v30 = vld [vmem:[%s3731_s1 + $0x60] sm:$0xff]  ;;  %v2608_v44 = vld [vmem:[%s3731_s1 + $0xd8] sm:$0xff]  ;;  %v2098_v51 = vld [vmem:[%s3732_s0 + $0x89] sm:$0xff] }
   0xc   :  { %v2096_v33 = vld [vmem:[%s3732_s0 + $0x79] sm:$0xff]  ;;  %v2101_v34 = vld [vmem:[%s3732_s0 + $0xa1] sm:$0xff]  ;;  %v2091_v48 = vld [vmem:[%s3732_s0 + $0x51] sm:$0xff] }
   0xd   :  { %v2084_v37 = vld [vmem:[%s3732_s0 + $0x19] sm:$0xff]  ;;  %v100_v41 = vpack.c.bf16 %v2096_v33, %v2095_v32  ;;  %v103_v42 = vpack.c.bf16 %v2102_v35, %v2101_v34  ;;  %v2097_v50 = vld [vmem:[%s3732_s0 + $0x81] sm:$0xff]  ;;  %v2103_v52 = vld [vmem:[%s3732_s0 + $0xb1] sm:$0xff] }
   0xe   :  { %2626 = vmatpush.bf16.msra.mxu1 %v2585_v3  ;;  %2627 = vmatpush.bf16.msra.mxu2 %v2585_v3  ;;  %v2581_v38 = vld [vmem:[%s3731_s1] sm:$0xff]  ;;  %v94_v43 = vpack.c.bf16 %v2084_v37, %v2083_v36  ;;  %v2612_v45 = vld [vmem:[%s3731_s1 + $0xf8] sm:$0xff]  ;;  %v2086_v54 = vld [vmem:[%s3732_s0 + $0x29] sm:$0xff]  ;;  %v101_v56 = vpack.c.bf16 %v2098_v51, %v2097_v50  ;;  %v104_v57 = vpack.c.bf16 %v2103_v52, %v2103_v52 }
   0xf   :  { %2628 = vmatpush.bf16.msra.mxu3 %v2585_v3  ;;  %182 = vmatpush.bf16.msra.mxu0 %v2585_v3  ;;  %v2597_v39 = vld [vmem:[%s3731_s1 + $0x80] sm:$0xff]  ;;  %v2604_v46 = vld [vmem:[%s3731_s1 + $0xb8] sm:$0xff]  ;;  %v26_v60 = vld [vmem:[%s3732_s0 + $0x8] sm:$0xff] }
  0x10   :  { %v2616_v47 = vld [vmem:[%s3731_s1 + $0x118] sm:$0xff]  ;;  %v2085_v53 = vld [vmem:[%s3732_s0 + $0x21] sm:$0xff]  ;;  %v2169_v62 = vld [vmem:[%s3732_s0 + $0xa] sm:$0xff] }
  0x11   :  { %2131 = vmatmul.msk.bf16.vlgmr.msra.gmra.mxu1 %vm138_vm0, %v96_v14  ;;  %2134 = vmatmul.msk.bf16.vlgmr.msra.gmra.mxu2 %vm138_vm0, %v99_v15  ;;  %v2092_v49 = vld [vmem:[%s3732_s0 + $0x59] sm:$0xff]  ;;  %v95_v58 = vpack.c.bf16 %v2086_v54, %v2085_v53  ;;  %v2168_v61 = vld [vmem:[%s3732_s0 + $0x2] sm:$0xff]  ;;  %v2286_v0 = vld [vmem:[%s3732_s0 + $0xb] sm:$0xff] }
  0x12   :  { %481 = vmatpush.bf16.msrb.mxu2 %v2592_v12  ;;  %2137 = vmatmul.msk.bf16.vlgmr.msra.gmra.mxu3 %vm138_vm0, %v102_v16  ;;  %v98_v55 = vpack.c.bf16 %v2092_v49, %v2091_v48  ;;  %v25_v59 = vld [vmem:[%s3732_s0] sm:$0xff]  ;;  %v2228_v63 = vld [vmem:[%s3732_s0 + $0x12] sm:$0xff]  ;;  %v396_v3 = vpack.c.bf16 %v2169_v62, %v2168_v61  ;;  %v2606_v50 = vld [vmem:[%s3731_s1 + $0xc8] sm:$0xff] }
  0x13   :  { %678 = vmatpush.bf16.msrb.mxu3 %v2596_v13  ;;  %2128 = vmatmul.msk.bf16.vlgmr.msra.gmra.mxu0 %vm138_vm0, %v93_v17  ;;  %v2287_v1 = vld [vmem:[%s3732_s0 + $0x13] sm:$0xff]  ;;  %v48_v2 = vpack.c.bf16 %v26_v60, %v25_v59  ;;  %v593_v4 = vpack.c.bf16 %v2228_v63, %v2169_v62  ;;  %v2230_v9 = vld [vmem:[%s3732_s0 + $0x22] sm:$0xff] }
  0x14   :  { %307 = vmatpush.bf16.msrb.mxu1 %v2584_v18  ;;  %875 = vmatpush.bf16.msrb.mxu0 %v2600_v19  ;;  %v790_v5 = vpack.c.bf16 %v2287_v1, %v2286_v0  ;;  %v27_v6 = vld [vmem:[%s3732_s0 + $0x10] sm:$0xff]  ;;  %v28_v7 = vld [vmem:[%s3732_s0 + $0x18] sm:$0xff]  ;;  %v2289_v11 = vld [vmem:[%s3732_s0 + $0x23] sm:$0xff] }
  0x15   :  { %v2171_v8 = vld [vmem:[%s3732_s0 + $0x1a] sm:$0xff]  ;;  %v49_v12 = vpack.c.bf16 %v28_v7, %v27_v6  ;;  %v2607_v16 = vld [vmem:[%s3731_s1 + $0xd0] sm:$0xff]  ;;  %v2234_v33 = vld [vmem:[%s3732_s0 + $0x42] sm:$0xff] }
  0x16   :  { %482 = vmatpush.bf16.msrb.mxu2 %v2591_v20  ;;  %v2288_v10 = vld [vmem:[%s3732_s0 + $0x1b] sm:$0xff]  ;;  %v397_v13 = vpack.c.bf16 %v2171_v8, %v2228_v63  ;;  %v594_v14 = vpack.c.bf16 %v2230_v9, %v2171_v8  ;;  %v2611_v17 = vld [vmem:[%s3731_s1 + $0xf0] sm:$0xff]  ;;  %v2293_v35 = vld [vmem:[%s3732_s0 + $0x43] sm:$0xff] }
  0x17   :  { %679 = vmatpush.bf16.msrb.mxu3 %v2595_v21  ;;  %v791_v15 = vpack.c.bf16 %v2289_v11, %v2288_v10  ;;  %v2603_v18 = vld [vmem:[%s3731_s1 + $0xb0] sm:$0xff]  ;;  %v29_v20 = vld [vmem:[%s3732_s0 + $0x20] sm:$0xff]  ;;  %v30_v21 = vld [vmem:[%s3732_s0 + $0x28] sm:$0xff] }
  0x18   :  { %308 = vmatpush.bf16.msrb.mxu1 %v2583_v22  ;;  %876 = vmatpush.bf16.msrb.mxu0 %v2599_v23  ;;  %v2615_v19 = vld [vmem:[%s3731_s1 + $0x110] sm:$0xff]  ;;  %v32_v31 = vld [vmem:[%s3732_s0 + $0x38] sm:$0xff]  ;;  %v2610_v51 = vld [vmem:[%s3731_s1 + $0xe8] sm:$0xff] }
  0x19   :  { %v2173_v22 = vld [vmem:[%s3732_s0 + $0x2a] sm:$0xff]  ;;  %v2232_v23 = vld [vmem:[%s3732_s0 + $0x32] sm:$0xff]  ;;  %v2175_v32 = vld [vmem:[%s3732_s0 + $0x3a] sm:$0xff] }
  0x1a   :  { %483 = vmatpush.bf16.msrb.mxu2 %v2590_v24  ;;  %v2290_v24 = vld [vmem:[%s3732_s0 + $0x2b] sm:$0xff]  ;;  %v595_v28 = vpack.c.bf16 %v2232_v23, %v2173_v22  ;;  %v2292_v34 = vld [vmem:[%s3732_s0 + $0x3b] sm:$0xff]  ;;  %v399_v37 = vpack.c.bf16 %v2175_v32, %v2232_v23  ;;  %v2297_v59 = vld [vmem:[%s3732_s0 + $0x63] sm:$0xff] }
  0x1b   :  { %680 = vmatpush.bf16.msrb.mxu3 %v2594_v25  ;;  %v2291_v25 = vld [vmem:[%s3732_s0 + $0x33] sm:$0xff]  ;;  %v2602_v52 = vld [vmem:[%s3731_s1 + $0xa8] sm:$0xff]  ;;  %v37_v6 = vld [vmem:[%s3732_s0 + $0x60] sm:$0xff] }
  0x1c   :  { %309 = vmatpush.bf16.msrb.mxu1 %v2582_v26  ;;  %877 = vmatpush.bf16.msrb.mxu0 %v2598_v27  ;;  %v50_v26 = vpack.c.bf16 %v30_v21, %v29_v20  ;;  %v398_v27 = vpack.c.bf16 %v2173_v22, %v2230_v9  ;;  %v2614_v53 = vld [vmem:[%s3731_s1 + $0x108] sm:$0xff]  ;;  %v35_v54 = vld [vmem:[%s3732_s0 + $0x50] sm:$0xff] }
  0x1d   :  { %v38_v7 = vld [vmem:[%s3732_s0 + $0x68] sm:$0xff]  ;;  %v2240_v9 = vld [vmem:[%s3732_s0 + $0x72] sm:$0xff] }
  0x1e   :  { %484 = vmatpush.bf16.msrb.mxu2 %v2589_v29  ;;  %v792_v29 = vpack.c.bf16 %v2291_v25, %v2290_v24  ;;  %v2181_v8 = vld [vmem:[%s3732_s0 + $0x6a] sm:$0xff]  ;;  %v2299_v11 = vld [vmem:[%s3732_s0 + $0x73] sm:$0xff] }
  0x1f   :  { %681 = vmatpush.bf16.msrb.mxu3 %v2593_v30  ;;  %v31_v30 = vld [vmem:[%s3732_s0 + $0x30] sm:$0xff]  ;;  %v40_v25 = vld [vmem:[%s3732_s0 + $0x78] sm:$0xff] }
  0x20   :  { %310 = vmatpush.bf16.msrb.mxu1 %v2581_v38  ;;  %878 = vmatpush.bf16.msrb.mxu0 %v2597_v39  ;;  %v51_v36 = vpack.c.bf16 %v32_v31, %v31_v30  ;;  %v596_v38 = vpack.c.bf16 %v2234_v33, %v2175_v32  ;;  %v793_v39 = vpack.c.bf16 %v2293_v35, %v2292_v34  ;;  %v2298_v10 = vld [vmem:[%s3732_s0 + $0x6b] sm:$0xff] }
  0x21   :  { %2132 = vmatmul.msk.bf16.gmra.mxu1 %vm138_vm0, %v97_v40  ;;  %2135 = vmatmul.msk.bf16.gmra.mxu2 %vm138_vm0, %v100_v41  ;;  %v33_v40 = vld [vmem:[%s3732_s0 + $0x40] sm:$0xff]  ;;  %v34_v41 = vld [vmem:[%s3732_s0 + $0x48] sm:$0xff]  ;;  %v39_v24 = vld [vmem:[%s3732_s0 + $0x70] sm:$0xff] }
  0x22   :  { %2138 = vmatmul.msk.bf16.gmra.mxu3 %vm138_vm0, %v103_v42  ;;  %1269 = vmatpush.bf16.msra.mxu2 %v2608_v44  ;;  %v2177_v42 = vld [vmem:[%s3732_s0 + $0x4a] sm:$0xff]  ;;  %v55_v32 = vpack.c.bf16 %v40_v25, %v39_v24 }
  0x23   :  { %2129 = vmatmul.msk.bf16.gmra.mxu0 %vm138_vm0, %v94_v43  ;;  %1466 = vmatpush.bf16.msra.mxu3 %v2612_v45  ;;  %v2236_v43 = vld [vmem:[%s3732_s0 + $0x52] sm:$0xff] }
  0x24   :  { %1072 = vmatpush.bf16.msra.mxu1 %v2604_v46  ;;  %1663 = vmatpush.bf16.msra.mxu0 %v2616_v47  ;;  %v2294_v44 = vld [vmem:[%s3732_s0 + $0x4b] sm:$0xff]  ;;  %v2295_v45 = vld [vmem:[%s3732_s0 + $0x53] sm:$0xff]  ;;  %v52_v46 = vpack.c.bf16 %v34_v41, %v33_v40  ;;  %v400_v47 = vpack.c.bf16 %v2177_v42, %v2234_v33  ;;  %v597_v48 = vpack.c.bf16 %v2236_v43, %v2177_v42 }
  0x25   :  { %v794_v49 = vpack.c.bf16 %v2295_v45, %v2294_v44  ;;  %v2601_v44 = vld [vmem:[%s3731_s1 + $0xa0] sm:$0xff] }
  0x26   :  { %1270 = vmatpush.bf16.msra.mxu2 %v2607_v16  ;;  %v2613_v45 = vld [vmem:[%s3731_s1 + $0x100] sm:$0xff] }
  0x27   :  { %1467 = vmatpush.bf16.msra.mxu3 %v2611_v17  ;;  %v599_v17 = vpack.c.bf16 %v2240_v9, %v2181_v8 }
  0x28   :  { %1073 = vmatpush.bf16.msra.mxu1 %v2603_v18  ;;  %1664 = vmatpush.bf16.msra.mxu0 %v2615_v19  ;;  %v796_v18 = vpack.c.bf16 %v2299_v11, %v2298_v10  ;;  %v44_v11 = vld [vmem:[%s3732_s0 + $0x98] sm:$0xff] }
  0x2a   :  { %1271 = vmatpush.bf16.msra.mxu2 %v2606_v50  ;;  %v2302_v50 = vld [vmem:[%s3732_s0 + $0x8b] sm:$0xff] }
  0x2b   :  { %1468 = vmatpush.bf16.msra.mxu3 %v2610_v51  ;;  %v2303_v51 = vld [vmem:[%s3732_s0 + $0x93] sm:$0xff] }
  0x2c   :  { %1074 = vmatpush.bf16.msra.mxu1 %v2602_v52  ;;  %1665 = vmatpush.bf16.msra.mxu0 %v2614_v53 }
  0x30   :  { %1075 = vmatpush.bf16.msra.mxu1 %v2601_v44  ;;  %1666 = vmatpush.bf16.msra.mxu0 %v2613_v45 }
  0x31   :  { %2133 = vmatmul.msk.bf16.gmra.mxu1 %vm138_vm0, %v98_v55  ;;  %2136 = vmatmul.msk.bf16.gmra.mxu2 %vm138_vm0, %v101_v56  ;;  %v36_v55 = vld [vmem:[%s3732_s0 + $0x58] sm:$0xff] }
  0x32   :  { %2139 = vmatmul.msk.bf16.gmra.mxu3 %vm138_vm0, %v104_v57  ;;  %v2179_v56 = vld [vmem:[%s3732_s0 + $0x5a] sm:$0xff]  ;;  %v2238_v57 = vld [vmem:[%s3732_s0 + $0x62] sm:$0xff]  ;;  %v53_v60 = vpack.c.bf16 %v36_v55, %v35_v54 }
  0x33   :  { %2130 = vmatmul.msk.bf16.gmra.mxu0 %vm138_vm0, %v95_v58  ;;  %v2296_v58 = vld [vmem:[%s3732_s0 + $0x5b] sm:$0xff]  ;;  %v401_v61 = vpack.c.bf16 %v2179_v56, %v2236_v43  ;;  %v598_v63 = vpack.c.bf16 %v2238_v57, %v2179_v56 }
  0x34   :  { %v795_v0 = vpack.c.bf16 %v2297_v59, %v2296_v58  ;;  %v798_v58 = vpack.c.bf16 %v2303_v51, %v2302_v50  ;;  %v45_v50 = vld [vmem:[%s3732_s0 + $0xa0] sm:$0xff]  ;;  %v46_v51 = vld [vmem:[%s3732_s0 + $0xa8] sm:$0xff] }
  0x41   :  { %2156 = vmatmul.msk.bf16.vlgmr.msrb.gmra.mxu1 %vm138_vm0, %v48_v2  ;;  %2215 = vmatmul.msk.bf16.vlgmr.msrb.gmra.mxu2 %vm138_vm0, %v396_v3 }
  0x42   :  { %2274 = vmatmul.msk.bf16.vlgmr.msrb.gmra.mxu3 %vm138_vm0, %v593_v4 }
  0x43   :  { %2333 = vmatmul.msk.bf16.vlgmr.msrb.gmra.mxu0 %vm138_vm0, %v790_v5 }
  0x51   :  { %2157 = vmatmul.msk.bf16.gmra.mxu1 %vm138_vm0, %v49_v12  ;;  %2216 = vmatmul.msk.bf16.gmra.mxu2 %vm138_vm0, %v397_v13 }
  0x52   :  { %2275 = vmatmul.msk.bf16.gmra.mxu3 %vm138_vm0, %v594_v14  ;;  %v54_v14 = vpack.c.bf16 %v38_v7, %v37_v6 }
  0x53   :  { %2334 = vmatmul.msk.bf16.gmra.mxu0 %vm138_vm0, %v791_v15  ;;  %v402_v15 = vpack.c.bf16 %v2181_v8, %v2238_v57 }
  0x61   :  { %2158 = vmatmul.msk.bf16.gmra.mxu1 %vm138_vm0, %v50_v26  ;;  %2217 = vmatmul.msk.bf16.gmra.mxu2 %vm138_vm0, %v398_v27  ;;  %v2183_v26 = vld [vmem:[%s3732_s0 + $0x7a] sm:$0xff]  ;;  %v2242_v27 = vld [vmem:[%s3732_s0 + $0x82] sm:$0xff] }
  0x62   :  { %2276 = vmatmul.msk.bf16.gmra.mxu3 %vm138_vm0, %v595_v28  ;;  %v2300_v28 = vld [vmem:[%s3732_s0 + $0x7b] sm:$0xff]  ;;  %v403_v33 = vpack.c.bf16 %v2183_v26, %v2240_v9  ;;  %v600_v35 = vpack.c.bf16 %v2242_v27, %v2183_v26 }
  0x63   :  { %2335 = vmatmul.msk.bf16.gmra.mxu0 %vm138_vm0, %v792_v29  ;;  %v2301_v29 = vld [vmem:[%s3732_s0 + $0x83] sm:$0xff] }
  0x71   :  { %2159 = vmatmul.msk.bf16.gmra.mxu1 %vm138_vm0, %v51_v36  ;;  %2218 = vmatmul.msk.bf16.gmra.mxu2 %vm138_vm0, %v399_v37  ;;  %v797_v36 = vpack.c.bf16 %v2301_v29, %v2300_v28 }
  0x72   :  { %2277 = vmatmul.msk.bf16.gmra.mxu3 %vm138_vm0, %v596_v38  ;;  %v2605_v38 = vld [vmem:[%s3731_s1 + $0xc0] sm:$0xff] }
  0x73   :  { %2336 = vmatmul.msk.bf16.gmra.mxu0 %vm138_vm0, %v793_v39  ;;  %v2609_v39 = vld [vmem:[%s3731_s1 + $0xe0] sm:$0xff]  ;;  %1272 = vmatpush.bf16.msra.mxu2 %v2605_v38 }
  0x74   :  { %1469 = vmatpush.bf16.msra.mxu3 %v2609_v39 }
  0x81   :  { %2160 = vmatmul.msk.bf16.gmra.mxu1 %vm138_vm0, %v52_v46  ;;  %2219 = vmatmul.msk.bf16.gmra.mxu2 %vm138_vm0, %v400_v47  ;;  %v41_v46 = vld [vmem:[%s3732_s0 + $0x80] sm:$0xff]  ;;  %v42_v47 = vld [vmem:[%s3732_s0 + $0x88] sm:$0xff] }
  0x82   :  { %2278 = vmatmul.msk.bf16.gmra.mxu3 %vm138_vm0, %v597_v48  ;;  %v2185_v48 = vld [vmem:[%s3732_s0 + $0x8a] sm:$0xff]  ;;  %v56_v54 = vpack.c.bf16 %v42_v47, %v41_v46 }
  0x83   :  { %2337 = vmatmul.msk.bf16.gmra.mxu0 %vm138_vm0, %v794_v49  ;;  %v2244_v49 = vld [vmem:[%s3732_s0 + $0x92] sm:$0xff]  ;;  %v404_v55 = vpack.c.bf16 %v2185_v48, %v2242_v27 }
  0x84   :  { %v601_v57 = vpack.c.bf16 %v2244_v49, %v2185_v48 }
  0x8e   :  { %v2969_v62 = vpop.f32.mrf.mxu1 }
  0x90   :  { %v2971_v1 = vpop.f32.mrf.mxu0 }
  0x91   :  { %2161 = vmatmul.msk.bf16.gmra.mxu1 %vm138_vm0, %v53_v60  ;;  %2220 = vmatmul.msk.bf16.gmra.mxu2 %vm138_vm0, %v401_v61 }
  0x92   :  { %2279 = vmatmul.msk.bf16.gmra.mxu3 %vm138_vm0, %v598_v63 }
  0x93   :  { %2338 = vmatmul.msk.bf16.gmra.mxu0 %vm138_vm0, %v795_v0 }
  0x94   :  { %v2977_v2 = vpop.f32.mrf.mxu2 }
  0x95   :  { %v2979_v3 = vpop.f32.mrf.mxu3 }
  0x96   :  { %v2981_v4 = vpop.f32.mrf.mxu1 }
  0x98   :  { %v2983_v5 = vpop.f32.mrf.mxu0 }
  0x9c   :  { %v3003_v12 = vpop.f32.mrf.mxu2 }
  0x9d   :  { %v3005_v13 = vpop.f32.mrf.mxu3 }
  0x9e   :  { %v3007_v16 = vpop.f32.mrf.mxu1 }
  0xa0   :  { %v3009_v19 = vpop.f32.mrf.mxu0 }
  0xa1   :  { %2162 = vmatmul.msk.bf16.gmra.mxu1 %vm138_vm0, %v54_v14  ;;  %2221 = vmatmul.msk.bf16.gmra.mxu2 %vm138_vm0, %v402_v15  ;;  %v2187_v14 = vld [vmem:[%s3732_s0 + $0x9a] sm:$0xff]  ;;  %v2246_v15 = vld [vmem:[%s3732_s0 + $0xa2] sm:$0xff] }
  0xa2   :  { %2280 = vmatmul.msk.bf16.gmra.mxu3 %vm138_vm0, %v599_v17  ;;  %v2305_v17 = vld [vmem:[%s3732_s0 + $0xa3] sm:$0xff]  ;;  %v405_v27 = vpack.c.bf16 %v2187_v14, %v2244_v49  ;;  %v602_v29 = vpack.c.bf16 %v2246_v15, %v2187_v14 }
  0xa3   :  { %2339 = vmatmul.msk.bf16.gmra.mxu0 %vm138_vm0, %v796_v18 }
  0xa4   :  { %v3015_v20 = vpop.f32.mrf.mxu2 }
  0xa5   :  { %v3017_v21 = vpop.f32.mrf.mxu3 }
  0xa6   :  { %v3019_v22 = vpop.f32.mrf.mxu1 }
  0xa8   :  { %v3021_v23 = vpop.f32.mrf.mxu0 }
  0xac   :  { %v3041_v30 = vpop.f32.mrf.mxu2 }
  0xad   :  { %v3043_v31 = vpop.f32.mrf.mxu3 }
  0xae   :  { %v3045_v34 = vpop.f32.mrf.mxu1 }
  0xb0   :  { %v3047_v37 = vpop.f32.mrf.mxu0 }
  0xb1   :  { %2163 = vmatmul.msk.bf16.gmra.mxu1 %vm138_vm0, %v55_v32  ;;  %2222 = vmatmul.msk.bf16.gmra.mxu2 %vm138_vm0, %v403_v33 }
  0xb2   :  { %2281 = vmatmul.msk.bf16.gmra.mxu3 %vm138_vm0, %v600_v35 }
  0xb3   :  { %2340 = vmatmul.msk.bf16.gmra.mxu0 %vm138_vm0, %v797_v36 }
  0xb4   :  { %v3059_v40 = vpop.f32.mrf.mxu2 }
  0xb5   :  { %v3061_v41 = vpop.f32.mrf.mxu3 }
  0xb6   :  { %v3063_v42 = vpop.f32.mrf.mxu1 }
  0xb8   :  { %v3065_v43 = vpop.f32.mrf.mxu0 }
  0xbc   :  { %v3091_v52 = vpop.f32.mrf.mxu2 }
  0xbd   :  { %v241_v53 = vpop.f32.mrf.mxu3 }
  0xbe   :  { %v312_v56 = vpop.f32.mrf.mxu1  ;;  %v2189_v53 = vld [vmem:[%s3732_s0 + $0xaa] sm:$0xff] }
  0xbf   :  { %v313_v59 = vadd.f32 %v312_v56, %v2971_v1  ;;  %v43_v1 = vld [vmem:[%s3732_s0 + $0x90] sm:$0xff] }
  0xc0   :  { %v880_v60 = vpop.f32.mrf.mxu0  ;;  %v57_v26 = vpack.c.bf16 %v44_v11, %v43_v1 }
  0xc1   :  { %2164 = vmatmul.msk.bf16.gmra.mxu1 %vm138_vm0, %v56_v54  ;;  %2223 = vmatmul.msk.bf16.gmra.mxu2 %vm138_vm0, %v404_v55  ;;  %v2248_v54 = vld [vmem:[%s3732_s0 + $0xb2] sm:$0xff] }
  0xc2   :  { %2282 = vmatmul.msk.bf16.gmra.mxu3 %vm138_vm0, %v601_v57  ;;  %v2307_v55 = vld [vmem:[%s3732_s0 + $0xb3] sm:$0xff] }
  0xc3   :  { %2341 = vmatmul.msk.bf16.gmra.mxu0 %vm138_vm0, %v798_v58 }
  0xc4   :  { %v486_v61 = vpop.f32.mrf.mxu2 }
  0xc5   :  { %v545_v63 = vadd.f32 %v486_v61, %v313_v59  ;;  %v683_v0 = vpop.f32.mrf.mxu3  ;;  %v58_v59 = vpack.c.bf16 %v46_v51, %v45_v50 }
  0xc6   :  { %v314_v6 = vpop.f32.mrf.mxu1 }
  0xc7   :  { %v742_v7 = vadd.f32 %v683_v0, %v545_v63  ;;  %v315_v8 = vadd.f32 %v314_v6, %v2983_v5  ;;  %v2304_v5 = vld [vmem:[%s3732_s0 + $0x9b] sm:$0xff]  ;;  %v603_v63 = vpack.c.bf16 %v2248_v54, %v2189_v53 }
  0xc8   :  { %v882_v9 = vpop.f32.mrf.mxu0  ;;  %v799_v32 = vpack.c.bf16 %v2305_v17, %v2304_v5 }
  0xc9   :  { %v3099_v10 = vadd.f32 %v880_v60, %v742_v7  ;;  %v406_v60 = vpack.c.bf16 %v2189_v53, %v2246_v15 }
  0xcc   :  { %v488_v18 = vpop.f32.mrf.mxu2 }
  0xcd   :  { %v546_v24 = vadd.f32 %v488_v18, %v315_v8  ;;  %v685_v25 = vpop.f32.mrf.mxu3 }
  0xce   :  { %v317_v28 = vpop.f32.mrf.mxu1 }
  0xcf   :  { %v743_v33 = vadd.f32 %v685_v25, %v546_v24  ;;  %v318_v35 = vadd.f32 %v317_v28, %v3009_v19  ;;  %v47_v24 = vld [vmem:[%s3732_s0 + $0xb0] sm:$0xff]  ;;  %v2249_v25 = vld [vmem:[%s3732_s0 + $0xba] sm:$0xff] }
  0xd0   :  { %v885_v36 = vpop.f32.mrf.mxu0 }
  0xd1   :  { %2165 = vmatmul.msk.bf16.gmra.mxu1 %vm138_vm0, %v57_v26  ;;  %2224 = vmatmul.msk.bf16.gmra.mxu2 %vm138_vm0, %v405_v27  ;;  %v3122_v38 = vadd.f32 %v882_v9, %v743_v33  ;;  %v2308_v26 = vld [vmem:[%s3732_s0 + $0xbb] sm:$0xff] }
  0xd2   :  { %2283 = vmatmul.msk.bf16.gmra.mxu3 %vm138_vm0, %v602_v29 }
  0xd3   :  { %2342 = vmatmul.msk.bf16.gmra.mxu0 %vm138_vm0, %v799_v32  ;;  %v59_v32 = vpack.c.bf16 %v47_v24, %v47_v24 }
  0xd4   :  { %v491_v39 = vpop.f32.mrf.mxu2 }
  0xd5   :  { %v547_v44 = vadd.f32 %v491_v39, %v318_v35  ;;  %v688_v45 = vpop.f32.mrf.mxu3  ;;  %v604_v35 = vpack.c.bf16 %v2249_v25, %v2249_v25 }
  0xd6   :  { %v319_v46 = vpop.f32.mrf.mxu1 }
  0xd7   :  { %v744_v47 = vadd.f32 %v688_v45, %v547_v44  ;;  %v320_v48 = vadd.f32 %v319_v46, %v3021_v23  ;;  %v2306_v23 = vld [vmem:[%s3732_s0 + $0xab] sm:$0xff] }
  0xd8   :  { %v887_v49 = vpop.f32.mrf.mxu0  ;;  %v800_v0 = vpack.c.bf16 %v2307_v55, %v2306_v23  ;;  %v2634_v23 = vmov 0   ;;  %v2345_v55 = vld [vmem:[%s3732_s0 + $0xc] sm:$0xff] }
  0xd9   :  { %v3127_v19 = vadd.f32 %v885_v36, %v744_v47  ;;  %v801_v36 = vpack.c.bf16 %v2308_v26, %v2308_v26  ;;  %2631 = vset.pattern.permute.xlu0 %v2634_v23  ;;  %2632 = vset.pattern.permute.xlu1 %v2634_v23 }
  0xda   :  { %2633 = vset.pattern.permute.xlu2 %v2634_v23 }
  0xdc   :  { %v493_v56 = vpop.f32.mrf.mxu2 }
  0xdd   :  { %v548_v57 = vadd.f32 %v493_v56, %v320_v48  ;;  %v690_v58 = vpop.f32.mrf.mxu3  ;;  %v2346_v56 = vld [vmem:[%s3732_s0 + $0x14] sm:$0xff] }
  0xde   :  { %v322_v61 = vpop.f32.mrf.mxu1 }
  0xdf   :  { %v745_v6 = vadd.f32 %v690_v58, %v548_v57  ;;  %v323_v7 = vadd.f32 %v322_v61, %v3047_v37  ;;  %v2405_v57 = vld [vmem:[%s3732_s0 + $0x1c] sm:$0xff] }
  0xe0   :  { %v890_v8 = vpop.f32.mrf.mxu0  ;;  %v2463_v58 = vld [vmem:[%s3732_s0 + $0x15] sm:$0xff] }
  0xe1   :  { %2166 = vmatmul.msk.bf16.gmra.mxu1 %vm138_vm0, %v58_v59  ;;  %2225 = vmatmul.msk.bf16.gmra.mxu2 %vm138_vm0, %v406_v60  ;;  %v3150_v9 = vadd.f32 %v887_v49, %v745_v6  ;;  %v2464_v60 = vld [vmem:[%s3732_s0 + $0x1d] sm:$0xff] }
  0xe2   :  { %2284 = vmatmul.msk.bf16.gmra.mxu3 %vm138_vm0, %v603_v63  ;;  %v2522_v61 = vld [vmem:[%s3732_s0 + $0x16] sm:$0xff]  ;;  %v2523_v63 = vld [vmem:[%s3732_s0 + $0x1e] sm:$0xff] }
  0xe3   :  { %2343 = vmatmul.msk.bf16.gmra.mxu0 %vm138_vm0, %v800_v0 }
  0xe4   :  { %v496_v1 = vpop.f32.mrf.mxu2 }
  0xe5   :  { %v549_v11 = vadd.f32 %v496_v1, %v323_v7  ;;  %v693_v14 = vpop.f32.mrf.mxu3  ;;  %v1184_v1 = vpack.c.bf16 %v2405_v57, %v2346_v56 }
  0xe6   :  { %v324_v15 = vpop.f32.mrf.mxu1 }
  0xe7   :  { %v746_v5 = vadd.f32 %v693_v14, %v549_v11  ;;  %v325_v17 = vadd.f32 %v324_v15, %v3065_v43  ;;  %v407_v43 = vpack.c.bf16 %v2248_v54, %v2248_v54  ;;  %v1773_v54 = vld [vmem:[%s3733_s2] sm:$0xff]  ;;  %v1381_v14 = vpack.c.bf16 %v2464_v60, %v2463_v58  ;;  %v1776_v58 = vld [vmem:[%s3733_s2 + $0x18] sm:$0xff] }
  0xe8   :  { %v892_v18 = vpop.f32.mrf.mxu0  ;;  %1798 = vperm.xlu0 %2631, %v1773_v54  }
  0xe9   :  { %v3155_v37 = vadd.f32 %v890_v8, %v746_v5  ;;  %v987_v8 = vpack.c.bf16 %v2346_v56, %v2345_v55 }
  0xec   :  { %v498_v27 = vpop.f32.mrf.mxu2 }
  0xed   :  { %v550_v28 = vadd.f32 %v498_v27, %v325_v17  ;;  %v695_v29 = vpop.f32.mrf.mxu3  ;;  %v1774_v17 = vld [vmem:[%s3733_s2 + $0x8] sm:$0xff] }
  0xee   :  { %v327_v33 = vpop.f32.mrf.mxu1 }
  0xef   :  { %v747_v39 = vadd.f32 %v695_v29, %v550_v28  ;;  %v328_v46 = vadd.f32 %v327_v33, %v2969_v62 }
  0xf0   :  { %v895_v44 = vpop.f32.mrf.mxu0  ;;  %1803 = vperm.xlu0 %2631, %v1774_v17  }
  0xf1   :  { %2167 = vmatmul.msk.bf16.gmra.mxu1 %vm138_vm0, %v59_v32  ;;  %2226 = vmatmul.msk.bf16.gmra.mxu2 %vm138_vm0, %v407_v43  ;;  %v3168_v45 = vadd.f32 %v892_v18, %v747_v39  ;;  %v1775_v43 = vld [vmem:[%s3733_s2 + $0x10] sm:$0xff] }
  0xf2   :  { %2285 = vmatmul.msk.bf16.gmra.mxu3 %vm138_vm0, %v604_v35  ;;  %1808 = vperm.xlu1 %2632, %v1775_v43   ;;  %v2348_v35 = vld [vmem:[%s3732_s0 + $0x24] sm:$0xff] }
  0xf3   :  { %2344 = vmatmul.msk.bf16.gmra.mxu0 %vm138_vm0, %v801_v36  ;;  %v2465_v36 = vld [vmem:[%s3732_s0 + $0x25] sm:$0xff] }
  0xf4   :  { %v501_v47 = vpop.f32.mrf.mxu2 }
  0xf5   :  { %v551_v48 = vadd.f32 %v501_v47, %v328_v46  ;;  %v698_v49 = vpop.f32.mrf.mxu3  ;;  %v2524_v46 = vld [vmem:[%s3732_s0 + $0x26] sm:$0xff]  ;;  %v2525_v47 = vld [vmem:[%s3732_s0 + $0x2e] sm:$0xff] }
  0xf6   :  { %v329_v50 = vpop.f32.mrf.mxu1 }
  0xf7   :  { %v748_v51 = vadd.f32 %v698_v49, %v551_v48  ;;  %v330_v59 = vadd.f32 %v329_v50, %v2981_v4  ;;  %v1578_v4 = vpack.c.bf16 %v2523_v63, %v2522_v61 }
  0xf8   :  { %v897_v53 = vpop.f32.mrf.mxu0 }
  0xf9   :  { %v3179_v62 = vadd.f32 %v895_v44, %v748_v51  ;;  %v2466_v44 = vld [vmem:[%s3732_s0 + $0x2d] sm:$0xff]  ;;  %v988_v51 = vpack.c.bf16 %v2348_v35, %v2405_v57 }
  0xfa   :  { %v1382_v23 = vpack.c.bf16 %v2466_v44, %v2465_v36  ;;  %1813 = vperm.xlu1 %2632, %v1776_v58  }
  0xfc   :  { %v503_v0 = vpop.f32.mrf.mxu2 }
  0xfd   :  { %v552_v6 = vadd.f32 %v503_v0, %v330_v59  ;;  %v700_v7 = vpop.f32.mrf.mxu3 }
  0xfe   :  { %v332_v11 = vpop.f32.mrf.mxu1 }
  0xff   :  { %v749_v15 = vadd.f32 %v700_v7, %v552_v6  ;;  %v333_v24 = vadd.f32 %v332_v11, %v3007_v16  ;;  %v2407_v16 = vld [vmem:[%s3732_s0 + $0x2c] sm:$0xff]  ;;  %v2409_v11 = vld [vmem:[%s3732_s0 + $0x3c] sm:$0xff] }
 0x100   :  { %v900_v5 = vpop.f32.mrf.mxu0 }
 0x101   :  { %2392 = vmatmul.msk.bf16.vlgmr.msra.gmra.mxu1 %vm138_vm0, %v987_v8  ;;  %2451 = vmatmul.msk.bf16.vlgmr.msra.gmra.mxu2 %vm138_vm0, %v1184_v1  ;;  %v3205_v18 = vadd.f32 %v897_v53, %v749_v15  ;;  %v1185_v53 = vpack.c.bf16 %v2407_v16, %v2348_v35  ;;  %v2350_v1 = vld [vmem:[%s3732_s0 + $0x34] sm:$0xff] }
 0x102   :  { %2510 = vmatmul.msk.bf16.vlgmr.msra.gmra.mxu3 %vm138_vm0, %v1381_v14  ;;  %v2526_v15 = vld [vmem:[%s3732_s0 + $0x36] sm:$0xff] }
 0x103   :  { %2569 = vmatmul.msk.bf16.vlgmr.msra.gmra.mxu0 %vm138_vm0, %v1578_v4  ;;  %v2468_v4 = vld [vmem:[%s3732_s0 + $0x3d] sm:$0xff] }
 0x104   :  { %v506_v25 = vpop.f32.mrf.mxu2 }
 0x105   :  { %v553_v26 = vadd.f32 %v506_v25, %v333_v24  ;;  %v703_v27 = vpop.f32.mrf.mxu3 }
 0x106   :  { %v334_v28 = vpop.f32.mrf.mxu1 }
 0x107   :  { %v750_v29 = vadd.f32 %v703_v27, %v553_v26  ;;  %v335_v39 = vadd.f32 %v334_v28, %v3019_v22  ;;  %v1579_v22 = vpack.c.bf16 %v2525_v47, %v2524_v46  ;;  %v989_v26 = vpack.c.bf16 %v2350_v1, %v2407_v16 }
 0x108   :  { %v902_v32 = vpop.f32.mrf.mxu0  ;;  %v1186_v27 = vpack.c.bf16 %v2409_v11, %v2350_v1  ;;  %v1777_v1 = vld [vmem:[%s3733_s2 + $0x20] sm:$0xff] }
 0x109   :  { %v3213_v33 = vadd.f32 %v900_v5, %v750_v29  ;;  %v2527_v5 = vld [vmem:[%s3732_s0 + $0x3e] sm:$0xff]  ;;  %1818 = vperm.xlu2 %2633, %v1777_v1   ;;  %v2532_v1 = vld [vmem:[%s3732_s0 + $0x66] sm:$0xff] }
 0x10c   :  { %v508_v48 = vpop.f32.mrf.mxu2 }
 0x10d   :  { %v554_v49 = vadd.f32 %v508_v48, %v335_v39  ;;  %v705_v50 = vpop.f32.mrf.mxu3 }
 0x10e   :  { %v337_v54 = vpop.f32.mrf.mxu1 }
 0x10f   :  { %v751_v55 = vadd.f32 %v705_v50, %v554_v49  ;;  %v338_v57 = vadd.f32 %v337_v54, %v3045_v34  ;;  %v2467_v34 = vld [vmem:[%s3732_s0 + $0x35] sm:$0xff] }
 0x110   :  { %v905_v56 = vpop.f32.mrf.mxu0  ;;  %v1383_v29 = vpack.c.bf16 %v2468_v4, %v2467_v34  ;;  %v1779_v49 = vld [vmem:[%s3733_s2 + $0x30] sm:$0xff]  ;;  %v1780_v34 = vld [vmem:[%s3733_s2 + $0x38] sm:$0xff] }
 0x111   :  { %2393 = vmatmul.msk.bf16.gmra.mxu1 %vm138_vm0, %v988_v51  ;;  %2452 = vmatmul.msk.bf16.gmra.mxu2 %vm138_vm0, %v1185_v53  ;;  %v3239_v59 = vadd.f32 %v902_v32, %v751_v55  ;;  %v2352_v51 = vld [vmem:[%s3732_s0 + $0x44] sm:$0xff]  ;;  %v2529_v55 = vld [vmem:[%s3732_s0 + $0x4e] sm:$0xff] }
 0x112   :  { %2511 = vmatmul.msk.bf16.gmra.mxu3 %vm138_vm0, %v1382_v23  ;;  %1828 = vperm.xlu0 %2631, %v1779_v49   ;;  %v2469_v53 = vld [vmem:[%s3732_s0 + $0x45] sm:$0xff]  ;;  %v2470_v23 = vld [vmem:[%s3732_s0 + $0x4d] sm:$0xff] }
 0x113   :  { %2570 = vmatmul.msk.bf16.gmra.mxu0 %vm138_vm0, %v1579_v22  ;;  %v2528_v22 = vld [vmem:[%s3732_s0 + $0x46] sm:$0xff]  ;;  %1833 = vperm.xlu1 %2632, %v1780_v34   ;;  %v2533_v34 = vld [vmem:[%s3732_s0 + $0x6e] sm:$0xff] }
 0x114   :  { %v511_v60 = vpop.f32.mrf.mxu2 }
 0x115   :  { %v555_v61 = vadd.f32 %v511_v60, %v338_v57  ;;  %v708_v63 = vpop.f32.mrf.mxu3  ;;  %v990_v60 = vpack.c.bf16 %v2352_v51, %v2409_v11 }
 0x116   :  { %v339_v0 = vpop.f32.mrf.mxu1 }
 0x117   :  { %v752_v6 = vadd.f32 %v708_v63, %v555_v61  ;;  %v340_v14 = vadd.f32 %v339_v0, %v3063_v42  ;;  %v1580_v42 = vpack.c.bf16 %v2527_v5, %v2526_v15  ;;  %v1384_v0 = vpack.c.bf16 %v2470_v23, %v2469_v53 }
 0x118   :  { %v907_v7 = vpop.f32.mrf.mxu0 }
 0x119   :  { %v3244_v8 = vadd.f32 %v905_v56, %v752_v6 }
 0x11c   :  { %v513_v17 = vpop.f32.mrf.mxu2 }
 0x11d   :  { %v556_v24 = vadd.f32 %v513_v17, %v340_v14  ;;  %v710_v25 = vpop.f32.mrf.mxu3 }
 0x11e   :  { %v342_v28 = vpop.f32.mrf.mxu1 }
 0x11f   :  { %v753_v32 = vadd.f32 %v710_v25, %v556_v24  ;;  %v343_v36 = vadd.f32 %v342_v28, %v2977_v2  ;;  %v2411_v2 = vld [vmem:[%s3732_s0 + $0x4c] sm:$0xff]  ;;  %v2354_v28 = vld [vmem:[%s3732_s0 + $0x54] sm:$0xff] }
 0x120   :  { %v910_v43 = vpop.f32.mrf.mxu0  ;;  %v1187_v61 = vpack.c.bf16 %v2411_v2, %v2352_v51 }
 0x121   :  { %2394 = vmatmul.msk.bf16.gmra.mxu1 %vm138_vm0, %v989_v26  ;;  %2453 = vmatmul.msk.bf16.gmra.mxu2 %vm138_vm0, %v1186_v27  ;;  %v3267_v35 = vadd.f32 %v907_v7, %v753_v32  ;;  %v1778_v26 = vld [vmem:[%s3733_s2 + $0x28] sm:$0xff]  ;;  %v2472_v32 = vld [vmem:[%s3732_s0 + $0x5d] sm:$0xff] }
 0x122   :  { %2512 = vmatmul.msk.bf16.gmra.mxu3 %vm138_vm0, %v1383_v29  ;;  %1823 = vperm.xlu2 %2633, %v1778_v26   ;;  %v2471_v29 = vld [vmem:[%s3732_s0 + $0x55] sm:$0xff] }
 0x123   :  { %2571 = vmatmul.msk.bf16.gmra.mxu0 %vm138_vm0, %v1580_v42  ;;  %v1385_v49 = vpack.c.bf16 %v2472_v32, %v2471_v29  ;;  %v1781_v29 = vld [vmem:[%s3733_s2 + $0x40] sm:$0xff] }
 0x124   :  { %v516_v39 = vpop.f32.mrf.mxu2 }
 0x125   :  { %v557_v16 = vadd.f32 %v516_v39, %v343_v36  ;;  %v713_v44 = vpop.f32.mrf.mxu3  ;;  %v2531_v36 = vld [vmem:[%s3732_s0 + $0x5e] sm:$0xff] }
 0x126   :  { %v344_v46 = vpop.f32.mrf.mxu1 }
 0x127   :  { %v754_v47 = vadd.f32 %v713_v44, %v557_v16  ;;  %v345_v54 = vadd.f32 %v344_v46, %v3003_v12  ;;  %v1581_v12 = vpack.c.bf16 %v2529_v55, %v2528_v22  ;;  %v991_v46 = vpack.c.bf16 %v2354_v28, %v2411_v2 }
 0x128   :  { %v912_v48 = vpop.f32.mrf.mxu0 }
 0x129   :  { %v3275_v50 = vadd.f32 %v910_v43, %v754_v47  ;;  %v2530_v43 = vld [vmem:[%s3732_s0 + $0x56] sm:$0xff] }
 0x12a   :  { %1838 = vperm.xlu2 %2633, %v1781_v29   ;;  %v2477_v29 = vld [vmem:[%s3732_s0 + $0x85] sm:$0xff] }
 0x12c   :  { %v518_v56 = vpop.f32.mrf.mxu2 }
 0x12d   :  { %v558_v58 = vadd.f32 %v518_v56, %v345_v54  ;;  %v715_v57 = vpop.f32.mrf.mxu3  ;;  %v1782_v54 = vld [vmem:[%s3733_s2 + $0x48] sm:$0xff] }
 0x12e   :  { %v347_v63 = vpop.f32.mrf.mxu1  ;;  %1843 = vperm.xlu0 %2631, %v1782_v54   ;;  %v2534_v54 = vld [vmem:[%s3732_s0 + $0x76] sm:$0xff] }
 0x12f   :  { %v755_v6 = vadd.f32 %v715_v57, %v558_v58  ;;  %v348_v14 = vadd.f32 %v347_v63, %v3015_v20  ;;  %v2413_v20 = vld [vmem:[%s3732_s0 + $0x5c] sm:$0xff] }
 0x130   :  { %v915_v7 = vpop.f32.mrf.mxu0  ;;  %v1188_v47 = vpack.c.bf16 %v2413_v20, %v2354_v28 }
 0x131   :  { %2395 = vmatmul.msk.bf16.gmra.mxu1 %vm138_vm0, %v990_v60  ;;  %2454 = vmatmul.msk.bf16.gmra.mxu2 %vm138_vm0, %v1187_v61  ;;  %v3304_v11 = vadd.f32 %v912_v48, %v755_v6  ;;  %v1783_v61 = vld [vmem:[%s3733_s2 + $0x50] sm:$0xff] }
 0x132   :  { %2513 = vmatmul.msk.bf16.gmra.mxu3 %vm138_vm0, %v1384_v0  ;;  %1848 = vperm.xlu1 %2632, %v1783_v61   ;;  %v2356_v0 = vld [vmem:[%s3732_s0 + $0x64] sm:$0xff] }
 0x133   :  { %2572 = vmatmul.msk.bf16.gmra.mxu0 %vm138_vm0, %v1581_v12  ;;  %v2473_v12 = vld [vmem:[%s3732_s0 + $0x65] sm:$0xff] }
 0x134   :  { %v521_v4 = vpop.f32.mrf.mxu2 }
 0x135   :  { %v559_v15 = vadd.f32 %v521_v4, %v348_v14  ;;  %v718_v5 = vpop.f32.mrf.mxu3 }
 0x136   :  { %v349_v17 = vpop.f32.mrf.mxu1 }
 0x137   :  { %v756_v24 = vadd.f32 %v718_v5, %v559_v15  ;;  %v350_v42 = vadd.f32 %v349_v17, %v3041_v30  ;;  %v1582_v30 = vpack.c.bf16 %v2531_v36, %v2530_v43  ;;  %v992_v5 = vpack.c.bf16 %v2356_v0, %v2413_v20 }
 0x138   :  { %v917_v25 = vpop.f32.mrf.mxu0 }
 0x139   :  { %v3312_v27 = vadd.f32 %v915_v7, %v756_v24  ;;  %v2474_v7 = vld [vmem:[%s3732_s0 + $0x6d] sm:$0xff] }
 0x13c   :  { %v523_v39 = vpop.f32.mrf.mxu2 }
 0x13d   :  { %v560_v16 = vadd.f32 %v523_v39, %v350_v42  ;;  %v720_v44 = vpop.f32.mrf.mxu3 }
 0x13e   :  { %v352_v48 = vpop.f32.mrf.mxu1 }
 0x13f   :  { %v757_v51 = vadd.f32 %v720_v44, %v560_v16  ;;  %v353_v2 = vadd.f32 %v352_v48, %v3059_v40  ;;  %v2415_v40 = vld [vmem:[%s3732_s0 + $0x6c] sm:$0xff]  ;;  %v1785_v16 = vld [vmem:[%s3733_s2 + $0x60] sm:$0xff] }
 0x140   :  { %v920_v53 = vpop.f32.mrf.mxu0  ;;  %v1189_v17 = vpack.c.bf16 %v2415_v40, %v2356_v0  ;;  %1858 = vperm.xlu0 %2631, %v1785_v16  }
 0x141   :  { %2396 = vmatmul.msk.bf16.gmra.mxu1 %vm138_vm0, %v991_v46  ;;  %2455 = vmatmul.msk.bf16.gmra.mxu2 %vm138_vm0, %v1188_v47  ;;  %v3338_v23 = vadd.f32 %v917_v25, %v757_v51  ;;  %v1386_v25 = vpack.c.bf16 %v2474_v7, %v2473_v12  ;;  %v1786_v47 = vld [vmem:[%s3733_s2 + $0x68] sm:$0xff]  ;;  %v1789_v7 = vld [vmem:[%s3733_s2 + $0x80] sm:$0xff] }
 0x142   :  { %2514 = vmatmul.msk.bf16.gmra.mxu3 %vm138_vm0, %v1385_v49  ;;  %1863 = vperm.xlu1 %2632, %v1786_v47   ;;  %v2417_v49 = vld [vmem:[%s3732_s0 + $0x7c] sm:$0xff] }
 0x143   :  { %2573 = vmatmul.msk.bf16.gmra.mxu0 %vm138_vm0, %v1582_v30  ;;  %v2475_v30 = vld [vmem:[%s3732_s0 + $0x75] sm:$0xff] }
 0x144   :  { %v526_v22 = vpop.f32.mrf.mxu2 }
 0x145   :  { %v561_v55 = vadd.f32 %v526_v22, %v353_v2  ;;  %v723_v56 = vpop.f32.mrf.mxu3  ;;  %v2535_v2 = vld [vmem:[%s3732_s0 + $0x7e] sm:$0xff] }
 0x146   :  { %v354_v58 = vpop.f32.mrf.mxu1  ;;  %v1584_v0 = vpack.c.bf16 %v2535_v2, %v2534_v54  ;;  %v1795_v2 = vld [vmem:[%s3733_s2 + $0xb0] sm:$0xff] }
 0x147   :  { %v758_v57 = vadd.f32 %v723_v56, %v561_v55  ;;  %v355_v6 = vadd.f32 %v354_v58, %v3091_v52  ;;  %v1583_v52 = vpack.c.bf16 %v2533_v34, %v2532_v1 }
 0x148   :  { %v922_v60 = vpop.f32.mrf.mxu0 }
 0x149   :  { %v3346_v63 = vadd.f32 %v920_v53, %v758_v57  ;;  %v2476_v53 = vld [vmem:[%s3732_s0 + $0x7d] sm:$0xff] }
 0x14a   :  { %v1387_v61 = vpack.c.bf16 %v2476_v53, %v2475_v30  ;;  %1878 = vperm.xlu1 %2632, %v1789_v7   ;;  %v2538_v7 = vld [vmem:[%s3732_s0 + $0x96] sm:$0xff] }
 0x14c   :  { %v528_v14 = vpop.f32.mrf.mxu2 }
 0x14d   :  { %v562_v4 = vadd.f32 %v528_v14, %v355_v6  ;;  %v725_v15 = vpop.f32.mrf.mxu3 }
 0x14e   :  { %v357_v24 = vpop.f32.mrf.mxu1 }
 0x14f   :  { %v759_v26 = vadd.f32 %v725_v15, %v562_v4  ;;  %v358_v20 = vadd.f32 %v357_v24, %v2979_v3  ;;  %v2358_v3 = vld [vmem:[%s3732_s0 + $0x74] sm:$0xff] }
 0x150   :  { %v925_v28 = vpop.f32.mrf.mxu0  ;;  %v993_v58 = vpack.c.bf16 %v2358_v3, %v2415_v40  ;;  %v1190_v57 = vpack.c.bf16 %v2417_v49, %v2358_v3 }
 0x151   :  { %2397 = vmatmul.msk.bf16.gmra.mxu1 %vm138_vm0, %v992_v5  ;;  %2456 = vmatmul.msk.bf16.gmra.mxu2 %vm138_vm0, %v1189_v17  ;;  %v3372_v42 = vadd.f32 %v922_v60, %v759_v26  ;;  %v1791_v5 = vld [vmem:[%s3733_s2 + $0x90] sm:$0xff]  ;;  %v2360_v26 = vld [vmem:[%s3732_s0 + $0x84] sm:$0xff] }
 0x152   :  { %2515 = vmatmul.msk.bf16.gmra.mxu3 %vm138_vm0, %v1386_v25  ;;  %v1784_v25 = vld [vmem:[%s3733_s2 + $0x58] sm:$0xff] }
 0x153   :  { %2574 = vmatmul.msk.bf16.gmra.mxu0 %vm138_vm0, %v1583_v52  ;;  %v1792_v52 = vld [vmem:[%s3733_s2 + $0x98] sm:$0xff]  ;;  %1853 = vperm.xlu2 %2633, %v1784_v25  }
 0x154   :  { %v531_v32 = vpop.f32.mrf.mxu2  ;;  %1893 = vperm.xlu1 %2632, %v1792_v52  }
 0x155   :  { %v563_v43 = vadd.f32 %v531_v32, %v358_v20  ;;  %v728_v36 = vpop.f32.mrf.mxu3  ;;  %v2478_v32 = vld [vmem:[%s3732_s0 + $0x8d] sm:$0xff] }
 0x156   :  { %v359_v39 = vpop.f32.mrf.mxu1  ;;  %v1388_v30 = vpack.c.bf16 %v2478_v32, %v2477_v29 }
 0x157   :  { %v760_v44 = vadd.f32 %v728_v36, %v563_v43  ;;  %v360_v51 = vadd.f32 %v359_v39, %v3005_v13  ;;  %v1788_v13 = vld [vmem:[%s3733_s2 + $0x78] sm:$0xff]  ;;  %v2536_v43 = vld [vmem:[%s3732_s0 + $0x86] sm:$0xff]  ;;  %v2537_v36 = vld [vmem:[%s3732_s0 + $0x8e] sm:$0xff] }
 0x158   :  { %v927_v46 = vpop.f32.mrf.mxu0  ;;  %1873 = vperm.xlu0 %2631, %v1788_v13  }
 0x159   :  { %v3383_v48 = vadd.f32 %v925_v28, %v760_v44  ;;  %v2419_v28 = vld [vmem:[%s3732_s0 + $0x8c] sm:$0xff] }
 0x15a   :  { %v1191_v47 = vpack.c.bf16 %v2419_v28, %v2360_v26 }
 0x15c   :  { %v533_v22 = vpop.f32.mrf.mxu2  ;;  %1908 = vperm.xlu1 %2632, %v1795_v2  }
 0x15d   :  { %v564_v55 = vadd.f32 %v533_v22, %v360_v51  ;;  %v730_v56 = vpop.f32.mrf.mxu3  ;;  %v1794_v51 = vld [vmem:[%s3733_s2 + $0xa8] sm:$0xff] }
 0x15e   :  { %v362_v60 = vpop.f32.mrf.mxu1 }
 0x15f   :  { %v761_v12 = vadd.f32 %v730_v56, %v564_v55  ;;  %v363_v1 = vadd.f32 %v362_v60, %v3017_v21 }
 0x160   :  { %v930_v6 = vpop.f32.mrf.mxu0  ;;  %1888 = vperm.xlu0 %2631, %v1791_v5  }
 0x161   :  { %2398 = vmatmul.msk.bf16.gmra.mxu1 %vm138_vm0, %v993_v58  ;;  %2457 = vmatmul.msk.bf16.gmra.mxu2 %vm138_vm0, %v1190_v57  ;;  %v3412_v40 = vadd.f32 %v927_v46, %v761_v12  ;;  %v994_v46 = vpack.c.bf16 %v2360_v26, %v2417_v49  ;;  %v2421_v12 = vld [vmem:[%s3732_s0 + $0x9c] sm:$0xff] }
 0x162   :  { %2516 = vmatmul.msk.bf16.gmra.mxu3 %vm138_vm0, %v1387_v61 }
 0x163   :  { %2575 = vmatmul.msk.bf16.gmra.mxu0 %vm138_vm0, %v1584_v0  ;;  %v2362_v0 = vld [vmem:[%s3732_s0 + $0x94] sm:$0xff] }
 0x164   :  { %v536_v34 = vpop.f32.mrf.mxu2  ;;  %v1192_v5 = vpack.c.bf16 %v2421_v12, %v2362_v0 }
 0x165   :  { %v565_v14 = vadd.f32 %v536_v34, %v363_v1  ;;  %v733_v4 = vpop.f32.mrf.mxu3  ;;  %v2539_v1 = vld [vmem:[%s3732_s0 + $0x9e] sm:$0xff] }
 0x166   :  { %v364_v15 = vpop.f32.mrf.mxu1  ;;  %v1586_v25 = vpack.c.bf16 %v2539_v1, %v2538_v7 }
 0x167   :  { %v762_v17 = vadd.f32 %v733_v4, %v565_v14  ;;  %v365_v20 = vadd.f32 %v364_v15, %v3043_v31  ;;  %v1585_v31 = vpack.c.bf16 %v2537_v36, %v2536_v43  ;;  %v1787_v14 = vld [vmem:[%s3733_s2 + $0x70] sm:$0xff]  ;;  %v995_v15 = vpack.c.bf16 %v2362_v0, %v2419_v28  ;;  %v1790_v28 = vld [vmem:[%s3733_s2 + $0x88] sm:$0xff]  ;;  %v1799_v36 = vpop.permute.xlu0 %1798 }
 0x168   :  { %v932_v24 = vpop.f32.mrf.mxu0  ;;  %1903 = vperm.xlu0 %2631, %v1794_v51   ;;  %1868 = vperm.xlu2 %2633, %v1787_v14   ;;  %v2541_v51 = vld [vmem:[%s3732_s0 + $0xae] sm:$0xff] }
 0x169   :  { %v3426_v21 = vadd.f32 %v930_v6, %v762_v17  ;;  %v2480_v6 = vld [vmem:[%s3732_s0 + $0x9d] sm:$0xff] }
 0x16c   :  { %v538_v39 = vpop.f32.mrf.mxu2 }
 0x16d   :  { %v566_v16 = vadd.f32 %v538_v39, %v365_v20  ;;  %v735_v44 = vpop.f32.mrf.mxu3 }
 0x16e   :  { %v367_v3 = vpop.f32.mrf.mxu1 }
 0x16f   :  { %v763_v53 = vadd.f32 %v735_v44, %v566_v16  ;;  %v368_v22 = vadd.f32 %v367_v3, %v3061_v41  ;;  %v2479_v41 = vld [vmem:[%s3732_s0 + $0x95] sm:$0xff] }
 0x170   :  { %v935_v54 = vpop.f32.mrf.mxu0  ;;  %1883 = vperm.xlu2 %2633, %v1790_v28  }
 0x171   :  { %2399 = vmatmul.msk.bf16.gmra.mxu1 %vm138_vm0, %v994_v46  ;;  %2458 = vmatmul.msk.bf16.gmra.mxu2 %vm138_vm0, %v1191_v47  ;;  %v3455_v49 = vadd.f32 %v932_v24, %v763_v53  ;;  %v1389_v24 = vpack.c.bf16 %v2480_v6, %v2479_v41  ;;  %v2364_v46 = vld [vmem:[%s3732_s0 + $0xa4] sm:$0xff]  ;;  %v1804_v41 = vpop.permute.xlu0 %1803 }
 0x172   :  { %2517 = vmatmul.msk.bf16.gmra.mxu3 %vm138_vm0, %v1388_v30  ;;  %v2481_v47 = vld [vmem:[%s3732_s0 + $0xa5] sm:$0xff]  ;;  %v2482_v30 = vld [vmem:[%s3732_s0 + $0xad] sm:$0xff] }
 0x173   :  { %2576 = vmatmul.msk.bf16.gmra.mxu0 %vm138_vm0, %v1585_v31  ;;  %v2540_v31 = vld [vmem:[%s3732_s0 + $0xa6] sm:$0xff] }
 0x174   :  { %v541_v55 = vpop.f32.mrf.mxu2 }
 0x175   :  { %v567_v56 = vadd.f32 %v541_v55, %v368_v22  ;;  %v738_v58 = vpop.f32.mrf.mxu3 }
 0x176   :  { %v369_v57 = vpop.f32.mrf.mxu1 }
 0x177   :  { %v764_v13 = vadd.f32 %v738_v58, %v567_v56  ;;  %v1390_v58 = vpack.c.bf16 %v2482_v30, %v2481_v47  ;;  %v1587_v57 = vpack.c.bf16 %v2541_v51, %v2540_v31  ;;  %v2542_v47 = vld [vmem:[%s3732_s0 + $0xb6] sm:$0xff] }
 0x178   :  { %v937_v60 = vpop.f32.mrf.mxu0 }
 0x179   :  { %v3460_v61 = vadd.f32 %v935_v54, %v764_v13  ;;  %v1793_v54 = vld [vmem:[%s3733_s2 + $0xa0] sm:$0xff] }
 0x17a   :  { %1898 = vperm.xlu2 %2633, %v1793_v54  }
 0x17c   :  { %v543_v34 = vpop.f32.mrf.mxu2 }
 0x17d   :  { %v740_v4 = vpop.f32.mrf.mxu3 }
 0x17e   :  { %v1077_v17 = vpop.f32.mrf.mxu1 }
 0x17f   :  { %v1136_v26 = vadd.f32 %v1077_v17, %v3099_v10  ;;  %v3497_v10 = vld [vmem:[%s3732_s0 + $0xac] sm:$0xff] }
 0x180   :  { %v1668_v52 = vpop.f32.mrf.mxu0  ;;  %v1193_v55 = vpack.c.bf16 %v3497_v10, %v2364_v46 }
 0x181   :  { %2400 = vmatmul.msk.bf16.gmra.mxu1 %vm138_vm0, %v995_v15  ;;  %2459 = vmatmul.msk.bf16.gmra.mxu2 %vm138_vm0, %v1192_v5 }
 0x182   :  { %2518 = vmatmul.msk.bf16.gmra.mxu3 %vm138_vm0, %v1389_v24 }
 0x183   :  { %2577 = vmatmul.msk.bf16.gmra.mxu0 %vm138_vm0, %v1586_v25 }
 0x184   :  { %v1274_v29 = vpop.f32.mrf.mxu2 }
 0x185   :  { %v1333_v20 = vadd.f32 %v1274_v29, %v1136_v26  ;;  %v1471_v32 = vpop.f32.mrf.mxu3 }
 0x186   :  { %v1079_v43 = vpop.f32.mrf.mxu1 }
 0x187   :  { %v1530_v39 = vadd.f32 %v1471_v32, %v1333_v20  ;;  %v1137_v3 = vadd.f32 %v1079_v43, %v3122_v38  ;;  %v996_v38 = vpack.c.bf16 %v2364_v46, %v2421_v12  ;;  %v2366_v43 = vld [vmem:[%s3732_s0 + $0xb4] sm:$0xff]  ;;  %v2484_v46 = vld [vmem:[%s3732_s0 + $0xbd] sm:$0xff] }
 0x188   :  { %v1670_v16 = vpop.f32.mrf.mxu0  ;;  %v997_v31 = vpack.c.bf16 %v2366_v43, %v3497_v10 }
 0x189   :  { %v1727_v44 = vadd.f32 %v1668_v52, %v1530_v39  ;;  %v1809_v52 = vpop.permute.xlu1 %1808  ;;  %v2483_v39 = vld [vmem:[%s3732_s0 + $0xb5] sm:$0xff] }
 0x18b   :  { %1750 = vst.msk [vmem:[%s3734_s3] sm:$0xff] %vm138_vm0, %v1727_v44  ;;  %v1911_v13 = vmul.f32 %v1799_v36, %v1727_v44  ;;  %v3539_v36 = vld [vmem:[%s3732_s0 + $0xbc] sm:$0xff] }
 0x18c   :  { %v1276_v53 = vpop.f32.mrf.mxu2 }
 0x18d   :  { %v1334_v2 = vadd.f32 %v1276_v53, %v1137_v3  ;;  %v1473_v22 = vpop.f32.mrf.mxu3  ;;  %v1986_v12 = vmul.f32 %v1911_v13, %v1727_v44  ;;  %v1935_v14 = vsel %vm138_vm0, %v1911_v13, 0.0  ;;  %v2543_v3 = vld [vmem:[%s3732_s0 + $0xbe] sm:$0xff] }
 0x18e   :  { %v1082_v56 = vpop.f32.mrf.mxu1 }
 0x18f   :  { %v1531_v60 = vadd.f32 %v1473_v22, %v1334_v2  ;;  %v1138_v7 = vadd.f32 %v1082_v56, %v3127_v19  ;;  %v2009_v26 = vsel %vm138_vm0, %v1986_v12, 0.0  ;;  %v1194_v2 = vpack.c.bf16 %v3539_v36, %v2366_v43 }
 0x190   :  { %v1673_v0 = vpop.f32.mrf.mxu0  ;;  %v1588_v56 = vpack.c.bf16 %v2543_v3, %v2542_v47  ;;  %v998_v43 = vpack.c.bf16 %v3539_v36, %v3539_v36 }
 0x191   :  { %v1728_v6 = vadd.f32 %v1670_v16, %v1531_v60  ;;  %2401 = vmatmul.msk.bf16.gmra.mxu1 %vm138_vm0, %v996_v38  ;;  %2460 = vmatmul.msk.bf16.gmra.mxu2 %vm138_vm0, %v1193_v55  ;;  %v1391_v55 = vpack.c.bf16 %v2484_v46, %v2483_v39 }
 0x192   :  { %2519 = vmatmul.msk.bf16.gmra.mxu3 %vm138_vm0, %v1390_v58 }
 0x193   :  { %2578 = vmatmul.msk.bf16.gmra.mxu0 %vm138_vm0, %v1587_v57  ;;  %1751 = vst.msk [vmem:[%s3734_s3 + $0x8] sm:$0xff] %vm138_vm0, %v1728_v6  ;;  %v1912_v1 = vmul.f32 %v1804_v41, %v1728_v6 }
 0x194   :  { %v1279_v34 = vpop.f32.mrf.mxu2 }
 0x195   :  { %v1936_v4 = vsel %vm138_vm0, %v1912_v1, 0.0  ;;  %v1987_v15 = vmul.f32 %v1912_v1, %v1728_v6  ;;  %v1335_v5 = vadd.f32 %v1279_v34, %v1138_v7  ;;  %v1476_v17 = vpop.f32.mrf.mxu3 }
 0x196   :  { %v1937_v24 = vadd.f32 %v1936_v4, %v1935_v14  ;;  %v1084_v25 = vpop.f32.mrf.mxu1 }
 0x197   :  { %v2010_v29 = vsel %vm138_vm0, %v1987_v15, 0.0  ;;  %v1532_v28 = vadd.f32 %v1476_v17, %v1335_v5  ;;  %v1139_v16 = vadd.f32 %v1084_v25, %v3150_v9  ;;  %v1819_v5 = vpop.permute.xlu2 %1818 }
 0x198   :  { %v1675_v20 = vpop.f32.mrf.mxu0  ;;  %v2011_v32 = vadd.f32 %v2010_v29, %v2009_v26 }
 0x199   :  { %v1729_v19 = vadd.f32 %v1673_v0, %v1532_v28  ;;  %v1814_v0 = vpop.permute.xlu1 %1813 }
 0x19b   :  { %1752 = vst.msk [vmem:[%s3734_s3 + $0x10] sm:$0xff] %vm138_vm0, %v1729_v19  ;;  %v1913_v44 = vmul.f32 %v1809_v52, %v1729_v19 }
 0x19c   :  { %v1281_v30 = vpop.f32.mrf.mxu2 }
 0x19d   :  { %v1938_v51 = vsel %vm138_vm0, %v1913_v44, 0.0  ;;  %v1988_v53 = vmul.f32 %v1913_v44, %v1729_v19  ;;  %v1336_v9 = vadd.f32 %v1281_v30, %v1139_v16  ;;  %v1478_v54 = vpop.f32.mrf.mxu3 }
 0x19e   :  { %v1939_v22 = vadd.f32 %v1938_v51, %v1937_v24  ;;  %v1087_v38 = vpop.f32.mrf.mxu1 }
 0x19f   :  { %v2012_v58 = vsel %vm138_vm0, %v1988_v53, 0.0  ;;  %v1533_v57 = vadd.f32 %v1478_v54, %v1336_v9  ;;  %v1140_v10 = vadd.f32 %v1087_v38, %v3155_v37  ;;  %v2426_v37 = vld [vmem:[%s3732_s0 + $0xc4] sm:$0xff] }
 0x1a0   :  { %v1678_v13 = vpop.f32.mrf.mxu0  ;;  %v2013_v60 = vadd.f32 %v2012_v58, %v2011_v32  ;;  %v2544_v32 = vld [vmem:[%s3732_s0 + $0xc6] sm:$0xff]  ;;  %v1195_v47 = vpack.c.bf16 %v2426_v37, %v2426_v37 }
 0x1a1   :  { %v1730_v41 = vadd.f32 %v1675_v20, %v1533_v57  ;;  %2402 = vmatmul.msk.bf16.gmra.mxu1 %vm138_vm0, %v997_v31  ;;  %2461 = vmatmul.msk.bf16.gmra.mxu2 %vm138_vm0, %v1194_v2  ;;  %v2485_v20 = vld [vmem:[%s3732_s0 + $0xc5] sm:$0xff]  ;;  %v1589_v31 = vpack.c.bf16 %v2544_v32, %v2544_v32  ;;  %v1824_v2 = vpop.permute.xlu2 %1823 }
 0x1a2   :  { %2520 = vmatmul.msk.bf16.gmra.mxu3 %vm138_vm0, %v1391_v55  ;;  %v1392_v30 = vpack.c.bf16 %v2485_v20, %v2485_v20 }
 0x1a3   :  { %2579 = vmatmul.msk.bf16.gmra.mxu0 %vm138_vm0, %v1588_v56  ;;  %1753 = vst.msk [vmem:[%s3734_s3 + $0x18] sm:$0xff] %vm138_vm0, %v1730_v41  ;;  %v1914_v6 = vmul.f32 %v1814_v0, %v1730_v41 }
 0x1a4   :  { %v1284_v12 = vpop.f32.mrf.mxu2 }
 0x1a5   :  { %v1940_v7 = vsel %vm138_vm0, %v1914_v6, 0.0  ;;  %v1989_v1 = vmul.f32 %v1914_v6, %v1730_v41  ;;  %v1337_v34 = vadd.f32 %v1284_v12, %v1140_v10  ;;  %v1481_v14 = vpop.f32.mrf.mxu3 }
 0x1a6   :  { %v1941_v4 = vadd.f32 %v1940_v7, %v1939_v22  ;;  %v1089_v15 = vpop.f32.mrf.mxu1  ;;  %v1829_v7 = vpop.permute.xlu0 %1828 }
 0x1a7   :  { %v2014_v17 = vsel %vm138_vm0, %v1989_v1, 0.0  ;;  %v1534_v24 = vadd.f32 %v1481_v14, %v1337_v34  ;;  %v1141_v29 = vadd.f32 %v1089_v15, %v3168_v45 }
 0x1a8   :  { %v1680_v25 = vpop.f32.mrf.mxu0  ;;  %v2015_v52 = vadd.f32 %v2014_v17, %v2013_v60 }
 0x1a9   :  { %v1731_v26 = vadd.f32 %v1678_v13, %v1534_v24 }
 0x1ab   :  { %1754 = vst.msk [vmem:[%s3734_s3 + $0x20] sm:$0xff] %vm138_vm0, %v1731_v26  ;;  %v1915_v28 = vmul.f32 %v1819_v5, %v1731_v26 }
 0x1ac   :  { %v1286_v19 = vpop.f32.mrf.mxu2 }
 0x1ad   :  { %v1942_v39 = vsel %vm138_vm0, %v1915_v28, 0.0  ;;  %v1990_v16 = vmul.f32 %v1915_v28, %v1731_v26  ;;  %v1338_v44 = vadd.f32 %v1286_v19, %v1141_v29  ;;  %v1483_v46 = vpop.f32.mrf.mxu3  ;;  %v1834_v28 = vpop.permute.xlu1 %1833 }
 0x1ae   :  { %v1943_v45 = vadd.f32 %v1942_v39, %v1941_v4  ;;  %v1092_v3 = vpop.f32.mrf.mxu1 }
 0x1af   :  { %v2016_v51 = vsel %vm138_vm0, %v1990_v16, 0.0  ;;  %v1535_v53 = vadd.f32 %v1483_v46, %v1338_v44  ;;  %v1142_v36 = vadd.f32 %v1092_v3, %v3179_v62 }
 0x1b0   :  { %v1683_v9 = vpop.f32.mrf.mxu0  ;;  %v2017_v54 = vadd.f32 %v2016_v51, %v2015_v52  ;;  %v1839_v51 = vpop.permute.xlu2 %1838 }
 0x1b1   :  { %v1732_v22 = vadd.f32 %v1680_v25, %v1535_v53  ;;  %2403 = vmatmul.msk.bf16.gmra.mxu1 %vm138_vm0, %v998_v43  ;;  %2462 = vmatmul.msk.bf16.gmra.mxu2 %vm138_vm0, %v1195_v47 }
 0x1b2   :  { %2521 = vmatmul.msk.bf16.gmra.mxu3 %vm138_vm0, %v1392_v30 }
 0x1b3   :  { %2580 = vmatmul.msk.bf16.gmra.mxu0 %vm138_vm0, %v1589_v31  ;;  %1755 = vst.msk [vmem:[%s3734_s3 + $0x28] sm:$0xff] %vm138_vm0, %v1732_v22  ;;  %v1916_v38 = vmul.f32 %v1824_v2, %v1732_v22 }
 0x1b4   :  { %v1289_v55 = vpop.f32.mrf.mxu2 }
 0x1b5   :  { %v1944_v56 = vsel %vm138_vm0, %v1916_v38, 0.0  ;;  %v1991_v58 = vmul.f32 %v1916_v38, %v1732_v22  ;;  %v1339_v57 = vadd.f32 %v1289_v55, %v1142_v36  ;;  %v1486_v13 = vpop.f32.mrf.mxu3 }
 0x1b6   :  { %v1945_v60 = vadd.f32 %v1944_v56, %v1943_v45  ;;  %v1094_v0 = vpop.f32.mrf.mxu1 }
 0x1b7   :  { %v2018_v41 = vsel %vm138_vm0, %v1991_v58, 0.0  ;;  %v1536_v10 = vadd.f32 %v1486_v13, %v1339_v57  ;;  %v1143_v62 = vadd.f32 %v1094_v0, %v3205_v18  ;;  %v1844_v0 = vpop.permute.xlu0 %1843 }
 0x1b8   :  { %v1685_v6 = vpop.f32.mrf.mxu0  ;;  %v2019_v12 = vadd.f32 %v2018_v41, %v2017_v54 }
 0x1b9   :  { %v1733_v1 = vadd.f32 %v1683_v9, %v1536_v10 }
 0x1bb   :  { %1756 = vst.msk [vmem:[%s3734_s3 + $0x30] sm:$0xff] %vm138_vm0, %v1733_v1  ;;  %v1917_v34 = vmul.f32 %v1829_v7, %v1733_v1 }
 0x1bc   :  { %v1291_v14 = vpop.f32.mrf.mxu2 }
 0x1bd   :  { %v1946_v4 = vsel %vm138_vm0, %v1917_v34, 0.0  ;;  %v1992_v15 = vmul.f32 %v1917_v34, %v1733_v1  ;;  %v1340_v5 = vadd.f32 %v1291_v14, %v1143_v62  ;;  %v1488_v17 = vpop.f32.mrf.mxu3 }
 0x1be   :  { %v1947_v24 = vadd.f32 %v1946_v4, %v1945_v60  ;;  %v1097_v25 = vpop.f32.mrf.mxu1 }
 0x1bf   :  { %v2020_v52 = vsel %vm138_vm0, %v1992_v15, 0.0  ;;  %v1537_v26 = vadd.f32 %v1488_v17, %v1340_v5  ;;  %v1144_v18 = vadd.f32 %v1097_v25, %v3213_v33 }
 0x1c0   :  { %v1688_v37 = vpop.f32.mrf.mxu0  ;;  %v2021_v29 = vadd.f32 %v2020_v52, %v2019_v12 }
 0x1c1   :  { %v1734_v20 = vadd.f32 %v1685_v6, %v1537_v26 }
 0x1c3   :  { %1757 = vst.msk [vmem:[%s3734_s3 + $0x38] sm:$0xff] %vm138_vm0, %v1734_v20  ;;  %v1918_v32 = vmul.f32 %v1834_v28, %v1734_v20 }
 0x1c4   :  { %v1294_v19 = vpop.f32.mrf.mxu2 }
 0x1c5   :  { %v1948_v43 = vsel %vm138_vm0, %v1918_v32, 0.0  ;;  %v1993_v39 = vmul.f32 %v1918_v32, %v1734_v20  ;;  %v1341_v16 = vadd.f32 %v1294_v19, %v1144_v18  ;;  %v1491_v44 = vpop.f32.mrf.mxu3 }
 0x1c6   :  { %v1949_v46 = vadd.f32 %v1948_v43, %v1947_v24  ;;  %v1099_v47 = vpop.f32.mrf.mxu1  ;;  %v1849_v24 = vpop.permute.xlu1 %1848 }
 0x1c7   :  { %v2022_v45 = vsel %vm138_vm0, %v1993_v39, 0.0  ;;  %v1538_v3 = vadd.f32 %v1491_v44, %v1341_v16  ;;  %v1145_v33 = vadd.f32 %v1099_v47, %v3239_v59  ;;  %v1854_v44 = vpop.permute.xlu2 %1853 }
 0x1c8   :  { %v1690_v30 = vpop.f32.mrf.mxu0  ;;  %v2023_v31 = vadd.f32 %v2022_v45, %v2021_v29 }
 0x1c9   :  { %v1735_v53 = vadd.f32 %v1688_v37, %v1538_v3 }
 0x1cb   :  { %1758 = vst.msk [vmem:[%s3734_s3 + $0x40] sm:$0xff] %vm138_vm0, %v1735_v53  ;;  %v1919_v9 = vmul.f32 %v1839_v51, %v1735_v53 }
 0x1cc   :  { %v1296_v54 = vpop.f32.mrf.mxu2 }
 0x1cd   :  { %v1950_v2 = vsel %vm138_vm0, %v1919_v9, 0.0  ;;  %v1994_v22 = vmul.f32 %v1919_v9, %v1735_v53  ;;  %v1342_v36 = vadd.f32 %v1296_v54, %v1145_v33  ;;  %v1493_v38 = vpop.f32.mrf.mxu3 }
 0x1ce   :  { %v1951_v55 = vadd.f32 %v1950_v2, %v1949_v46  ;;  %v1102_v56 = vpop.f32.mrf.mxu1 }
 0x1cf   :  { %v2024_v58 = vsel %vm138_vm0, %v1994_v22, 0.0  ;;  %v1539_v57 = vadd.f32 %v1493_v38, %v1342_v36  ;;  %v1146_v59 = vadd.f32 %v1102_v56, %v3244_v8  ;;  %v1859_v38 = vpop.permute.xlu0 %1858 }
 0x1d0   :  { %v1693_v13 = vpop.f32.mrf.mxu0  ;;  %v2025_v60 = vadd.f32 %v2024_v58, %v2023_v31 }
 0x1d1   :  { %v1736_v41 = vadd.f32 %v1690_v30, %v1539_v57 }
 0x1d3   :  { %1759 = vst.msk [vmem:[%s3734_s3 + $0x48] sm:$0xff] %vm138_vm0, %v1736_v41  ;;  %v1920_v10 = vmul.f32 %v1844_v0, %v1736_v41 }
 0x1d4   :  { %v1299_v6 = vpop.f32.mrf.mxu2 }
 0x1d5   :  { %v1952_v12 = vsel %vm138_vm0, %v1920_v10, 0.0  ;;  %v1995_v7 = vmul.f32 %v1920_v10, %v1736_v41  ;;  %v1343_v1 = vadd.f32 %v1299_v6, %v1146_v59  ;;  %v1496_v62 = vpop.f32.mrf.mxu3 }
 0x1d6   :  { %v1953_v34 = vadd.f32 %v1952_v12, %v1951_v55  ;;  %v1104_v14 = vpop.f32.mrf.mxu1 }
 0x1d7   :  { %v2026_v4 = vsel %vm138_vm0, %v1995_v7, 0.0  ;;  %v1540_v15 = vadd.f32 %v1496_v62, %v1343_v1  ;;  %v1147_v8 = vadd.f32 %v1104_v14, %v3267_v35  ;;  %v1864_v1 = vpop.permute.xlu1 %1863 }
 0x1d8   :  { %v1695_v5 = vpop.f32.mrf.mxu0  ;;  %v2027_v17 = vadd.f32 %v2026_v4, %v2025_v60 }
 0x1d9   :  { %v1737_v25 = vadd.f32 %v1693_v13, %v1540_v15 }
 0x1db   :  { %1760 = vst.msk [vmem:[%s3734_s3 + $0x50] sm:$0xff] %vm138_vm0, %v1737_v25  ;;  %v1921_v52 = vmul.f32 %v1849_v24, %v1737_v25 }
 0x1dc   :  { %v1301_v26 = vpop.f32.mrf.mxu2 }
 0x1dd   :  { %v1954_v37 = vsel %vm138_vm0, %v1921_v52, 0.0  ;;  %v1996_v29 = vmul.f32 %v1921_v52, %v1737_v25  ;;  %v1344_v28 = vadd.f32 %v1301_v26, %v1147_v8  ;;  %v1498_v20 = vpop.f32.mrf.mxu3 }
 0x1de   :  { %v1955_v18 = vadd.f32 %v1954_v37, %v1953_v34  ;;  %v1107_v32 = vpop.f32.mrf.mxu1 }
 0x1df   :  { %v2028_v19 = vsel %vm138_vm0, %v1996_v29, 0.0  ;;  %v1541_v43 = vadd.f32 %v1498_v20, %v1344_v28  ;;  %v1148_v35 = vadd.f32 %v1107_v32, %v3275_v50  ;;  %v1869_v29 = vpop.permute.xlu2 %1868 }
 0x1e0   :  { %v1698_v39 = vpop.f32.mrf.mxu0  ;;  %v2029_v16 = vadd.f32 %v2028_v19, %v2027_v17 }
 0x1e1   :  { %v1738_v46 = vadd.f32 %v1695_v5, %v1541_v43 }
 0x1e3   :  { %1761 = vst.msk [vmem:[%s3734_s3 + $0x58] sm:$0xff] %vm138_vm0, %v1738_v46  ;;  %v1922_v47 = vmul.f32 %v1854_v44, %v1738_v46 }
 0x1e4   :  { %v1304_v45 = vpop.f32.mrf.mxu2 }
 0x1e5   :  { %v1956_v3 = vsel %vm138_vm0, %v1922_v47, 0.0  ;;  %v1997_v30 = vmul.f32 %v1922_v47, %v1738_v46  ;;  %v1345_v31 = vadd.f32 %v1304_v45, %v1148_v35  ;;  %v1501_v51 = vpop.f32.mrf.mxu3 }
 0x1e6   :  { %v1957_v53 = vadd.f32 %v1956_v3, %v1955_v18  ;;  %v1109_v33 = vpop.f32.mrf.mxu1  ;;  %v1874_v3 = vpop.permute.xlu0 %1873 }
 0x1e7   :  { %v2030_v9 = vsel %vm138_vm0, %v1997_v30, 0.0  ;;  %v1542_v54 = vadd.f32 %v1501_v51, %v1345_v31  ;;  %v1149_v50 = vadd.f32 %v1109_v33, %v3304_v11 }
 0x1e8   :  { %v1700_v2 = vpop.f32.mrf.mxu0  ;;  %v2031_v22 = vadd.f32 %v2030_v9, %v2029_v16 }
 0x1e9   :  { %v1739_v36 = vadd.f32 %v1698_v39, %v1542_v54 }
 0x1eb   :  { %1762 = vst.msk [vmem:[%s3734_s3 + $0x60] sm:$0xff] %vm138_vm0, %v1739_v36  ;;  %v1923_v55 = vmul.f32 %v1859_v38, %v1739_v36 }
 0x1ec   :  { %v1306_v56 = vpop.f32.mrf.mxu2 }
 0x1ed   :  { %v1958_v58 = vsel %vm138_vm0, %v1923_v55, 0.0  ;;  %v1998_v57 = vmul.f32 %v1923_v55, %v1739_v36  ;;  %v1346_v13 = vadd.f32 %v1306_v56, %v1149_v50  ;;  %v1503_v60 = vpop.f32.mrf.mxu3  ;;  %v1879_v56 = vpop.permute.xlu1 %1878 }
 0x1ee   :  { %v1959_v0 = vadd.f32 %v1958_v58, %v1957_v53  ;;  %v1112_v41 = vpop.f32.mrf.mxu1 }
 0x1ef   :  { %v2032_v59 = vsel %vm138_vm0, %v1998_v57, 0.0  ;;  %v1543_v10 = vadd.f32 %v1503_v60, %v1346_v13  ;;  %v1150_v62 = vadd.f32 %v1112_v41, %v3312_v27 }
 0x1f0   :  { %v1703_v6 = vpop.f32.mrf.mxu0  ;;  %v2033_v12 = vadd.f32 %v2032_v59, %v2031_v22 }
 0x1f1   :  { %v1740_v7 = vadd.f32 %v1700_v2, %v1543_v10 }
 0x1f3   :  { %1763 = vst.msk [vmem:[%s3734_s3 + $0x68] sm:$0xff] %vm138_vm0, %v1740_v7  ;;  %v1924_v11 = vmul.f32 %v1864_v1, %v1740_v7 }
 0x1f4   :  { %v1309_v34 = vpop.f32.mrf.mxu2 }
 0x1f5   :  { %v1999_v14 = vmul.f32 %v1924_v11, %v1740_v7  ;;  %v1347_v4 = vadd.f32 %v1309_v34, %v1150_v62  ;;  %v1506_v15 = vpop.f32.mrf.mxu3  ;;  %v1960_v5 = vsel %vm138_vm0, %v1924_v11, 0.0  ;;  %v1884_v62 = vpop.permute.xlu2 %1883 }
 0x1f6   :  { %v1961_v17 = vadd.f32 %v1960_v5, %v1959_v0  ;;  %v1114_v24 = vpop.f32.mrf.mxu1 }
 0x1f7   :  { %v1544_v25 = vadd.f32 %v1506_v15, %v1347_v4  ;;  %v2034_v8 = vsel %vm138_vm0, %v1999_v14, 0.0  ;;  %v1151_v28 = vadd.f32 %v1114_v24, %v3338_v23 }
 0x1f8   :  { %v1705_v52 = vpop.f32.mrf.mxu0  ;;  %v2035_v26 = vadd.f32 %v2034_v8, %v2033_v12 }
 0x1f9   :  { %v1741_v37 = vadd.f32 %v1703_v6, %v1544_v25 }
 0x1fb   :  { %1764 = vst.msk [vmem:[%s3734_s3 + $0x70] sm:$0xff] %vm138_vm0, %v1741_v37  ;;  %v1925_v27 = vmul.f32 %v1869_v29, %v1741_v37 }
 0x1fc   :  { %v1311_v20 = vpop.f32.mrf.mxu2 }
 0x1fd   :  { %v1962_v18 = vsel %vm138_vm0, %v1925_v27, 0.0  ;;  %v2000_v32 = vmul.f32 %v1925_v27, %v1741_v37  ;;  %v1348_v19 = vadd.f32 %v1311_v20, %v1151_v28  ;;  %v1508_v43 = vpop.f32.mrf.mxu3  ;;  %v2635_v27 = vmov 0.0  }
 0x1fe   :  { %v1963_v39 = vadd.f32 %v1962_v18, %v1961_v17  ;;  %v1117_v16 = vpop.f32.mrf.mxu1  ;;  %23 = vst.msk [vmem:[%s3735_s4] sm:$0x3] %vm22_vm1, %v2635_v27 }
 0x1ff   :  { %v2036_v44 = vsel %vm138_vm0, %v2000_v32, 0.0  ;;  %v1545_v46 = vadd.f32 %v1508_v43, %v1348_v19  ;;  %v1152_v30 = vadd.f32 %v1117_v16, %v3346_v63 }
 0x200   :  { %v1708_v35 = vpop.f32.mrf.mxu0  ;;  %v2037_v47 = vadd.f32 %v2036_v44, %v2035_v26 }
 0x201   :  { %v1742_v45 = vadd.f32 %v1705_v52, %v1545_v46 }
 0x203   :  { %1765 = vst.msk [vmem:[%s3734_s3 + $0x78] sm:$0xff] %vm138_vm0, %v1742_v45  ;;  %v1926_v23 = vmul.f32 %v1874_v3, %v1742_v45 }
 0x204   :  { %v1314_v31 = vpop.f32.mrf.mxu2 }
 0x205   :  { %v1964_v51 = vsel %vm138_vm0, %v1926_v23, 0.0  ;;  %v2001_v53 = vmul.f32 %v1926_v23, %v1742_v45  ;;  %v1349_v33 = vadd.f32 %v1314_v31, %v1152_v30  ;;  %v1511_v9 = vpop.f32.mrf.mxu3  ;;  %v1894_v23 = vpop.permute.xlu1 %1893 }
 0x206   :  { %v1965_v54 = vadd.f32 %v1964_v51, %v1963_v39  ;;  %v1119_v2 = vpop.f32.mrf.mxu1 }
 0x207   :  { %v2038_v22 = vsel %vm138_vm0, %v2001_v53, 0.0  ;;  %v1546_v36 = vadd.f32 %v1511_v9, %v1349_v33  ;;  %v1153_v58 = vadd.f32 %v1119_v2, %v3372_v42 }
 0x208   :  { %v1710_v38 = vpop.f32.mrf.mxu0  ;;  %v2039_v50 = vadd.f32 %v2038_v22, %v2037_v47 }
 0x209   :  { %v1743_v55 = vadd.f32 %v1708_v35, %v1546_v36 }
 0x20b   :  { %1766 = vst.msk [vmem:[%s3734_s3 + $0x80] sm:$0xff] %vm138_vm0, %v1743_v55  ;;  %v1927_v63 = vmul.f32 %v1879_v56, %v1743_v55  ;;  %v1899_v56 = vpop.permute.xlu2 %1898 }
 0x20c   :  { %v1316_v57 = vpop.f32.mrf.mxu2 }
 0x20d   :  { %v1966_v13 = vsel %vm138_vm0, %v1927_v63, 0.0  ;;  %v2002_v60 = vmul.f32 %v1927_v63, %v1743_v55  ;;  %v1350_v0 = vadd.f32 %v1316_v57, %v1153_v58  ;;  %v1513_v41 = vpop.f32.mrf.mxu3 }
 0x20e   :  { %v1967_v59 = vadd.f32 %v1966_v13, %v1965_v54  ;;  %v1122_v10 = vpop.f32.mrf.mxu1 }
 0x20f   :  { %v2040_v6 = vsel %vm138_vm0, %v2002_v60, 0.0  ;;  %v1547_v12 = vadd.f32 %v1513_v41, %v1350_v0  ;;  %v1154_v34 = vadd.f32 %v1122_v10, %v3383_v48  ;;  %v1889_v48 = vpop.permute.xlu0 %1888 }
 0x210   :  { %v1713_v7 = vpop.f32.mrf.mxu0  ;;  %v2041_v1 = vadd.f32 %v2040_v6, %v2039_v50 }
 0x211   :  { %v1744_v11 = vadd.f32 %v1710_v38, %v1547_v12 }
 0x213   :  { %1767 = vst.msk [vmem:[%s3734_s3 + $0x88] sm:$0xff] %vm138_vm0, %v1744_v11  ;;  %v1928_v42 = vmul.f32 %v1884_v62, %v1744_v11 }
 0x214   :  { %v1319_v14 = vpop.f32.mrf.mxu2 }
 0x215   :  { %v1968_v4 = vsel %vm138_vm0, %v1928_v42, 0.0  ;;  %v2003_v15 = vmul.f32 %v1928_v42, %v1744_v11  ;;  %v1351_v5 = vadd.f32 %v1319_v14, %v1154_v34  ;;  %v1516_v17 = vpop.f32.mrf.mxu3 }
 0x216   :  { %v1969_v24 = vadd.f32 %v1968_v4, %v1967_v59  ;;  %v1124_v25 = vpop.f32.mrf.mxu1 }
 0x217   :  { %v2042_v8 = vsel %vm138_vm0, %v2003_v15, 0.0  ;;  %v1548_v52 = vadd.f32 %v1516_v17, %v1351_v5  ;;  %v1155_v20 = vadd.f32 %v1124_v25, %v3412_v40  ;;  %v1904_v11 = vpop.permute.xlu0 %1903 }
 0x218   :  { %v1715_v26 = vpop.f32.mrf.mxu0  ;;  %v2043_v37 = vadd.f32 %v2042_v8, %v2041_v1 }
 0x219   :  { %v1745_v29 = vadd.f32 %v1713_v7, %v1548_v52 }
 0x21b   :  { %1768 = vst.msk [vmem:[%s3734_s3 + $0x90] sm:$0xff] %vm138_vm0, %v1745_v29  ;;  %v1929_v28 = vmul.f32 %v1889_v48, %v1745_v29 }
 0x21c   :  { %v1321_v18 = vpop.f32.mrf.mxu2 }
 0x21d   :  { %v1970_v32 = vsel %vm138_vm0, %v1929_v28, 0.0  ;;  %v2004_v19 = vmul.f32 %v1929_v28, %v1745_v29  ;;  %v1352_v43 = vadd.f32 %v1321_v18, %v1155_v20  ;;  %v1518_v39 = vpop.f32.mrf.mxu3 }
 0x21e   :  { %v1971_v16 = vadd.f32 %v1970_v32, %v1969_v24  ;;  %v1127_v44 = vpop.f32.mrf.mxu1 }
 0x21f   :  { %v2044_v46 = vsel %vm138_vm0, %v2004_v19, 0.0  ;;  %v1549_v35 = vadd.f32 %v1518_v39, %v1352_v43  ;;  %v1156_v30 = vadd.f32 %v1127_v44, %v3426_v21 }
 0x220   :  { %v1718_v47 = vpop.f32.mrf.mxu0  ;;  %v2045_v45 = vadd.f32 %v2044_v46, %v2043_v37  ;;  %v1909_v37 = vpop.permute.xlu1 %1908 }
 0x221   :  { %v1746_v3 = vadd.f32 %v1715_v26, %v1549_v35 }
 0x223   :  { %1769 = vst.msk [vmem:[%s3734_s3 + $0x98] sm:$0xff] %vm138_vm0, %v1746_v3  ;;  %v1930_v40 = vmul.f32 %v1894_v23, %v1746_v3  ;;  %v1934_v23 = vld [vmem:[%s3735_s4] sm:$0x3] }
 0x224   :  { %v1324_v31 = vpop.f32.mrf.mxu2 }
 0x225   :  { %v1972_v51 = vsel %vm138_vm0, %v1930_v40, 0.0  ;;  %v2005_v53 = vmul.f32 %v1930_v40, %v1746_v3  ;;  %v1353_v33 = vadd.f32 %v1324_v31, %v1156_v30  ;;  %v1521_v9 = vpop.f32.mrf.mxu3 }
 0x226   :  { %v1973_v54 = vadd.f32 %v1972_v51, %v1971_v16  ;;  %v1129_v2 = vpop.f32.mrf.mxu1 }
 0x227   :  { %v2046_v22 = vsel %vm138_vm0, %v2005_v53, 0.0  ;;  %v1550_v36 = vadd.f32 %v1521_v9, %v1353_v33  ;;  %v1157_v63 = vadd.f32 %v1129_v2, %v3455_v49 }
 0x228   :  { %v1720_v38 = vpop.f32.mrf.mxu0  ;;  %v2047_v50 = vadd.f32 %v2046_v22, %v2045_v45 }
 0x229   :  { %v1747_v55 = vadd.f32 %v1718_v47, %v1550_v36 }
 0x22b   :  { %1770 = vst.msk [vmem:[%s3734_s3 + $0xa0] sm:$0xff] %vm138_vm0, %v1747_v55  ;;  %v1931_v21 = vmul.f32 %v1899_v56, %v1747_v55 }
 0x22c   :  { %v1326_v58 = vpop.f32.mrf.mxu2 }
 0x22d   :  { %v1974_v57 = vsel %vm138_vm0, %v1931_v21, 0.0  ;;  %v2006_v13 = vmul.f32 %v1931_v21, %v1747_v55  ;;  %v1354_v60 = vadd.f32 %v1326_v58, %v1157_v63  ;;  %v1523_v0 = vpop.f32.mrf.mxu3 }
 0x22e   :  { %v1975_v41 = vadd.f32 %v1974_v57, %v1973_v54  ;;  %v1132_v59 = vpop.f32.mrf.mxu1 }
 0x22f   :  { %v2048_v10 = vsel %vm138_vm0, %v2006_v13, 0.0  ;;  %v1551_v6 = vadd.f32 %v1523_v0, %v1354_v60  ;;  %v1158_v62 = vadd.f32 %v1132_v59, %v3460_v61 }
 0x230   :  { %v1723_v12 = vpop.f32.mrf.mxu0  ;;  %v2049_v7 = vadd.f32 %v2048_v10, %v2047_v50 }
 0x231   :  { %v1748_v1 = vadd.f32 %v1720_v38, %v1551_v6 }
 0x233   :  { %1771 = vst.msk [vmem:[%s3734_s3 + $0xa8] sm:$0xff] %vm138_vm0, %v1748_v1  ;;  %v1932_v49 = vmul.f32 %v1904_v11, %v1748_v1 }
 0x234   :  { %v1329_v42 = vpop.f32.mrf.mxu2 }
 0x235   :  { %v1976_v34 = vsel %vm138_vm0, %v1932_v49, 0.0  ;;  %v2007_v14 = vmul.f32 %v1932_v49, %v1748_v1  ;;  %v1355_v4 = vadd.f32 %v1329_v42, %v1158_v62  ;;  %v1526_v15 = vpop.f32.mrf.mxu3 }
 0x236   :  { %v1977_v5 = vadd.f32 %v1976_v34, %v1975_v41  ;;  %v1134_v17 = vpop.f32.mrf.mxu1 }
 0x237   :  { %v2050_v24 = vsel %vm138_vm0, %v2007_v14, 0.0  ;;  %v1552_v25 = vadd.f32 %v1526_v15, %v1355_v4 }
 0x238   :  { %v1725_v8 = vpop.f32.mrf.mxu0  ;;  %v2051_v52 = vadd.f32 %v2050_v24, %v2049_v7 }
 0x239   :  { %v1749_v26 = vadd.f32 %v1723_v12, %v1552_v25 }
 0x23b   :  { %1772 = vst.msk [vmem:[%s3734_s3 + $0xb0] sm:$0xff] %vm138_vm0, %v1749_v26  ;;  %v1933_v61 = vmul.f32 %v1909_v37, %v1749_v26 }
 0x23c   :  { %v1331_v29 = vpop.f32.mrf.mxu2 }
 0x23d   :  { %v1978_v27 = vsel %vm138_vm0, %v1933_v61, 0.0  ;;  %v2008_v48 = vmul.f32 %v1933_v61, %v1749_v26  ;;  %v1528_v28 = vpop.f32.mrf.mxu3 }
 0x23e   :  { %v1979_v20 = vadd.f32 %v1978_v27, %v1977_v5 }
 0x23f   :  { %v2052_v18 = vsel %vm138_vm0, %v2008_v48, 0.0 }
 0x240   :  { %v1980_v32 = vrot.slane %v1979_v20, 4  ;;  %v2053_v19 = vadd.f32 %v2052_v18, %v2051_v52 }
 0x242   :  { %v1981_v43 = vadd.f32 %v1980_v32, %v1979_v20  ;;  %v2054_v39 = vrot.slane %v2053_v19, 4 }
 0x244   :  { %v1982_v16 = vrot.slane %v1981_v43, 2  ;;  %v2055_v44 = vadd.f32 %v2054_v39, %v2053_v19 }
 0x246   :  { %v1983_v46 = vadd.f32 %v1982_v16, %v1981_v43  ;;  %v2056_v35 = vrot.slane %v2055_v44, 2 }
 0x248   :  { %v1984_v47 = vrot.slane %v1983_v46, 1  ;;  %v2057_v45 = vadd.f32 %v2056_v35, %v2055_v44 }
 0x24a   :  { %v2058_v3 = vrot.slane %v2057_v45, 1  ;;  %v1985_v40 = vadd.f32 %v1984_v47, %v1983_v46 }
 0x24c   :  { %v2059_v30 = vadd.f32 %v2058_v3, %v2057_v45 }
 0x24e   :  { %v2061_v31 = vsel %vm2060_vm2, %v1985_v40, %v2059_v30 }
 0x24f   :  { %v2062_v51 = vadd.f32 %v2061_v31, %v1934_v23 }
 0x251   :  { %2064 = vst.msk [vmem:[%s3735_s4] sm:$0x3] %vm22_vm1, %v2062_v51 }

// kernel: resnet_small_forward.34
= control target key start
LH: loop header
LB: loop body
LE: loop exit
PB: predicated region body
PF: predicated region fallthrough
CT: control target
= control target key end

     0   :  { %vm65_vm0 = vcmask 523264   ;;  %v167_v6 = vmov 0.0   ;;  %vm118_vm1 = vcmask 1040384   ;;  %s227_s1 = inlined_call_operand.vmem [shape: bf16[64,128], index: 1, kind: input, shape index: {}]   ;;  %s228_s0 = inlined_call_operand.vmem [shape: bf16[32,64], index: 0, kind: input, shape index: {}]   ;;  %s229_s3 = inlined_call_operand.vmem [shape: f32[2,128], index: 3, kind: output, shape index: {1}]   ;;  %s230_s2 = inlined_call_operand.vmem [shape: f32[32,128], index: 2, kind: output, shape index: {0}]  }
   0x1   :  { %v161_v0 = vld [vmem:[%s227_s1 + $0x18] sm:$0xff]  ;;  %v160_v1 = vld [vmem:[%s227_s1 + $0x10] sm:$0xff]  ;;  %v159_v2 = vld [vmem:[%s227_s1 + $0x8] sm:$0xff]  ;;  %18 = vst [vmem:[%s229_s3] sm:$0x3] %v167_v6 }
   0x2   :  { %76 = vmatpush.bf16.msra.mxu0 %v161_v0  ;;  %162 = vmatpush.bf16.msra.mxu1 %v161_v0  ;;  %v158_v3 = vld [vmem:[%s227_s1] sm:$0xff]  ;;  %v157_v5 = vld [vmem:[%s228_s0 + $0x8] sm:$0xff] }
   0x3   :  { %v156_v4 = vld [vmem:[%s228_s0] sm:$0xff] }
   0x6   :  { %77 = vmatpush.bf16.msra.mxu0 %v160_v1  ;;  %163 = vmatpush.bf16.msra.mxu1 %v160_v1 }
   0x8   :  { %v95_v31 = vld [vmem:[%s229_s3] sm:$0x3] }
   0xa   :  { %78 = vmatpush.bf16.msra.mxu0 %v159_v2  ;;  %164 = vmatpush.bf16.msra.mxu1 %v159_v2 }
   0xe   :  { %79 = vmatpush.bf16.msra.mxu0 %v158_v3  ;;  %165 = vmatpush.bf16.msra.mxu1 %v158_v3 }
  0x11   :  { %154 = vmatmul.msk.bf16.vlgmr.msra.gmra.mxu0 %vm65_vm0, %v156_v4  ;;  %155 = vmatmul.msk.bf16.vlgmr.msra.gmra.mxu1 %vm65_vm0, %v157_v5 }
  0x8e   :  { %v81_v7 = vpop.f32.mrf.mxu0  ;;  %v86_v8 = vpop.f32.mrf.mxu1 }
  0x8f   :  { %91 = vst [vmem:[%s230_s2] sm:$0xff] %v81_v7  ;;  %v105_v11 = vmul.f32 %v81_v7, %v81_v7  ;;  %v107_v14 = vmul.f32 %v86_v8, %v86_v8 }
  0x90   :  { %93 = vst [vmem:[%s230_s2 + $0x10] sm:$0xff] %v86_v8 }
  0x96   :  { %v83_v9 = vpop.f32.mrf.mxu0  ;;  %v88_v10 = vpop.f32.mrf.mxu1 }
  0x97   :  { %92 = vst [vmem:[%s230_s2 + $0x8] sm:$0xff] %v83_v9  ;;  %v96_v12 = vadd.f32 %v83_v9, %v81_v7  ;;  %v106_v13 = vmul.f32 %v83_v9, %v83_v9  ;;  %v108_v18 = vmul.f32 %v88_v10, %v88_v10 }
  0x98   :  { %94 = vst [vmem:[%s230_s2 + $0x18] sm:$0xff] %v88_v10 }
  0x99   :  { %v109_v15 = vadd.f32 %v106_v13, %v105_v11  ;;  %v97_v16 = vadd.f32 %v96_v12, %v86_v8 }
  0x9b   :  { %v98_v17 = vadd.f32 %v97_v16, %v88_v10  ;;  %v110_v19 = vadd.f32 %v109_v15, %v107_v14 }
  0x9d   :  { %v99_v20 = vrot.slane %v98_v17, 4  ;;  %v111_v21 = vadd.f32 %v110_v19, %v108_v18 }
  0x9f   :  { %v100_v22 = vadd.f32 %v99_v20, %v98_v17  ;;  %v112_v23 = vrot.slane %v111_v21, 4 }
  0xa1   :  { %v101_v24 = vrot.slane %v100_v22, 2  ;;  %v113_v25 = vadd.f32 %v112_v23, %v111_v21 }
  0xa3   :  { %v102_v26 = vadd.f32 %v101_v24, %v100_v22  ;;  %v114_v27 = vrot.slane %v113_v25, 2 }
  0xa5   :  { %v103_v28 = vrot.slane %v102_v26, 1  ;;  %v115_v29 = vadd.f32 %v114_v27, %v113_v25 }
  0xa7   :  { %v116_v30 = vrot.slane %v115_v29, 1  ;;  %v104_v32 = vadd.f32 %v103_v28, %v102_v26 }
  0xa9   :  { %v117_v33 = vadd.f32 %v116_v30, %v115_v29 }
  0xab   :  { %v119_v34 = vsel %vm118_vm1, %v104_v32, %v117_v33 }
  0xac   :  { %v120_v35 = vadd.f32 %v119_v34, %v95_v31 }
  0xae   :  { %121 = vst [vmem:[%s229_s3] sm:$0x3] %v120_v35 }

// kernel: resnet_small_forward.36
= control target key start
LH: loop header
LB: loop body
LE: loop exit
PB: predicated region body
PF: predicated region fallthrough
CT: control target
= control target key end

     0   :  { %s170_s0 = inlined_call_operand.vmem [shape: f32[32,128], index: 0, kind: input, shape index: {}]   ;;  %s171_s1 = inlined_call_operand.vmem [shape: f32[32,128], index: 1, kind: input, shape index: {}]   ;;  %s172_s2 = inlined_call_operand.vmem [shape: f32[1,128], index: 2, kind: input, shape index: {}]   ;;  %s173_s3 = inlined_call_operand.vmem [shape: f32[1,128], index: 3, kind: input, shape index: {}]   ;;  %s174_s4 = inlined_call_operand.vmem [shape: f32[1,128], index: 4, kind: input, shape index: {}]   ;;  %s175_s5 = inlined_call_operand.vmem [shape: f32[1,128], index: 5, kind: input, shape index: {}]   ;;  %s176_s6 = inlined_call_operand.vmem [shape: f32[32,128], index: 6, kind: output, shape index: {}]  }
   0x1   :  { %v23_v0 = vld [vmem:[%s170_s0] sm:$0xff]  ;;  %v24_v7 = vld [vmem:[%s170_s0 + $0x8] sm:$0xff]  ;;  %v25_v13 = vld [vmem:[%s170_s0 + $0x10] sm:$0xff] }
   0x2   :  { %v83_v1 = vld [vmem:[%s172_s2] ss:$0 sm:$0xff]  ;;  %v48_v8 = vld [vmem:[%s171_s1 + $0x8] sm:$0xff]  ;;  %v49_v14 = vld [vmem:[%s171_s1 + $0x10] sm:$0xff] }
   0x3   :  { %v84_v2 = vld [vmem:[%s173_s3] ss:$0 sm:$0xff]  ;;  %v31_v4 = vmul.f32 %v83_v1, %v23_v0  ;;  %v32_v11 = vmul.f32 %v83_v1, %v24_v7  ;;  %v26_v15 = vld [vmem:[%s170_s0 + $0x18] sm:$0xff]  ;;  %v33_v16 = vmul.f32 %v83_v1, %v25_v13 }
   0x4   :  { %v47_v3 = vld [vmem:[%s171_s1] sm:$0xff]  ;;  %v34_v18 = vmul.f32 %v83_v1, %v26_v15  ;;  %v50_v19 = vld [vmem:[%s171_s1 + $0x18] sm:$0xff] }
   0x5   :  { %v85_v5 = vld [vmem:[%s174_s4] ss:$0 sm:$0xff]  ;;  %v39_v9 = vadd.f32 %v84_v2, %v31_v4  ;;  %v40_v22 = vadd.f32 %v84_v2, %v32_v11  ;;  %v41_v24 = vadd.f32 %v84_v2, %v33_v16 }
   0x6   :  { %v86_v6 = vld [vmem:[%s175_s5] ss:$0 sm:$0xff]  ;;  %v55_v10 = vmul.f32 %v85_v5, %v47_v3  ;;  %v56_v12 = vmul.f32 %v85_v5, %v48_v8  ;;  %v57_v17 = vmul.f32 %v85_v5, %v49_v14  ;;  %v42_v26 = vadd.f32 %v84_v2, %v34_v18 }
   0x7   :  { %v43_v20 = vmax.f32 %v39_v9, 0.0  ;;  %v58_v27 = vmul.f32 %v85_v5, %v50_v19  ;;  %v44_v29 = vmax.f32 %v40_v22, 0.0  ;;  %v45_v30 = vmax.f32 %v41_v24, 0.0 }
   0x8   :  { %v63_v21 = vadd.f32 %v86_v6, %v55_v10  ;;  %v64_v23 = vadd.f32 %v86_v6, %v56_v12  ;;  %v65_v25 = vadd.f32 %v86_v6, %v57_v17  ;;  %v46_v31 = vmax.f32 %v42_v26, 0.0 }
   0x9   :  { %v66_v32 = vadd.f32 %v86_v6, %v58_v27 }
   0xa   :  { %v67_v28 = vadd.f32 %v63_v21, %v43_v20  ;;  %v68_v34 = vadd.f32 %v64_v23, %v44_v29  ;;  %v69_v35 = vadd.f32 %v65_v25, %v45_v30 }
   0xb   :  { %v70_v36 = vadd.f32 %v66_v32, %v46_v31 }
   0xc   :  { %v71_v33 = vmax.f32 %v67_v28, 0.0  ;;  %v72_v37 = vmax.f32 %v68_v34, 0.0  ;;  %v73_v38 = vmax.f32 %v69_v35, 0.0 }
   0xd   :  { %v74_v39 = vmax.f32 %v70_v36, 0.0 }
   0xe   :  { %75 = vst [vmem:[%s176_s6] sm:$0xff] %v71_v33 }
   0xf   :  { %76 = vst [vmem:[%s176_s6 + $0x8] sm:$0xff] %v72_v37 }
  0x10   :  { %77 = vst [vmem:[%s176_s6 + $0x10] sm:$0xff] %v73_v38 }
  0x11   :  { %78 = vst [vmem:[%s176_s6 + $0x18] sm:$0xff] %v74_v39 }

// kernel: resnet_small_forward.35
= control target key start
LH: loop header
LB: loop body
LE: loop exit
PB: predicated region body
PF: predicated region fallthrough
CT: control target
= control target key end

     0   :  { %vm1147_vm0 = vcmask 1040384   ;;  %s2315_s1 = inlined_call_operand.vmem [shape: bf16[9,128,128], index: 1, kind: input, shape index: {}]   ;;  %s2316_s0 = inlined_call_operand.vmem [shape: f32[78,128], index: 0, kind: input, shape index: {}]   ;;  %s2317_s2 = inlined_call_operand.vmem [shape: f32[64,1], index: 2, kind: input, shape index: {}]   ;;  %s2318_s3 = inlined_call_operand.vmem [shape: f32[64,128], index: 3, kind: output, shape index: {0}]   ;;  %s2319_s4 = inlined_call_operand.vmem [shape: f32[2,128], index: 4, kind: output, shape index: {1}]  }
   0x1   :  { %v1662_v0 = vld [vmem:[%s2315_s1 + $0x78] sm:$0xff]  ;;  %v1661_v2 = vld [vmem:[%s2315_s1 + $0x70] sm:$0xff]  ;;  %v1660_v6 = vld [vmem:[%s2315_s1 + $0x68] sm:$0xff] }
   0x2   :  { %v1670_v1 = vld [vmem:[%s2315_s1 + $0xb8] sm:$0xff]  ;;  %1719 = vmatpush.bf16.msra.mxu1 %v1662_v0  ;;  %130 = vmatpush.bf16.msra.mxu0 %v1662_v0  ;;  %v1669_v3 = vld [vmem:[%s2315_s1 + $0xb0] sm:$0xff]  ;;  %v1668_v7 = vld [vmem:[%s2315_s1 + $0xa8] sm:$0xff] }
   0x3   :  { %315 = vmatpush.bf16.msra.mxu2 %v1670_v1  ;;  %v1678_v4 = vld [vmem:[%s2315_s1 + $0xf8] sm:$0xff]  ;;  %v1677_v5 = vld [vmem:[%s2315_s1 + $0xf0] sm:$0xff]  ;;  %v1676_v8 = vld [vmem:[%s2315_s1 + $0xe8] sm:$0xff] }
   0x4   :  { %431 = vmatpush.bf16.msra.mxu3 %v1678_v4  ;;  %v1659_v9 = vld [vmem:[%s2315_s1 + $0x60] sm:$0xff]  ;;  %v1658_v12 = vld [vmem:[%s2315_s1 + $0x58] sm:$0xff]  ;;  %v1657_v15 = vld [vmem:[%s2315_s1 + $0x50] sm:$0xff] }
   0x5   :  { %v1667_v10 = vld [vmem:[%s2315_s1 + $0xa0] sm:$0xff]  ;;  %v1666_v13 = vld [vmem:[%s2315_s1 + $0x98] sm:$0xff]  ;;  %v1665_v16 = vld [vmem:[%s2315_s1 + $0x90] sm:$0xff] }
   0x6   :  { %1720 = vmatpush.bf16.msra.mxu1 %v1661_v2  ;;  %131 = vmatpush.bf16.msra.mxu0 %v1661_v2  ;;  %v1675_v11 = vld [vmem:[%s2315_s1 + $0xe0] sm:$0xff]  ;;  %v1674_v14 = vld [vmem:[%s2315_s1 + $0xd8] sm:$0xff]  ;;  %v1673_v17 = vld [vmem:[%s2315_s1 + $0xd0] sm:$0xff] }
   0x7   :  { %316 = vmatpush.bf16.msra.mxu2 %v1669_v3  ;;  %v1656_v18 = vld [vmem:[%s2315_s1 + $0x48] sm:$0xff]  ;;  %v1655_v20 = vld [vmem:[%s2315_s1 + $0x40] sm:$0xff]  ;;  %v1654_v24 = vld [vmem:[%s2315_s1 + $0x38] sm:$0xff] }
   0x8   :  { %432 = vmatpush.bf16.msra.mxu3 %v1677_v5  ;;  %v1664_v19 = vld [vmem:[%s2315_s1 + $0x88] sm:$0xff]  ;;  %v1663_v27 = vld [vmem:[%s2315_s1 + $0x80] sm:$0xff]  ;;  %v1686_v30 = vld [vmem:[%s2315_s1 + $0x138] sm:$0xff] }
   0x9   :  { %v1171_v21 = vld [vmem:[%s2316_s0 + $0x21] sm:$0xff]  ;;  %v1172_v22 = vld [vmem:[%s2316_s0 + $0x29] sm:$0xff]  ;;  %v1702_v31 = vld [vmem:[%s2315_s1 + $0x1b8] sm:$0xff] }
   0xa   :  { %1721 = vmatpush.bf16.msra.mxu1 %v1660_v6  ;;  %132 = vmatpush.bf16.msra.mxu0 %v1660_v6  ;;  %v1672_v23 = vld [vmem:[%s2315_s1 + $0xc8] sm:$0xff]  ;;  %v63_v32 = vpack.c.bf16 %v1172_v22, %v1171_v21  ;;  %v1671_v35 = vld [vmem:[%s2315_s1 + $0xc0] sm:$0xff]  ;;  %v1653_v38 = vld [vmem:[%s2315_s1 + $0x30] sm:$0xff] }
   0xb   :  { %317 = vmatpush.bf16.msra.mxu2 %v1668_v7  ;;  %v1167_v25 = vld [vmem:[%s2316_s0 + $0x1] sm:$0xff]  ;;  %v1168_v26 = vld [vmem:[%s2316_s0 + $0x9] sm:$0xff]  ;;  %v1710_v39 = vld [vmem:[%s2315_s1 + $0x1f8] sm:$0xff] }
   0xc   :  { %433 = vmatpush.bf16.msra.mxu3 %v1676_v8  ;;  %v1255_v28 = vld [vmem:[%s2316_s0 + $0x2] sm:$0xff]  ;;  %v1256_v29 = vld [vmem:[%s2316_s0 + $0xa] sm:$0xff]  ;;  %v61_v33 = vpack.c.bf16 %v1168_v26, %v1167_v25  ;;  %v1174_v52 = vld [vmem:[%s2316_s0 + $0x39] sm:$0xff] }
   0xd   :  { %v246_v34 = vpack.c.bf16 %v1256_v29, %v1255_v28  ;;  %v1311_v36 = vld [vmem:[%s2316_s0 + $0x6] sm:$0xff]  ;;  %v1872_v37 = vld [vmem:[%s2316_s0 + $0xe] sm:$0xff]  ;;  %v1170_v54 = vld [vmem:[%s2316_s0 + $0x19] sm:$0xff] }
   0xe   :  { %1722 = vmatpush.bf16.msra.mxu1 %v1659_v9  ;;  %133 = vmatpush.bf16.msra.mxu0 %v1659_v9  ;;  %v1685_v40 = vld [vmem:[%s2315_s1 + $0x130] sm:$0xff]  ;;  %v362_v42 = vpack.c.bf16 %v1872_v37, %v1311_v36  ;;  %v1652_v43 = vld [vmem:[%s2315_s1 + $0x28] sm:$0xff]  ;;  %v1651_v47 = vld [vmem:[%s2315_s1 + $0x20] sm:$0xff] }
   0xf   :  { %318 = vmatpush.bf16.msra.mxu2 %v1667_v10  ;;  %v1701_v41 = vld [vmem:[%s2315_s1 + $0x1b0] sm:$0xff]  ;;  %v1684_v45 = vld [vmem:[%s2315_s1 + $0x128] sm:$0xff]  ;;  %v1683_v49 = vld [vmem:[%s2315_s1 + $0x120] sm:$0xff] }
  0x10   :  { %434 = vmatpush.bf16.msra.mxu3 %v1675_v11  ;;  %v1709_v44 = vld [vmem:[%s2315_s1 + $0x1f0] sm:$0xff]  ;;  %v1700_v46 = vld [vmem:[%s2315_s1 + $0x1a8] sm:$0xff]  ;;  %v1699_v50 = vld [vmem:[%s2315_s1 + $0x1a0] sm:$0xff] }
  0x11   :  { %v1708_v48 = vld [vmem:[%s2315_s1 + $0x1e8] sm:$0xff]  ;;  %v1173_v51 = vld [vmem:[%s2316_s0 + $0x31] sm:$0xff]  ;;  %v1258_v57 = vld [vmem:[%s2316_s0 + $0x1a] sm:$0xff] }
  0x12   :  { %1723 = vmatpush.bf16.msra.mxu1 %v1658_v12  ;;  %134 = vmatpush.bf16.msra.mxu0 %v1658_v12  ;;  %v1169_v53 = vld [vmem:[%s2316_s0 + $0x11] sm:$0xff]  ;;  %v64_v59 = vpack.c.bf16 %v1174_v52, %v1173_v51  ;;  %v1943_v63 = vld [vmem:[%s2316_s0 + $0x1e] sm:$0xff]  ;;  %v1648_v4 = vld [vmem:[%s2315_s1 + $0x8] sm:$0xff] }
  0x13   :  { %319 = vmatpush.bf16.msra.mxu2 %v1666_v13  ;;  %v1650_v55 = vld [vmem:[%s2315_s1 + $0x18] sm:$0xff]  ;;  %v62_v60 = vpack.c.bf16 %v1170_v54, %v1169_v53  ;;  %v1649_v0 = vld [vmem:[%s2315_s1 + $0x10] sm:$0xff]  ;;  %v1707_v5 = vld [vmem:[%s2315_s1 + $0x1e0] sm:$0xff] }
  0x14   :  { %435 = vmatpush.bf16.msra.mxu3 %v1674_v14  ;;  %v1257_v56 = vld [vmem:[%s2316_s0 + $0x12] sm:$0xff]  ;;  %v1680_v6 = vld [vmem:[%s2315_s1 + $0x108] sm:$0xff]  ;;  %v1647_v9 = vld [vmem:[%s2315_s1] sm:$0xff] }
  0x15   :  { %v1682_v58 = vld [vmem:[%s2315_s1 + $0x118] sm:$0xff]  ;;  %v247_v61 = vpack.c.bf16 %v1258_v57, %v1257_v56  ;;  %v1681_v1 = vld [vmem:[%s2315_s1 + $0x110] sm:$0xff]  ;;  %v1679_v11 = vld [vmem:[%s2315_s1 + $0x100] sm:$0xff] }
  0x16   :  { %1724 = vmatpush.bf16.msra.mxu1 %v1657_v15  ;;  %135 = vmatpush.bf16.msra.mxu0 %v1657_v15  ;;  %v1938_v62 = vld [vmem:[%s2316_s0 + $0x16] sm:$0xff]  ;;  %v23_v12 = vld [vmem:[%s2316_s0] sm:$0xff]  ;;  %v1989_v14 = vld [vmem:[%s2316_s0 + $0x8] sm:$0xff] }
  0x17   :  { %320 = vmatpush.bf16.msra.mxu2 %v1665_v16  ;;  %v363_v2 = vpack.c.bf16 %v1943_v63, %v1938_v62  ;;  %v1698_v3 = vld [vmem:[%s2315_s1 + $0x198] sm:$0xff]  ;;  %v1697_v7 = vld [vmem:[%s2315_s1 + $0x190] sm:$0xff]  ;;  %v1367_v15 = vld [vmem:[%s2316_s0 + $0x7] sm:$0xff] }
  0x18   :  { %436 = vmatpush.bf16.msra.mxu3 %v1673_v17  ;;  %v1706_v8 = vld [vmem:[%s2315_s1 + $0x1d8] sm:$0xff]  ;;  %v1368_v16 = vld [vmem:[%s2316_s0 + $0xf] sm:$0xff]  ;;  %v1259_v17 = vld [vmem:[%s2316_s0 + $0x22] sm:$0xff] }
  0x19   :  { %v1694_v10 = vld [vmem:[%s2315_s1 + $0x178] sm:$0xff]  ;;  %v478_v21 = vpack.c.bf16 %v1368_v16, %v1367_v15  ;;  %v1717_v25 = vld [vmem:[%s2315_s1 + $0x230] sm:$0xff]  ;;  %v1692_v26 = vld [vmem:[%s2315_s1 + $0x168] sm:$0xff] }
  0x1a   :  { %1725 = vmatpush.bf16.msra.mxu1 %v1656_v18  ;;  %136 = vmatpush.bf16.msra.mxu0 %v1656_v18  ;;  %v1718_v13 = vld [vmem:[%s2315_s1 + $0x238] sm:$0xff]  ;;  %v1260_v18 = vld [vmem:[%s2316_s0 + $0x2a] sm:$0xff]  ;;  %v1703_v52 = vld [vmem:[%s2315_s1 + $0x1c0] sm:$0xff] }
  0x1b   :  { %321 = vmatpush.bf16.msra.mxu2 %v1664_v19  ;;  %v1693_v19 = vld [vmem:[%s2315_s1 + $0x170] sm:$0xff]  ;;  %v248_v22 = vpack.c.bf16 %v1260_v18, %v1259_v17  ;;  %v1716_v29 = vld [vmem:[%s2315_s1 + $0x228] sm:$0xff]  ;;  %v1714_v51 = vld [vmem:[%s2315_s1 + $0x218] sm:$0xff] }
  0x1c   :  { %437 = vmatpush.bf16.msra.mxu3 %v1672_v23  ;;  %v2010_v23 = vld [vmem:[%s2316_s0 + $0x26] sm:$0xff]  ;;  %v2052_v36 = vld [vmem:[%s2316_s0 + $0x10] sm:$0xff]  ;;  %v1537_v17 = vld [vmem:[%s2316_s0 + $0x1d] sm:$0xff] }
  0x1d   :  { %v1687_v53 = vld [vmem:[%s2315_s1 + $0x140] sm:$0xff]  ;;  %v1713_v54 = vld [vmem:[%s2315_s1 + $0x210] sm:$0xff]  ;;  %v2114_v57 = vld [vmem:[%s2316_s0 + $0x28] sm:$0xff] }
  0x1e   :  { %1726 = vmatpush.bf16.msra.mxu1 %v1655_v20  ;;  %137 = vmatpush.bf16.msra.mxu0 %v1655_v20  ;;  %v31_v20 = vpack.c.bf16 %v1989_v14, %v23_v12  ;;  %v2109_v56 = vld [vmem:[%s2316_s0 + $0x20] sm:$0xff] }
  0x1f   :  { %322 = vmatpush.bf16.msra.mxu2 %v1663_v27  ;;  %v1696_v27 = vld [vmem:[%s2315_s1 + $0x188] sm:$0xff] }
  0x20   :  { %438 = vmatpush.bf16.msra.mxu3 %v1671_v35  ;;  %v1690_v35 = vld [vmem:[%s2315_s1 + $0x158] sm:$0xff]  ;;  %v1482_v12 = vld [vmem:[%s2316_s0 + $0x24] sm:$0xff] }
  0x21   :  { %148 = vmatmul.bf16.vlgmr.msra.gmra.mxu1 %v63_v32  ;;  %138 = vmatmul.bf16.vlgmr.msra.gmra.mxu0 %v61_v33  ;;  %v1691_v32 = vld [vmem:[%s2315_s1 + $0x160] sm:$0xff] }
  0x22   :  { %207 = vmatpush.bf16.msrb.mxu1 %v1654_v24  ;;  %547 = vmatpush.bf16.msrb.mxu0 %v1686_v30  ;;  %v2015_v24 = vld [vmem:[%s2316_s0 + $0x2e] sm:$0xff]  ;;  %v1695_v30 = vld [vmem:[%s2315_s1 + $0x180] sm:$0xff] }
  0x23   :  { %779 = vmatpush.bf16.msrb.mxu2 %v1702_v31  ;;  %439 = vmatmul.bf16.vlgmr.msra.gmra.mxu3 %v362_v42  ;;  %v364_v28 = vpack.c.bf16 %v2015_v24, %v2010_v23  ;;  %v1705_v31 = vld [vmem:[%s2315_s1 + $0x1d0] sm:$0xff]  ;;  %v1715_v33 = vld [vmem:[%s2315_s1 + $0x220] sm:$0xff] }
  0x24   :  { %323 = vmatmul.bf16.vlgmr.msra.gmra.mxu2 %v246_v34  ;;  %895 = vmatpush.bf16.msrb.mxu3 %v1710_v39  ;;  %v1704_v34 = vld [vmem:[%s2315_s1 + $0x1c8] sm:$0xff]  ;;  %v1369_v39 = vld [vmem:[%s2316_s0 + $0x17] sm:$0xff] }
  0x25   :  { %v1262_v42 = vld [vmem:[%s2316_s0 + $0x3a] sm:$0xff]  ;;  %v1538_v18 = vld [vmem:[%s2316_s0 + $0x25] sm:$0xff] }
  0x26   :  { %208 = vmatpush.bf16.msrb.mxu1 %v1653_v38  ;;  %548 = vmatpush.bf16.msrb.mxu0 %v1685_v40  ;;  %v2057_v38 = vld [vmem:[%s2316_s0 + $0x18] sm:$0xff] }
  0x27   :  { %780 = vmatpush.bf16.msrb.mxu2 %v1701_v41  ;;  %v1370_v40 = vld [vmem:[%s2316_s0 + $0x1f] sm:$0xff]  ;;  %v1261_v41 = vld [vmem:[%s2316_s0 + $0x32] sm:$0xff] }
  0x28   :  { %896 = vmatpush.bf16.msrb.mxu3 %v1709_v44  ;;  %v32_v44 = vpack.c.bf16 %v2057_v38, %v2052_v36 }
  0x2a   :  { %209 = vmatpush.bf16.msrb.mxu1 %v1652_v43  ;;  %549 = vmatpush.bf16.msrb.mxu0 %v1684_v45  ;;  %v1689_v43 = vld [vmem:[%s2315_s1 + $0x150] sm:$0xff]  ;;  %v479_v45 = vpack.c.bf16 %v1370_v40, %v1369_v39  ;;  %v1541_v39 = vld [vmem:[%s2316_s0 + $0x3d] sm:$0xff]  ;;  %v1542_v40 = vld [vmem:[%s2316_s0 + $0x45] sm:$0xff] }
  0x2b   :  { %781 = vmatpush.bf16.msrb.mxu2 %v1700_v46  ;;  %v249_v46 = vpack.c.bf16 %v1262_v42, %v1261_v41  ;;  %v829_v41 = vpack.c.bf16 %v1542_v40, %v1541_v39 }
  0x2c   :  { %897 = vmatpush.bf16.msrb.mxu3 %v1708_v48  ;;  %v2084_v48 = vld [vmem:[%s2316_s0 + $0x3e] sm:$0xff] }
  0x2e   :  { %210 = vmatpush.bf16.msrb.mxu1 %v1651_v47  ;;  %550 = vmatpush.bf16.msrb.mxu0 %v1683_v49  ;;  %v2079_v47 = vld [vmem:[%s2316_s0 + $0x36] sm:$0xff] }
  0x2f   :  { %782 = vmatpush.bf16.msrb.mxu2 %v1699_v50  ;;  %v365_v49 = vpack.c.bf16 %v2084_v48, %v2079_v47  ;;  %v1688_v50 = vld [vmem:[%s2315_s1 + $0x148] sm:$0xff] }
  0x30   :  { %898 = vmatpush.bf16.msrb.mxu3 %v1707_v5 }
  0x31   :  { %153 = vmatmul.bf16.gmra.mxu1 %v64_v59  ;;  %143 = vmatmul.bf16.gmra.mxu0 %v62_v60  ;;  %v1372_v59 = vld [vmem:[%s2316_s0 + $0x2f] sm:$0xff] }
  0x32   :  { %211 = vmatpush.bf16.msrb.mxu1 %v1650_v55  ;;  %551 = vmatpush.bf16.msrb.mxu0 %v1682_v58  ;;  %v1712_v55 = vld [vmem:[%s2315_s1 + $0x208] sm:$0xff] }
  0x33   :  { %783 = vmatpush.bf16.msrb.mxu2 %v1698_v3  ;;  %444 = vmatmul.bf16.gmra.mxu3 %v363_v2  ;;  %v1371_v58 = vld [vmem:[%s2316_s0 + $0x27] sm:$0xff] }
  0x34   :  { %328 = vmatmul.bf16.gmra.mxu2 %v247_v61  ;;  %899 = vmatpush.bf16.msrb.mxu3 %v1706_v8  ;;  %v1479_v60 = vld [vmem:[%s2316_s0 + $0xc] sm:$0xff]  ;;  %v1480_v61 = vld [vmem:[%s2316_s0 + $0x14] sm:$0xff] }
  0x35   :  { %v710_v2 = vpack.c.bf16 %v1480_v61, %v1479_v60  ;;  %v1535_v3 = vld [vmem:[%s2316_s0 + $0xd] sm:$0xff]  ;;  %v2147_v8 = vld [vmem:[%s2316_s0 + $0x38] sm:$0xff] }
  0x36   :  { %212 = vmatpush.bf16.msrb.mxu1 %v1649_v0  ;;  %552 = vmatpush.bf16.msrb.mxu0 %v1681_v1  ;;  %v33_v0 = vpack.c.bf16 %v2114_v57, %v2109_v56  ;;  %v480_v1 = vpack.c.bf16 %v1372_v59, %v1371_v58 }
  0x37   :  { %784 = vmatpush.bf16.msrb.mxu2 %v1697_v7  ;;  %v2142_v7 = vld [vmem:[%s2316_s0 + $0x30] sm:$0xff] }
  0x38   :  { %900 = vmatpush.bf16.msrb.mxu3 %v1705_v31  ;;  %v1540_v31 = vld [vmem:[%s2316_s0 + $0x35] sm:$0xff]  ;;  %v596_v42 = vpack.c.bf16 %v2142_v7, %v2114_v57  ;;  %v1061_v57 = vld [vmem:[%s2317_s2 + $0x28] sm:$0xff] }
  0x3a   :  { %213 = vmatpush.bf16.msrb.mxu1 %v1648_v4  ;;  %553 = vmatpush.bf16.msrb.mxu0 %v1680_v6  ;;  %v1536_v4 = vld [vmem:[%s2316_s0 + $0x15] sm:$0xff]  ;;  %v1711_v6 = vld [vmem:[%s2315_s1 + $0x200] sm:$0xff] }
  0x3b   :  { %785 = vmatpush.bf16.msrb.mxu2 %v1696_v27  ;;  %v826_v5 = vpack.c.bf16 %v1536_v4, %v1535_v3  ;;  %v594_v27 = vpack.c.bf16 %v2052_v36, %v1989_v14  ;;  %v1486_v14 = vld [vmem:[%s2316_s0 + $0x44] sm:$0xff] }
  0x3c   :  { %901 = vmatpush.bf16.msrb.mxu3 %v1704_v34  ;;  %v595_v34 = vpack.c.bf16 %v2109_v56, %v2057_v38  ;;  %v1062_v38 = vld [vmem:[%s2317_s2 + $0x30] sm:$0xff] }
  0x3e   :  { %214 = vmatpush.bf16.msrb.mxu1 %v1647_v9  ;;  %554 = vmatpush.bf16.msrb.mxu0 %v1679_v11  ;;  %v1373_v9 = vld [vmem:[%s2316_s0 + $0x37] sm:$0xff] }
  0x3f   :  { %786 = vmatpush.bf16.msrb.mxu2 %v1695_v30  ;;  %v1481_v11 = vld [vmem:[%s2316_s0 + $0x1c] sm:$0xff]  ;;  %v1539_v30 = vld [vmem:[%s2316_s0 + $0x2d] sm:$0xff] }
  0x40   :  { %902 = vmatpush.bf16.msrb.mxu3 %v1703_v52  ;;  %v711_v16 = vpack.c.bf16 %v1482_v12, %v1481_v11 }
  0x41   :  { %215 = vmatmul.bf16.vlgmr.msrb.gmra.mxu1 %v31_v20  ;;  %555 = vmatmul.bf16.vlgmr.msrb.gmra.mxu0 %v478_v21  ;;  %v1056_v20 = vld [vmem:[%s2317_s2] sm:$0xff]  ;;  %v1740_v21 = vmov 0  }
  0x42   :  { %663 = vmatpush.bf16.msra.mxu1 %v1694_v10  ;;  %1011 = vmatpush.bf16.msra.mxu0 %v1718_v13  ;;  %v1374_v10 = vld [vmem:[%s2316_s0 + $0x3f] sm:$0xff] }
  0x43   :  { %449 = vmatmul.bf16.gmra.mxu3 %v364_v28  ;;  %1727 = vmatpush.bf16.msra.mxu2 %v1718_v13  ;;  %v34_v13 = vpack.c.bf16 %v2147_v8, %v2142_v7  ;;  %v481_v15 = vpack.c.bf16 %v1374_v10, %v1373_v9  ;;  %v942_v28 = vpack.c.bf16 %v1938_v62, %v1872_v37  ;;  %v1059_v37 = vld [vmem:[%s2317_s2 + $0x18] sm:$0xff] }
  0x44   :  { %333 = vmatmul.bf16.gmra.mxu2 %v248_v22  ;;  %1737 = vset.pattern.permute.xlu0 %v1740_v21  ;;  %v1057_v22 = vld [vmem:[%s2317_s2 + $0x8] sm:$0xff]  ;;  %v1485_v62 = vld [vmem:[%s2316_s0 + $0x3c] sm:$0xff] }
  0x45   :  { %1066 = vperm.xlu0 %1737, %v1056_v20   ;;  %1738 = vset.pattern.permute.xlu1 %v1740_v21  ;;  %v713_v36 = vpack.c.bf16 %v1486_v14, %v1485_v62 }
  0x46   :  { %664 = vmatpush.bf16.msra.mxu1 %v1693_v19  ;;  %1012 = vmatpush.bf16.msra.mxu0 %v1717_v25  ;;  %v827_v19 = vpack.c.bf16 %v1538_v18, %v1537_v17 }
  0x47   :  { %1728 = vmatpush.bf16.msra.mxu2 %v1717_v25  ;;  %1739 = vset.pattern.permute.xlu2 %v1740_v21  ;;  %v1483_v25 = vld [vmem:[%s2316_s0 + $0x2c] sm:$0xff] }
  0x4a   :  { %665 = vmatpush.bf16.msra.mxu1 %v1692_v26  ;;  %1013 = vmatpush.bf16.msra.mxu0 %v1716_v29  ;;  %v1484_v26 = vld [vmem:[%s2316_s0 + $0x34] sm:$0xff] }
  0x4b   :  { %1729 = vmatpush.bf16.msra.mxu2 %v1716_v29  ;;  %v712_v29 = vpack.c.bf16 %v1484_v26, %v1483_v25 }
  0x4d   :  { %1071 = vperm.xlu0 %1737, %v1057_v22  }
  0x4e   :  { %666 = vmatpush.bf16.msra.mxu1 %v1691_v32  ;;  %1014 = vmatpush.bf16.msra.mxu0 %v1715_v33  ;;  %v828_v32 = vpack.c.bf16 %v1540_v31, %v1539_v30 }
  0x4f   :  { %1730 = vmatpush.bf16.msra.mxu2 %v1715_v33  ;;  %v1058_v33 = vld [vmem:[%s2317_s2 + $0x10] sm:$0xff] }
  0x50   :  { %1076 = vperm.xlu1 %1738, %v1058_v33  }
  0x51   :  { %220 = vmatmul.bf16.gmra.mxu1 %v32_v44  ;;  %560 = vmatmul.bf16.gmra.mxu0 %v479_v45 }
  0x52   :  { %667 = vmatpush.bf16.msra.mxu1 %v1690_v35  ;;  %1015 = vmatpush.bf16.msra.mxu0 %v1714_v51  ;;  %v943_v35 = vpack.c.bf16 %v2010_v23, %v1943_v63  ;;  %v1063_v63 = vld [vmem:[%s2317_s2 + $0x38] sm:$0xff]  ;;  %v1598_v23 = vld [vmem:[%s2316_s0 + $0x46] sm:$0xff] }
  0x53   :  { %454 = vmatmul.bf16.gmra.mxu3 %v365_v49  ;;  %1731 = vmatpush.bf16.msra.mxu2 %v1714_v51 }
  0x54   :  { %338 = vmatmul.bf16.gmra.mxu2 %v249_v46  ;;  %v945_v46 = vpack.c.bf16 %v1598_v23, %v2084_v48 }
  0x55   :  { %1096 = vperm.xlu0 %1737, %v1062_v38  }
  0x56   :  { %668 = vmatpush.bf16.msra.mxu1 %v1689_v43  ;;  %1016 = vmatpush.bf16.msra.mxu0 %v1713_v54  ;;  %v944_v43 = vpack.c.bf16 %v2079_v47, %v2015_v24 }
  0x57   :  { %1732 = vmatpush.bf16.msra.mxu2 %v1713_v54  ;;  %v1430_v54 = vld [vmem:[%s2316_s0 + $0x40] sm:$0xff] }
  0x58   :  { %1081 = vperm.xlu1 %1738, %v1059_v37   ;;  %v597_v24 = vpack.c.bf16 %v1430_v54, %v2147_v8 }
  0x5a   :  { %669 = vmatpush.bf16.msra.mxu1 %v1688_v50  ;;  %1017 = vmatpush.bf16.msra.mxu0 %v1712_v55 }
  0x5b   :  { %1733 = vmatpush.bf16.msra.mxu2 %v1712_v55 }
  0x5e   :  { %670 = vmatpush.bf16.msra.mxu1 %v1687_v53  ;;  %1018 = vmatpush.bf16.msra.mxu0 %v1711_v6  ;;  %v1060_v53 = vld [vmem:[%s2317_s2 + $0x20] sm:$0xff] }
  0x5f   :  { %1734 = vmatpush.bf16.msra.mxu2 %v1711_v6  ;;  %1086 = vperm.xlu2 %1739, %v1060_v53  }
  0x60   :  { %1101 = vperm.xlu1 %1738, %v1063_v63  }
  0x61   :  { %225 = vmatmul.bf16.gmra.mxu1 %v33_v0  ;;  %565 = vmatmul.bf16.gmra.mxu0 %v480_v1 }
  0x63   :  { %903 = vmatmul.bf16.vlgmr.msrb.gmra.mxu3 %v826_v5 }
  0x64   :  { %787 = vmatmul.bf16.vlgmr.msrb.gmra.mxu2 %v710_v2 }
  0x67   :  { %1091 = vperm.xlu2 %1739, %v1061_v57  }
  0x71   :  { %230 = vmatmul.bf16.gmra.mxu1 %v34_v13  ;;  %570 = vmatmul.bf16.gmra.mxu0 %v481_v15 }
  0x73   :  { %908 = vmatmul.bf16.gmra.mxu3 %v827_v19 }
  0x74   :  { %792 = vmatmul.bf16.gmra.mxu2 %v711_v16 }
  0x81   :  { %671 = vmatmul.bf16.vlgmr.msra.gmra.mxu1 %v594_v27  ;;  %1019 = vmatmul.bf16.vlgmr.msra.gmra.mxu0 %v942_v28 }
  0x83   :  { %913 = vmatmul.bf16.gmra.mxu3 %v828_v32 }
  0x84   :  { %797 = vmatmul.bf16.gmra.mxu2 %v712_v29 }
  0x91   :  { %676 = vmatmul.bf16.gmra.mxu1 %v595_v34  ;;  %1024 = vmatmul.bf16.gmra.mxu0 %v943_v35 }
  0x93   :  { %918 = vmatmul.bf16.gmra.mxu3 %v829_v41 }
  0x94   :  { %802 = vmatmul.bf16.gmra.mxu2 %v713_v36 }
  0x9e   :  { %v149_v44 = vpop.f32.mrf.mxu1  ;;  %v139_v45 = vpop.f32.mrf.mxu0 }
  0xa1   :  { %681 = vmatmul.bf16.gmra.mxu1 %v596_v42  ;;  %1029 = vmatmul.bf16.gmra.mxu0 %v944_v43 }
  0xa4   :  { %1034 = vmatmul.bf16.vlgmr.msra.gmra.mxu2 %v945_v46 }
  0xa6   :  { %v151_v50 = vpop.f32.mrf.mxu1  ;;  %v141_v51 = vpop.f32.mrf.mxu0 }
  0xa7   :  { %v324_v49 = vpop.f32.mrf.mxu2  ;;  %v440_v52 = vpop.f32.mrf.mxu3 }
  0xae   :  { %v154_v48 = vpop.f32.mrf.mxu1  ;;  %v144_v55 = vpop.f32.mrf.mxu0 }
  0xaf   :  { %v326_v47 = vpop.f32.mrf.mxu2  ;;  %v442_v56 = vpop.f32.mrf.mxu3 }
  0xb1   :  { %686 = vmatmul.bf16.gmra.mxu1 %v597_v24 }
  0xb6   :  { %v156_v59 = vpop.f32.mrf.mxu1  ;;  %v146_v60 = vpop.f32.mrf.mxu0 }
  0xb7   :  { %v329_v58 = vpop.f32.mrf.mxu2  ;;  %v2237_v61 = vpop.f32.mrf.mxu3 }
  0xbe   :  { %v216_v1 = vpop.f32.mrf.mxu1  ;;  %v556_v2 = vpop.f32.mrf.mxu0 }
  0xbf   :  { %v331_v0 = vpop.f32.mrf.mxu2  ;;  %v217_v3 = vadd.f32 %v216_v1, %v139_v45  ;;  %v2239_v5 = vpop.f32.mrf.mxu3 }
  0xc1   :  { %v344_v4 = vadd.f32 %v324_v49, %v217_v3 }
  0xc6   :  { %v218_v7 = vpop.f32.mrf.mxu1  ;;  %v558_v8 = vpop.f32.mrf.mxu0 }
  0xc7   :  { %v334_v6 = vpop.f32.mrf.mxu2  ;;  %v219_v9 = vadd.f32 %v218_v7, %v141_v51  ;;  %v2241_v11 = vpop.f32.mrf.mxu3 }
  0xc9   :  { %v345_v10 = vadd.f32 %v326_v47, %v219_v9 }
  0xcb   :  { %v461_v24 = vadd.f32 %v442_v56, %v345_v10 }
  0xcd   :  { %v577_v57 = vadd.f32 %v558_v8, %v461_v24 }
  0xce   :  { %v221_v13 = vpop.f32.mrf.mxu1  ;;  %v561_v15 = vpop.f32.mrf.mxu0 }
  0xcf   :  { %v336_v12 = vpop.f32.mrf.mxu2  ;;  %v222_v16 = vadd.f32 %v221_v13, %v144_v55  ;;  %v2243_v19 = vpop.f32.mrf.mxu3 }
  0xd1   :  { %v346_v17 = vadd.f32 %v329_v58, %v222_v16 }
  0xd3   :  { %v462_v1 = vadd.f32 %v2237_v61, %v346_v17 }
  0xd5   :  { %v578_v56 = vadd.f32 %v561_v15, %v462_v1 }
  0xd6   :  { %v223_v20 = vpop.f32.mrf.mxu1  ;;  %v2245_v21 = vpop.f32.mrf.mxu0 }
  0xd7   :  { %v339_v18 = vpop.f32.mrf.mxu2  ;;  %v224_v22 = vadd.f32 %v223_v20, %v146_v60  ;;  %v2249_v30 = vpop.f32.mrf.mxu3 }
  0xd9   :  { %v347_v25 = vadd.f32 %v331_v0, %v224_v22 }
  0xdb   :  { %v463_v16 = vadd.f32 %v2239_v5, %v347_v25 }
  0xde   :  { %v226_v27 = vpop.f32.mrf.mxu1  ;;  %v2247_v28 = vpop.f32.mrf.mxu0 }
  0xdf   :  { %v341_v26 = vpop.f32.mrf.mxu2  ;;  %v227_v29 = vadd.f32 %v226_v27, %v149_v44  ;;  %v2257_v34 = vpop.f32.mrf.mxu3  ;;  %v460_v44 = vadd.f32 %v440_v52, %v344_v4 }
  0xe1   :  { %v2251_v31 = vadd.f32 %v334_v6, %v227_v29  ;;  %v576_v46 = vadd.f32 %v556_v2, %v460_v44 }
  0xe3   :  { %v464_v25 = vadd.f32 %v2241_v11, %v2251_v31 }
  0xe6   :  { %v228_v33 = vpop.f32.mrf.mxu1  ;;  %v2253_v37 = vpop.f32.mrf.mxu0 }
  0xe7   :  { %v788_v32 = vpop.f32.mrf.mxu2  ;;  %v229_v62 = vadd.f32 %v228_v33, %v151_v50  ;;  %v904_v38 = vpop.f32.mrf.mxu3 }
  0xe9   :  { %v2255_v14 = vadd.f32 %v336_v12, %v229_v62 }
  0xeb   :  { %v465_v24 = vadd.f32 %v2243_v19, %v2255_v14 }
  0xee   :  { %v231_v36 = vpop.f32.mrf.mxu1  ;;  %v2259_v39 = vpop.f32.mrf.mxu0 }
  0xef   :  { %v790_v35 = vpop.f32.mrf.mxu2  ;;  %v232_v40 = vadd.f32 %v231_v36, %v154_v48  ;;  %v906_v49 = vpop.f32.mrf.mxu3 }
  0xf0   :  { %v1067_v48 = vpop.permute.xlu0 %1066 }
  0xf1   :  { %v2261_v41 = vadd.f32 %v339_v18, %v232_v40 }
  0xf3   :  { %v466_v19 = vadd.f32 %v2249_v30, %v2261_v41 }
  0xf6   :  { %v233_v23 = vpop.f32.mrf.mxu1  ;;  %v2263_v42 = vpop.f32.mrf.mxu0 }
  0xf7   :  { %v793_v63 = vpop.f32.mrf.mxu2  ;;  %v234_v43 = vadd.f32 %v233_v23, %v156_v59  ;;  %v909_v59 = vpop.f32.mrf.mxu3 }
  0xf8   :  { %v1072_v6 = vpop.permute.xlu0 %1071 }
  0xf9   :  { %v2265_v45 = vadd.f32 %v341_v26, %v234_v43  ;;  %v1077_v26 = vpop.permute.xlu1 %1076 }
  0xfb   :  { %v467_v30 = vadd.f32 %v2257_v34, %v2265_v45 }
  0xfe   :  { %v672_v50 = vpop.f32.mrf.mxu1  ;;  %v1020_v51 = vpop.f32.mrf.mxu0 }
  0xff   :  { %v692_v53 = vadd.f32 %v672_v50, %v576_v46  ;;  %v795_v54 = vpop.f32.mrf.mxu2  ;;  %v911_v22 = vpop.f32.mrf.mxu3 }
 0x101   :  { %v808_v47 = vadd.f32 %v788_v32, %v692_v53  ;;  %v579_v32 = vadd.f32 %v2245_v21, %v463_v16  ;;  %v1082_v46 = vpop.permute.xlu1 %1081  ;;  %v1741_v21 = vmov 0.0  }
 0x102   :  { %21 = vst [vmem:[%s2319_s4] sm:$0x3] %v1741_v21 }
 0x103   :  { %v924_v55 = vadd.f32 %v904_v38, %v808_v47 }
 0x105   :  { %v1040_v58 = vadd.f32 %v1020_v51, %v924_v55 }
 0x106   :  { %v674_v60 = vpop.f32.mrf.mxu1  ;;  %v1022_v0 = vpop.f32.mrf.mxu0 }
 0x107   :  { %1048 = vst [vmem:[%s2318_s3] sm:$0xff] %v1040_v58  ;;  %v693_v52 = vadd.f32 %v674_v60, %v577_v57  ;;  %v798_v3 = vpop.f32.mrf.mxu2  ;;  %v1104_v7 = vmul.f32 %v1067_v48, %v1040_v58  ;;  %v914_v44 = vpop.f32.mrf.mxu3 }
 0x108   :  { %v1087_v57 = vpop.permute.xlu2 %1086 }
 0x109   :  { %v809_v2 = vadd.f32 %v790_v35, %v693_v52  ;;  %v1126_v18 = vmul.f32 %v1104_v7, %v1040_v58 }
 0x10b   :  { %v925_v4 = vadd.f32 %v906_v49, %v809_v2  ;;  %v580_v49 = vadd.f32 %v2247_v28, %v464_v25  ;;  %v581_v28 = vadd.f32 %v2253_v37, %v465_v24  ;;  %v1112_v24 = vld [vmem:[%s2319_s4] sm:$0x3] }
 0x10d   :  { %v1041_v9 = vadd.f32 %v1022_v0, %v925_v4 }
 0x10e   :  { %v677_v10 = vpop.f32.mrf.mxu1  ;;  %v1025_v8 = vpop.f32.mrf.mxu0 }
 0x10f   :  { %1049 = vst [vmem:[%s2318_s3 + $0x8] sm:$0xff] %v1041_v9  ;;  %v1105_v12 = vmul.f32 %v1072_v6, %v1041_v9  ;;  %v694_v13 = vadd.f32 %v677_v10, %v578_v56  ;;  %v800_v29 = vpop.f32.mrf.mxu2  ;;  %v916_v52 = vpop.f32.mrf.mxu3  ;;  %v582_v10 = vadd.f32 %v2259_v39, %v466_v19  ;;  %v583_v39 = vadd.f32 %v2263_v42, %v467_v30 }
 0x110   :  { %v1092_v37 = vpop.permute.xlu2 %1091 }
 0x111   :  { %v1113_v20 = vadd.f32 %v1105_v12, %v1104_v7  ;;  %v1127_v61 = vmul.f32 %v1105_v12, %v1041_v9  ;;  %v810_v17 = vadd.f32 %v793_v63, %v694_v13 }
 0x113   :  { %v1134_v27 = vadd.f32 %v1127_v61, %v1126_v18  ;;  %v926_v15 = vadd.f32 %v909_v59, %v810_v17 }
 0x115   :  { %v1042_v33 = vadd.f32 %v1025_v8, %v926_v15  ;;  %v1097_v15 = vpop.permute.xlu0 %1096 }
 0x116   :  { %v679_v62 = vpop.f32.mrf.mxu1  ;;  %v1027_v35 = vpop.f32.mrf.mxu0 }
 0x117   :  { %1050 = vst [vmem:[%s2318_s3 + $0x10] sm:$0xff] %v1042_v33  ;;  %v1106_v36 = vmul.f32 %v1077_v26, %v1042_v33  ;;  %v695_v5 = vadd.f32 %v679_v62, %v579_v32  ;;  %v803_v51 = vpop.f32.mrf.mxu2  ;;  %v919_v18 = vpop.f32.mrf.mxu3 }
 0x119   :  { %v1114_v40 = vadd.f32 %v1113_v20, %v1106_v36  ;;  %v1128_v38 = vmul.f32 %v1106_v36, %v1042_v33  ;;  %v811_v63 = vadd.f32 %v795_v54, %v695_v5 }
 0x11b   :  { %v1135_v23 = vadd.f32 %v1134_v27, %v1128_v38  ;;  %v927_v43 = vadd.f32 %v911_v22, %v811_v63  ;;  %v1102_v38 = vpop.permute.xlu1 %1101 }
 0x11d   :  { %v1043_v50 = vadd.f32 %v1027_v35, %v927_v43 }
 0x11e   :  { %v682_v53 = vpop.f32.mrf.mxu1  ;;  %v1030_v54 = vpop.f32.mrf.mxu0 }
 0x11f   :  { %1051 = vst [vmem:[%s2318_s3 + $0x18] sm:$0xff] %v1043_v50  ;;  %v1107_v11 = vmul.f32 %v1082_v46, %v1043_v50  ;;  %v696_v31 = vadd.f32 %v682_v53, %v580_v49  ;;  %v805_v4 = vpop.f32.mrf.mxu2  ;;  %v921_v45 = vpop.f32.mrf.mxu3 }
 0x121   :  { %v1115_v47 = vadd.f32 %v1114_v40, %v1107_v11  ;;  %v1129_v48 = vmul.f32 %v1107_v11, %v1043_v50  ;;  %v812_v55 = vadd.f32 %v798_v3, %v696_v31 }
 0x123   :  { %v1136_v58 = vadd.f32 %v1135_v23, %v1129_v48  ;;  %v928_v60 = vadd.f32 %v914_v44, %v812_v55 }
 0x125   :  { %v1044_v0 = vadd.f32 %v1030_v54, %v928_v60 }
 0x126   :  { %v684_v59 = vpop.f32.mrf.mxu1  ;;  %v1032_v56 = vpop.f32.mrf.mxu0 }
 0x127   :  { %1052 = vst [vmem:[%s2318_s3 + $0x20] sm:$0xff] %v1044_v0  ;;  %v1108_v1 = vmul.f32 %v1087_v57, %v1044_v0  ;;  %v697_v2 = vadd.f32 %v684_v59, %v581_v28  ;;  %v1035_v17 = vpop.f32.mrf.mxu2 }
 0x129   :  { %v1116_v14 = vadd.f32 %v1115_v47, %v1108_v1  ;;  %v1130_v3 = vmul.f32 %v1108_v1, %v1044_v0  ;;  %v813_v6 = vadd.f32 %v800_v29, %v697_v2 }
 0x12b   :  { %v1137_v7 = vadd.f32 %v1136_v58, %v1130_v3  ;;  %v929_v9 = vadd.f32 %v916_v52, %v813_v6 }
 0x12d   :  { %v1045_v8 = vadd.f32 %v1032_v56, %v929_v9 }
 0x12e   :  { %v687_v12 = vpop.f32.mrf.mxu1 }
 0x12f   :  { %1053 = vst [vmem:[%s2318_s3 + $0x28] sm:$0xff] %v1045_v8  ;;  %v1109_v13 = vmul.f32 %v1092_v37, %v1045_v8  ;;  %v698_v16 = vadd.f32 %v687_v12, %v582_v10  ;;  %v1037_v25 = vpop.f32.mrf.mxu2 }
 0x131   :  { %v1117_v41 = vadd.f32 %v1116_v14, %v1109_v13  ;;  %v1131_v20 = vmul.f32 %v1109_v13, %v1045_v8  ;;  %v814_v61 = vadd.f32 %v803_v51, %v698_v16 }
 0x133   :  { %v1138_v22 = vadd.f32 %v1137_v7, %v1131_v20  ;;  %v930_v26 = vadd.f32 %v919_v18, %v814_v61 }
 0x135   :  { %v1046_v27 = vadd.f32 %v1035_v17, %v930_v26 }
 0x136   :  { %v689_v29 = vpop.f32.mrf.mxu1 }
 0x137   :  { %1054 = vst [vmem:[%s2318_s3 + $0x30] sm:$0xff] %v1046_v27  ;;  %v1110_v32 = vmul.f32 %v1097_v15, %v1046_v27  ;;  %v699_v33 = vadd.f32 %v689_v29, %v583_v39 }
 0x139   :  { %v1118_v62 = vadd.f32 %v1117_v41, %v1110_v32  ;;  %v1132_v35 = vmul.f32 %v1110_v32, %v1046_v27  ;;  %v815_v34 = vadd.f32 %v805_v4, %v699_v33 }
 0x13b   :  { %v1139_v36 = vadd.f32 %v1138_v22, %v1132_v35  ;;  %v931_v5 = vadd.f32 %v921_v45, %v815_v34 }
 0x13d   :  { %v1047_v40 = vadd.f32 %v1037_v25, %v931_v5 }
 0x13f   :  { %1055 = vst [vmem:[%s2318_s3 + $0x38] sm:$0xff] %v1047_v40  ;;  %v1111_v42 = vmul.f32 %v1102_v38, %v1047_v40 }
 0x141   :  { %v1119_v63 = vadd.f32 %v1118_v62, %v1111_v42  ;;  %v1133_v23 = vmul.f32 %v1111_v42, %v1047_v40 }
 0x143   :  { %v1120_v43 = vrot.slane %v1119_v63, 4  ;;  %v1140_v44 = vadd.f32 %v1139_v36, %v1133_v23 }
 0x145   :  { %v1121_v46 = vadd.f32 %v1120_v43, %v1119_v63  ;;  %v1141_v21 = vrot.slane %v1140_v44, 4 }
 0x147   :  { %v1122_v49 = vrot.slane %v1121_v46, 2  ;;  %v1142_v50 = vadd.f32 %v1141_v21, %v1140_v44 }
 0x149   :  { %v1123_v51 = vadd.f32 %v1122_v49, %v1121_v46  ;;  %v1143_v53 = vrot.slane %v1142_v50, 2 }
 0x14b   :  { %v1124_v11 = vrot.slane %v1123_v51, 1  ;;  %v1144_v31 = vadd.f32 %v1143_v53, %v1142_v50 }
 0x14d   :  { %v1145_v54 = vrot.slane %v1144_v31, 1  ;;  %v1125_v47 = vadd.f32 %v1124_v11, %v1123_v51 }
 0x14f   :  { %v1146_v48 = vadd.f32 %v1145_v54, %v1144_v31 }
 0x151   :  { %v1148_v55 = vsel %vm1147_vm0, %v1125_v47, %v1146_v48 }
 0x152   :  { %v1149_v57 = vadd.f32 %v1148_v55, %v1112_v24 }
 0x154   :  { %1150 = vst [vmem:[%s2319_s4] sm:$0x3] %v1149_v57 }

// kernel: resnet_small_forward.40
= control target key start
LH: loop header
LB: loop body
LE: loop exit
PB: predicated region body
PF: predicated region fallthrough
CT: control target
= control target key end

     0   :  { %s130_s0 = inlined_call_operand.vmem [shape: f32[32,128], index: 0, kind: input, shape index: {}]   ;;  %s131_s2 = inlined_call_operand.vmem [shape: f32[1,128], index: 2, kind: input, shape index: {}]   ;;  %s132_s3 = inlined_call_operand.vmem [shape: f32[1,128], index: 3, kind: input, shape index: {}]   ;;  %s133_s1 = inlined_call_operand.vmem [shape: f32[32,128], index: 1, kind: input, shape index: {}]   ;;  %s134_s4 = inlined_call_operand.vmem [shape: f32[32,128], index: 4, kind: output, shape index: {}]  }
   0x1   :  { %v17_v0 = vld [vmem:[%s130_s0] sm:$0xff]  ;;  %v18_v4 = vld [vmem:[%s130_s0 + $0x8] sm:$0xff]  ;;  %v19_v5 = vld [vmem:[%s130_s0 + $0x10] sm:$0xff] }
   0x2   :  { %v61_v1 = vld [vmem:[%s131_s2] ss:$0 sm:$0xff]  ;;  %v20_v8 = vld [vmem:[%s130_s0 + $0x18] sm:$0xff]  ;;  %v42_v15 = vld [vmem:[%s133_s1 + $0x8] sm:$0xff] }
   0x3   :  { %v62_v2 = vld [vmem:[%s132_s3] ss:$0 sm:$0xff]  ;;  %v25_v3 = vmul.f32 %v61_v1, %v17_v0  ;;  %v26_v6 = vmul.f32 %v61_v1, %v18_v4  ;;  %v27_v7 = vmul.f32 %v61_v1, %v19_v5  ;;  %v28_v10 = vmul.f32 %v61_v1, %v20_v8  ;;  %v43_v16 = vld [vmem:[%s133_s1 + $0x10] sm:$0xff]  ;;  %v44_v20 = vld [vmem:[%s133_s1 + $0x18] sm:$0xff] }
   0x4   :  { %v41_v11 = vld [vmem:[%s133_s1] sm:$0xff] }
   0x5   :  { %v33_v9 = vadd.f32 %v62_v2, %v25_v3  ;;  %v34_v12 = vadd.f32 %v62_v2, %v26_v6  ;;  %v35_v13 = vadd.f32 %v62_v2, %v27_v7  ;;  %v36_v17 = vadd.f32 %v62_v2, %v28_v10 }
   0x7   :  { %v37_v14 = vmax.f32 %v33_v9, 0.0  ;;  %v38_v18 = vmax.f32 %v34_v12, 0.0  ;;  %v39_v19 = vmax.f32 %v35_v13, 0.0  ;;  %v40_v22 = vmax.f32 %v36_v17, 0.0 }
   0x9   :  { %v45_v21 = vadd.f32 %v41_v11, %v37_v14  ;;  %v46_v23 = vadd.f32 %v42_v15, %v38_v18  ;;  %v47_v24 = vadd.f32 %v43_v16, %v39_v19  ;;  %v48_v26 = vadd.f32 %v44_v20, %v40_v22 }
   0xb   :  { %v49_v25 = vmax.f32 %v45_v21, 0.0  ;;  %v50_v27 = vmax.f32 %v46_v23, 0.0  ;;  %v51_v28 = vmax.f32 %v47_v24, 0.0  ;;  %v52_v29 = vmax.f32 %v48_v26, 0.0 }
   0xd   :  { %53 = vst [vmem:[%s134_s4] sm:$0xff] %v49_v25 }
   0xe   :  { %54 = vst [vmem:[%s134_s4 + $0x8] sm:$0xff] %v50_v27 }
   0xf   :  { %55 = vst [vmem:[%s134_s4 + $0x10] sm:$0xff] %v51_v28 }
  0x10   :  { %56 = vst [vmem:[%s134_s4 + $0x18] sm:$0xff] %v52_v29 }

// kernel: resnet_small_forward.41
= control target key start
LH: loop header
LB: loop body
LE: loop exit
PB: predicated region body
PF: predicated region fallthrough
CT: control target
= control target key end

     0   :  { %v431_v48 = vmov 16.0   ;;  %s872_s0 = inlined_call_operand.vmem [shape: f32[2,16,128], index: 0, kind: input, shape index: {}]   ;;  %s873_s1 = inlined_call_operand.vmem [shape: f32[128,1000], index: 1, kind: input, shape index: {}]   ;;  %s874_s2 = inlined_call_operand.vmem [shape: f32[1,1000], index: 2, kind: input, shape index: {}]   ;;  %s875_s3 = inlined_call_operand.hbm [shape: f32[2,1000], index: 3, kind: output, shape index: {}]  }
   0x1   :  { %v164_v0 = vld [vmem:[%s873_s1 + $0x3d0] sm:$0xff]  ;;  %v165_v1 = vld [vmem:[%s873_s1 + $0x3d8] sm:$0xff]  ;;  %v163_v6 = vld [vmem:[%s873_s1 + $0x3c8] sm:$0xff]  ;;  %403 = vrcp.f32 %v431_v48 }
   0x2   :  { %v156_v2 = vld [vmem:[%s873_s1 + $0x390] sm:$0xff]  ;;  %233 = vmatpush.msra.mxu2 %v164_v0  ;;  %253 = vmatpush.msra.mxu3 %v165_v1  ;;  %v157_v3 = vld [vmem:[%s873_s1 + $0x398] sm:$0xff]  ;;  %v162_v7 = vld [vmem:[%s873_s1 + $0x3c0] sm:$0xff] }
   0x3   :  { %v148_v4 = vld [vmem:[%s873_s1 + $0x350] sm:$0xff]  ;;  %v149_v5 = vld [vmem:[%s873_s1 + $0x358] sm:$0xff]  ;;  %v155_v8 = vld [vmem:[%s873_s1 + $0x388] sm:$0xff]  ;;  %213 = vmatpush.msra.mxu1 %v163_v6  ;;  %193 = vmatpush.msra.mxu0 %v162_v7 }
   0x4   :  { %234 = vmatpush.msra.mxu2 %v156_v2  ;;  %254 = vmatpush.msra.mxu3 %v157_v3  ;;  %v140_v9 = vld [vmem:[%s873_s1 + $0x310] sm:$0xff]  ;;  %v141_v10 = vld [vmem:[%s873_s1 + $0x318] sm:$0xff]  ;;  %v154_v11 = vld [vmem:[%s873_s1 + $0x380] sm:$0xff] }
   0x5   :  { %v147_v12 = vld [vmem:[%s873_s1 + $0x348] sm:$0xff]  ;;  %v146_v13 = vld [vmem:[%s873_s1 + $0x340] sm:$0xff]  ;;  %214 = vmatpush.msra.mxu1 %v155_v8  ;;  %v132_v14 = vld [vmem:[%s873_s1 + $0x2d0] sm:$0xff]  ;;  %194 = vmatpush.msra.mxu0 %v154_v11 }
   0x6   :  { %235 = vmatpush.msra.mxu2 %v148_v4  ;;  %255 = vmatpush.msra.mxu3 %v149_v5  ;;  %v133_v15 = vld [vmem:[%s873_s1 + $0x2d8] sm:$0xff]  ;;  %v139_v16 = vld [vmem:[%s873_s1 + $0x308] sm:$0xff]  ;;  %v138_v17 = vld [vmem:[%s873_s1 + $0x300] sm:$0xff] }
   0x7   :  { %215 = vmatpush.msra.mxu1 %v147_v12  ;;  %v124_v18 = vld [vmem:[%s873_s1 + $0x290] sm:$0xff]  ;;  %v125_v19 = vld [vmem:[%s873_s1 + $0x298] sm:$0xff]  ;;  %195 = vmatpush.msra.mxu0 %v146_v13  ;;  %v131_v20 = vld [vmem:[%s873_s1 + $0x2c8] sm:$0xff]  ;;  %v627_v59 = vpop.eup %403 }
   0x8   :  { %236 = vmatpush.msra.mxu2 %v140_v9  ;;  %256 = vmatpush.msra.mxu3 %v141_v10  ;;  %v130_v21 = vld [vmem:[%s873_s1 + $0x2c0] sm:$0xff]  ;;  %v116_v22 = vld [vmem:[%s873_s1 + $0x250] sm:$0xff]  ;;  %v117_v23 = vld [vmem:[%s873_s1 + $0x258] sm:$0xff]  ;;  %v34_v4 = vmul.f32 16.0, %v627_v59  ;;  %vm38_vm0 = vweird.f32 %v627_v59 }
   0x9   :  { %216 = vmatpush.msra.mxu1 %v139_v16  ;;  %196 = vmatpush.msra.mxu0 %v138_v17  ;;  %v123_v24 = vld [vmem:[%s873_s1 + $0x288] sm:$0xff]  ;;  %v122_v25 = vld [vmem:[%s873_s1 + $0x280] sm:$0xff]  ;;  %v108_v26 = vld [vmem:[%s873_s1 + $0x210] sm:$0xff] }
   0xa   :  { %237 = vmatpush.msra.mxu2 %v132_v14  ;;  %257 = vmatpush.msra.mxu3 %v133_v15  ;;  %v109_v27 = vld [vmem:[%s873_s1 + $0x218] sm:$0xff]  ;;  %v115_v28 = vld [vmem:[%s873_s1 + $0x248] sm:$0xff]  ;;  %v114_v29 = vld [vmem:[%s873_s1 + $0x240] sm:$0xff]  ;;  %v35_v16 = vsub.f32 1.0, %v34_v4 }
   0xb   :  { %217 = vmatpush.msra.mxu1 %v131_v20  ;;  %197 = vmatpush.msra.mxu0 %v130_v21  ;;  %v100_v30 = vld [vmem:[%s873_s1 + $0x1d0] sm:$0xff]  ;;  %v101_v31 = vld [vmem:[%s873_s1 + $0x1d8] sm:$0xff]  ;;  %v107_v32 = vld [vmem:[%s873_s1 + $0x208] sm:$0xff] }
   0xc   :  { %238 = vmatpush.msra.mxu2 %v124_v18  ;;  %258 = vmatpush.msra.mxu3 %v125_v19  ;;  %v106_v33 = vld [vmem:[%s873_s1 + $0x200] sm:$0xff]  ;;  %v92_v34 = vld [vmem:[%s873_s1 + $0x190] sm:$0xff]  ;;  %v93_v35 = vld [vmem:[%s873_s1 + $0x198] sm:$0xff] }
   0xd   :  { %218 = vmatpush.msra.mxu1 %v123_v24  ;;  %198 = vmatpush.msra.mxu0 %v122_v25  ;;  %v99_v36 = vld [vmem:[%s873_s1 + $0x1c8] sm:$0xff]  ;;  %v98_v37 = vld [vmem:[%s873_s1 + $0x1c0] sm:$0xff]  ;;  %v84_v38 = vld [vmem:[%s873_s1 + $0x150] sm:$0xff] }
   0xe   :  { %239 = vmatpush.msra.mxu2 %v116_v22  ;;  %259 = vmatpush.msra.mxu3 %v117_v23  ;;  %v85_v39 = vld [vmem:[%s873_s1 + $0x158] sm:$0xff]  ;;  %v91_v40 = vld [vmem:[%s873_s1 + $0x188] sm:$0xff]  ;;  %v90_v41 = vld [vmem:[%s873_s1 + $0x180] sm:$0xff] }
   0xf   :  { %219 = vmatpush.msra.mxu1 %v115_v28  ;;  %199 = vmatpush.msra.mxu0 %v114_v29  ;;  %v76_v42 = vld [vmem:[%s873_s1 + $0x110] sm:$0xff]  ;;  %v77_v43 = vld [vmem:[%s873_s1 + $0x118] sm:$0xff]  ;;  %v83_v44 = vld [vmem:[%s873_s1 + $0x148] sm:$0xff] }
  0x10   :  { %240 = vmatpush.msra.mxu2 %v108_v26  ;;  %260 = vmatpush.msra.mxu3 %v109_v27  ;;  %v82_v45 = vld [vmem:[%s873_s1 + $0x140] sm:$0xff]  ;;  %v68_v46 = vld [vmem:[%s873_s1 + $0xd0] sm:$0xff]  ;;  %v69_v47 = vld [vmem:[%s873_s1 + $0xd8] sm:$0xff] }
  0x11   :  { %220 = vmatpush.msra.mxu1 %v107_v32  ;;  %200 = vmatpush.msra.mxu0 %v106_v33  ;;  %v75_v49 = vld [vmem:[%s873_s1 + $0x108] sm:$0xff]  ;;  %v74_v50 = vld [vmem:[%s873_s1 + $0x100] sm:$0xff]  ;;  %v60_v51 = vld [vmem:[%s873_s1 + $0x90] sm:$0xff] }
  0x12   :  { %241 = vmatpush.msra.mxu2 %v100_v30  ;;  %261 = vmatpush.msra.mxu3 %v101_v31  ;;  %v61_v52 = vld [vmem:[%s873_s1 + $0x98] sm:$0xff]  ;;  %v67_v53 = vld [vmem:[%s873_s1 + $0xc8] sm:$0xff]  ;;  %v66_v54 = vld [vmem:[%s873_s1 + $0xc0] sm:$0xff]  ;;  %v36_v30 = vmul.f32 %v627_v59, %v35_v16 }
  0x13   :  { %221 = vmatpush.msra.mxu1 %v99_v36  ;;  %201 = vmatpush.msra.mxu0 %v98_v37  ;;  %v52_v55 = vld [vmem:[%s873_s1 + $0x50] sm:$0xff]  ;;  %v53_v56 = vld [vmem:[%s873_s1 + $0x58] sm:$0xff]  ;;  %v59_v57 = vld [vmem:[%s873_s1 + $0x88] sm:$0xff] }
  0x14   :  { %242 = vmatpush.msra.mxu2 %v92_v34  ;;  %262 = vmatpush.msra.mxu3 %v93_v35  ;;  %v58_v58 = vld [vmem:[%s873_s1 + $0x80] sm:$0xff]  ;;  %v44_v60 = vld [vmem:[%s873_s1 + $0x10] sm:$0xff]  ;;  %v45_v61 = vld [vmem:[%s873_s1 + $0x18] sm:$0xff] }
  0x15   :  { %222 = vmatpush.msra.mxu1 %v91_v40  ;;  %202 = vmatpush.msra.mxu0 %v90_v41  ;;  %v168_v62 = vld [vmem:[%s873_s1 + $0x3f0] sm:$0xff]  ;;  %v169_v63 = vld [vmem:[%s873_s1 + $0x3f8] sm:$0xff]  ;;  %v51_v0 = vld [vmem:[%s873_s1 + $0x48] sm:$0xff] }
  0x16   :  { %243 = vmatpush.msra.mxu2 %v84_v38  ;;  %263 = vmatpush.msra.mxu3 %v85_v39  ;;  %v50_v1 = vld [vmem:[%s873_s1 + $0x40] sm:$0xff]  ;;  %v160_v2 = vld [vmem:[%s873_s1 + $0x3b0] sm:$0xff]  ;;  %v161_v3 = vld [vmem:[%s873_s1 + $0x3b8] sm:$0xff] }
  0x17   :  { %223 = vmatpush.msra.mxu1 %v83_v44  ;;  %203 = vmatpush.msra.mxu0 %v82_v45  ;;  %v43_v5 = vld [vmem:[%s873_s1 + $0x8] sm:$0xff]  ;;  %v42_v6 = vld [vmem:[%s873_s1] sm:$0xff]  ;;  %v152_v7 = vld [vmem:[%s873_s1 + $0x370] sm:$0xff] }
  0x18   :  { %244 = vmatpush.msra.mxu2 %v76_v42  ;;  %264 = vmatpush.msra.mxu3 %v77_v43  ;;  %v153_v8 = vld [vmem:[%s873_s1 + $0x378] sm:$0xff]  ;;  %v167_v9 = vld [vmem:[%s873_s1 + $0x3e8] sm:$0xff]  ;;  %v144_v10 = vld [vmem:[%s873_s1 + $0x330] sm:$0xff]  ;;  %v37_v43 = vadd.f32 %v627_v59, %v36_v30 }
  0x19   :  { %224 = vmatpush.msra.mxu1 %v75_v49  ;;  %204 = vmatpush.msra.mxu0 %v74_v50  ;;  %v145_v11 = vld [vmem:[%s873_s1 + $0x338] sm:$0xff]  ;;  %v166_v12 = vld [vmem:[%s873_s1 + $0x3e0] sm:$0xff]  ;;  %v16_v14 = vld [vmem:[%s872_s0 + $0x8] sm:$0xff] }
  0x1a   :  { %245 = vmatpush.msra.mxu2 %v68_v46  ;;  %265 = vmatpush.msra.mxu3 %v69_v47  ;;  %v15_v13 = vld [vmem:[%s872_s0] sm:$0xff]  ;;  %v17_v15 = vld [vmem:[%s872_s0 + $0x10] sm:$0xff]  ;;  %v159_v17 = vld [vmem:[%s873_s1 + $0x3a8] sm:$0xff] }
  0x1b   :  { %225 = vmatpush.msra.mxu1 %v67_v53  ;;  %205 = vmatpush.msra.mxu0 %v66_v54  ;;  %v158_v18 = vld [vmem:[%s873_s1 + $0x3a0] sm:$0xff]  ;;  %v18_v19 = vld [vmem:[%s872_s0 + $0x18] sm:$0xff]  ;;  %v19_v20 = vadd.f32 %v16_v14, %v15_v13  ;;  %v136_v21 = vld [vmem:[%s873_s1 + $0x2f0] sm:$0xff] }
  0x1c   :  { %246 = vmatpush.msra.mxu2 %v60_v51  ;;  %266 = vmatpush.msra.mxu3 %v61_v52  ;;  %v137_v22 = vld [vmem:[%s873_s1 + $0x2f8] sm:$0xff]  ;;  %v26_v23 = vadd.f32 %v18_v19, %v17_v15  ;;  %v151_v24 = vld [vmem:[%s873_s1 + $0x368] sm:$0xff]  ;;  %v150_v25 = vld [vmem:[%s873_s1 + $0x360] sm:$0xff] }
  0x1d   :  { %226 = vmatpush.msra.mxu1 %v59_v57  ;;  %206 = vmatpush.msra.mxu0 %v58_v58  ;;  %v20_v26 = vrot.slane %v19_v20, 4  ;;  %v128_v27 = vld [vmem:[%s873_s1 + $0x2b0] sm:$0xff]  ;;  %v129_v28 = vld [vmem:[%s873_s1 + $0x2b8] sm:$0xff]  ;;  %v143_v31 = vld [vmem:[%s873_s1 + $0x328] sm:$0xff] }
  0x1e   :  { %247 = vmatpush.msra.mxu2 %v52_v55  ;;  %267 = vmatpush.msra.mxu3 %v53_v56  ;;  %v27_v29 = vrot.slane %v26_v23, 4  ;;  %v142_v32 = vld [vmem:[%s873_s1 + $0x320] sm:$0xff]  ;;  %v120_v34 = vld [vmem:[%s873_s1 + $0x270] sm:$0xff]  ;;  %v121_v35 = vld [vmem:[%s873_s1 + $0x278] sm:$0xff] }
  0x1f   :  { %227 = vmatpush.msra.mxu1 %v51_v0  ;;  %207 = vmatpush.msra.mxu0 %v50_v1  ;;  %v21_v33 = vadd.f32 %v20_v26, %v19_v20  ;;  %v135_v37 = vld [vmem:[%s873_s1 + $0x2e8] sm:$0xff]  ;;  %v134_v38 = vld [vmem:[%s873_s1 + $0x2e0] sm:$0xff]  ;;  %v112_v40 = vld [vmem:[%s873_s1 + $0x230] sm:$0xff] }
  0x20   :  { %248 = vmatpush.msra.mxu2 %v44_v60  ;;  %268 = vmatpush.msra.mxu3 %v45_v61  ;;  %v28_v36 = vadd.f32 %v27_v29, %v26_v23  ;;  %v113_v41 = vld [vmem:[%s873_s1 + $0x238] sm:$0xff]  ;;  %v127_v44 = vld [vmem:[%s873_s1 + $0x2a8] sm:$0xff]  ;;  %v126_v45 = vld [vmem:[%s873_s1 + $0x2a0] sm:$0xff] }
  0x21   :  { %228 = vmatpush.msra.mxu1 %v43_v5  ;;  %208 = vmatpush.msra.mxu0 %v42_v6  ;;  %v22_v39 = vrot.slane %v21_v33, 2 }
  0x22   :  { %313 = vmatpush.msrb.mxu2 %v168_v62  ;;  %333 = vmatpush.msrb.mxu3 %v169_v63  ;;  %v29_v42 = vrot.slane %v28_v36, 2 }
  0x23   :  { %293 = vmatpush.msrb.mxu1 %v167_v9  ;;  %273 = vmatpush.msrb.mxu0 %v166_v12  ;;  %v23_v46 = vadd.f32 %v22_v39, %v21_v33 }
  0x24   :  { %314 = vmatpush.msrb.mxu2 %v160_v2  ;;  %334 = vmatpush.msrb.mxu3 %v161_v3 }
  0x25   :  { %294 = vmatpush.msrb.mxu1 %v159_v17  ;;  %274 = vmatpush.msrb.mxu0 %v158_v18 }
  0x26   :  { %315 = vmatpush.msrb.mxu2 %v152_v7  ;;  %335 = vmatpush.msrb.mxu3 %v153_v8 }
  0x27   :  { %295 = vmatpush.msrb.mxu1 %v151_v24  ;;  %275 = vmatpush.msrb.mxu0 %v150_v25 }
  0x28   :  { %316 = vmatpush.msrb.mxu2 %v144_v10  ;;  %336 = vmatpush.msrb.mxu3 %v145_v11 }
  0x29   :  { %296 = vmatpush.msrb.mxu1 %v143_v31  ;;  %276 = vmatpush.msrb.mxu0 %v142_v32 }
  0x2a   :  { %317 = vmatpush.msrb.mxu2 %v136_v21  ;;  %337 = vmatpush.msrb.mxu3 %v137_v22 }
  0x2c   :  { %318 = vmatpush.msrb.mxu2 %v128_v27  ;;  %338 = vmatpush.msrb.mxu3 %v129_v28 }
  0x2e   :  { %319 = vmatpush.msrb.mxu2 %v120_v34  ;;  %339 = vmatpush.msrb.mxu3 %v121_v35 }
  0x2f   :  { %8 = vsyncpa [#allocation3], 0  ;;  %297 = vmatpush.msrb.mxu1 %v135_v37  ;;  %277 = vmatpush.msrb.mxu0 %v134_v38  ;;  %v104_v47 = vld [vmem:[%s873_s1 + $0x1f0] sm:$0xff]  ;;  %v105_v48 = vld [vmem:[%s873_s1 + $0x1f8] sm:$0xff]  ;;  %v30_v49 = vadd.f32 %v29_v42, %v28_v36  ;;  %v24_v52 = vrot.slane %v23_v46, 1  ;;  %v39_v56 = vsel %vm38_vm0, %v627_v59, %v37_v43  ;;  %vm190_vm1 = vcmask 1041409  }
  0x30   :  { %320 = vmatpush.msrb.mxu2 %v112_v40  ;;  %340 = vmatpush.msrb.mxu3 %v113_v41  ;;  %v119_v50 = vld [vmem:[%s873_s1 + $0x268] sm:$0xff]  ;;  %v118_v51 = vld [vmem:[%s873_s1 + $0x260] sm:$0xff]  ;;  %v96_v53 = vld [vmem:[%s873_s1 + $0x1b0] sm:$0xff]  ;;  %vm369_vm2 = vcmask 1045508   ;;  %vm367_vm3 = vcmask 1041408   ;;  %vm371_vm4 = vcmask 1043456  }
  0x31   :  { %298 = vmatpush.msrb.mxu1 %v127_v44  ;;  %278 = vmatpush.msrb.mxu0 %v126_v45  ;;  %v97_v54 = vld [vmem:[%s873_s1 + $0x1b8] sm:$0xff]  ;;  %v31_v55 = vrot.slane %v30_v49, 1  ;;  %v111_v57 = vld [vmem:[%s873_s1 + $0x228] sm:$0xff]  ;;  %v110_v58 = vld [vmem:[%s873_s1 + $0x220] sm:$0xff]  ;;  %v25_v60 = vadd.f32 %v24_v52, %v23_v46  ;;  %vm379_vm5 = vcmask 1043458   ;;  %vm382_vm8 = vcmask 850950  }
  0x32   :  { %321 = vmatpush.msrb.mxu2 %v104_v47  ;;  %341 = vmatpush.msrb.mxu3 %v105_v48  ;;  %v88_v61 = vld [vmem:[%s873_s1 + $0x170] sm:$0xff]  ;;  %v89_v59 = vld [vmem:[%s873_s1 + $0x178] sm:$0xff]  ;;  %v103_v63 = vld [vmem:[%s873_s1 + $0x1e8] sm:$0xff]  ;;  %s392_s6 = sshll.u32 %s875_s3, 4  ;;  %s393_s6 = int_to_ptr.hbm [resolvable:$true] %s392_s6 }
  0x33   :  { %299 = vmatpush.msrb.mxu1 %v119_v50  ;;  %279 = vmatpush.msrb.mxu0 %v118_v51  ;;  %v32_v62 = vadd.f32 %v31_v55, %v30_v49  ;;  %v40_v0 = vmul.f32 %v39_v56, %v25_v60  ;;  %v102_v1 = vld [vmem:[%s873_s1 + $0x1e0] sm:$0xff]  ;;  %v80_v2 = vld [vmem:[%s873_s1 + $0x130] sm:$0xff]  ;;  %v81_v3 = vld [vmem:[%s873_s1 + $0x138] sm:$0xff] }
  0x34   :  { %322 = vmatpush.msrb.mxu2 %v96_v53  ;;  %342 = vmatpush.msrb.mxu3 %v97_v54  ;;  %v95_v6 = vld [vmem:[%s873_s1 + $0x1a8] sm:$0xff]  ;;  %v72_v7 = vld [vmem:[%s873_s1 + $0xf0] sm:$0xff]  ;;  %v73_v8 = vld [vmem:[%s873_s1 + $0xf8] sm:$0xff] }
  0x35   :  { %300 = vmatpush.msrb.mxu1 %v111_v57  ;;  %280 = vmatpush.msrb.mxu0 %v110_v58  ;;  %v41_v4 = vmul.f32 %v39_v56, %v32_v62  ;;  %v94_v9 = vld [vmem:[%s873_s1 + $0x1a0] sm:$0xff]  ;;  %v87_v10 = vld [vmem:[%s873_s1 + $0x168] sm:$0xff]  ;;  %v64_v11 = vld [vmem:[%s873_s1 + $0xb0] sm:$0xff] }
  0x36   :  { %323 = vmatpush.msrb.mxu2 %v88_v61  ;;  %343 = vmatpush.msrb.mxu3 %v89_v59  ;;  %v65_v12 = vld [vmem:[%s873_s1 + $0xb8] sm:$0xff]  ;;  %v86_v13 = vld [vmem:[%s873_s1 + $0x160] sm:$0xff]  ;;  %v79_v14 = vld [vmem:[%s873_s1 + $0x128] sm:$0xff] }
  0x37   :  { %301 = vmatpush.msrb.mxu1 %v103_v63  ;;  %v191_v5 = vsel %vm190_vm1, %v41_v4, %v40_v0  ;;  %281 = vmatpush.msrb.mxu0 %v102_v1  ;;  %v56_v15 = vld [vmem:[%s873_s1 + $0x70] sm:$0xff]  ;;  %v57_v16 = vld [vmem:[%s873_s1 + $0x78] sm:$0xff]  ;;  %v78_v17 = vld [vmem:[%s873_s1 + $0x120] sm:$0xff] }
  0x38   :  { %324 = vmatpush.msrb.mxu2 %v80_v2  ;;  %344 = vmatpush.msrb.mxu3 %v81_v3  ;;  %v71_v18 = vld [vmem:[%s873_s1 + $0xe8] sm:$0xff]  ;;  %v48_v19 = vld [vmem:[%s873_s1 + $0x30] sm:$0xff]  ;;  %v49_v20 = vld [vmem:[%s873_s1 + $0x38] sm:$0xff] }
  0x39   :  { %249 = vmatmul.f32.vlgmr.msra.gmra.mxu2 %v191_v5  ;;  %269 = vmatmul.f32.vlgmr.msra.gmra.mxu3 %v191_v5  ;;  %v70_v21 = vld [vmem:[%s873_s1 + $0xe0] sm:$0xff]  ;;  %v63_v22 = vld [vmem:[%s873_s1 + $0xa8] sm:$0xff]  ;;  %vm380_vm6 = vmor %vm379_vm5, %vm367_vm3 }
  0x3a   :  { %302 = vmatpush.msrb.mxu1 %v95_v6  ;;  %325 = vmatpush.msrb.mxu2 %v72_v7  ;;  %v62_v23 = vld [vmem:[%s873_s1 + $0xa0] sm:$0xff]  ;;  %v55_v24 = vld [vmem:[%s873_s1 + $0x68] sm:$0xff]  ;;  %vm381_vm7 = vmor %vm369_vm2, %vm380_vm6 }
  0x3b   :  { %345 = vmatpush.msrb.mxu3 %v73_v8  ;;  %282 = vmatpush.msrb.mxu0 %v94_v9  ;;  %v54_v25 = vld [vmem:[%s873_s1 + $0x60] sm:$0xff]  ;;  %v47_v26 = vld [vmem:[%s873_s1 + $0x28] sm:$0xff]  ;;  %vm383_vm9 = vmor %vm382_vm8, %vm381_vm7 }
  0x3c   :  { %303 = vmatpush.msrb.mxu1 %v87_v10  ;;  %326 = vmatpush.msrb.mxu2 %v64_v11  ;;  %v46_v27 = vld [vmem:[%s873_s1 + $0x20] sm:$0xff]  ;;  %s432_s1 = smov [#allocation2]  }
  0x3d   :  { %346 = vmatpush.msrb.mxu3 %v65_v12  ;;  %283 = vmatpush.msrb.mxu0 %v86_v13  ;;  %v170_v28 = vld [vmem:[%s874_s2] sm:$0xff]  ;;  %s390_s2 = sshll.u32 %s432_s1, 4  ;;  %s391_s2 = int_to_ptr.vmem [resolvable:$true] %s390_s2 }
  0x3e   :  { %304 = vmatpush.msrb.mxu1 %v79_v14  ;;  %327 = vmatpush.msrb.mxu2 %v56_v15  ;;  %v173_v29 = vperm.slane %v170_v28, 1  ;;  %v174_v30 = vperm.slane %v170_v28, 2  ;;  %v175_v31 = vperm.slane %v170_v28, 3  ;;  %v172_v34 = vperm.slane %v170_v28, 0 }
  0x3f   :  { %347 = vmatpush.msrb.mxu3 %v57_v16  ;;  %229 = vmatmul.f32.vlgmr.msra.gmra.mxu1 %v191_v5  ;;  %v178_v46 = vperm.slane %v170_v28, 6  ;;  %v177_v47 = vperm.slane %v170_v28, 5  ;;  %v179_v48 = vperm.slane %v170_v28, 7  ;;  %v176_v50 = vperm.slane %v170_v28, 4 }
  0x40   :  { %284 = vmatpush.msrb.mxu0 %v78_v17  ;;  %305 = vmatpush.msrb.mxu1 %v71_v18 }
  0x41   :  { %328 = vmatpush.msrb.mxu2 %v48_v19  ;;  %348 = vmatpush.msrb.mxu3 %v49_v20 }
  0x42   :  { %209 = vmatmul.f32.vlgmr.msra.gmra.mxu0 %v191_v5  ;;  %329 = vmatmul.f32.vlgmr.msrb.gmra.mxu2 %v191_v5 }
  0x43   :  { %349 = vmatmul.f32.vlgmr.msrb.gmra.mxu3 %v191_v5  ;;  %285 = vmatpush.msrb.mxu0 %v70_v21 }
  0x44   :  { %306 = vmatpush.msrb.mxu1 %v63_v22 }
  0x45   :  { %286 = vmatpush.msrb.mxu0 %v62_v23 }
  0x46   :  { %307 = vmatpush.msrb.mxu1 %v55_v24 }
  0x47   :  { %287 = vmatpush.msrb.mxu0 %v54_v25 }
  0x48   :  { %308 = vmatpush.msrb.mxu1 %v47_v26 }
  0x49   :  { %309 = vmatmul.f32.vlgmr.msrb.gmra.mxu1 %v191_v5  ;;  %288 = vmatpush.msrb.mxu0 %v46_v27 }
  0x4a   :  { %289 = vmatmul.f32.vlgmr.msrb.gmra.mxu0 %v191_v5 }
  0xbc   :  { %v230_v32 = vpop.f32.mrf.mxu1  ;;  %v250_v33 = vpop.f32.mrf.mxu2 }
  0xbd   :  { %v231_v35 = vadd.f32 %v230_v32, %v173_v29  ;;  %v251_v36 = vadd.f32 %v250_v33, %v174_v30  ;;  %v270_v37 = vpop.f32.mrf.mxu3 }
  0xbe   :  { %v271_v38 = vadd.f32 %v270_v37, %v175_v31 }
  0xbf   :  { %v361_v39 = vrot.slane %v231_v35, 6  ;;  %v362_v40 = vrot.slane %v251_v36, 4  ;;  %v210_v41 = vpop.f32.mrf.mxu0 }
  0xc0   :  { %v363_v42 = vrot.slane %v271_v38, 2  ;;  %v211_v43 = vadd.f32 %v210_v41, %v172_v34 }
  0xc2   :  { %v370_v44 = vsel %vm369_vm2, %v362_v40, %v363_v42  ;;  %v368_v45 = vsel %vm367_vm3, %v211_v43, %v361_v39 }
  0xc3   :  { %v372_v49 = vsel %vm371_vm4, %v368_v45, %v370_v44 }
  0xc4   :  { %378 = vst [vmem:[#allocation2] sm:$0xff] %v372_v49 }
  0xc5   :  { %v330_v51 = vpop.f32.mrf.mxu2 }
  0xc6   :  { %v310_v52 = vpop.f32.mrf.mxu1  ;;  %v331_v53 = vadd.f32 %v330_v51, %v178_v46  ;;  %v350_v54 = vpop.f32.mrf.mxu3 }
  0xc7   :  { %v311_v55 = vadd.f32 %v310_v52, %v177_v47  ;;  %v351_v56 = vadd.f32 %v350_v54, %v179_v48  ;;  %v290_v57 = vpop.f32.mrf.mxu0 }
  0xc8   :  { %v365_v58 = vrot.slane %v331_v53, 4  ;;  %v291_v60 = vadd.f32 %v290_v57, %v176_v50 }
  0xc9   :  { %v364_v61 = vrot.slane %v311_v55, 6  ;;  %v366_v59 = vrot.slane %v351_v56, 2 }
  0xcb   :  { %v374_v62 = vsel %vm369_vm2, %v365_v58, %v366_v59  ;;  %v373_v63 = vsel %vm367_vm3, %v291_v60, %v364_v61 }
  0xcc   :  { %v375_v0 = vsel %vm371_vm4, %v373_v63, %v374_v62 }
  0xcd   :  { %384 = vst.msk [vmem:[#allocation2 + $0x8] sm:$0xff] %vm383_vm9, %v375_v0 }
  0xce   :  { %395 = dma.vmem_to_hbm [thread:$0]  %s391_s2, 256, %s393_s6, [#allocation3]  }
  0xcf   :  { %429 = dma.done.wait [#allocation3], 256  }
  0xd0   :  { %430 = vsyncadd [#allocation3], 4294967040 }
  0xd1   :  { %400 = vsyncpa [#allocation3], 1 }

</bundles_post_ra>
